<compile_context>
chip_gen: v5e
topology: v5e:2x2
jax: 0.10.0
libtpu: 0.0.40
codegen_flags: <defaults>
</compile_context>

<pallas_src>
import functools
import math

import jax
import jax.numpy as jnp
from jax.experimental import pallas as pl
from jax.experimental.pallas import tpu as pltpu

_BN_EPS = 1e-5


# ----------------------------------------------------------------------------
# Pallas kernel: fused 3x3 conv (im2col folded in-kernel) + bias + ReLU
# ----------------------------------------------------------------------------
def _conv3x3_bn_relu_kernel(x_ref, w_ref, b_ref, o_ref, *, H, W, Cin, Cout):
    """One image per grid step.

    x_ref: (1, H+2, W+2, Cin)  bf16  spatially padded activation
    w_ref: (3, 3, Cin, Cout)   bf16  BN-folded weights (resident across grid)
    b_ref: (1, Cout)           f32   BN-folded bias
    o_ref: (1, H, W, Cout)     f32
    """
    # Initialize the accumulator with the broadcast bias (saves the epilogue
    # add); hoisted out of the tap loop.
    acc = jnp.broadcast_to(b_ref[...].astype(jnp.float32), (H * W, Cout))

    # 9-tap accumulation: im2col never touches HBM.  dy/dx are Python ints so
    # every tap is a static VMEM slice feeding a bf16 MXU matmul with f32
    # accumulation.
    for dy in range(3):
        for dx in range(3):
            tap = x_ref[0, dy:dy + H, dx:dx + W, :].reshape(H * W, Cin)
            acc = acc + jnp.dot(tap, w_ref[dy, dx, :, :],
                                preferred_element_type=jnp.float32)

    acc = jnp.maximum(acc, 0.0)                       # fused ReLU
    o_ref[...] = acc.reshape(1, H, W, Cout).astype(o_ref.dtype)


def conv3x3_bn_relu(x, w, b, bn):
    """3x3 conv (padding=1) + folded BatchNorm + ReLU.

    x: (N, H, W, Cin) f32 NHWC; w: (3, 3, Cin, Cout); b: (Cout,);
    bn: (gamma, beta, running_mean, running_var).
    """
    gamma, beta, mean, var = bn
    scale = gamma / jnp.sqrt(var + _BN_EPS)
    wf = (w * scale[None, None, None, :]).astype(jnp.bfloat16)   # bf16 operand
    bf = ((b - mean) * scale + beta).astype(jnp.float32).reshape(1, -1)

    n, h, wd, cin = x.shape
    cout = w.shape[-1]

    # Single spatial pad (the only input-side HBM copy); activation in bf16
    # halves the DMA bytes.
    xp = jnp.pad(x, ((0, 0), (1, 1), (1, 1), (0, 0))).astype(jnp.bfloat16)

    kernel = functools.partial(_conv3x3_bn_relu_kernel,
                               H=h, W=wd, Cin=cin, Cout=cout)

    return pl.pallas_call(
        kernel,
        out_shape=jax.ShapeDtypeStruct((n, h, wd, cout), jnp.float32),
        grid_spec=pltpu.PrefetchScalarGridSpec(
            num_scalar_prefetch=0,
            grid=(n,),                                 # one image per step
            in_specs=[
                pl.BlockSpec((1, h + 2, wd + 2, cin), lambda i: (i, 0, 0, 0)),
                pl.BlockSpec((3, 3, cin, cout), lambda i: (0, 0, 0, 0)),
                pl.BlockSpec((1, cout), lambda i: (0, 0)),
            ],
            out_specs=pl.BlockSpec((1, h, wd, cout), lambda i: (i, 0, 0, 0)),
        ),
        compiler_params=pltpu.CompilerParams(
            dimension_semantics=("parallel",),          # >=2 tiles -> both v7x TCs
            vmem_limit_bytes=32 * 1024 * 1024,
        ),
    )(xp, wf, bf)


# ----------------------------------------------------------------------------
# JAX glue matching the PyTorch `Up` forward
# ----------------------------------------------------------------------------
def double_conv(x, p):
    x = conv3x3_bn_relu(x, p["w1"], p["b1"], p["bn1"])
    x = conv3x3_bn_relu(x, p["w2"], p["b2"], p["bn2"])
    return x


def _bilinear_idx(in_size, out_size):
    if out_size == 1:
        src = jnp.zeros((1,), jnp.float32)
    else:
        src = jnp.arange(out_size, dtype=jnp.float32) * (
            (in_size - 1) / (out_size - 1))
    i0 = jnp.clip(jnp.floor(src).astype(jnp.int32), 0, in_size - 1)
    i1 = jnp.minimum(i0 + 1, in_size - 1)
    w1 = src - i0.astype(jnp.float32)
    return i0, i1, w1


def bilinear_resize(x, out_h, out_w):
    """align_corners=True bilinear resize (matches nn.Upsample(..., align_corners=True))."""
    _, h, w, _ = x.shape
    h0, h1, wh = _bilinear_idx(h, out_h)
    w0, w1, ww = _bilinear_idx(w, out_w)
    xa = jnp.take(x, h0, axis=1)
    xb = jnp.take(x, h1, axis=1)
    xh = xa * (1.0 - wh)[None, :, None, None] + xb * wh[None, :, None, None]
    ya = jnp.take(xh, w0, axis=2)
    yb = jnp.take(xh, w1, axis=2)
    return ya * (1.0 - ww)[None, None, :, None] + yb * ww[None, None, :, None]


def up_forward(x1_nchw, x2_nchw, params):
    """PyTorch `Up.forward(x1, x2)` with bilinear=True.  NCHW in / NCHW out."""
    x1 = jnp.transpose(x1_nchw, (0, 2, 3, 1))       # NHWC for kernel compute
    x2 = jnp.transpose(x2_nchw, (0, 2, 3, 1))

    _, h, w, _ = x1.shape
    x1 = bilinear_resize(x1, 2 * h, 2 * w)          # Upsample(scale_factor=2)

    diff_y = x2.shape[1] - x1.shape[1]
    diff_x = x2.shape[2] - x1.shape[2]
    x1 = jnp.pad(x1, ((0, 0),
                      (diff_y // 2, diff_y - diff_y // 2),
                      (diff_x // 2, diff_x - diff_x // 2),
                      (0, 0)))

    x = jnp.concatenate([x2, x1], axis=-1)          # torch.cat([x2, x1], dim=1)
    x = double_conv(x, params)
    return jnp.transpose(x, (0, 3, 1, 2))           # back to NCHW


# ----------------------------------------------------------------------------
# Deterministic synthetic parameters (no checkpoint load)
# ----------------------------------------------------------------------------
def init_params(in_channels, out_channels, seed=0):
    keys = iter(jax.random.split(jax.random.PRNGKey(seed), 16))

    def conv_w(shape, fan_in):
        # note: layout is HWIO; real PyTorch (Cout,Cin,3,3) weights would need
        # a transpose when loading checkpoints.
        return (jax.random.normal(next(keys), shape, jnp.float32)
                / math.sqrt(float(fan_in)))

    def bias(n):
        return 0.01 * jax.random.normal(next(keys), (n,), jnp.float32)

    def bn(c):
        gamma = 1.0 + 0.05 * jax.random.normal(next(keys), (c,), jnp.float32)
        beta = 0.01 * jax.random.normal(next(keys), (c,), jnp.float32)
        return (gamma, beta, jnp.zeros((c,), jnp.float32),
                jnp.ones((c,), jnp.float32))

    return dict(
        w1=conv_w((3, 3, in_channels, out_channels), 9 * in_channels),
        b1=bias(out_channels), bn1=bn(out_channels),
        w2=conv_w((3, 3, out_channels, out_channels), 9 * out_channels),
        b2=bias(out_channels), bn2=bn(out_channels),
    )


# ----------------------------------------------------------------------------
if __name__ == "__main__":
    # Up(in_channels=256, out_channels=128, bilinear=True):
    #   x1 = deeper feature map (128 ch, 8x8), x2 = skip connection (128 ch, 16x16)
    in_channels, out_channels = 256, 128
    params = init_params(in_channels, out_channels, seed=0)

    key = jax.random.PRNGKey(0)
    k1, k2 = jax.random.split(key)
    x1 = jax.random.normal(k1, (2, in_channels // 2, 8, 8), jnp.float32)
    x2 = jax.random.normal(k2, (2, in_channels // 2, 16, 16), jnp.float32)

    fwd = jax.jit(up_forward)
    out = fwd(x1, x2, params)
    jax.block_until_ready(out)

    assert out.shape == (2, out_channels, 16, 16), out.shape
    assert out.dtype == jnp.float32
    print("KERNEL_OK")
</pallas_src>

<mosaic_0001>
module attributes {stable_mosaic.version = 11 : i64} {
  func.func @_conv3x3_bn_relu_kernel(%arg0: i32, %arg1: memref<1x18x18x256xbf16, #tpu.memory_space<vmem>>, %arg2: memref<3x3x256x128xbf16, #tpu.memory_space<vmem>>, %arg3: memref<1x128xf32, #tpu.memory_space<vmem>>, %arg4: memref<1x16x16x128xf32, #tpu.memory_space<vmem>>) attributes {dimension_semantics = [#tpu.dimension_semantics<parallel>], iteration_bounds = array<i64: 2>, scalar_prefetch = 0 : i64, scratch_operands = 0 : i64, tpu.core_type = #tpu.core_type<tc>, window_params = [{transform_indices = @transform_0, window_bounds = array<i64: 1, 18, 18, 256>}, {pipeline_mode = #tpu.pipeline_mode<synchronous>, transform_indices = @transform_1, window_bounds = array<i64: 3, 3, 256, 128>}, {pipeline_mode = #tpu.pipeline_mode<synchronous>, transform_indices = @transform_2, window_bounds = array<i64: 1, 128>}, {transform_indices = @transform_3, window_bounds = array<i64: 1, 16, 16, 128>}]} {
    %c0 = arith.constant 0 : index
    %c0_0 = arith.constant 0 : index
    %0 = vector.load %arg3[%c0, %c0_0] : memref<1x128xf32, #tpu.memory_space<vmem>>, vector<1x128xf32>
    %1 = vector.shape_cast %0 : vector<1x128xf32> to vector<1x128xf32>
    %2 = vector.broadcast %1 : vector<1x128xf32> to vector<256x128xf32>
    %c0_1 = arith.constant 0 : index
    %c0_2 = arith.constant 0 : index
    %c0_3 = arith.constant 0 : index
    %c0_4 = arith.constant 0 : index
    %3 = vector.load %arg1[%c0_1, %c0_2, %c0_3, %c0_4] : memref<1x18x18x256xbf16, #tpu.memory_space<vmem>>, vector<1x16x16x256xbf16>
    %4 = vector.shape_cast %3 : vector<1x16x16x256xbf16> to vector<16x16x256xbf16>
    %5 = vector.shape_cast %4 : vector<16x16x256xbf16> to vector<256x256xbf16>
    %c0_5 = arith.constant 0 : index
    %c0_6 = arith.constant 0 : index
    %c0_7 = arith.constant 0 : index
    %c0_8 = arith.constant 0 : index
    %6 = vector.load %arg2[%c0_5, %c0_6, %c0_7, %c0_8] : memref<3x3x256x128xbf16, #tpu.memory_space<vmem>>, vector<1x1x256x128xbf16>
    %7 = vector.shape_cast %6 : vector<1x1x256x128xbf16> to vector<256x128xbf16>
    %cst = arith.constant dense<0.000000e+00> : vector<256x128xf32>
    %8 = tpu.matmul %5, %7, %cst {dimension_numbers = #tpu.dot_dimension_numbers<[1], [0], [0], [1], [0, 0, 1, 1], [], []>} : vector<256x256xbf16>, vector<256x128xbf16>, vector<256x128xf32> -> vector<256x128xf32>
    %9 = arith.addf %2, %8 : vector<256x128xf32>
    %c0_9 = arith.constant 0 : index
    %c0_10 = arith.constant 0 : index
    %c1 = arith.constant 1 : index
    %c0_11 = arith.constant 0 : index
    %10 = vector.load %arg1[%c0_9, %c0_10, %c1, %c0_11] : memref<1x18x18x256xbf16, #tpu.memory_space<vmem>>, vector<1x16x16x256xbf16>
    %11 = vector.shape_cast %10 : vector<1x16x16x256xbf16> to vector<16x16x256xbf16>
    %12 = vector.shape_cast %11 : vector<16x16x256xbf16> to vector<256x256xbf16>
    %c0_12 = arith.constant 0 : index
    %c1_13 = arith.constant 1 : index
    %c0_14 = arith.constant 0 : index
    %c0_15 = arith.constant 0 : index
    %13 = vector.load %arg2[%c0_12, %c1_13, %c0_14, %c0_15] : memref<3x3x256x128xbf16, #tpu.memory_space<vmem>>, vector<1x1x256x128xbf16>
    %14 = vector.shape_cast %13 : vector<1x1x256x128xbf16> to vector<256x128xbf16>
    %cst_16 = arith.constant dense<0.000000e+00> : vector<256x128xf32>
    %15 = tpu.matmul %12, %14, %cst_16 {dimension_numbers = #tpu.dot_dimension_numbers<[1], [0], [0], [1], [0, 0, 1, 1], [], []>} : vector<256x256xbf16>, vector<256x128xbf16>, vector<256x128xf32> -> vector<256x128xf32>
    %16 = arith.addf %9, %15 : vector<256x128xf32>
    %c0_17 = arith.constant 0 : index
    %c0_18 = arith.constant 0 : index
    %c2 = arith.constant 2 : index
    %c0_19 = arith.constant 0 : index
    %17 = vector.load %arg1[%c0_17, %c0_18, %c2, %c0_19] : memref<1x18x18x256xbf16, #tpu.memory_space<vmem>>, vector<1x16x16x256xbf16>
    %18 = vector.shape_cast %17 : vector<1x16x16x256xbf16> to vector<16x16x256xbf16>
    %19 = vector.shape_cast %18 : vector<16x16x256xbf16> to vector<256x256xbf16>
    %c0_20 = arith.constant 0 : index
    %c2_21 = arith.constant 2 : index
    %c0_22 = arith.constant 0 : index
    %c0_23 = arith.constant 0 : index
    %20 = vector.load %arg2[%c0_20, %c2_21, %c0_22, %c0_23] : memref<3x3x256x128xbf16, #tpu.memory_space<vmem>>, vector<1x1x256x128xbf16>
    %21 = vector.shape_cast %20 : vector<1x1x256x128xbf16> to vector<256x128xbf16>
    %cst_24 = arith.constant dense<0.000000e+00> : vector<256x128xf32>
    %22 = tpu.matmul %19, %21, %cst_24 {dimension_numbers = #tpu.dot_dimension_numbers<[1], [0], [0], [1], [0, 0, 1, 1], [], []>} : vector<256x256xbf16>, vector<256x128xbf16>, vector<256x128xf32> -> vector<256x128xf32>
    %23 = arith.addf %16, %22 : vector<256x128xf32>
    %c0_25 = arith.constant 0 : index
    %c1_26 = arith.constant 1 : index
    %c0_27 = arith.constant 0 : index
    %c0_28 = arith.constant 0 : index
    %24 = vector.load %arg1[%c0_25, %c1_26, %c0_27, %c0_28] : memref<1x18x18x256xbf16, #tpu.memory_space<vmem>>, vector<1x16x16x256xbf16>
    %25 = vector.shape_cast %24 : vector<1x16x16x256xbf16> to vector<16x16x256xbf16>
    %26 = vector.shape_cast %25 : vector<16x16x256xbf16> to vector<256x256xbf16>
    %c1_29 = arith.constant 1 : index
    %c0_30 = arith.constant 0 : index
    %c0_31 = arith.constant 0 : index
    %c0_32 = arith.constant 0 : index
    %27 = vector.load %arg2[%c1_29, %c0_30, %c0_31, %c0_32] : memref<3x3x256x128xbf16, #tpu.memory_space<vmem>>, vector<1x1x256x128xbf16>
    %28 = vector.shape_cast %27 : vector<1x1x256x128xbf16> to vector<256x128xbf16>
    %cst_33 = arith.constant dense<0.000000e+00> : vector<256x128xf32>
    %29 = tpu.matmul %26, %28, %cst_33 {dimension_numbers = #tpu.dot_dimension_numbers<[1], [0], [0], [1], [0, 0, 1, 1], [], []>} : vector<256x256xbf16>, vector<256x128xbf16>, vector<256x128xf32> -> vector<256x128xf32>
    %30 = arith.addf %23, %29 : vector<256x128xf32>
    %c0_34 = arith.constant 0 : index
    %c1_35 = arith.constant 1 : index
    %c1_36 = arith.constant 1 : index
    %c0_37 = arith.constant 0 : index
    %31 = vector.load %arg1[%c0_34, %c1_35, %c1_36, %c0_37] : memref<1x18x18x256xbf16, #tpu.memory_space<vmem>>, vector<1x16x16x256xbf16>
    %32 = vector.shape_cast %31 : vector<1x16x16x256xbf16> to vector<16x16x256xbf16>
    %33 = vector.shape_cast %32 : vector<16x16x256xbf16> to vector<256x256xbf16>
    %c1_38 = arith.constant 1 : index
    %c1_39 = arith.constant 1 : index
    %c0_40 = arith.constant 0 : index
    %c0_41 = arith.constant 0 : index
    %34 = vector.load %arg2[%c1_38, %c1_39, %c0_40, %c0_41] : memref<3x3x256x128xbf16, #tpu.memory_space<vmem>>, vector<1x1x256x128xbf16>
    %35 = vector.shape_cast %34 : vector<1x1x256x128xbf16> to vector<256x128xbf16>
    %cst_42 = arith.constant dense<0.000000e+00> : vector<256x128xf32>
    %36 = tpu.matmul %33, %35, %cst_42 {dimension_numbers = #tpu.dot_dimension_numbers<[1], [0], [0], [1], [0, 0, 1, 1], [], []>} : vector<256x256xbf16>, vector<256x128xbf16>, vector<256x128xf32> -> vector<256x128xf32>
    %37 = arith.addf %30, %36 : vector<256x128xf32>
    %c0_43 = arith.constant 0 : index
    %c1_44 = arith.constant 1 : index
    %c2_45 = arith.constant 2 : index
    %c0_46 = arith.constant 0 : index
    %38 = vector.load %arg1[%c0_43, %c1_44, %c2_45, %c0_46] : memref<1x18x18x256xbf16, #tpu.memory_space<vmem>>, vector<1x16x16x256xbf16>
    %39 = vector.shape_cast %38 : vector<1x16x16x256xbf16> to vector<16x16x256xbf16>
    %40 = vector.shape_cast %39 : vector<16x16x256xbf16> to vector<256x256xbf16>
    %c1_47 = arith.constant 1 : index
    %c2_48 = arith.constant 2 : index
    %c0_49 = arith.constant 0 : index
    %c0_50 = arith.constant 0 : index
    %41 = vector.load %arg2[%c1_47, %c2_48, %c0_49, %c0_50] : memref<3x3x256x128xbf16, #tpu.memory_space<vmem>>, vector<1x1x256x128xbf16>
    %42 = vector.shape_cast %41 : vector<1x1x256x128xbf16> to vector<256x128xbf16>
    %cst_51 = arith.constant dense<0.000000e+00> : vector<256x128xf32>
    %43 = tpu.matmul %40, %42, %cst_51 {dimension_numbers = #tpu.dot_dimension_numbers<[1], [0], [0], [1], [0, 0, 1, 1], [], []>} : vector<256x256xbf16>, vector<256x128xbf16>, vector<256x128xf32> -> vector<256x128xf32>
    %44 = arith.addf %37, %43 : vector<256x128xf32>
    %c0_52 = arith.constant 0 : index
    %c2_53 = arith.constant 2 : index
    %c0_54 = arith.constant 0 : index
    %c0_55 = arith.constant 0 : index
    %45 = vector.load %arg1[%c0_52, %c2_53, %c0_54, %c0_55] : memref<1x18x18x256xbf16, #tpu.memory_space<vmem>>, vector<1x16x16x256xbf16>
    %46 = vector.shape_cast %45 : vector<1x16x16x256xbf16> to vector<16x16x256xbf16>
    %47 = vector.shape_cast %46 : vector<16x16x256xbf16> to vector<256x256xbf16>
    %c2_56 = arith.constant 2 : index
    %c0_57 = arith.constant 0 : index
    %c0_58 = arith.constant 0 : index
    %c0_59 = arith.constant 0 : index
    %48 = vector.load %arg2[%c2_56, %c0_57, %c0_58, %c0_59] : memref<3x3x256x128xbf16, #tpu.memory_space<vmem>>, vector<1x1x256x128xbf16>
    %49 = vector.shape_cast %48 : vector<1x1x256x128xbf16> to vector<256x128xbf16>
    %cst_60 = arith.constant dense<0.000000e+00> : vector<256x128xf32>
    %50 = tpu.matmul %47, %49, %cst_60 {dimension_numbers = #tpu.dot_dimension_numbers<[1], [0], [0], [1], [0, 0, 1, 1], [], []>} : vector<256x256xbf16>, vector<256x128xbf16>, vector<256x128xf32> -> vector<256x128xf32>
    %51 = arith.addf %44, %50 : vector<256x128xf32>
    %c0_61 = arith.constant 0 : index
    %c2_62 = arith.constant 2 : index
    %c1_63 = arith.constant 1 : index
    %c0_64 = arith.constant 0 : index
    %52 = vector.load %arg1[%c0_61, %c2_62, %c1_63, %c0_64] : memref<1x18x18x256xbf16, #tpu.memory_space<vmem>>, vector<1x16x16x256xbf16>
    %53 = vector.shape_cast %52 : vector<1x16x16x256xbf16> to vector<16x16x256xbf16>
    %54 = vector.shape_cast %53 : vector<16x16x256xbf16> to vector<256x256xbf16>
    %c2_65 = arith.constant 2 : index
    %c1_66 = arith.constant 1 : index
    %c0_67 = arith.constant 0 : index
    %c0_68 = arith.constant 0 : index
    %55 = vector.load %arg2[%c2_65, %c1_66, %c0_67, %c0_68] : memref<3x3x256x128xbf16, #tpu.memory_space<vmem>>, vector<1x1x256x128xbf16>
    %56 = vector.shape_cast %55 : vector<1x1x256x128xbf16> to vector<256x128xbf16>
    %cst_69 = arith.constant dense<0.000000e+00> : vector<256x128xf32>
    %57 = tpu.matmul %54, %56, %cst_69 {dimension_numbers = #tpu.dot_dimension_numbers<[1], [0], [0], [1], [0, 0, 1, 1], [], []>} : vector<256x256xbf16>, vector<256x128xbf16>, vector<256x128xf32> -> vector<256x128xf32>
    %58 = arith.addf %51, %57 : vector<256x128xf32>
    %c0_70 = arith.constant 0 : index
    %c2_71 = arith.constant 2 : index
    %c2_72 = arith.constant 2 : index
    %c0_73 = arith.constant 0 : index
    %59 = vector.load %arg1[%c0_70, %c2_71, %c2_72, %c0_73] : memref<1x18x18x256xbf16, #tpu.memory_space<vmem>>, vector<1x16x16x256xbf16>
    %60 = vector.shape_cast %59 : vector<1x16x16x256xbf16> to vector<16x16x256xbf16>
    %61 = vector.shape_cast %60 : vector<16x16x256xbf16> to vector<256x256xbf16>
    %c2_74 = arith.constant 2 : index
    %c2_75 = arith.constant 2 : index
    %c0_76 = arith.constant 0 : index
    %c0_77 = arith.constant 0 : index
    %62 = vector.load %arg2[%c2_74, %c2_75, %c0_76, %c0_77] : memref<3x3x256x128xbf16, #tpu.memory_space<vmem>>, vector<1x1x256x128xbf16>
    %63 = vector.shape_cast %62 : vector<1x1x256x128xbf16> to vector<256x128xbf16>
    %cst_78 = arith.constant dense<0.000000e+00> : vector<256x128xf32>
    %64 = tpu.matmul %61, %63, %cst_78 {dimension_numbers = #tpu.dot_dimension_numbers<[1], [0], [0], [1], [0, 0, 1, 1], [], []>} : vector<256x256xbf16>, vector<256x128xbf16>, vector<256x128xf32> -> vector<256x128xf32>
    %65 = arith.addf %58, %64 : vector<256x128xf32>
    %cst_79 = arith.constant 0.000000e+00 : f32
    %66 = vector.broadcast %cst_79 : f32 to vector<256x128xf32>
    %67 = arith.maximumf %65, %66 : vector<256x128xf32>
    %68 = vector.shape_cast %67 : vector<256x128xf32> to vector<1x16x16x128xf32>
    %c0_80 = arith.constant 0 : index
    %c0_81 = arith.constant 0 : index
    %c0_82 = arith.constant 0 : index
    %c0_83 = arith.constant 0 : index
    %69 = vector.load %arg4[%c0_80, %c0_81, %c0_82, %c0_83] : memref<1x16x16x128xf32, #tpu.memory_space<vmem>>, vector<1x16x16x128xf32>
    tpu.vector_store %arg4[%c0_80, %c0_81, %c0_82, %c0_83], %68 {strides = array<i32>} : memref<1x16x16x128xf32, #tpu.memory_space<vmem>>, vector<1x16x16x128xf32>,
    return
  }
  func.func @transform_0(%arg0: i32) -> (i32, i32, i32, i32) {
    %c0_i32 = arith.constant 0 : i32
    %c0_i32_0 = arith.constant 0 : i32
    %c0_i32_1 = arith.constant 0 : i32
    %c0_i32_2 = arith.constant 0 : i32
    return %arg0, %c0_i32, %c0_i32_0, %c0_i32_1 : i32, i32, i32, i32
  }
  func.func @transform_1(%arg0: i32) -> (i32, i32, i32, i32) {
    %c0_i32 = arith.constant 0 : i32
    %c0_i32_0 = arith.constant 0 : i32
    %c0_i32_1 = arith.constant 0 : i32
    %c0_i32_2 = arith.constant 0 : i32
    %c0_i32_3 = arith.constant 0 : i32
    return %c0_i32, %c0_i32_0, %c0_i32_1, %c0_i32_2 : i32, i32, i32, i32
  }
  func.func @transform_2(%arg0: i32) -> (i32, i32) {
    %c0_i32 = arith.constant 0 : i32
    %c0_i32_0 = arith.constant 0 : i32
    %c0_i32_1 = arith.constant 0 : i32
    return %c0_i32, %c0_i32_0 : i32, i32
  }
  func.func @transform_3(%arg0: i32) -> (i32, i32, i32, i32) {
    %c0_i32 = arith.constant 0 : i32
    %c0_i32_0 = arith.constant 0 : i32
    %c0_i32_1 = arith.constant 0 : i32
    %c0_i32_2 = arith.constant 0 : i32
    return %arg0, %c0_i32, %c0_i32_0, %c0_i32_1 : i32, i32, i32, i32
  }
}

module attributes {stable_mosaic.version = 11 : i64} {
  func.func @_conv3x3_bn_relu_kernel(%arg0: i32, %arg1: memref<1x18x18x128xbf16, #tpu.memory_space<vmem>>, %arg2: memref<3x3x128x128xbf16, #tpu.memory_space<vmem>>, %arg3: memref<1x128xf32, #tpu.memory_space<vmem>>, %arg4: memref<1x16x16x128xf32, #tpu.memory_space<vmem>>) attributes {dimension_semantics = [#tpu.dimension_semantics<parallel>], iteration_bounds = array<i64: 2>, scalar_prefetch = 0 : i64, scratch_operands = 0 : i64, tpu.core_type = #tpu.core_type<tc>, window_params = [{transform_indices = @transform_0, window_bounds = array<i64: 1, 18, 18, 128>}, {pipeline_mode = #tpu.pipeline_mode<synchronous>, transform_indices = @transform_1, window_bounds = array<i64: 3, 3, 128, 128>}, {pipeline_mode = #tpu.pipeline_mode<synchronous>, transform_indices = @transform_2, window_bounds = array<i64: 1, 128>}, {transform_indices = @transform_3, window_bounds = array<i64: 1, 16, 16, 128>}]} {
    %c0 = arith.constant 0 : index
    %c0_0 = arith.constant 0 : index
    %0 = vector.load %arg3[%c0, %c0_0] : memref<1x128xf32, #tpu.memory_space<vmem>>, vector<1x128xf32>
    %1 = vector.shape_cast %0 : vector<1x128xf32> to vector<1x128xf32>
    %2 = vector.broadcast %1 : vector<1x128xf32> to vector<256x128xf32>
    %c0_1 = arith.constant 0 : index
    %c0_2 = arith.constant 0 : index
    %c0_3 = arith.constant 0 : index
    %c0_4 = arith.constant 0 : index
    %3 = vector.load %arg1[%c0_1, %c0_2, %c0_3, %c0_4] : memref<1x18x18x128xbf16, #tpu.memory_space<vmem>>, vector<1x16x16x128xbf16>
    %4 = vector.shape_cast %3 : vector<1x16x16x128xbf16> to vector<16x16x128xbf16>
    %5 = vector.shape_cast %4 : vector<16x16x128xbf16> to vector<256x128xbf16>
    %c0_5 = arith.constant 0 : index
    %c0_6 = arith.constant 0 : index
    %c0_7 = arith.constant 0 : index
    %c0_8 = arith.constant 0 : index
    %6 = vector.load %arg2[%c0_5, %c0_6, %c0_7, %c0_8] : memref<3x3x128x128xbf16, #tpu.memory_space<vmem>>, vector<1x1x128x128xbf16>
    %7 = vector.shape_cast %6 : vector<1x1x128x128xbf16> to vector<128x128xbf16>
    %cst = arith.constant dense<0.000000e+00> : vector<256x128xf32>
    %8 = tpu.matmul %5, %7, %cst {dimension_numbers = #tpu.dot_dimension_numbers<[1], [0], [0], [1], [0, 0, 1, 1], [], []>} : vector<256x128xbf16>, vector<128x128xbf16>, vector<256x128xf32> -> vector<256x128xf32>
    %9 = arith.addf %2, %8 : vector<256x128xf32>
    %c0_9 = arith.constant 0 : index
    %c0_10 = arith.constant 0 : index
    %c1 = arith.constant 1 : index
    %c0_11 = arith.constant 0 : index
    %10 = vector.load %arg1[%c0_9, %c0_10, %c1, %c0_11] : memref<1x18x18x128xbf16, #tpu.memory_space<vmem>>, vector<1x16x16x128xbf16>
    %11 = vector.shape_cast %10 : vector<1x16x16x128xbf16> to vector<16x16x128xbf16>
    %12 = vector.shape_cast %11 : vector<16x16x128xbf16> to vector<256x128xbf16>
    %c0_12 = arith.constant 0 : index
    %c1_13 = arith.constant 1 : index
    %c0_14 = arith.constant 0 : index
    %c0_15 = arith.constant 0 : index
    %13 = vector.load %arg2[%c0_12, %c1_13, %c0_14, %c0_15] : memref<3x3x128x128xbf16, #tpu.memory_space<vmem>>, vector<1x1x128x128xbf16>
    %14 = vector.shape_cast %13 : vector<1x1x128x128xbf16> to vector<128x128xbf16>
    %cst_16 = arith.constant dense<0.000000e+00> : vector<256x128xf32>
    %15 = tpu.matmul %12, %14, %cst_16 {dimension_numbers = #tpu.dot_dimension_numbers<[1], [0], [0], [1], [0, 0, 1, 1], [], []>} : vector<256x128xbf16>, vector<128x128xbf16>, vector<256x128xf32> -> vector<256x128xf32>
    %16 = arith.addf %9, %15 : vector<256x128xf32>
    %c0_17 = arith.constant 0 : index
    %c0_18 = arith.constant 0 : index
    %c2 = arith.constant 2 : index
    %c0_19 = arith.constant 0 : index
    %17 = vector.load %arg1[%c0_17, %c0_18, %c2, %c0_19] : memref<1x18x18x128xbf16, #tpu.memory_space<vmem>>, vector<1x16x16x128xbf16>
    %18 = vector.shape_cast %17 : vector<1x16x16x128xbf16> to vector<16x16x128xbf16>
    %19 = vector.shape_cast %18 : vector<16x16x128xbf16> to vector<256x128xbf16>
    %c0_20 = arith.constant 0 : index
    %c2_21 = arith.constant 2 : index
    %c0_22 = arith.constant 0 : index
    %c0_23 = arith.constant 0 : index
    %20 = vector.load %arg2[%c0_20, %c2_21, %c0_22, %c0_23] : memref<3x3x128x128xbf16, #tpu.memory_space<vmem>>, vector<1x1x128x128xbf16>
    %21 = vector.shape_cast %20 : vector<1x1x128x128xbf16> to vector<128x128xbf16>
    %cst_24 = arith.constant dense<0.000000e+00> : vector<256x128xf32>
    %22 = tpu.matmul %19, %21, %cst_24 {dimension_numbers = #tpu.dot_dimension_numbers<[1], [0], [0], [1], [0, 0, 1, 1], [], []>} : vector<256x128xbf16>, vector<128x128xbf16>, vector<256x128xf32> -> vector<256x128xf32>
    %23 = arith.addf %16, %22 : vector<256x128xf32>
    %c0_25 = arith.constant 0 : index
    %c1_26 = arith.constant 1 : index
    %c0_27 = arith.constant 0 : index
    %c0_28 = arith.constant 0 : index
    %24 = vector.load %arg1[%c0_25, %c1_26, %c0_27, %c0_28] : memref<1x18x18x128xbf16, #tpu.memory_space<vmem>>, vector<1x16x16x128xbf16>
    %25 = vector.shape_cast %24 : vector<1x16x16x128xbf16> to vector<16x16x128xbf16>
    %26 = vector.shape_cast %25 : vector<16x16x128xbf16> to vector<256x128xbf16>
    %c1_29 = arith.constant 1 : index
    %c0_30 = arith.constant 0 : index
    %c0_31 = arith.constant 0 : index
    %c0_32 = arith.constant 0 : index
    %27 = vector.load %arg2[%c1_29, %c0_30, %c0_31, %c0_32] : memref<3x3x128x128xbf16, #tpu.memory_space<vmem>>, vector<1x1x128x128xbf16>
    %28 = vector.shape_cast %27 : vector<1x1x128x128xbf16> to vector<128x128xbf16>
    %cst_33 = arith.constant dense<0.000000e+00> : vector<256x128xf32>
    %29 = tpu.matmul %26, %28, %cst_33 {dimension_numbers = #tpu.dot_dimension_numbers<[1], [0], [0], [1], [0, 0, 1, 1], [], []>} : vector<256x128xbf16>, vector<128x128xbf16>, vector<256x128xf32> -> vector<256x128xf32>
    %30 = arith.addf %23, %29 : vector<256x128xf32>
    %c0_34 = arith.constant 0 : index
    %c1_35 = arith.constant 1 : index
    %c1_36 = arith.constant 1 : index
    %c0_37 = arith.constant 0 : index
    %31 = vector.load %arg1[%c0_34, %c1_35, %c1_36, %c0_37] : memref<1x18x18x128xbf16, #tpu.memory_space<vmem>>, vector<1x16x16x128xbf16>
    %32 = vector.shape_cast %31 : vector<1x16x16x128xbf16> to vector<16x16x128xbf16>
    %33 = vector.shape_cast %32 : vector<16x16x128xbf16> to vector<256x128xbf16>
    %c1_38 = arith.constant 1 : index
    %c1_39 = arith.constant 1 : index
    %c0_40 = arith.constant 0 : index
    %c0_41 = arith.constant 0 : index
    %34 = vector.load %arg2[%c1_38, %c1_39, %c0_40, %c0_41] : memref<3x3x128x128xbf16, #tpu.memory_space<vmem>>, vector<1x1x128x128xbf16>
    %35 = vector.shape_cast %34 : vector<1x1x128x128xbf16> to vector<128x128xbf16>
    %cst_42 = arith.constant dense<0.000000e+00> : vector<256x128xf32>
    %36 = tpu.matmul %33, %35, %cst_42 {dimension_numbers = #tpu.dot_dimension_numbers<[1], [0], [0], [1], [0, 0, 1, 1], [], []>} : vector<256x128xbf16>, vector<128x128xbf16>, vector<256x128xf32> -> vector<256x128xf32>
    %37 = arith.addf %30, %36 : vector<256x128xf32>
    %c0_43 = arith.constant 0 : index
    %c1_44 = arith.constant 1 : index
    %c2_45 = arith.constant 2 : index
    %c0_46 = arith.constant 0 : index
    %38 = vector.load %arg1[%c0_43, %c1_44, %c2_45, %c0_46] : memref<1x18x18x128xbf16, #tpu.memory_space<vmem>>, vector<1x16x16x128xbf16>
    %39 = vector.shape_cast %38 : vector<1x16x16x128xbf16> to vector<16x16x128xbf16>
    %40 = vector.shape_cast %39 : vector<16x16x128xbf16> to vector<256x128xbf16>
    %c1_47 = arith.constant 1 : index
    %c2_48 = arith.constant 2 : index
    %c0_49 = arith.constant 0 : index
    %c0_50 = arith.constant 0 : index
    %41 = vector.load %arg2[%c1_47, %c2_48, %c0_49, %c0_50] : memref<3x3x128x128xbf16, #tpu.memory_space<vmem>>, vector<1x1x128x128xbf16>
    %42 = vector.shape_cast %41 : vector<1x1x128x128xbf16> to vector<128x128xbf16>
    %cst_51 = arith.constant dense<0.000000e+00> : vector<256x128xf32>
    %43 = tpu.matmul %40, %42, %cst_51 {dimension_numbers = #tpu.dot_dimension_numbers<[1], [0], [0], [1], [0, 0, 1, 1], [], []>} : vector<256x128xbf16>, vector<128x128xbf16>, vector<256x128xf32> -> vector<256x128xf32>
    %44 = arith.addf %37, %43 : vector<256x128xf32>
    %c0_52 = arith.constant 0 : index
    %c2_53 = arith.constant 2 : index
    %c0_54 = arith.constant 0 : index
    %c0_55 = arith.constant 0 : index
    %45 = vector.load %arg1[%c0_52, %c2_53, %c0_54, %c0_55] : memref<1x18x18x128xbf16, #tpu.memory_space<vmem>>, vector<1x16x16x128xbf16>
    %46 = vector.shape_cast %45 : vector<1x16x16x128xbf16> to vector<16x16x128xbf16>
    %47 = vector.shape_cast %46 : vector<16x16x128xbf16> to vector<256x128xbf16>
    %c2_56 = arith.constant 2 : index
    %c0_57 = arith.constant 0 : index
    %c0_58 = arith.constant 0 : index
    %c0_59 = arith.constant 0 : index
    %48 = vector.load %arg2[%c2_56, %c0_57, %c0_58, %c0_59] : memref<3x3x128x128xbf16, #tpu.memory_space<vmem>>, vector<1x1x128x128xbf16>
    %49 = vector.shape_cast %48 : vector<1x1x128x128xbf16> to vector<128x128xbf16>
    %cst_60 = arith.constant dense<0.000000e+00> : vector<256x128xf32>
    %50 = tpu.matmul %47, %49, %cst_60 {dimension_numbers = #tpu.dot_dimension_numbers<[1], [0], [0], [1], [0, 0, 1, 1], [], []>} : vector<256x128xbf16>, vector<128x128xbf16>, vector<256x128xf32> -> vector<256x128xf32>
    %51 = arith.addf %44, %50 : vector<256x128xf32>
    %c0_61 = arith.constant 0 : index
    %c2_62 = arith.constant 2 : index
    %c1_63 = arith.constant 1 : index
    %c0_64 = arith.constant 0 : index
    %52 = vector.load %arg1[%c0_61, %c2_62, %c1_63, %c0_64] : memref<1x18x18x128xbf16, #tpu.memory_space<vmem>>, vector<1x16x16x128xbf16>
    %53 = vector.shape_cast %52 : vector<1x16x16x128xbf16> to vector<16x16x128xbf16>
    %54 = vector.shape_cast %53 : vector<16x16x128xbf16> to vector<256x128xbf16>
    %c2_65 = arith.constant 2 : index
    %c1_66 = arith.constant 1 : index
    %c0_67 = arith.constant 0 : index
    %c0_68 = arith.constant 0 : index
    %55 = vector.load %arg2[%c2_65, %c1_66, %c0_67, %c0_68] : memref<3x3x128x128xbf16, #tpu.memory_space<vmem>>, vector<1x1x128x128xbf16>
    %56 = vector.shape_cast %55 : vector<1x1x128x128xbf16> to vector<128x128xbf16>
    %cst_69 = arith.constant dense<0.000000e+00> : vector<256x128xf32>
    %57 = tpu.matmul %54, %56, %cst_69 {dimension_numbers = #tpu.dot_dimension_numbers<[1], [0], [0], [1], [0, 0, 1, 1], [], []>} : vector<256x128xbf16>, vector<128x128xbf16>, vector<256x128xf32> -> vector<256x128xf32>
    %58 = arith.addf %51, %57 : vector<256x128xf32>
    %c0_70 = arith.constant 0 : index
    %c2_71 = arith.constant 2 : index
    %c2_72 = arith.constant 2 : index
    %c0_73 = arith.constant 0 : index
    %59 = vector.load %arg1[%c0_70, %c2_71, %c2_72, %c0_73] : memref<1x18x18x128xbf16, #tpu.memory_space<vmem>>, vector<1x16x16x128xbf16>
    %60 = vector.shape_cast %59 : vector<1x16x16x128xbf16> to vector<16x16x128xbf16>
    %61 = vector.shape_cast %60 : vector<16x16x128xbf16> to vector<256x128xbf16>
    %c2_74 = arith.constant 2 : index
    %c2_75 = arith.constant 2 : index
    %c0_76 = arith.constant 0 : index
    %c0_77 = arith.constant 0 : index
    %62 = vector.load %arg2[%c2_74, %c2_75, %c0_76, %c0_77] : memref<3x3x128x128xbf16, #tpu.memory_space<vmem>>, vector<1x1x128x128xbf16>
    %63 = vector.shape_cast %62 : vector<1x1x128x128xbf16> to vector<128x128xbf16>
    %cst_78 = arith.constant dense<0.000000e+00> : vector<256x128xf32>
    %64 = tpu.matmul %61, %63, %cst_78 {dimension_numbers = #tpu.dot_dimension_numbers<[1], [0], [0], [1], [0, 0, 1, 1], [], []>} : vector<256x128xbf16>, vector<128x128xbf16>, vector<256x128xf32> -> vector<256x128xf32>
    %65 = arith.addf %58, %64 : vector<256x128xf32>
    %cst_79 = arith.constant 0.000000e+00 : f32
    %66 = vector.broadcast %cst_79 : f32 to vector<256x128xf32>
    %67 = arith.maximumf %65, %66 : vector<256x128xf32>
    %68 = vector.shape_cast %67 : vector<256x128xf32> to vector<1x16x16x128xf32>
    %c0_80 = arith.constant 0 : index
    %c0_81 = arith.constant 0 : index
    %c0_82 = arith.constant 0 : index
    %c0_83 = arith.constant 0 : index
    %69 = vector.load %arg4[%c0_80, %c0_81, %c0_82, %c0_83] : memref<1x16x16x128xf32, #tpu.memory_space<vmem>>, vector<1x16x16x128xf32>
    tpu.vector_store %arg4[%c0_80, %c0_81, %c0_82, %c0_83], %68 {strides = array<i32>} : memref<1x16x16x128xf32, #tpu.memory_space<vmem>>, vector<1x16x16x128xf32>,
    return
  }
  func.func @transform_0(%arg0: i32) -> (i32, i32, i32, i32) {
    %c0_i32 = arith.constant 0 : i32
    %c0_i32_0 = arith.constant 0 : i32
    %c0_i32_1 = arith.constant 0 : i32
    %c0_i32_2 = arith.constant 0 : i32
    return %arg0, %c0_i32, %c0_i32_0, %c0_i32_1 : i32, i32, i32, i32
  }
  func.func @transform_1(%arg0: i32) -> (i32, i32, i32, i32) {
    %c0_i32 = arith.constant 0 : i32
    %c0_i32_0 = arith.constant 0 : i32
    %c0_i32_1 = arith.constant 0 : i32
    %c0_i32_2 = arith.constant 0 : i32
    %c0_i32_3 = arith.constant 0 : i32
    return %c0_i32, %c0_i32_0, %c0_i32_1, %c0_i32_2 : i32, i32, i32, i32
  }
  func.func @transform_2(%arg0: i32) -> (i32, i32) {
    %c0_i32 = arith.constant 0 : i32
    %c0_i32_0 = arith.constant 0 : i32
    %c0_i32_1 = arith.constant 0 : i32
    return %c0_i32, %c0_i32_0 : i32, i32
  }
  func.func @transform_3(%arg0: i32) -> (i32, i32, i32, i32) {
    %c0_i32 = arith.constant 0 : i32
    %c0_i32_0 = arith.constant 0 : i32
    %c0_i32_1 = arith.constant 0 : i32
    %c0_i32_2 = arith.constant 0 : i32
    return %arg0, %c0_i32, %c0_i32_0, %c0_i32_1 : i32, i32, i32, i32
  }
}

</mosaic_0001>

<bundles_post_ra>
// kernel: up_forward.3
= control target key start
LH: loop header
LB: loop body
LE: loop exit
PB: predicated region body
PF: predicated region fallthrough
CT: control target
= control target key end

     0   :  { %8 = vsyncpa [#allocation3], 0  ;;  %s7356_s0 = inlined_call_operand.vmem [shape: bf16[2,18,18,128], index: 0, kind: input, shape index: {}]   ;;  %s7357_s1 = inlined_call_operand.vmem [shape: bf16[3,3,128,128], index: 1, kind: input, shape index: {}]   ;;  %s7358_s2 = inlined_call_operand.vmem [shape: f32[1,128], index: 2, kind: input, shape index: {}]   ;;  %s7359_s3 = inlined_call_operand.hbm [shape: f32[2,16,16,128], index: 3, kind: output, shape index: {}]  }
   0x1   :  { %10 = vsyncpa [#allocation3 + $0x1], 0  ;;  %s5754_s12 = smov 0   ;;  %s5756_s13 = smov 0  }
   0x2   :  { %s5758_s14 = smov 0   ;;  %s5760_s15 = smov 0  }
   0x3 LB: > { %s5775_s16 = sadd.s32 4294967295, %s5730_s15   ;;  %s4588_s17 = sadd.s32 4294967294, %s5730_s15   ;;  %s5730_s15 = sphi %s5760_s15, %s7389_s15   ;;  %s5726_s14 = sphi %s5758_s14, %s7388_s14   ;;  %s5722_s13 = sphi %s5756_s13, %s7387_s13   ;;  %s5718_s12 = sphi %s5754_s12, %s7386_s12  }
   0x4   : > { %s5779_s18 = sadd.s32 1, %s5730_s15   ;;  %s91_s19 = sadd.s32 1, %s5726_s14 }
   0x5   : > { %s88_s20 = ssub.s32 %s5730_s15, %s5779_s18  ;;  %p101_p0 = scmp.ne.s32.totalorder %s5726_s14, %s5722_s13 }
   0x6   : > { %p89_p1 = scmp.eq.s32.totalorder %s88_s20, 0  ;;  %p102_p2 = scmp.eq.s32.totalorder %s5775_s16, 1 }
   0x7   : > { %p107_p3 = scmp.ne.s32.totalorder %s5722_s13, %s5718_s12  ;;  %p108_p4 = scmp.eq.s32.totalorder %s4588_s17, 1 }
   0x8   : > { %s5790_s21 = scalar_select %p89_p1, %s5726_s14, %s91_s19  }
   0x9   : > { %p5792_p5 = por %p102_p2, %p101_p0  ;;  %p5796_p6 = por %p108_p4, %p107_p3 }
   0xa   : > { %p4591_p7 = scmp.ge.s32.totalorder %s5730_s15, 1  ;;  %p140_p8 = scmp.lt.s32.totalorder %s5730_s15, 3 }
   0xc   : > { %p141_p9 = pnand %p4591_p7, %p140_p8 }
   0xe   : > { %144 = sbr.rel (%p141_p9) target bundleno = 763 (0x2fb), region = 32 }
  0x13   : > { %v5470_v0 = vld [vmem:[%s7357_s1 + $0x38] sm:$0xff]  ;;  %v5469_v1 = vld [vmem:[%s7357_s1 + $0x30] sm:$0xff]  ;;  %v5468_v2 = vld [vmem:[%s7357_s1 + $0x28] sm:$0xff]  ;;  %p164_p10 = scmp.lt.s32.totalorder %s5775_s16, 1  ;;  %vm534_vm0 = vsmask.f32 3328 }
  0x14   : > { %5568 = vmatpush.bf16.msra.mxu1 %v5470_v0  ;;  %5569 = vmatpush.bf16.msra.mxu2 %v5470_v0  ;;  %v5467_v3 = vld [vmem:[%s7357_s1 + $0x20] sm:$0xff]  ;;  %v5466_v4 = vld [vmem:[%s7357_s1 + $0x18] sm:$0xff]  ;;  %v5465_v5 = vld [vmem:[%s7357_s1 + $0x10] sm:$0xff]  ;;  %vm535_vm1 = vsmask.f32 7440  ;;  %vm1235_vm2 = vcmask 1042432  }
  0x15   : > { %5570 = vmatpush.bf16.msra.mxu3 %v5470_v0  ;;  %365 = vmatpush.bf16.msra.mxu0 %v5470_v0  ;;  %s165_s9 = scalar_select %p164_p10, %s5775_s16, 1  ;;  %v5464_v6 = vld [vmem:[%s7357_s1 + $0x8] sm:$0xff]  ;;  %v5463_v7 = vld [vmem:[%s7357_s1] sm:$0xff]  ;;  %v5486_v8 = vld [vmem:[%s7357_s1 + $0xb8] sm:$0xff]  ;;  %vm1236_vm3 = vcmask 1046532  }
  0x16   : > { %v5510_v9 = vld [vmem:[%s7357_s1 + $0xf8] sm:$0xff]  ;;  %v5485_v16 = vld [vmem:[%s7357_s1 + $0xb0] sm:$0xff]  ;;  %v5484_v20 = vld [vmem:[%s7357_s1 + $0xa8] sm:$0xff]  ;;  %s161_s19 = sand.u32 1, %s5722_s13   ;;  %s5688_s8 = scalar_lea.hbm %s7359_s3, 512 }
  0x17   : > { %s5592_s17 = smul.u32 216, %s165_s9  ;;  %v5478_v14 = vld [vmem:[%s7357_s1 + $0x78] sm:$0xff]  ;;  %v5509_v17 = vld [vmem:[%s7357_s1 + $0xf0] sm:$0xff]  ;;  %v5508_v21 = vld [vmem:[%s7357_s1 + $0xe8] sm:$0xff]  ;;  %s4592_s20 = sshll.u32 %s161_s19, 8 }
  0x18   : > { %5571 = vmatpush.bf16.msra.mxu1 %v5469_v1  ;;  %5572 = vmatpush.bf16.msra.mxu2 %v5469_v1  ;;  %v5518_v15 = vld [vmem:[%s7357_s1 + $0x138] sm:$0xff]  ;;  %v5477_v18 = vld [vmem:[%s7357_s1 + $0x70] sm:$0xff]  ;;  %v5476_v22 = vld [vmem:[%s7357_s1 + $0x68] sm:$0xff]  ;;  %s7099_s24 = scalar_lea.vmem [#allocation2], %s4592_s20 }
  0x19   : > { %5573 = vmatpush.bf16.msra.mxu3 %v5469_v1  ;;  %366 = vmatpush.bf16.msra.mxu0 %v5469_v1  ;;  %s5831_s26 = scalar_lea.vmem %s7356_s0, %s5592_s17  ;;  %v5517_v19 = vld [vmem:[%s7357_s1 + $0x130] sm:$0xff]  ;;  %v5516_v23 = vld [vmem:[%s7357_s1 + $0x128] sm:$0xff]  ;;  %v5483_v24 = vld [vmem:[%s7357_s1 + $0xa0] sm:$0xff]  ;;  %s4523_s29 = sshll.u32 %s7099_s24, 4  ;;  %s4524_s29 = int_to_ptr.vmem [resolvable:$true] %s4523_s29 }
  0x1a   : > { %v5451_v10 = vld [vmem:[%s5831_s26 + $0x30] sm:$0xff]  ;;  %v5455_v11 = vld [vmem:[%s5831_s26 + $0x60] sm:$0xff]  ;;  %v5482_v28 = vld [vmem:[%s7357_s1 + $0x98] sm:$0xff] }
  0x1b   : > { %v5459_v12 = vld [vmem:[%s5831_s26 + $0x90] sm:$0xff]  ;;  %v5447_v13 = vld [vmem:[%s5831_s26] sm:$0xff]  ;;  %v5506_v29 = vld [vmem:[%s7357_s1 + $0xd8] sm:$0xff] }
  0x1c   : > { %5574 = vmatpush.bf16.msra.mxu1 %v5468_v2  ;;  %5575 = vmatpush.bf16.msra.mxu2 %v5468_v2  ;;  %v5507_v25 = vld [vmem:[%s7357_s1 + $0xe0] sm:$0xff]  ;;  %v5456_v31 = vld [vmem:[%s5831_s26 + $0x6c] sm:$0xff]  ;;  %v5474_v34 = vld [vmem:[%s7357_s1 + $0x58] sm:$0xff] }
  0x1d   : > { %5576 = vmatpush.bf16.msra.mxu3 %v5468_v2  ;;  %367 = vmatpush.bf16.msra.mxu0 %v5468_v2  ;;  %v5475_v26 = vld [vmem:[%s7357_s1 + $0x60] sm:$0xff]  ;;  %v5448_v33 = vld [vmem:[%s5831_s26 + $0xc] sm:$0xff]  ;;  %v5514_v35 = vld [vmem:[%s7357_s1 + $0x118] sm:$0xff] }
  0x1e   : > { %v5515_v27 = vld [vmem:[%s7357_s1 + $0x120] sm:$0xff]  ;;  %v5481_v36 = vld [vmem:[%s7357_s1 + $0x90] sm:$0xff]  ;;  %v5480_v40 = vld [vmem:[%s7357_s1 + $0x88] sm:$0xff] }
  0x1f   : > { %v5452_v30 = vld [vmem:[%s5831_s26 + $0x3c] sm:$0xff]  ;;  %v5505_v37 = vld [vmem:[%s7357_s1 + $0xd0] sm:$0xff]  ;;  %v5504_v41 = vld [vmem:[%s7357_s1 + $0xc8] sm:$0xff] }
  0x20   : > { %5577 = vmatpush.bf16.msra.mxu1 %v5467_v3  ;;  %5578 = vmatpush.bf16.msra.mxu2 %v5467_v3  ;;  %v5460_v32 = vld [vmem:[%s5831_s26 + $0x9c] sm:$0xff]  ;;  %v5473_v38 = vld [vmem:[%s7357_s1 + $0x50] sm:$0xff]  ;;  %v5472_v42 = vld [vmem:[%s7357_s1 + $0x48] sm:$0xff] }
  0x21   : > { %5579 = vmatpush.bf16.msra.mxu3 %v5467_v3  ;;  %368 = vmatpush.bf16.msra.mxu0 %v5467_v3  ;;  %v5513_v39 = vld [vmem:[%s7357_s1 + $0x110] sm:$0xff]  ;;  %v5512_v43 = vld [vmem:[%s7357_s1 + $0x108] sm:$0xff]  ;;  %v5479_v44 = vld [vmem:[%s7357_s1 + $0x80] sm:$0xff] }
  0x22   : > { %v5503_v45 = vld [vmem:[%s7357_s1 + $0xc0] sm:$0xff]  ;;  %v5453_v48 = vld [vmem:[%s5831_s26 + $0x48] sm:$0xff]  ;;  %v5457_v49 = vld [vmem:[%s5831_s26 + $0x78] sm:$0xff] }
  0x23   : > { %v5471_v46 = vld [vmem:[%s7357_s1 + $0x40] sm:$0xff]  ;;  %v5461_v50 = vld [vmem:[%s5831_s26 + $0xa8] sm:$0xff]  ;;  %v5449_v51 = vld [vmem:[%s5831_s26 + $0x18] sm:$0xff] }
  0x24   : > { %5580 = vmatpush.bf16.msra.mxu1 %v5466_v4  ;;  %5581 = vmatpush.bf16.msra.mxu2 %v5466_v4  ;;  %v5511_v47 = vld [vmem:[%s7357_s1 + $0x100] sm:$0xff]  ;;  %v5550_v56 = vld [vmem:[%s7357_s1 + $0x1b8] sm:$0xff]  ;;  %v4946_v58 = vld [vmem:[%s5831_s26 + $0xc] sm:$0xf] }
  0x25   : > { %5582 = vmatpush.bf16.msra.mxu3 %v5466_v4  ;;  %369 = vmatpush.bf16.msra.mxu0 %v5466_v4  ;;  %v486_v52 = vld [vmem:[%s5831_s26] sm:$0xf]  ;;  %v5943_v53 = vld [vmem:[%s5831_s26 + $0x4] sm:$0xf]  ;;  %v5558_v57 = vld [vmem:[%s7357_s1 + $0x1f8] sm:$0xff]  ;;  %v1964_v2 = vshrl.u32 %v4946_v58, 16 }
  0x26   : > { %v538_v54 = vshrl.u32 %v486_v52, 16  ;;  %v541_v55 = vshll.u32 %v486_v52, 16  ;;  %v5526_v59 = vld [vmem:[%s7357_s1 + $0x178] sm:$0xff]  ;;  %v547_v61 = vshll.u32 %v5943_v53, 16  ;;  %v551_v62 = vshrl.u32 %v5943_v53, 16  ;;  %vm5971_vm4 = vmor %vm534_vm0, %vm535_vm1 }
  0x27   : > { %v5566_v60 = vld [vmem:[%s7357_s1 + $0x238] sm:$0xff]  ;;  %v4947_v63 = vld [vmem:[%s5831_s26 + $0x10] sm:$0xf]  ;;  %v1967_v3 = vshll.u32 %v4946_v58, 16  ;;  %vm5975_vm5 = vmor %vm1235_vm2, %vm1236_vm3 }
  0x28   : > { %5583 = vmatpush.bf16.msra.mxu1 %v5465_v5  ;;  %5584 = vmatpush.bf16.msra.mxu2 %v5465_v5  ;;  %v540_v0 = vrot.slane %v538_v54, 4  ;;  %v543_v1 = vrot.slane %v541_v55, 5  ;;  %v1973_v4 = vshll.u32 %v4947_v63, 16 }
  0x29   : > { %5585 = vmatpush.bf16.msra.mxu3 %v5465_v5  ;;  %370 = vmatpush.bf16.msra.mxu0 %v5465_v5  ;;  %v1977_v5 = vshrl.u32 %v4947_v63, 16 }
  0x2c   : > { %5586 = vmatpush.bf16.msra.mxu1 %v5464_v6  ;;  %5587 = vmatpush.bf16.msra.mxu2 %v5464_v6 }
  0x2d   : > { %5588 = vmatpush.bf16.msra.mxu3 %v5464_v6  ;;  %371 = vmatpush.bf16.msra.mxu0 %v5464_v6  ;;  %v488_v6 = vld [vmem:[%s5831_s26 + $0x8] sm:$0x1] }
  0x30   : > { %5589 = vmatpush.bf16.msra.mxu1 %v5463_v7  ;;  %5590 = vmatpush.bf16.msra.mxu2 %v5463_v7 }
  0x31   : > { %5591 = vmatpush.bf16.msra.mxu3 %v5463_v7  ;;  %372 = vmatpush.bf16.msra.mxu0 %v5463_v7  ;;  %v549_v7 = vrot.slane %v547_v61, 5  ;;  %v491_v61 = vld [vmem:[%s5831_s26 + $0x14] sm:$0x1] }
  0x33   : > { %393 = vmatmul.bf16.vlgmr.msra.gmra.mxu1 %v5451_v10  ;;  %413 = vmatmul.bf16.vlgmr.msra.gmra.mxu2 %v5455_v11  ;;  %v1966_v10 = vrot.slane %v1964_v2, 4  ;;  %v1969_v11 = vrot.slane %v1967_v3, 5 }
  0x34   : > { %1479 = vmatpush.bf16.msrb.mxu2 %v5486_v8  ;;  %433 = vmatmul.bf16.vlgmr.msra.gmra.mxu3 %v5459_v12  ;;  %v553_v8 = vrot.slane %v551_v62, 4  ;;  %v557_v12 = vshll.u32 %v488_v6, 16 }
  0x35   : > { %1794 = vmatpush.bf16.msrb.mxu3 %v5510_v9  ;;  %373 = vmatmul.bf16.vlgmr.msra.gmra.mxu0 %v5447_v13  ;;  %v544_v9 = vor.u32 %v543_v1, %v540_v0  ;;  %v1171_v13 = vld [vmem:[%s5831_s26] sm:$0xe] }
  0x36   : > { %1050 = vmatpush.bf16.msrb.mxu1 %v5478_v14  ;;  %2476 = vmatpush.bf16.msrb.mxu0 %v5518_v15  ;;  %v1975_v14 = vrot.slane %v1973_v4, 5  ;;  %v1979_v15 = vrot.slane %v1977_v5, 4 }
  0x38   : > { %1480 = vmatpush.bf16.msrb.mxu2 %v5485_v16  ;;  %v554_v16 = vor.u32 %v553_v8, %v549_v7  ;;  %v581_v8 = vshll.u32 %v491_v61, 16 }
  0x39   : > { %1795 = vmatpush.bf16.msrb.mxu3 %v5509_v17  ;;  %v1240_v17 = vrot.slane %v5943_v53, 5 }
  0x3a   : > { %1051 = vmatpush.bf16.msrb.mxu1 %v5477_v18  ;;  %2477 = vmatpush.bf16.msrb.mxu0 %v5517_v19  ;;  %v4948_v18 = vld [vmem:[%s5831_s26 + $0x14] sm:$0x1] }
  0x3b   : > { %v5454_v19 = vld [vmem:[%s5831_s26 + $0x54] sm:$0xff] }
  0x3c   : > { %1481 = vmatpush.bf16.msrb.mxu2 %v5484_v20  ;;  %v5458_v20 = vld [vmem:[%s5831_s26 + $0x84] sm:$0xff] }
  0x3d   : > { %1796 = vmatpush.bf16.msrb.mxu3 %v5508_v21  ;;  %v5462_v21 = vld [vmem:[%s5831_s26 + $0xb4] sm:$0xff] }
  0x3e   : > { %1052 = vmatpush.bf16.msrb.mxu1 %v5476_v22  ;;  %2478 = vmatpush.bf16.msrb.mxu0 %v5516_v23  ;;  %v5450_v22 = vld [vmem:[%s5831_s26 + $0x24] sm:$0xff] }
  0x40   : > { %1482 = vmatpush.bf16.msrb.mxu2 %v5483_v24  ;;  %v545_v24 = vrot.slane %v544_v9, 4 }
  0x41   : > { %1797 = vmatpush.bf16.msrb.mxu3 %v5507_v25  ;;  %v4738_v25 = vrot.slane %v1171_v13, 9  ;;  %v1172_v13 = vld [vmem:[%s5831_s26 + $0xc] sm:$0xe] }
  0x42   : > { %1053 = vmatpush.bf16.msrb.mxu1 %v5475_v26  ;;  %2479 = vmatpush.bf16.msrb.mxu0 %v5515_v27  ;;  %v1970_v26 = vor.u32 %v1969_v11, %v1966_v10 }
  0x43   : > { %398 = vmatmul.bf16.gmra.mxu1 %v5452_v30  ;;  %418 = vmatmul.bf16.gmra.mxu2 %v5456_v31  ;;  %v555_v30 = vrot.slane %v554_v16, 4  ;;  %v559_v31 = vrot.slane %v557_v12, 5 }
  0x44   : > { %1483 = vmatpush.bf16.msrb.mxu2 %v5482_v28  ;;  %438 = vmatmul.bf16.gmra.mxu3 %v5460_v32  ;;  %v1980_v28 = vor.u32 %v1979_v15, %v1975_v14  ;;  %v1242_v32 = vrot.slane %v1240_v17, 4 }
  0x45   : > { %1798 = vmatpush.bf16.msrb.mxu3 %v5506_v29  ;;  %378 = vmatmul.bf16.gmra.mxu0 %v5448_v33  ;;  %v1983_v29 = vshll.u32 %v4948_v18, 16  ;;  %v1243_v33 = vrot.slane %v488_v6, 5  ;;  %v4951_v6 = vld [vmem:[%s5831_s26 + $0x20] sm:$0x1] }
  0x46   : > { %1054 = vmatpush.bf16.msrb.mxu1 %v5474_v34  ;;  %2480 = vmatpush.bf16.msrb.mxu0 %v5514_v35  ;;  %v489_v34 = vld [vmem:[%s5831_s26 + $0xc] sm:$0xf]  ;;  %v5981_v35 = vld [vmem:[%s5831_s26 + $0x10] sm:$0xf]  ;;  %v2007_v16 = vshll.u32 %v4951_v6, 16 }
  0x47   : > { %v1247_v11 = vrot.slane %v5981_v35, 5  ;;  %v4954_v6 = vld [vmem:[%s5831_s26 + $0x2c] sm:$0x1] }
  0x48   : > { %1484 = vmatpush.bf16.msrb.mxu2 %v5481_v36  ;;  %v550_v36 = vsel %vm5971_vm4, %v545_v24, %v549_v7 }
  0x49   : > { %1799 = vmatpush.bf16.msrb.mxu3 %v5505_v37  ;;  %v1241_v37 = vsel %vm5975_vm5, %v4738_v25, %v1240_v17  ;;  %v938_v53 = vunpack.c.l.b16 %v550_v36  ;;  %v5487_v17 = vld [vmem:[%s5831_s26 + $0xc] sm:$0xff]  ;;  %v4739_v25 = vrot.slane %v1172_v13, 9 }
  0x4a   : > { %1055 = vmatpush.bf16.msrb.mxu1 %v5473_v38  ;;  %2481 = vmatpush.bf16.msrb.mxu0 %v5513_v39  ;;  %v1971_v38 = vrot.slane %v1970_v26, 4  ;;  %v4949_v39 = vld [vmem:[%s5831_s26 + $0x18] sm:$0xf]  ;;  %v1367_v54 = vunpack.c.l.b16 %v1241_v37  ;;  %v1249_v26 = vrot.slane %v1247_v11, 4  ;;  %v5549_v36 = vld [vmem:[%s7357_s1 + $0x1b0] sm:$0xff] }
  0x4b   : > { %v5557_v37 = vld [vmem:[%s7357_s1 + $0x1f0] sm:$0xff] }
  0x4c   : > { %1485 = vmatpush.bf16.msrb.mxu2 %v5480_v40  ;;  %v4950_v40 = vld [vmem:[%s5831_s26 + $0x1c] sm:$0xf]  ;;  %v1976_v55 = vsel %vm5971_vm4, %v1971_v38, %v1975_v14  ;;  %v5525_v38 = vld [vmem:[%s7357_s1 + $0x170] sm:$0xff] }
  0x4d   : > { %1800 = vmatpush.bf16.msrb.mxu3 %v5504_v41  ;;  %v1981_v41 = vrot.slane %v1980_v28, 4  ;;  %v2001_v52 = vshrl.u32 %v4950_v40, 16  ;;  %v2364_v4 = vunpack.c.l.b16 %v1976_v55  ;;  %v1250_v28 = vrot.slane %v491_v61, 5 }
  0x4e   : > { %1056 = vmatpush.bf16.msrb.mxu1 %v5472_v42  ;;  %2482 = vmatpush.bf16.msrb.mxu0 %v5512_v43  ;;  %v1985_v42 = vrot.slane %v1983_v29, 5  ;;  %v562_v43 = vshrl.u32 %v489_v34, 16 }
  0x4f   : > { %v2003_v3 = vrot.slane %v2001_v52, 4  ;;  %v494_v52 = vld [vmem:[%s5831_s26 + $0x20] sm:$0x1] }
  0x50   : > { %1486 = vmatpush.bf16.msrb.mxu2 %v5479_v44  ;;  %v565_v44 = vshll.u32 %v489_v34, 16 }
  0x51   : > { %1801 = vmatpush.bf16.msrb.mxu3 %v5503_v45  ;;  %v560_v45 = vsel %vm5971_vm4, %v555_v30, %v559_v31  ;;  %v2009_v31 = vrot.slane %v2007_v16, 5 }
  0x52   : > { %1057 = vmatpush.bf16.msrb.mxu1 %v5471_v46  ;;  %2483 = vmatpush.bf16.msrb.mxu0 %v5511_v47  ;;  %v1244_v46 = vsel %vm5975_vm5, %v1242_v32, %v1243_v33  ;;  %v571_v47 = vshll.u32 %v5981_v35, 16  ;;  %v567_v58 = vrot.slane %v565_v44, 5  ;;  %v4953_v44 = vld [vmem:[%s5831_s26 + $0x28] sm:$0xf] }
  0x53   : > { %403 = vmatmul.bf16.gmra.mxu1 %v5453_v48  ;;  %423 = vmatmul.bf16.gmra.mxu2 %v5457_v49  ;;  %v575_v48 = vshrl.u32 %v5981_v35, 16  ;;  %v1988_v49 = vshrl.u32 %v4949_v39, 16  ;;  %v2021_v55 = vshll.u32 %v4953_v44, 16 }
  0x54   : > { %443 = vmatmul.bf16.gmra.mxu3 %v5461_v50  ;;  %3217 = vmatpush.bf16.msra.mxu2 %v5550_v56  ;;  %v1991_v50 = vshll.u32 %v4949_v39, 16  ;;  %v1986_v56 = vsel %vm5971_vm4, %v1981_v41, %v1985_v42  ;;  %v6000_v62 = vrot.slane %v571_v47, 5  ;;  %v5565_v39 = vld [vmem:[%s7357_s1 + $0x230] sm:$0xff]  ;;  %v1248_v42 = vsel %vm5975_vm5, %v4739_v25, %v1247_v11 }
  0x55   : > { %383 = vmatmul.bf16.gmra.mxu0 %v5449_v51  ;;  %3899 = vmatpush.bf16.msra.mxu3 %v5558_v57  ;;  %v1997_v51 = vshll.u32 %v4950_v40, 16  ;;  %v564_v57 = vrot.slane %v562_v43, 4  ;;  %v577_v63 = vrot.slane %v575_v48, 4  ;;  %v1990_v0 = vrot.slane %v1988_v49, 4  ;;  %v4952_v43 = vld [vmem:[%s5831_s26 + $0x24] sm:$0xf] }
  0x56   : > { %2902 = vmatpush.bf16.msra.mxu1 %v5526_v59  ;;  %4325 = vmatpush.bf16.msra.mxu0 %v5566_v60  ;;  %v939_v59 = vunpack.c.l.b16 %v560_v45  ;;  %v1368_v60 = vunpack.c.l.b16 %v1244_v46  ;;  %v1993_v1 = vrot.slane %v1991_v50, 5  ;;  %v2365_v5 = vunpack.c.l.b16 %v1986_v56 }
  0x57   : > { %v6002_v2 = vrot.slane %v1997_v51, 5  ;;  %v568_v7 = vor.u32 %v567_v58, %v564_v57  ;;  %v578_v10 = vor.u32 %v577_v63, %v6000_v62  ;;  %v1251_v45 = vsel %vm5975_vm5, %v1249_v26, %v1250_v28  ;;  %v4955_v26 = vld [vmem:[%s5831_s26 + $0x30] sm:$0xf] }
  0x58   : > { %v970_v9 = vpack.c.b16 %v939_v59, %v938_v53  ;;  %v1399_v12 = vpack.c.b16 %v1368_v60, %v1367_v54  ;;  %v1994_v14 = vor.u32 %v1993_v1, %v1990_v0  ;;  %v2396_v18 = vpack.c.b16 %v2365_v5, %v2364_v4  ;;  %3218 = vmatpush.bf16.msra.mxu2 %v5549_v36 }
  0x59   : > { %v2004_v15 = vor.u32 %v2003_v3, %v6002_v2  ;;  %v579_v24 = vrot.slane %v578_v10, 4  ;;  %3900 = vmatpush.bf16.msra.mxu3 %v5557_v37  ;;  %v2012_v53 = vshrl.u32 %v4952_v43, 16  ;;  %v2015_v54 = vshll.u32 %v4952_v43, 16 }
  0x5a   : > { %v1995_v29 = vrot.slane %v1994_v14, 4  ;;  %2903 = vmatpush.bf16.msra.mxu1 %v5525_v38  ;;  %4326 = vmatpush.bf16.msra.mxu0 %v5565_v39  ;;  %v2025_v56 = vshrl.u32 %v4953_v44, 16  ;;  %v1369_v59 = vunpack.c.l.b16 %v1248_v42  ;;  %v1370_v60 = vunpack.c.l.b16 %v1251_v45 }
  0x5b   : > { %v2005_v30 = vrot.slane %v2004_v15, 4  ;;  %v605_v1 = vshll.u32 %v494_v52, 16  ;;  %v2017_v3 = vrot.slane %v2015_v54, 5  ;;  %v2023_v4 = vrot.slane %v2021_v55, 5  ;;  %v1173_v15 = vld [vmem:[%s5831_s26 + $0x18] sm:$0xe] }
  0x5c   : > { %v2000_v46 = vsel %vm5971_vm4, %v1995_v29, %v6002_v2  ;;  %v2014_v2 = vrot.slane %v2012_v53, 4  ;;  %v2027_v5 = vrot.slane %v2025_v56, 4  ;;  %v2036_v37 = vshrl.u32 %v4955_v26, 16 }
  0x5d   : > { %v2010_v47 = vsel %vm5971_vm4, %v2005_v30, %v2009_v31  ;;  %v2366_v61 = vunpack.c.l.b16 %v2000_v46  ;;  %v2039_v38 = vshll.u32 %v4955_v26, 16 }
  0x5e   : > { %v2018_v16 = vor.u32 %v2017_v3, %v2014_v2  ;;  %v2038_v54 = vrot.slane %v2036_v37, 4 }
  0x5f   : > { %v2041_v55 = vrot.slane %v2039_v38, 5 }
  0x60   : > { %v2019_v29 = vrot.slane %v2018_v16, 4 }
  0x61   : > { %v2042_v3 = vor.u32 %v2041_v55, %v2038_v54 }
  0x62   : > { %v2024_v45 = vsel %vm5971_vm4, %v2019_v29, %v2023_v4 }
  0x63   : > { %408 = vmatmul.bf16.gmra.mxu1 %v5454_v19  ;;  %428 = vmatmul.bf16.gmra.mxu2 %v5458_v20  ;;  %v492_v19 = vld [vmem:[%s5831_s26 + $0x18] sm:$0xf]  ;;  %v569_v20 = vrot.slane %v568_v7, 4  ;;  %v2368_v56 = vunpack.c.l.b16 %v2024_v45 }
  0x64   : > { %448 = vmatmul.bf16.gmra.mxu3 %v5462_v21  ;;  %v583_v21 = vrot.slane %v581_v8, 5  ;;  %v586_v32 = vshrl.u32 %v492_v19, 16  ;;  %v589_v33 = vshll.u32 %v492_v19, 16  ;;  %v1400_v8 = vpack.c.b16 %v1370_v60, %v1369_v59  ;;  %v495_v19 = vld [vmem:[%s5831_s26 + $0x24] sm:$0xf] }
  0x65   : > { %388 = vmatmul.bf16.gmra.mxu0 %v5450_v22  ;;  %v6012_v22 = vld [vmem:[%s5831_s26 + $0x1c] sm:$0xf]  ;;  %v574_v40 = vsel %vm5971_vm4, %v569_v20, %v6000_v62  ;;  %v2367_v62 = vunpack.c.l.b16 %v2010_v47  ;;  %v6051_v20 = vld [vmem:[%s5831_s26 + $0x28] sm:$0xf]  ;;  %v497_v47 = vld [vmem:[%s5831_s26 + $0x2c] sm:$0x1] }
  0x66   : > { %v595_v34 = vshll.u32 %v6012_v22, 16  ;;  %v599_v35 = vshrl.u32 %v6012_v22, 16  ;;  %v584_v41 = vsel %vm5971_vm4, %v579_v24, %v583_v21  ;;  %v588_v48 = vrot.slane %v586_v32, 4  ;;  %v4956_v32 = vld [vmem:[%s5831_s26 + $0x34] sm:$0xf] }
  0x67   : > { %v591_v49 = vrot.slane %v589_v33, 5  ;;  %v940_v57 = vunpack.c.l.b16 %v574_v40  ;;  %v941_v58 = vunpack.c.l.b16 %v584_v41  ;;  %v2397_v10 = vpack.c.b16 %v2367_v62, %v2366_v61  ;;  %v4957_v61 = vld [vmem:[%s5831_s26 + $0x38] sm:$0x1] }
  0x68   : > { %v597_v50 = vrot.slane %v595_v34, 5  ;;  %v601_v51 = vrot.slane %v599_v35, 4  ;;  %v1254_v13 = vrot.slane %v6012_v22, 5  ;;  %v4740_v24 = vrot.slane %v1173_v15, 9 }
  0x69   : > { %v592_v63 = vor.u32 %v591_v49, %v588_v48  ;;  %v971_v7 = vpack.c.b16 %v941_v58, %v940_v57  ;;  %v1257_v22 = vrot.slane %v494_v52, 5  ;;  %v610_v33 = vshrl.u32 %v495_v19, 16 }
  0x6a   : > { %v602_v0 = vor.u32 %v601_v51, %v597_v50  ;;  %v1256_v25 = vrot.slane %v1254_v13, 4  ;;  %v613_v34 = vshll.u32 %v495_v19, 16  ;;  %v619_v35 = vshll.u32 %v6051_v20, 16 }
  0x6b   : > { %v593_v11 = vrot.slane %v592_v63, 4  ;;  %v623_v36 = vshrl.u32 %v6051_v20, 16  ;;  %v1255_v39 = vsel %vm5975_vm5, %v4740_v24, %v1254_v13  ;;  %v2045_v41 = vshll.u32 %v4956_v32, 16  ;;  %v6082_v13 = vld [vmem:[%s5831_s26 + $0x34] sm:$0xf] }
  0x6c   : > { %v603_v14 = vrot.slane %v602_v0, 4  ;;  %v1258_v40 = vsel %vm5975_vm5, %v1256_v25, %v1257_v22  ;;  %v2049_v42 = vshrl.u32 %v4956_v32, 16  ;;  %v612_v48 = vrot.slane %v610_v33, 4  ;;  %v4959_v24 = vld [vmem:[%s5831_s26 + $0x40] sm:$0xf]  ;;  %v5556_v25 = vld [vmem:[%s7357_s1 + $0x1e8] sm:$0xff] }
  0x6d   : > { %v598_v21 = vsel %vm5971_vm4, %v593_v11, %v597_v50  ;;  %v615_v49 = vrot.slane %v613_v34, 5  ;;  %v6070_v50 = vrot.slane %v619_v35, 5  ;;  %v625_v51 = vrot.slane %v623_v36, 4  ;;  %3901 = vmatpush.bf16.msra.mxu3 %v5556_v25 }
  0x6e   : > { %v942_v43 = vunpack.c.l.b16 %v598_v21  ;;  %v1371_v52 = vunpack.c.l.b16 %v1255_v39  ;;  %v1372_v53 = vunpack.c.l.b16 %v1258_v40  ;;  %v6072_v58 = vrot.slane %v2045_v41, 5  ;;  %v5548_v21 = vld [vmem:[%s7357_s1 + $0x1a8] sm:$0xff] }
  0x6f   : > { %v2051_v59 = vrot.slane %v2049_v42, 4  ;;  %v629_v60 = vshll.u32 %v497_v47, 16  ;;  %v616_v62 = vor.u32 %v615_v49, %v612_v48  ;;  %v626_v63 = vor.u32 %v625_v51, %v6070_v50  ;;  %3219 = vmatpush.bf16.msra.mxu2 %v5548_v21  ;;  %v5524_v40 = vld [vmem:[%s7357_s1 + $0x168] sm:$0xff] }
  0x70   : > { %v1261_v2 = vrot.slane %v6051_v20, 5  ;;  %v1264_v16 = vrot.slane %v497_v47, 5  ;;  %v647_v29 = vshrl.u32 %v6082_v13, 16  ;;  %v2069_v34 = vshll.u32 %v4959_v24, 16  ;;  %v500_v47 = vld [vmem:[%s5831_s26 + $0x38] sm:$0x1]  ;;  %2904 = vmatpush.bf16.msra.mxu1 %v5524_v40 }
  0x71   : > { %v627_v11 = vrot.slane %v626_v63, 4  ;;  %v2073_v35 = vshrl.u32 %v4959_v24, 16  ;;  %v4961_v21 = vld [vmem:[%s5831_s26 + $0x48] sm:$0xf] }
  0x72   : > { %v1263_v15 = vrot.slane %v1261_v2, 4 }
  0x73   : > { %1058 = vmatmul.bf16.vlgmr.msrb.gmra.mxu1 %v970_v9  ;;  %1487 = vmatmul.bf16.vlgmr.msrb.gmra.mxu2 %v1399_v12  ;;  %v5488_v9 = vld [vmem:[%s5831_s26 + $0x18] sm:$0xff]  ;;  %v607_v12 = vrot.slane %v605_v1, 5  ;;  %v1401_v1 = vpack.c.b16 %v1372_v53, %v1371_v52  ;;  %v2071_v53 = vrot.slane %v2069_v34, 5  ;;  %v2075_v54 = vrot.slane %v2073_v35, 4 }
  0x74   : > { %1802 = vmatmul.bf16.vlgmr.msrb.gmra.mxu3 %v5487_v17  ;;  %v2028_v17 = vor.u32 %v2027_v5, %v2023_v4  ;;  %v5489_v4 = vld [vmem:[%s5831_s26 + $0x24] sm:$0xff]  ;;  %v1265_v37 = vsel %vm5975_vm5, %v1263_v15, %v1264_v16  ;;  %v2084_v35 = vshrl.u32 %v4961_v21, 16 }
  0x75   : > { %2484 = vmatmul.bf16.vlgmr.msrb.gmra.mxu0 %v2396_v18  ;;  %v2031_v18 = vshll.u32 %v4954_v6, 16  ;;  %v608_v28 = vsel %vm5971_vm4, %v603_v14, %v607_v12  ;;  %v1174_v6 = vld [vmem:[%s5831_s26 + $0x24] sm:$0xe]  ;;  %v498_v12 = vld [vmem:[%s5831_s26 + $0x30] sm:$0xf]  ;;  %v1374_v52 = vunpack.c.l.b16 %v1265_v37 }
  0x76   : > { %v2029_v30 = vrot.slane %v2028_v17, 4  ;;  %v943_v44 = vunpack.c.l.b16 %v608_v28  ;;  %v4741_v14 = vrot.slane %v1174_v6, 9  ;;  %v2043_v17 = vrot.slane %v2042_v3, 4  ;;  %v501_v6 = vld [vmem:[%s5831_s26 + $0x3c] sm:$0xf] }
  0x77   : > { %v2033_v31 = vrot.slane %v2031_v18, 5  ;;  %v4958_v18 = vld [vmem:[%s5831_s26 + $0x3c] sm:$0xf]  ;;  %v634_v22 = vshrl.u32 %v498_v12, 16  ;;  %v637_v26 = vshll.u32 %v498_v12, 16  ;;  %v643_v28 = vshll.u32 %v6082_v13, 16 }
  0x78   : > { %v972_v0 = vpack.c.b16 %v943_v44, %v942_v43  ;;  %v1262_v36 = vsel %vm5975_vm5, %v4741_v14, %v1261_v2  ;;  %v2048_v38 = vsel %vm5971_vm4, %v2043_v17, %v6072_v58  ;;  %v649_v44 = vrot.slane %v647_v29, 4  ;;  %v6146_v37 = vld [vmem:[%s5831_s26 + $0x44] sm:$0x1] }
  0x79   : > { %v2034_v46 = vsel %vm5971_vm4, %v2029_v30, %v2033_v31  ;;  %v2060_v30 = vshrl.u32 %v4958_v18, 16  ;;  %v2063_v31 = vshll.u32 %v4958_v18, 16  ;;  %v636_v41 = vrot.slane %v634_v22, 4 }
  0x7a   : > { %v2369_v57 = vunpack.c.l.b16 %v2034_v46  ;;  %v639_v42 = vrot.slane %v637_v26, 5  ;;  %v6111_v43 = vrot.slane %v643_v28, 5  ;;  %v1373_v51 = vunpack.c.l.b16 %v1262_v36  ;;  %v4962_v28 = vld [vmem:[%s5831_s26 + $0x4c] sm:$0xf] }
  0x7b   : > { %v2062_v48 = vrot.slane %v2060_v30, 4  ;;  %v2065_v49 = vrot.slane %v2063_v31, 5  ;;  %v2370_v55 = vunpack.c.l.b16 %v2048_v38  ;;  %v2076_v2 = vor.u32 %v2075_v54, %v2071_v53 }
  0x7c   : > { %v2398_v5 = vpack.c.b16 %v2369_v57, %v2368_v56  ;;  %v4960_v57 = vld [vmem:[%s5831_s26 + $0x44] sm:$0x1]  ;;  %v1271_v14 = vrot.slane %v500_v47, 5  ;;  %v658_v17 = vshrl.u32 %v501_v6, 16  ;;  %v661_v18 = vshll.u32 %v501_v6, 16 }
  0x7d   : > { %v2079_v3 = vshll.u32 %v4960_v57, 16  ;;  %v2087_v36 = vshll.u32 %v4961_v21, 16  ;;  %v2093_v38 = vshll.u32 %v4962_v28, 16 }
  0x7e   : > { %v660_v31 = vrot.slane %v658_v17, 4 }
  0x7f   : > { %v2081_v16 = vrot.slane %v2079_v3, 5 }
  0x83   : > { %1063 = vmatmul.bf16.gmra.mxu1 %v971_v7  ;;  %1492 = vmatmul.bf16.gmra.mxu2 %v1400_v8  ;;  %v2052_v7 = vor.u32 %v2051_v59, %v6072_v58  ;;  %v2055_v8 = vshll.u32 %v4957_v61, 16  ;;  %v640_v58 = vor.u32 %v639_v42, %v636_v41  ;;  %v650_v59 = vor.u32 %v649_v44, %v6111_v43 }
  0x84   : > { %1807 = vmatmul.bf16.gmra.mxu3 %v5488_v9  ;;  %v631_v9 = vrot.slane %v629_v60, 5  ;;  %v653_v60 = vshll.u32 %v500_v47, 16  ;;  %v1268_v61 = vrot.slane %v6082_v13, 5  ;;  %v2077_v13 = vrot.slane %v2076_v2, 4  ;;  %v504_v2 = vld [vmem:[%s5831_s26 + $0x48] sm:$0xf] }
  0x85   : > { %2489 = vmatmul.bf16.gmra.mxu0 %v2397_v10  ;;  %v617_v10 = vrot.slane %v616_v62, 4  ;;  %v2053_v19 = vrot.slane %v2052_v7, 4  ;;  %v2057_v20 = vrot.slane %v2055_v8, 5  ;;  %v2066_v62 = vor.u32 %v2065_v49, %v2062_v48 }
  0x86   : > { %v632_v33 = vsel %vm5971_vm4, %v627_v11, %v631_v9  ;;  %v641_v7 = vrot.slane %v640_v58, 4  ;;  %v651_v8 = vrot.slane %v650_v59, 4  ;;  %v655_v9 = vrot.slane %v653_v60, 5  ;;  %v1176_v59 = vld [vmem:[%s5831_s26 + $0x3c] sm:$0xe] }
  0x87   : > { %v622_v32 = vsel %vm5971_vm4, %v617_v10, %v6070_v50  ;;  %v2058_v39 = vsel %vm5971_vm4, %v2053_v19, %v2057_v20  ;;  %v945_v46 = vunpack.c.l.b16 %v632_v33  ;;  %v5564_v50 = vld [vmem:[%s7357_s1 + $0x228] sm:$0xff]  ;;  %v6124_v10 = vld [vmem:[%s5831_s26 + $0x40] sm:$0xf]  ;;  %v1270_v12 = vrot.slane %v1268_v61, 4 }
  0x88   : > { %v944_v45 = vunpack.c.l.b16 %v622_v32  ;;  %v2371_v56 = vunpack.c.l.b16 %v2058_v39  ;;  %4327 = vmatpush.bf16.msra.mxu0 %v5564_v50  ;;  %v2067_v15 = vrot.slane %v2066_v62, 4  ;;  %v667_v19 = vshll.u32 %v6124_v10, 16 }
  0x89   : > { %v671_v20 = vshrl.u32 %v6124_v10, 16  ;;  %v646_v24 = vsel %vm5971_vm4, %v641_v7, %v6111_v43  ;;  %v656_v25 = vsel %vm5971_vm4, %v651_v8, %v655_v9  ;;  %v1272_v26 = vsel %vm5975_vm5, %v1270_v12, %v1271_v14  ;;  %v6169_v9 = vld [vmem:[%s5831_s26 + $0x4c] sm:$0xf]  ;;  %v4964_v12 = vld [vmem:[%s5831_s26 + $0x54] sm:$0xf] }
  0x8a   : > { %v973_v63 = vpack.c.b16 %v945_v46, %v944_v45  ;;  %v2072_v29 = vsel %vm5971_vm4, %v2067_v15, %v2071_v53  ;;  %v2082_v30 = vsel %vm5971_vm4, %v2077_v13, %v2081_v16  ;;  %v663_v32 = vrot.slane %v661_v18, 5  ;;  %v4965_v14 = vld [vmem:[%s5831_s26 + $0x58] sm:$0xf]  ;;  %v5547_v18 = vld [vmem:[%s7357_s1 + $0x1a0] sm:$0xff] }
  0x8b   : > { %v6143_v33 = vrot.slane %v667_v19, 5  ;;  %v673_v34 = vrot.slane %v671_v20, 4  ;;  %v2097_v39 = vshrl.u32 %v4962_v28, 16  ;;  %v946_v40 = vunpack.c.l.b16 %v646_v24  ;;  %v5555_v19 = vld [vmem:[%s7357_s1 + $0x1e0] sm:$0xff]  ;;  %3220 = vmatpush.bf16.msra.mxu2 %v5547_v18  ;;  %v6229_v18 = vld [vmem:[%s5831_s26 + $0x58] sm:$0xf] }
  0x8c   : > { %v947_v41 = vunpack.c.l.b16 %v656_v25  ;;  %v1376_v43 = vunpack.c.l.b16 %v1272_v26  ;;  %v2372_v44 = vunpack.c.l.b16 %v2072_v29  ;;  %v2373_v45 = vunpack.c.l.b16 %v2082_v30  ;;  %3902 = vmatpush.bf16.msra.mxu3 %v5555_v19 }
  0x8d   : > { %v664_v46 = vor.u32 %v663_v32, %v660_v31  ;;  %v674_v47 = vor.u32 %v673_v34, %v6143_v33  ;;  %v677_v48 = vshll.u32 %v6146_v37, 16  ;;  %v2086_v49 = vrot.slane %v2084_v35, 4 }
  0x8e   : > { %v2089_v50 = vrot.slane %v2087_v36, 5  ;;  %v2099_v53 = vrot.slane %v2097_v39, 4  ;;  %v1275_v54 = vrot.slane %v6124_v10, 5  ;;  %v2400_v58 = vpack.c.b16 %v2373_v45, %v2372_v44  ;;  %v506_v45 = vld [vmem:[%s5831_s26 + $0x50] sm:$0x1] }
  0x8f   : > { %v665_v62 = vrot.slane %v664_v46, 4  ;;  %v4743_v7 = vrot.slane %v1176_v59, 9  ;;  %v682_v10 = vshrl.u32 %v504_v2, 16  ;;  %v1278_v16 = vrot.slane %v6146_v37, 5 }
  0x90   : > { %v1277_v8 = vrot.slane %v1275_v54, 4  ;;  %v691_v24 = vshll.u32 %v6169_v9, 16  ;;  %v695_v25 = vshrl.u32 %v6169_v9, 16  ;;  %v2108_v26 = vshrl.u32 %v4964_v12, 16 }
  0x91   : > { %v670_v15 = vsel %vm5971_vm4, %v665_v62, %v6143_v33  ;;  %v2111_v28 = vshll.u32 %v4964_v12, 16  ;;  %v2117_v29 = vshll.u32 %v4965_v14, 16  ;;  %v2121_v30 = vshrl.u32 %v4965_v14, 16 }
  0x92   : > { %v1276_v33 = vsel %vm5975_vm5, %v4743_v7, %v1275_v54  ;;  %v684_v34 = vrot.slane %v682_v10, 4  ;;  %v1279_v39 = vsel %vm5975_vm5, %v1277_v8, %v1278_v16  ;;  %v693_v46 = vrot.slane %v691_v24, 5 }
  0x93   : > { %1068 = vmatmul.bf16.gmra.mxu1 %v972_v0  ;;  %1497 = vmatmul.bf16.gmra.mxu2 %v1401_v1  ;;  %v1402_v0 = vpack.c.b16 %v1374_v52, %v1373_v51  ;;  %v1175_v1 = vld [vmem:[%s5831_s26 + $0x30] sm:$0xe]  ;;  %v6153_v51 = vld [vmem:[%s7358_s2] ss:$0 sm:$0xff]  ;;  %v6155_v52 = vrot.slane %v2093_v38, 5  ;;  %v948_v38 = vunpack.c.l.b16 %v670_v15 }
  0x94   : > { %1812 = vmatmul.bf16.gmra.mxu3 %v5489_v4  ;;  %v5490_v4 = vld [vmem:[%s5831_s26 + $0x30] sm:$0xff]  ;;  %v4742_v11 = vrot.slane %v1175_v1, 9  ;;  %v2090_v1 = vor.u32 %v2089_v50, %v2086_v49  ;;  %v2113_v49 = vrot.slane %v2111_v28, 5  ;;  %v6211_v50 = vrot.slane %v2117_v29, 5 }
  0x95   : > { %2494 = vmatmul.bf16.gmra.mxu0 %v2398_v5  ;;  %v2399_v5 = vpack.c.b16 %v2371_v56, %v2370_v55  ;;  %v4963_v55 = vld [vmem:[%s5831_s26 + $0x50] sm:$0x1]  ;;  %v974_v56 = vpack.c.b16 %v947_v41, %v946_v40  ;;  %v5523_v41 = vld [vmem:[%s7357_s1 + $0x160] sm:$0xff] }
  0x96   : > { %v1269_v22 = vsel %vm5975_vm5, %v4742_v11, %v1268_v61  ;;  %v5491_v61 = vld [vmem:[%s5831_s26 + $0x3c] sm:$0xff]  ;;  %v2103_v6 = vshll.u32 %v4963_v55, 16  ;;  %v685_v11 = vshll.u32 %v504_v2, 16  ;;  %v2091_v17 = vrot.slane %v2090_v1, 4  ;;  %2905 = vmatpush.bf16.msra.mxu1 %v5523_v41  ;;  %v1177_v1 = vld [vmem:[%s5831_s26 + $0x48] sm:$0xe] }
  0x97   : > { %v1375_v42 = vunpack.c.l.b16 %v1269_v22  ;;  %v1377_v55 = vunpack.c.l.b16 %v1276_v33  ;;  %v4744_v24 = vrot.slane %v1177_v1, 9 }
  0x98   : > { %v2105_v21 = vrot.slane %v2103_v6, 5  ;;  %v687_v35 = vrot.slane %v685_v11, 5  ;;  %v2096_v40 = vsel %vm5971_vm4, %v2091_v17, %v6155_v52  ;;  %v507_v17 = vld [vmem:[%s5831_s26 + $0x54] sm:$0xf] }
  0x99   : > { %v1403_v57 = vpack.c.b16 %v1376_v43, %v1375_v42  ;;  %v2374_v59 = vunpack.c.l.b16 %v2096_v40  ;;  %v709_v33 = vshll.u32 %v507_v17, 16 }
  0xa3   : > { %1073 = vmatmul.bf16.gmra.mxu1 %v973_v63  ;;  %1502 = vmatmul.bf16.gmra.mxu2 %v1402_v0  ;;  %v675_v63 = vrot.slane %v674_v47, 4  ;;  %v679_v0 = vrot.slane %v677_v48, 5  ;;  %v697_v47 = vrot.slane %v695_v25, 4  ;;  %v2110_v48 = vrot.slane %v2108_v26, 4 }
  0xa4   : > { %1817 = vmatmul.bf16.gmra.mxu3 %v5490_v4 }
  0xa5   : > { %2499 = vmatmul.bf16.gmra.mxu0 %v2399_v5  ;;  %v2100_v5 = vor.u32 %v2099_v53, %v6155_v52  ;;  %v680_v13 = vsel %vm5971_vm4, %v675_v63, %v679_v0  ;;  %v2123_v52 = vrot.slane %v2121_v30, 4  ;;  %v5563_v53 = vld [vmem:[%s7357_s1 + $0x220] sm:$0xff]  ;;  %v698_v62 = vor.u32 %v697_v47, %v693_v46 }
  0xa6   : > { %v949_v54 = vunpack.c.l.b16 %v680_v13  ;;  %4328 = vmatpush.bf16.msra.mxu0 %v5563_v53  ;;  %v1282_v63 = vrot.slane %v6169_v9, 5  ;;  %v2114_v2 = vor.u32 %v2113_v49, %v2110_v48  ;;  %v5492_v9 = vld [vmem:[%s5831_s26 + $0x48] sm:$0xff]  ;;  %v4968_v47 = vld [vmem:[%s5831_s26 + $0x64] sm:$0xf]  ;;  %v711_v53 = vrot.slane %v709_v33, 5 }
  0xa7   : > { %v2101_v20 = vrot.slane %v2100_v5, 4  ;;  %v2124_v5 = vor.u32 %v2123_v52, %v6211_v50 }
  0xa8   : > { %v975_v10 = vpack.c.b16 %v949_v54, %v948_v38  ;;  %v1284_v25 = vrot.slane %v1282_v63, 4  ;;  %v2115_v26 = vrot.slane %v2114_v2, 4  ;;  %v1283_v38 = vsel %vm5975_vm5, %v4744_v24, %v1282_v63 }
  0xa9   : > { %v2106_v44 = vsel %vm5971_vm4, %v2101_v20, %v2105_v21  ;;  %v699_v21 = vrot.slane %v698_v62, 4  ;;  %v2125_v28 = vrot.slane %v2124_v5, 4  ;;  %v1379_v62 = vunpack.c.l.b16 %v1283_v38 }
  0xaa   : > { %v2141_v63 = vshll.u32 %v4968_v47, 16 }
  0xb0   : > { %v394_v60 = vpop.f32.mrf.mxu1 }
  0xb1   : > { %v6163_v3 = vadd.f32 %v6153_v51, %v394_v60  ;;  %v2375_v60 = vunpack.c.l.b16 %v2106_v44 }
  0xb2   : > { %v6165_v4 = vpop.f32.mrf.mxu0 }
  0xb3   : > { %1078 = vmatmul.bf16.gmra.mxu1 %v974_v56  ;;  %1507 = vmatmul.bf16.gmra.mxu2 %v1403_v57  ;;  %v1378_v56 = vunpack.c.l.b16 %v1279_v39  ;;  %v688_v57 = vor.u32 %v687_v35, %v684_v34  ;;  %v2401_v13 = vpack.c.b16 %v2375_v60, %v2374_v59  ;;  %v715_v34 = vshll.u32 %v6229_v18, 16  ;;  %v4967_v39 = vld [vmem:[%s5831_s26 + $0x60] sm:$0xf] }
  0xb4   : > { %1822 = vmatmul.bf16.gmra.mxu3 %v5491_v61  ;;  %v701_v61 = vshll.u32 %v506_v45, 16  ;;  %v719_v35 = vshrl.u32 %v6229_v18, 16  ;;  %v2135_v59 = vshll.u32 %v4967_v39, 16 }
  0xb5   : > { %2504 = vmatmul.bf16.gmra.mxu0 %v2400_v58  ;;  %v4966_v58 = vld [vmem:[%s5831_s26 + $0x5c] sm:$0x1]  ;;  %v1404_v11 = vpack.c.b16 %v1378_v56, %v1377_v55  ;;  %v689_v12 = vrot.slane %v688_v57, 4  ;;  %v6256_v54 = vrot.slane %v715_v34, 5 }
  0xb6   : > { %v414_v22 = vpop.f32.mrf.mxu2  ;;  %v2127_v6 = vshll.u32 %v4966_v58, 16  ;;  %v703_v16 = vrot.slane %v701_v61, 5  ;;  %v6262_v57 = vld [vmem:[%s5831_s26 + $0x5c] sm:$0x1]  ;;  %v721_v58 = vrot.slane %v719_v35, 4  ;;  %v5493_v35 = vld [vmem:[%s5831_s26 + $0x54] sm:$0xff] }
  0xb7   : > { %v6188_v31 = vadd.f32 %v6153_v51, %v414_v22  ;;  %v434_v32 = vpop.f32.mrf.mxu3  ;;  %v1285_v22 = vrot.slane %v506_v45, 5  ;;  %v694_v30 = vsel %vm5971_vm4, %v689_v12, %v693_v46  ;;  %v2120_v45 = vsel %vm5971_vm4, %v2115_v26, %v6211_v50 }
  0xb8   : > { %v6193_v36 = vadd.f32 %v6153_v51, %v434_v32  ;;  %v396_v37 = vpop.f32.mrf.mxu1  ;;  %v2129_v29 = vrot.slane %v2127_v6, 5  ;;  %v706_v32 = vshrl.u32 %v507_v17, 16  ;;  %v950_v41 = vunpack.c.l.b16 %v694_v30 }
  0xb9   : > { %v6204_v42 = vadd.f32 %v6153_v51, %v396_v37  ;;  %v704_v37 = vsel %vm5971_vm4, %v699_v21, %v703_v16  ;;  %v1286_v44 = vsel %vm5975_vm5, %v1284_v25, %v1285_v22  ;;  %v2132_v50 = vshrl.u32 %v4967_v39, 16  ;;  %v4969_v22 = vld [vmem:[%s5831_s26 + $0x68] sm:$0x1] }
  0xba   : > { %v6206_v43 = vpop.f32.mrf.mxu0  ;;  %v2130_v46 = vsel %vm5971_vm4, %v2125_v28, %v2129_v29  ;;  %v708_v52 = vrot.slane %v706_v32, 4  ;;  %v951_v1 = vunpack.c.l.b16 %v704_v37  ;;  %v1380_v2 = vunpack.c.l.b16 %v1286_v44 }
  0xbb   : > { %v2376_v5 = vunpack.c.l.b16 %v2120_v45  ;;  %v2377_v6 = vunpack.c.l.b16 %v2130_v46  ;;  %v2134_v12 = vrot.slane %v2132_v50, 4  ;;  %v1289_v32 = vrot.slane %v6229_v18, 5  ;;  %v510_v18 = vld [vmem:[%s5831_s26 + $0x60] sm:$0xf] }
  0xbc   : > { %v976_v21 = vpack.c.b16 %v951_v1, %v950_v41  ;;  %v1405_v24 = vpack.c.b16 %v1380_v2, %v1379_v62  ;;  %v2151_v45 = vshll.u32 %v4969_v22, 16  ;;  %v5554_v62 = vld [vmem:[%s7357_s1 + $0x1d8] sm:$0xff]  ;;  %v730_v1 = vshrl.u32 %v510_v18, 16 }
  0xbd   : > { %v2402_v25 = vpack.c.b16 %v2377_v6, %v2376_v5  ;;  %v1291_v46 = vrot.slane %v1289_v32, 4  ;;  %3903 = vmatpush.bf16.msra.mxu3 %v5554_v62 }
  0xbe   : > { %v416_v0 = vpop.f32.mrf.mxu2 }
  0xbf   : > { %v6221_v7 = vadd.f32 %v6153_v51, %v416_v0  ;;  %v436_v8 = vpop.f32.mrf.mxu3  ;;  %v2145_v0 = vshrl.u32 %v4968_v47, 16  ;;  %v1292_v47 = vrot.slane %v6262_v57, 5 }
  0xc0   : > { %v6224_v14 = vadd.f32 %v6153_v51, %v436_v8  ;;  %v399_v15 = vpop.f32.mrf.mxu1  ;;  %v712_v8 = vor.u32 %v711_v53, %v708_v52  ;;  %v4970_v52 = vld [vmem:[%s5831_s26 + $0x6c] sm:$0xf] }
  0xc1   : > { %v6232_v19 = vadd.f32 %v6153_v51, %v399_v15  ;;  %v2137_v15 = vrot.slane %v2135_v59, 5  ;;  %v2147_v16 = vrot.slane %v2145_v0, 4  ;;  %v4971_v59 = vld [vmem:[%s5831_s26 + $0x70] sm:$0xf]  ;;  %v2153_v0 = vrot.slane %v2151_v45, 5 }
  0xc2   : > { %7366 = vst [vmem:[#allocation5_spill] sm:$0xff] %v6224_v14  ;;  %v6234_v20 = vpop.f32.mrf.mxu0  ;;  %v713_v29 = vrot.slane %v712_v8, 4  ;;  %v2156_v8 = vshrl.u32 %v4970_v52, 16 }
  0xc3   : > { %1083 = vmatmul.bf16.gmra.mxu1 %v975_v10  ;;  %1512 = vmatmul.bf16.gmra.mxu2 %v1404_v11  ;;  %v725_v10 = vshll.u32 %v6262_v57, 16  ;;  %v722_v11 = vor.u32 %v721_v58, %v6256_v54  ;;  %v2138_v39 = vor.u32 %v2137_v15, %v2134_v12  ;;  %v5546_v57 = vld [vmem:[%s7357_s1 + $0x198] sm:$0xff] }
  0xc4   : > { %1827 = vmatmul.bf16.gmra.mxu3 %v5492_v9  ;;  %v1178_v9 = vld [vmem:[%s5831_s26 + $0x54] sm:$0xe]  ;;  %v718_v53 = vsel %vm5971_vm4, %v713_v29, %v6256_v54  ;;  %v733_v54 = vshll.u32 %v510_v18, 16  ;;  %3221 = vmatpush.bf16.msra.mxu2 %v5546_v57 }
  0xc5   : > { %2509 = vmatmul.bf16.gmra.mxu0 %v2401_v13  ;;  %v6272_v13 = vrot.slane %v2141_v63, 5  ;;  %v727_v30 = vrot.slane %v725_v10, 5  ;;  %v723_v37 = vrot.slane %v722_v11, 4  ;;  %v4745_v38 = vrot.slane %v1178_v9, 9 }
  0xc6   : > { %v419_v40 = vpop.f32.mrf.mxu2  ;;  %v2139_v50 = vrot.slane %v2138_v39, 4  ;;  %v2159_v10 = vshll.u32 %v4970_v52, 16  ;;  %v952_v15 = vunpack.c.l.b16 %v718_v53  ;;  %v2165_v9 = vshll.u32 %v4971_v59, 16 }
  0xc7   : > { %v6254_v48 = vadd.f32 %v6153_v51, %v419_v40  ;;  %v439_v49 = vpop.f32.mrf.mxu3  ;;  %v2148_v44 = vor.u32 %v2147_v16, %v6272_v13  ;;  %v1290_v58 = vsel %vm5975_vm5, %v4745_v38, %v1289_v32  ;;  %v2169_v16 = vshrl.u32 %v4971_v59, 16 }
  0xc8   : > { %v6259_v55 = vadd.f32 %v6153_v51, %v439_v49  ;;  %v401_v56 = vpop.f32.mrf.mxu1  ;;  %v6292_v49 = vld [vmem:[%s5831_s26 + $0x64] sm:$0xf]  ;;  %v2144_v22 = vsel %vm5971_vm4, %v2139_v50, %v6272_v13  ;;  %v732_v32 = vrot.slane %v730_v1, 4  ;;  %v512_v13 = vld [vmem:[%s5831_s26 + $0x68] sm:$0x1]  ;;  %v2161_v45 = vrot.slane %v2159_v10, 5 }
  0xc9   : > { %v6265_v60 = vadd.f32 %v6153_v51, %v401_v56  ;;  %v728_v56 = vsel %vm5971_vm4, %v723_v37, %v727_v30  ;;  %v2149_v63 = vrot.slane %v2148_v44, 4  ;;  %v739_v5 = vshll.u32 %v6292_v49, 16  ;;  %v5562_v37 = vld [vmem:[%s7357_s1 + $0x218] sm:$0xff]  ;;  %v4972_v50 = vld [vmem:[%s5831_s26 + $0x74] sm:$0x1] }
  0xca   : > { %7367 = vst [vmem:[#allocation6_spill] sm:$0xff] %v6259_v55  ;;  %v6267_v61 = vpop.f32.mrf.mxu0  ;;  %v743_v6 = vshrl.u32 %v6292_v49, 16  ;;  %v2158_v44 = vrot.slane %v2156_v8, 4  ;;  %v1381_v18 = vunpack.c.l.b16 %v1290_v58  ;;  %v2171_v52 = vrot.slane %v2169_v16, 4  ;;  %4329 = vmatpush.bf16.msra.mxu0 %v5562_v37  ;;  %v1179_v1 = vld [vmem:[%s5831_s26 + $0x60] sm:$0xe] }
  0xcb   : > { %v2154_v30 = vsel %vm5971_vm4, %v2149_v63, %v2153_v0  ;;  %v6336_v38 = vrot.slane %v739_v5, 5  ;;  %v2378_v53 = vunpack.c.l.b16 %v2144_v22  ;;  %v749_v59 = vshll.u32 %v512_v13, 16 }
  0xcc   : > { %v745_v39 = vrot.slane %v743_v6, 4  ;;  %v1296_v58 = vrot.slane %v6292_v49, 5  ;;  %v2175_v10 = vshll.u32 %v4972_v50, 16  ;;  %v1299_v37 = vrot.slane %v512_v13, 5  ;;  %v4973_v13 = vld [vmem:[%s5831_s26 + $0x78] sm:$0xf] }
  0xcd   : > { %v751_v22 = vrot.slane %v749_v59, 5 }
  0xce   : > { %v421_v17 = vpop.f32.mrf.mxu2  ;;  %v746_v0 = vor.u32 %v745_v39, %v6336_v38 }
  0xcf   : > { %v6276_v26 = vadd.f32 %v6153_v51, %v421_v17  ;;  %v441_v28 = vpop.f32.mrf.mxu3 }
  0xd0   : > { %v6280_v33 = vadd.f32 %v6153_v51, %v441_v28  ;;  %v404_v34 = vpop.f32.mrf.mxu1 }
  0xd1   : > { %v6284_v40 = vadd.f32 %v6153_v51, %v404_v34  ;;  %v735_v34 = vrot.slane %v733_v54, 5  ;;  %v2162_v54 = vor.u32 %v2161_v45, %v2158_v44  ;;  %v2177_v45 = vrot.slane %v2175_v10, 5  ;;  %v6386_v10 = vld [vmem:[%s5831_s26 + $0x74] sm:$0x1] }
  0xd2   : > { %7368 = vst [vmem:[#allocation7_spill] sm:$0xff] %v6280_v33  ;;  %v6286_v41 = vpop.f32.mrf.mxu0 }
  0xd3   : > { %1088 = vmatmul.bf16.gmra.mxu1 %v976_v21  ;;  %1517 = vmatmul.bf16.gmra.mxu2 %v1405_v24  ;;  %v953_v24 = vunpack.c.l.b16 %v728_v56  ;;  %v2379_v56 = vunpack.c.l.b16 %v2154_v30  ;;  %v736_v57 = vor.u32 %v735_v34, %v732_v32  ;;  %v4746_v30 = vrot.slane %v1179_v1, 9  ;;  %v6359_v32 = vld [vmem:[%s5831_s26 + $0x70] sm:$0xf] }
  0xd4   : > { %1832 = vmatmul.bf16.gmra.mxu3 %v5493_v35  ;;  %v5522_v35 = vld [vmem:[%s7357_s1 + $0x158] sm:$0xff]  ;;  %v747_v34 = vrot.slane %v746_v0, 4  ;;  %v2163_v39 = vrot.slane %v2162_v54, 4 }
  0xd5   : > { %2514 = vmatmul.bf16.gmra.mxu0 %v2402_v25  ;;  %v1293_v25 = vsel %vm5975_vm5, %v1291_v46, %v1292_v47  ;;  %v6338_v47 = vrot.slane %v2165_v9, 5  ;;  %2906 = vmatpush.bf16.msra.mxu1 %v5522_v35  ;;  %v977_v63 = vpack.c.b16 %v953_v24, %v952_v15  ;;  %v5494_v15 = vld [vmem:[%s5831_s26 + $0x60] sm:$0xff]  ;;  %v2403_v16 = vpack.c.b16 %v2379_v56, %v2378_v53  ;;  %v4974_v0 = vld [vmem:[%s5831_s26 + $0x7c] sm:$0xf] }
  0xd6   : > { %v424_v2 = vpop.f32.mrf.mxu2  ;;  %v1382_v46 = vunpack.c.l.b16 %v1293_v25  ;;  %v737_v25 = vrot.slane %v736_v57, 4  ;;  %v1298_v35 = vrot.slane %v1296_v58, 4  ;;  %v767_v53 = vshrl.u32 %v6359_v32, 16 }
  0xd7   : > { %v6312_v11 = vadd.f32 %v6153_v51, %v424_v2  ;;  %v444_v12 = vpop.f32.mrf.mxu3  ;;  %v2172_v8 = vor.u32 %v2171_v52, %v6338_v47  ;;  %v763_v52 = vshll.u32 %v6359_v32, 16  ;;  %v752_v57 = vsel %vm5971_vm4, %v747_v34, %v751_v22 }
  0xd8   : > { %v6315_v17 = vadd.f32 %v6153_v51, %v444_v12  ;;  %v406_v21 = vpop.f32.mrf.mxu1  ;;  %v1406_v6 = vpack.c.b16 %v1382_v46, %v1381_v18  ;;  %v742_v56 = vsel %vm5971_vm4, %v737_v25, %v6336_v38  ;;  %v1297_v59 = vsel %vm5975_vm5, %v4746_v30, %v1296_v58 }
  0xd9   : > { %v6323_v28 = vadd.f32 %v6153_v51, %v406_v21  ;;  %v513_v21 = vld [vmem:[%s5831_s26 + $0x6c] sm:$0xf]  ;;  %v2173_v44 = vrot.slane %v2172_v8, 4  ;;  %v2183_v25 = vshll.u32 %v4973_v13, 16  ;;  %v2189_v22 = vshll.u32 %v4974_v0, 16 }
  0xda   : > { %7369 = vst [vmem:[#allocation8_spill] sm:$0xff] %v6315_v17  ;;  %v6325_v29 = vpop.f32.mrf.mxu0  ;;  %v754_v18 = vshrl.u32 %v513_v21, 16  ;;  %v757_v46 = vshll.u32 %v513_v21, 16  ;;  %v2193_v30 = vshrl.u32 %v4974_v0, 16  ;;  %v954_v34 = vunpack.c.l.b16 %v742_v56 }
  0xdb   : > { %v2178_v54 = vsel %vm5971_vm4, %v2173_v44, %v2177_v45  ;;  %v6399_v0 = vrot.slane %v2189_v22, 5 }
  0xdc   : > { %v2381_v45 = vunpack.c.l.b16 %v2178_v54  ;;  %v2195_v56 = vrot.slane %v2193_v30, 4  ;;  %v4975_v54 = vld [vmem:[%s5831_s26 + $0x80] sm:$0x1] }
  0xde   : > { %v426_v62 = vpop.f32.mrf.mxu2 }
  0xdf   : > { %v6345_v2 = vadd.f32 %v6153_v51, %v426_v62  ;;  %v446_v5 = vpop.f32.mrf.mxu3  ;;  %v1300_v62 = vsel %vm5975_vm5, %v1298_v35, %v1299_v37  ;;  %v955_v35 = vunpack.c.l.b16 %v752_v57  ;;  %v1383_v37 = vunpack.c.l.b16 %v1297_v59 }
  0xe0   : > { %v6349_v12 = vadd.f32 %v6153_v51, %v446_v5  ;;  %v409_v9 = vpop.f32.mrf.mxu1  ;;  %v756_v5 = vrot.slane %v754_v18, 4  ;;  %v454_v57 = vadd.f32 %v6153_v51, %v6165_v4 }
  0xe1   : > { %v6354_v24 = vadd.f32 %v6153_v51, %v409_v9  ;;  %v6388_v9 = vrot.slane %v763_v52, 5 }
  0xe2   : > { %7370 = vst [vmem:[#allocation9_spill] sm:$0xff] %v6349_v12  ;;  %v6356_v49 = vpop.f32.mrf.mxu0 }
  0xe3   : > { %1093 = vmatmul.bf16.gmra.mxu1 %v977_v63  ;;  %1522 = vmatmul.bf16.gmra.mxu2 %v1406_v6  ;;  %v2168_v63 = vsel %vm5971_vm4, %v2163_v39, %v6338_v47  ;;  %v759_v6 = vrot.slane %v757_v46, 5  ;;  %v2180_v47 = vshrl.u32 %v4973_v13, 16  ;;  %v1384_v39 = vunpack.c.l.b16 %v1300_v62 }
  0xe4   : > { %1837 = vmatmul.bf16.gmra.mxu3 %v5494_v15  ;;  %v769_v15 = vrot.slane %v767_v53, 4  ;;  %v2380_v44 = vunpack.c.l.b16 %v2168_v63  ;;  %v773_v46 = vshll.u32 %v6386_v10, 16  ;;  %v1303_v53 = vrot.slane %v6359_v32, 5 }
  0xe5   : > { %2519 = vmatmul.bf16.gmra.mxu0 %v2403_v16  ;;  %v760_v18 = vor.u32 %v759_v6, %v756_v5  ;;  %v2182_v13 = vrot.slane %v2180_v47, 4  ;;  %v978_v62 = vpack.c.b16 %v955_v35, %v954_v34  ;;  %v1407_v63 = vpack.c.b16 %v1384_v39, %v1383_v37  ;;  %v516_v47 = vld [vmem:[%s5831_s26 + $0x78] sm:$0xf] }
  0xe6   : > { %v429_v50 = vpop.f32.mrf.mxu2  ;;  %v770_v52 = vor.u32 %v769_v15, %v6388_v9  ;;  %v2404_v6 = vpack.c.b16 %v2381_v45, %v2380_v44  ;;  %v775_v15 = vrot.slane %v773_v46, 5  ;;  %v1305_v34 = vrot.slane %v1303_v53, 4 }
  0xe7   : > { %v6378_v1 = vadd.f32 %v6153_v51, %v429_v50  ;;  %v449_v38 = vpop.f32.mrf.mxu3  ;;  %v1180_v50 = vld [vmem:[%s5831_s26 + $0x6c] sm:$0xe]  ;;  %v2196_v44 = vor.u32 %v2195_v56, %v6399_v0  ;;  %v2199_v45 = vshll.u32 %v4975_v54, 16  ;;  %v778_v46 = vshrl.u32 %v516_v47, 16  ;;  %v4976_v56 = vld [vmem:[%s5831_s26 + $0x84] sm:$0xf] }
  0xe8   : > { %v6383_v8 = vadd.f32 %v6153_v51, %v449_v38  ;;  %v411_v58 = vpop.f32.mrf.mxu1  ;;  %v2185_v38 = vrot.slane %v2183_v25, 5  ;;  %v6409_v25 = vld [vmem:[%s5831_s26 + $0x7c] sm:$0xf]  ;;  %v771_v4 = vrot.slane %v770_v52, 4  ;;  %v4747_v12 = vrot.slane %v1180_v50, 9 }
  0xe9   : > { %v6391_v16 = vadd.f32 %v6153_v51, %v411_v58  ;;  %v761_v58 = vrot.slane %v760_v18, 4  ;;  %v1306_v18 = vrot.slane %v6386_v10, 5  ;;  %v791_v52 = vshrl.u32 %v6409_v25, 16 }
  0xea   : > { %7371 = vst [vmem:[#allocation10_spill] sm:$0xff] %v6383_v8  ;;  %v6393_v21 = vpop.f32.mrf.mxu0  ;;  %v5495_v8 = vld [vmem:[%s5831_s26 + $0x6c] sm:$0xff]  ;;  %v2186_v39 = vor.u32 %v2185_v38, %v2182_v13  ;;  %v455_v50 = vadd.f32 %v6153_v51, %v6206_v43  ;;  %v1304_v10 = vsel %vm5975_vm5, %v4747_v12, %v1303_v53  ;;  %v776_v43 = vsel %vm5971_vm4, %v771_v4, %v775_v15 }
  0xeb   : > { %v766_v13 = vsel %vm5971_vm4, %v761_v58, %v6388_v9  ;;  %v5545_v38 = vld [vmem:[%s7357_s1 + $0x190] sm:$0xff]  ;;  %v4977_v9 = vld [vmem:[%s5831_s26 + $0x88] sm:$0xf]  ;;  %v1307_v12 = vsel %vm5975_vm5, %v1305_v34, %v1306_v18  ;;  %v780_v53 = vrot.slane %v778_v46, 4  ;;  %v2204_v17 = vshrl.u32 %v4976_v56, 16 }
  0xec   : > { %3222 = vmatpush.bf16.msra.mxu2 %v5545_v38  ;;  %v2207_v15 = vshll.u32 %v4976_v56, 16  ;;  %v2217_v33 = vshrl.u32 %v4977_v9, 16  ;;  %v5521_v46 = vld [vmem:[%s7357_s1 + $0x150] sm:$0xff] }
  0xed   : > { %v2206_v56 = vrot.slane %v2204_v17, 4  ;;  %2907 = vmatpush.bf16.msra.mxu1 %v5521_v46  ;;  %v1310_v17 = vrot.slane %v6409_v25, 5 }
  0xee   : > { %v431_v59 = vpop.f32.mrf.mxu2 }
  0xef   : > { %v6405_v5 = vadd.f32 %v6153_v51, %v431_v59  ;;  %v451_v32 = vpop.f32.mrf.mxu3  ;;  %v781_v59 = vshll.u32 %v516_v47, 16 }
  0xf0   : > { %v6412_v22 = vadd.f32 %v6153_v51, %v451_v32  ;;  %v1059_v30 = vpop.f32.mrf.mxu1  ;;  %v787_v32 = vshll.u32 %v6409_v25, 16  ;;  %v1312_v25 = vrot.slane %v1310_v17, 4 }
  0xf1   : > { %v1139_v35 = vadd.f32 %v1059_v30, %v454_v57  ;;  %v5553_v57 = vld [vmem:[%s7357_s1 + $0x1d0] sm:$0xff] }
  0xf2   : > { %7372 = vst [vmem:[#allocation11_spill] sm:$0xff] %v6412_v22  ;;  %v6415_v37 = vpop.f32.mrf.mxu0  ;;  %v6440_v58 = vrot.slane %v787_v32, 5  ;;  %3904 = vmatpush.bf16.msra.mxu3 %v5553_v57  ;;  %v793_v22 = vrot.slane %v791_v52, 4  ;;  %v957_v32 = vunpack.c.l.b16 %v776_v43  ;;  %v1385_v52 = vunpack.c.l.b16 %v1304_v10  ;;  %v4978_v43 = vld [vmem:[%s5831_s26 + $0x8c] sm:$0x1] }
  0xf3   : > { %1098 = vmatmul.bf16.gmra.mxu1 %v978_v62  ;;  %1527 = vmatmul.bf16.gmra.mxu2 %v1407_v63  ;;  %v2197_v62 = vrot.slane %v2196_v44, 4  ;;  %v2201_v63 = vrot.slane %v2199_v45, 5  ;;  %v6443_v44 = vld [vmem:[%s5831_s26 + $0x80] sm:$0x1]  ;;  %v2213_v45 = vshll.u32 %v4977_v9, 16  ;;  %v2209_v57 = vrot.slane %v2207_v15, 5 }
  0xf4   : > { %1842 = vmatmul.bf16.gmra.mxu3 %v5495_v8  ;;  %v2187_v8 = vrot.slane %v2186_v39, 4  ;;  %v956_v39 = vunpack.c.l.b16 %v766_v13  ;;  %v794_v38 = vor.u32 %v793_v22, %v6440_v58  ;;  %v2219_v9 = vrot.slane %v2217_v33, 4  ;;  %v5496_v33 = vld [vmem:[%s5831_s26 + $0x78] sm:$0xff] }
  0xf5   : > { %2524 = vmatmul.bf16.gmra.mxu0 %v2404_v6  ;;  %v783_v6 = vrot.slane %v781_v59, 5  ;;  %v5561_v59 = vld [vmem:[%s7357_s1 + $0x210] sm:$0xff]  ;;  %v456_v10 = vadd.f32 %v6153_v51, %v6234_v20  ;;  %v2223_v46 = vshll.u32 %v4978_v43, 16 }
  0xf6   : > { %v1488_v54 = vpop.f32.mrf.mxu2  ;;  %v2192_v18 = vsel %vm5971_vm4, %v2187_v8, %v6399_v0  ;;  %v797_v0 = vshll.u32 %v6443_v44, 16  ;;  %4330 = vmatpush.bf16.msra.mxu0 %v5561_v59  ;;  %v795_v15 = vrot.slane %v794_v38, 4  ;;  %v6475_v38 = vld [vmem:[%s5831_s26 + $0x88] sm:$0xf]  ;;  %v4980_v43 = vld [vmem:[%s5831_s26 + $0x94] sm:$0xf] }
  0xf7   : > { %v1568_v47 = vadd.f32 %v1488_v54, %v1139_v35  ;;  %v1803_v30 = vpop.f32.mrf.mxu3  ;;  %v2202_v35 = vsel %vm5971_vm4, %v2197_v62, %v2201_v63  ;;  %v784_v13 = vor.u32 %v783_v6, %v780_v53  ;;  %v2382_v8 = vunpack.c.l.b16 %v2192_v18  ;;  %v1181_v6 = vld [vmem:[%s5831_s26 + $0x78] sm:$0xe] }
  0xf8   : > { %v1061_v4 = vpop.f32.mrf.mxu1  ;;  %v2383_v62 = vunpack.c.l.b16 %v2202_v35  ;;  %v6458_v63 = vrot.slane %v2213_v45, 5  ;;  %v2210_v45 = vor.u32 %v2209_v57, %v2206_v56  ;;  %v4979_v57 = vld [vmem:[%s5831_s26 + $0x90] sm:$0xf] }
  0xf9   : > { %v1883_v55 = vadd.f32 %v1803_v30, %v1568_v47  ;;  %v1140_v14 = vadd.f32 %v1061_v4, %v455_v50  ;;  %v1386_v50 = vunpack.c.l.b16 %v1307_v12  ;;  %v979_v12 = vpack.c.b16 %v957_v32, %v956_v39 }
  0xfa   : > { %v2487_v34 = vpop.f32.mrf.mxu0  ;;  %v785_v53 = vrot.slane %v784_v13, 4  ;;  %v799_v4 = vrot.slane %v797_v0, 5  ;;  %v2405_v35 = vpack.c.b16 %v2383_v62, %v2382_v8  ;;  %v2220_v20 = vor.u32 %v2219_v9, %v6458_v63 }
  0xfb   : > { %v1408_v22 = vpack.c.b16 %v1386_v50, %v1385_v52  ;;  %v4748_v52 = vrot.slane %v1181_v6, 9  ;;  %v519_v50 = vld [vmem:[%s5831_s26 + $0x84] sm:$0xf]  ;;  %v1313_v13 = vrot.slane %v6443_v44, 5  ;;  %v2211_v56 = vrot.slane %v2210_v45, 4 }
  0xfc   : > { %v800_v0 = vsel %vm5971_vm4, %v795_v15, %v799_v4  ;;  %v6481_v8 = vadd.f32 %v6415_v37, %v1883_v55  ;;  %v2225_v9 = vrot.slane %v2223_v46, 5  ;;  %v805_v44 = vshll.u32 %v519_v50, 16 }
  0xfd   : > { %v815_v55 = vshrl.u32 %v6475_v38, 16  ;;  %v2228_v6 = vshrl.u32 %v4979_v57, 16  ;;  %v959_v4 = vunpack.c.l.b16 %v800_v0  ;;  %v2237_v45 = vshll.u32 %v4980_v43, 16 }
  0xfe   : > { %v1490_v54 = vpop.f32.mrf.mxu2 }
  0xff   : > { %v1569_v47 = vadd.f32 %v1490_v54, %v1140_v14  ;;  %v1805_v30 = vpop.f32.mrf.mxu3  ;;  %v790_v14 = vsel %vm5971_vm4, %v785_v53, %v6440_v58  ;;  %v2221_v58 = vrot.slane %v2220_v20, 4  ;;  %v457_v54 = vadd.f32 %v6153_v51, %v6267_v61 }
 0x100   : > { %v1064_v18 = vpop.f32.mrf.mxu1  ;;  %v1314_v53 = vsel %vm5975_vm5, %v1312_v25, %v1313_v13  ;;  %v2241_v61 = vshrl.u32 %v4980_v43, 16  ;;  %v807_v20 = vrot.slane %v805_v44, 5  ;;  %v1317_v25 = vrot.slane %v6475_v38, 5 }
 0x101   : > { %v1884_v39 = vadd.f32 %v1805_v30, %v1569_v47  ;;  %v1141_v59 = vadd.f32 %v1064_v18, %v456_v10  ;;  %v802_v10 = vshrl.u32 %v519_v50, 16  ;;  %v2231_v47 = vshll.u32 %v4979_v57, 16 }
 0x102   : > { %v6467_v32 = vpop.f32.mrf.mxu0  ;;  %v817_v50 = vrot.slane %v815_v55, 4  ;;  %v2230_v13 = vrot.slane %v2228_v6, 4  ;;  %v1388_v43 = vunpack.c.l.b16 %v1314_v53 }
 0x103   : > { %1103 = vmatmul.bf16.gmra.mxu1 %v979_v12  ;;  %1532 = vmatmul.bf16.gmra.mxu2 %v1408_v22  ;;  %v6483_v62 = vadd.f32 %v2487_v34, %v1884_v39  ;;  %v1311_v12 = vsel %vm5975_vm5, %v4748_v52, %v1310_v17  ;;  %v811_v22 = vshll.u32 %v6475_v38, 16  ;;  %v958_v34 = vunpack.c.l.b16 %v790_v14  ;;  %v521_v14 = vld [vmem:[%s5831_s26 + $0x8c] sm:$0x1] }
 0x104   : > { %1847 = vmatmul.bf16.gmra.mxu3 %v5496_v33  ;;  %v2216_v17 = vsel %vm5971_vm4, %v2211_v56, %v6458_v63  ;;  %v2226_v33 = vsel %vm5971_vm4, %v2221_v58, %v2225_v9  ;;  %v2233_v0 = vrot.slane %v2231_v47, 5  ;;  %v1387_v57 = vunpack.c.l.b16 %v1311_v12  ;;  %v1182_v63 = vld [vmem:[%s5831_s26 + $0x84] sm:$0xe] }
 0x105   : > { %7373 = vst [vmem:[#allocation12_spill] sm:$0xff] %v6483_v62  ;;  %2529 = vmatmul.bf16.gmra.mxu0 %v2405_v35  ;;  %v804_v35 = vrot.slane %v802_v10, 4  ;;  %v6504_v56 = vrot.slane %v2237_v45, 5  ;;  %v2243_v58 = vrot.slane %v2241_v61, 4  ;;  %v458_v9 = vadd.f32 %v6153_v51, %v6286_v41 }
 0x106   : > { %v1493_v37 = vpop.f32.mrf.mxu2  ;;  %v2384_v10 = vunpack.c.l.b16 %v2216_v17  ;;  %v2385_v44 = vunpack.c.l.b16 %v2226_v33  ;;  %v821_v38 = vshll.u32 %v521_v14, 16  ;;  %v4749_v47 = vrot.slane %v1182_v63, 9  ;;  %v5497_v33 = vld [vmem:[%s5831_s26 + $0x84] sm:$0xff] }
 0x107   : > { %v1570_v30 = vadd.f32 %v1493_v37, %v1141_v59  ;;  %v1808_v15 = vpop.f32.mrf.mxu3  ;;  %v6499_v59 = vrot.slane %v811_v22, 5  ;;  %v980_v22 = vpack.c.b16 %v959_v4, %v958_v34  ;;  %v808_v55 = vor.u32 %v807_v20, %v804_v35 }
 0x108   : > { %v1066_v18 = vpop.f32.mrf.mxu1  ;;  %v1319_v12 = vrot.slane %v1317_v25, 4  ;;  %v1320_v53 = vrot.slane %v521_v14, 5  ;;  %v1409_v61 = vpack.c.b16 %v1388_v43, %v1387_v57  ;;  %v2244_v41 = vor.u32 %v2243_v58, %v6504_v56 }
 0x109   : > { %v1885_v46 = vadd.f32 %v1808_v15, %v1570_v30  ;;  %v1142_v39 = vadd.f32 %v1066_v18, %v457_v54  ;;  %v4981_v54 = vld [vmem:[%s5831_s26 + $0x98] sm:$0x1]  ;;  %v818_v37 = vor.u32 %v817_v50, %v6499_v59  ;;  %v2234_v30 = vor.u32 %v2233_v0, %v2230_v13  ;;  %v522_v0 = vld [vmem:[%s5831_s26 + $0x90] sm:$0xf] }
 0x10a   : > { %v2492_v52 = vpop.f32.mrf.mxu0  ;;  %v2247_v18 = vshll.u32 %v4981_v54, 16  ;;  %v2406_v62 = vpack.c.b16 %v2385_v44, %v2384_v10  ;;  %v809_v20 = vrot.slane %v808_v55, 4  ;;  %v823_v50 = vrot.slane %v821_v38, 5  ;;  %v5544_v10 = vld [vmem:[%s7357_s1 + $0x188] sm:$0xff] }
 0x10b   : > { %v819_v63 = vrot.slane %v818_v37, 4  ;;  %v6520_v14 = vsel %vm5975_vm5, %v1319_v12, %v1320_v53  ;;  %v2235_v13 = vrot.slane %v2234_v30, 4  ;;  %v2245_v57 = vrot.slane %v2244_v41, 4  ;;  %v5552_v44 = vld [vmem:[%s7357_s1 + $0x1c8] sm:$0xff]  ;;  %3223 = vmatpush.bf16.msra.mxu2 %v5544_v10  ;;  %v1183_v10 = vld [vmem:[%s5831_s26 + $0x90] sm:$0xe] }
 0x10c   : > { %v2249_v43 = vrot.slane %v2247_v18, 5  ;;  %v6524_v58 = vadd.f32 %v6467_v32, %v1885_v46  ;;  %v459_v54 = vadd.f32 %v6153_v51, %v6325_v29  ;;  %v814_v32 = vsel %vm5971_vm4, %v809_v20, %v6499_v59  ;;  %3905 = vmatpush.bf16.msra.mxu3 %v5552_v44  ;;  %v5560_v20 = vld [vmem:[%s7357_s1 + $0x208] sm:$0xff] }
 0x10d   : > { %v826_v46 = vshrl.u32 %v522_v0, 16  ;;  %v824_v37 = vsel %vm5971_vm4, %v819_v63, %v823_v50  ;;  %v2240_v51 = vsel %vm5971_vm4, %v2235_v13, %v6504_v56  ;;  %v960_v50 = vunpack.c.l.b16 %v814_v32  ;;  %v524_v13 = vld [vmem:[%s5831_s26 + $0x98] sm:$0x1]  ;;  %4331 = vmatpush.bf16.msra.mxu0 %v5560_v20 }
 0x10e   : > { %v1495_v6 = vpop.f32.mrf.mxu2  ;;  %v961_v63 = vunpack.c.l.b16 %v824_v37 }
 0x10f   : > { %v1571_v15 = vadd.f32 %v1495_v6, %v1142_v39  ;;  %v1810_v45 = vpop.f32.mrf.mxu3  ;;  %v6516_v39 = vsel %vm5975_vm5, %v4749_v47, %v1317_v25  ;;  %v6529_v25 = vld [vmem:[%s5831_s26 + $0x94] sm:$0xf]  ;;  %v1390_v6 = vunpack.c.l.b16 %v6520_v14  ;;  %v2250_v47 = vsel %vm5971_vm4, %v2245_v57, %v2249_v43 }
 0x110   : > { %v1069_v17 = vpop.f32.mrf.mxu1  ;;  %v1389_v38 = vunpack.c.l.b16 %v6516_v39  ;;  %v835_v12 = vshll.u32 %v6529_v25, 16  ;;  %v839_v53 = vshrl.u32 %v6529_v25, 16  ;;  %v2386_v39 = vunpack.c.l.b16 %v2240_v51 }
 0x111   : > { %v1886_v34 = vadd.f32 %v1810_v45, %v1571_v15  ;;  %v1143_v4 = vadd.f32 %v1069_v17, %v458_v9  ;;  %v2387_v14 = vunpack.c.l.b16 %v2250_v47  ;;  %v1324_v43 = vrot.slane %v6529_v25, 5 }
 0x112   : > { %v6512_v35 = vpop.f32.mrf.mxu0  ;;  %v841_v57 = vrot.slane %v839_v53, 4  ;;  %v981_v51 = vpack.c.b16 %v961_v63, %v960_v50  ;;  %v1410_v25 = vpack.c.b16 %v1390_v6, %v1389_v38  ;;  %v845_v53 = vshll.u32 %v524_v13, 16  ;;  %v525_v50 = vld [vmem:[%s5831_s26 + $0x9c] sm:$0xf] }
 0x113   : > { %1108 = vmatmul.bf16.gmra.mxu1 %v980_v22  ;;  %1537 = vmatmul.bf16.gmra.mxu2 %v1409_v61  ;;  %v6526_v9 = vadd.f32 %v2492_v52, %v1886_v34  ;;  %v829_v52 = vshll.u32 %v522_v0, 16  ;;  %v4983_v22 = vld [vmem:[%s5831_s26 + $0xa0] sm:$0xf]  ;;  %v6562_v0 = vrot.slane %v835_v12, 5 }
 0x114   : > { %1852 = vmatmul.bf16.gmra.mxu3 %v5497_v33  ;;  %v2261_v61 = vshll.u32 %v4983_v22, 16  ;;  %v2265_v41 = vshrl.u32 %v4983_v22, 16  ;;  %v828_v33 = vrot.slane %v826_v46, 4  ;;  %v5635_v22 = vld [vmem:[%s7358_s2] ss:$0 sm:$0xff] }
 0x115   : > { %2534 = vmatmul.bf16.gmra.mxu0 %v2406_v62  ;;  %v4982_v62 = vld [vmem:[%s5831_s26 + $0x9c] sm:$0xf]  ;;  %v831_v34 = vrot.slane %v829_v52, 5  ;;  %v842_v12 = vor.u32 %v841_v57, %v6562_v0  ;;  %v461_v20 = vadd.f32 %v5635_v22, %v6393_v21  ;;  %v4985_v57 = vld [vmem:[%s5831_s26 + $0xa8] sm:$0xf] }
 0x116   : > { %v1498_v55 = vpop.f32.mrf.mxu2  ;;  %v2252_v15 = vshrl.u32 %v4982_v62, 16  ;;  %v2255_v45 = vshll.u32 %v4982_v62, 16  ;;  %v6566_v46 = vrot.slane %v2261_v61, 5  ;;  %v2267_v52 = vrot.slane %v2265_v41, 4  ;;  %v4984_v62 = vld [vmem:[%s5831_s26 + $0xa4] sm:$0x1] }
 0x117   : > { %v1572_v29 = vadd.f32 %v1498_v55, %v1143_v4  ;;  %v1813_v59 = vpop.f32.mrf.mxu3  ;;  %v5520_v4 = vld [vmem:[%s7357_s1 + $0x148] sm:$0xff]  ;;  %v832_v32 = vor.u32 %v831_v34, %v828_v33  ;;  %v460_v55 = vadd.f32 %v5635_v22, %v6356_v49  ;;  %v1326_v61 = vrot.slane %v1324_v43, 4 }
 0x118   : > { %v1071_v30 = vpop.f32.mrf.mxu1  ;;  %2908 = vmatpush.bf16.msra.mxu1 %v5520_v4  ;;  %v2254_v44 = vrot.slane %v2252_v15, 4  ;;  %v2268_v33 = vor.u32 %v2267_v52, %v6566_v46  ;;  %v2271_v49 = vshll.u32 %v4984_v62, 16  ;;  %v843_v63 = vrot.slane %v842_v12, 4 }
 0x119   : > { %v1887_v18 = vadd.f32 %v1813_v59, %v1572_v29  ;;  %v1144_v17 = vadd.f32 %v1071_v30, %v459_v54  ;;  %v2257_v54 = vrot.slane %v2255_v45, 5  ;;  %v2407_v29 = vpack.c.b16 %v2387_v14, %v2386_v39  ;;  %v5498_v45 = vld [vmem:[%s5831_s26 + $0x90] sm:$0xff]  ;;  %v6581_v14 = vld [vmem:[%s5831_s26 + $0xa0] sm:$0xf] }
 0x11a   : > { %v2497_v56 = vpop.f32.mrf.mxu0  ;;  %v4750_v30 = vrot.slane %v1183_v10, 9  ;;  %v833_v6 = vrot.slane %v832_v32, 4  ;;  %v847_v39 = vrot.slane %v845_v53, 5  ;;  %v2273_v52 = vrot.slane %v2271_v49, 5  ;;  %v4986_v32 = vld [vmem:[%s5831_s26 + $0xac] sm:$0xf] }
 0x11b   : > { %v2258_v41 = vor.u32 %v2257_v54, %v2254_v44  ;;  %v6585_v10 = vadd.f32 %v6512_v35, %v1887_v18  ;;  %v2269_v54 = vrot.slane %v2268_v33, 4  ;;  %v850_v35 = vshrl.u32 %v525_v50, 16 }
 0x11c   : > { %v838_v62 = vsel %vm5971_vm4, %v833_v6, %v6562_v0  ;;  %v853_v18 = vshll.u32 %v525_v50, 16  ;;  %v2289_v12 = vshrl.u32 %v4986_v32, 16 }
 0x11d   : > { %v2259_v21 = vrot.slane %v2258_v41, 4  ;;  %v852_v49 = vrot.slane %v850_v35, 4 }
 0x11e   : > { %v1500_v37 = vpop.f32.mrf.mxu2 }
 0x11f   : > { %v1573_v59 = vadd.f32 %v1500_v37, %v1144_v17  ;;  %v1815_v47 = vpop.f32.mrf.mxu3  ;;  %v1327_v17 = vrot.slane %v524_v13, 5  ;;  %v1325_v13 = vsel %vm5975_vm5, %v4750_v30, %v1324_v43  ;;  %v863_v37 = vshrl.u32 %v6581_v14, 16 }
 0x120   : > { %v1074_v15 = vpop.f32.mrf.mxu1  ;;  %v2279_v43 = vshll.u32 %v4985_v57, 16  ;;  %v1391_v53 = vunpack.c.l.b16 %v1325_v13  ;;  %v1184_v13 = vld [vmem:[%s5831_s26 + $0x9c] sm:$0xe] }
 0x121   : > { %v1888_v34 = vadd.f32 %v1815_v47, %v1573_v59  ;;  %v1145_v4 = vadd.f32 %v1074_v15, %v460_v55  ;;  %v1328_v22 = vsel %vm5975_vm5, %v1326_v61, %v1327_v17  ;;  %v859_v55 = vshll.u32 %v6581_v14, 16 }
 0x122   : > { %v6576_v38 = vpop.f32.mrf.mxu0  ;;  %v848_v59 = vsel %vm5971_vm4, %v843_v63, %v847_v39  ;;  %v2285_v47 = vshll.u32 %v4986_v32, 16  ;;  %v1392_v30 = vunpack.c.l.b16 %v1328_v22  ;;  %v2264_v15 = vsel %vm5971_vm4, %v2259_v21, %v6566_v46 }
 0x123   : > { %1113 = vmatmul.bf16.gmra.mxu1 %v981_v51  ;;  %1542 = vmatmul.bf16.gmra.mxu2 %v1410_v25  ;;  %v6587_v44 = vadd.f32 %v2497_v56, %v1888_v34  ;;  %v2276_v51 = vshrl.u32 %v4985_v57, 16  ;;  %v855_v34 = vrot.slane %v853_v18, 5  ;;  %v865_v6 = vrot.slane %v863_v37, 4  ;;  %v527_v57 = vld [vmem:[%s5831_s26 + $0xa4] sm:$0x1] }
 0x124   : > { %1857 = vmatmul.bf16.gmra.mxu3 %v5498_v45  ;;  %v2274_v45 = vsel %vm5971_vm4, %v2269_v54, %v2273_v52  ;;  %v2281_v50 = vrot.slane %v2279_v43, 5  ;;  %v962_v63 = vunpack.c.l.b16 %v838_v62  ;;  %v963_v39 = vunpack.c.l.b16 %v848_v59  ;;  %v4987_v52 = vld [vmem:[%s5831_s26 + $0xb0] sm:$0x1] }
 0x125   : > { %2539 = vmatmul.bf16.gmra.mxu0 %v2407_v29  ;;  %v2278_v17 = vrot.slane %v2276_v51, 4  ;;  %v6610_v32 = vrot.slane %v2285_v47, 5  ;;  %v2291_v46 = vrot.slane %v2289_v12, 4  ;;  %v2388_v21 = vunpack.c.l.b16 %v2264_v15  ;;  %v5499_v12 = vld [vmem:[%s5831_s26 + $0x9c] sm:$0xff] }
 0x126   : > { %v1503_v56 = vpop.f32.mrf.mxu2  ;;  %v2389_v54 = vunpack.c.l.b16 %v2274_v45  ;;  %v1411_v22 = vpack.c.b16 %v1392_v30, %v1391_v53  ;;  %v856_v35 = vor.u32 %v855_v34, %v852_v49  ;;  %v4751_v37 = vrot.slane %v1184_v13, 9  ;;  %v528_v34 = vld [vmem:[%s5831_s26 + $0xa8] sm:$0xf]  ;;  %v4988_v13 = vld [vmem:[%s5831_s26 + $0xb4] sm:$0xf] }
 0x127   : > { %v1574_v25 = vadd.f32 %v1503_v56, %v1145_v4  ;;  %v1818_v29 = vpop.f32.mrf.mxu3  ;;  %v6606_v4 = vrot.slane %v859_v55, 5  ;;  %v869_v55 = vshll.u32 %v527_v57, 16  ;;  %v2282_v62 = vor.u32 %v2281_v50, %v2278_v17 }
 0x128   : > { %v1076_v0 = vpop.f32.mrf.mxu1  ;;  %v2295_v59 = vshll.u32 %v4987_v52, 16  ;;  %v1334_v53 = vrot.slane %v527_v57, 5  ;;  %v857_v49 = vrot.slane %v856_v35, 4  ;;  %v5543_v52 = vld [vmem:[%s7357_s1 + $0x180] sm:$0xff] }
 0x129   : > { %v1889_v61 = vadd.f32 %v1818_v29, %v1574_v25  ;;  %v1146_v41 = vadd.f32 %v1076_v0, %v461_v20  ;;  %v1331_v20 = vrot.slane %v6581_v14, 5  ;;  %v866_v56 = vor.u32 %v865_v6, %v6606_v4  ;;  %v5551_v35 = vld [vmem:[%s7357_s1 + $0x1c0] sm:$0xff]  ;;  %3224 = vmatpush.bf16.msra.mxu2 %v5543_v52 }
 0x12a   : > { %v2502_v33 = vpop.f32.mrf.mxu0  ;;  %v982_v25 = vpack.c.b16 %v963_v39, %v962_v63  ;;  %v2292_v29 = vor.u32 %v2291_v46, %v6610_v32  ;;  %v2408_v14 = vpack.c.b16 %v2389_v54, %v2388_v21  ;;  %v871_v6 = vrot.slane %v869_v55, 5  ;;  %v6624_v63 = vld [vmem:[%s5831_s26 + $0xac] sm:$0xf]  ;;  %3906 = vmatpush.bf16.msra.mxu3 %v5551_v35  ;;  %v4990_v35 = vld [vmem:[%s5831_s26 + $0xbc] sm:$0x1] }
 0x12b   : > { %v1333_v0 = vrot.slane %v1331_v20, 4  ;;  %v1332_v17 = vsel %vm5975_vm5, %v4751_v37, %v1331_v20  ;;  %v2283_v50 = vrot.slane %v2282_v62, 4  ;;  %v2297_v57 = vrot.slane %v2295_v59, 5 }
 0x12c   : > { %v2293_v39 = vrot.slane %v2292_v29, 4  ;;  %v874_v54 = vshrl.u32 %v528_v34, 16  ;;  %v877_v20 = vshll.u32 %v528_v34, 16  ;;  %v1393_v55 = vunpack.c.l.b16 %v1332_v17 }
 0x12d   : > { %v1335_v21 = vsel %vm5975_vm5, %v1333_v0, %v1334_v53  ;;  %v2300_v37 = vshrl.u32 %v4988_v13, 16  ;;  %v2303_v62 = vshll.u32 %v4988_v13, 16  ;;  %v1338_v17 = vrot.slane %v6624_v63, 5  ;;  %v1185_v13 = vld [vmem:[%s5831_s26 + $0xa8] sm:$0xe] }
 0x12e   : > { %v1505_v18 = vpop.f32.mrf.mxu2  ;;  %v879_v0 = vrot.slane %v877_v20, 5 }
 0x12f   : > { %v1575_v51 = vadd.f32 %v1505_v18, %v1146_v41  ;;  %v1820_v43 = vpop.f32.mrf.mxu3  ;;  %v867_v41 = vrot.slane %v866_v56, 4 }
 0x130   : > { %v1079_v47 = vpop.f32.mrf.mxu1 }
 0x131   : > { %v1890_v30 = vadd.f32 %v1820_v43, %v1575_v51  ;;  %v1147_v15 = vadd.f32 %v1079_v47, %v6163_v3  ;;  %v6628_v3 = vadd.f32 %v6576_v38, %v1889_v61  ;;  %v862_v38 = vsel %vm5971_vm4, %v857_v49, %v6606_v4 }
 0x132   : > { %v6618_v45 = vpop.f32.mrf.mxu0  ;;  %v883_v61 = vshll.u32 %v6624_v63, 16  ;;  %v872_v56 = vsel %vm5971_vm4, %v867_v41, %v871_v6  ;;  %v2288_v47 = vsel %vm5971_vm4, %v2283_v50, %v6610_v32  ;;  %v5519_v6 = vld [vmem:[%s7357_s1 + $0x140] sm:$0xff]  ;;  %v2302_v50 = vrot.slane %v2300_v37, 4 }
 0x133   : > { %1118 = vmatmul.bf16.gmra.mxu1 %v982_v25  ;;  %1547 = vmatmul.bf16.gmra.mxu2 %v1411_v22  ;;  %v6630_v46 = vadd.f32 %v2502_v33, %v1890_v30  ;;  %v4989_v22 = vld [vmem:[%s5831_s26 + $0xb8] sm:$0xf]  ;;  %v887_v33 = vshrl.u32 %v6624_v63, 16  ;;  %v1394_v25 = vunpack.c.l.b16 %v1335_v21  ;;  %v5559_v32 = vld [vmem:[%s7357_s1 + $0x200] sm:$0xff]  ;;  %v2390_v20 = vunpack.c.l.b16 %v2288_v47 }
 0x134   : > { %1862 = vmatmul.bf16.gmra.mxu3 %v5499_v12  ;;  %v2309_v29 = vshll.u32 %v4989_v22, 16  ;;  %v2313_v59 = vshrl.u32 %v4989_v22, 16  ;;  %v2298_v12 = vsel %vm5971_vm4, %v2293_v39, %v2297_v57  ;;  %v6655_v34 = vrot.slane %v883_v61, 5  ;;  %2909 = vmatpush.bf16.msra.mxu1 %v5519_v6 }
 0x135   : > { %2544 = vmatmul.bf16.gmra.mxu0 %v2408_v14  ;;  %v876_v14 = vrot.slane %v874_v54, 4  ;;  %v889_v41 = vrot.slane %v887_v33, 4  ;;  %v2305_v39 = vrot.slane %v2303_v62, 5  ;;  %v964_v57 = vunpack.c.l.b16 %v862_v38 }
 0x136   : > { %v1508_v18 = vpop.f32.mrf.mxu2  ;;  %v6665_v21 = vrot.slane %v2309_v29, 5  ;;  %v2315_v54 = vrot.slane %v2313_v59, 4  ;;  %4332 = vmatpush.bf16.msra.mxu0 %v5559_v32  ;;  %v2391_v52 = vunpack.c.l.b16 %v2298_v12  ;;  %v1412_v61 = vpack.c.b16 %v1394_v25, %v1393_v55  ;;  %v5500_v12 = vld [vmem:[%s5831_s26 + $0xa8] sm:$0xff] }
 0x137   : > { %v1576_v51 = vadd.f32 %v1508_v18, %v1147_v15  ;;  %v1823_v43 = vpop.f32.mrf.mxu3  ;;  %v530_v15 = vld [vmem:[%s5831_s26 + $0xb0] sm:$0x1]  ;;  %v880_v33 = vor.u32 %v879_v0, %v876_v14  ;;  %v890_v18 = vor.u32 %v889_v41, %v6655_v34  ;;  %v4752_v37 = vrot.slane %v1185_v13, 9 }
 0x138   : > { %v1081_v4 = vpop.f32.mrf.mxu1  ;;  %v893_v22 = vshll.u32 %v530_v15, 16  ;;  %v1340_v62 = vrot.slane %v1338_v17, 4  ;;  %v1341_v38 = vrot.slane %v530_v15, 5  ;;  %v2316_v59 = vor.u32 %v2315_v54, %v6665_v21  ;;  %v5636_v54 = vld [vmem:[%s5831_s26 + $0x10] sm:$0xf] }
 0x139   : > { %v1891_v53 = vadd.f32 %v1823_v43, %v1576_v51  ;;  %v1148_v30 = vadd.f32 %v1081_v4, %v6204_v42  ;;  %v965_v42 = vunpack.c.l.b16 %v872_v56  ;;  %v2306_v56 = vor.u32 %v2305_v39, %v2302_v50 }
 0x13a   : > { %v2507_v49 = vpop.f32.mrf.mxu0  ;;  %v2319_v4 = vshll.u32 %v4990_v35, 16  ;;  %v2409_v6 = vpack.c.b16 %v2391_v52, %v2390_v20  ;;  %v895_v32 = vrot.slane %v893_v22, 5  ;;  %v881_v0 = vrot.slane %v880_v33, 4  ;;  %v5637_v52 = vld [vmem:[%s5831_s26 + $0x14] sm:$0x1] }
 0x13b   : > { %v983_v29 = vpack.c.b16 %v965_v42, %v964_v57  ;;  %v891_v15 = vrot.slane %v890_v18, 4  ;;  %v1342_v41 = vsel %vm5975_vm5, %v1340_v62, %v1341_v38  ;;  %v2307_v50 = vrot.slane %v2306_v56, 4  ;;  %v531_v42 = vld [vmem:[%s5831_s26 + $0xb4] sm:$0xf]  ;;  %v4992_v62 = vld [vmem:[%s5831_s26 + $0xc4] sm:$0xf] }
 0x13c   : > { %v2317_v39 = vrot.slane %v2316_v59, 4  ;;  %v2321_v57 = vrot.slane %v2319_v4, 5  ;;  %v2663_v20 = vrot.slane %v5636_v54, 5  ;;  %v2666_v22 = vrot.slane %v5637_v52, 5 }
 0x13d   : > { %v886_v35 = vsel %vm5971_vm4, %v881_v0, %v6655_v34  ;;  %v1396_v33 = vunpack.c.l.b16 %v1342_v41  ;;  %v2312_v18 = vsel %vm5971_vm4, %v2307_v50, %v6665_v21 }
 0x13e   : > { %v1510_v63 = vpop.f32.mrf.mxu2  ;;  %v966_v59 = vunpack.c.l.b16 %v886_v35  ;;  %v2392_v0 = vunpack.c.l.b16 %v2312_v18  ;;  %v2665_v50 = vrot.slane %v2663_v20, 4 }
 0x13f   : > { %v1577_v51 = vadd.f32 %v1510_v63, %v1148_v30  ;;  %v1825_v43 = vpop.f32.mrf.mxu3  ;;  %v1339_v30 = vsel %vm5975_vm5, %v4752_v37, %v1338_v17  ;;  %v6684_v17 = vld [vmem:[%s5831_s26 + $0xb8] sm:$0xf]  ;;  %v898_v63 = vshrl.u32 %v531_v42, 16  ;;  %v901_v37 = vshll.u32 %v531_v42, 16 }
 0x140   : > { %v1084_v47 = vpop.f32.mrf.mxu1  ;;  %v907_v34 = vshll.u32 %v6684_v17, 16 }
 0x141   : > { %v1892_v55 = vadd.f32 %v1825_v43, %v1577_v51  ;;  %v1149_v25 = vadd.f32 %v1084_v47, %v6232_v19  ;;  %v6678_v19 = vadd.f32 %v6618_v45, %v1891_v53  ;;  %v1395_v45 = vunpack.c.l.b16 %v1339_v30  ;;  %v4991_v53 = vld [vmem:[%s5831_s26 + $0xc0] sm:$0xf] }
 0x142   : > { %v2510_v14 = vpop.f32.mrf.mxu0  ;;  %v2322_v51 = vsel %vm5971_vm4, %v2317_v39, %v2321_v57  ;;  %v911_v43 = vshrl.u32 %v6684_v17, 16  ;;  %v2324_v47 = vshrl.u32 %v4991_v53, 16  ;;  %v900_v30 = vrot.slane %v898_v63, 4  ;;  %v6703_v39 = vld [vmem:[%s5831_s26 + $0xbc] sm:$0x1] }
 0x143   : > { %1123 = vmatmul.bf16.gmra.mxu1 %v983_v29  ;;  %1552 = vmatmul.bf16.gmra.mxu2 %v1412_v61  ;;  %v6680_v13 = vadd.f32 %v2507_v49, %v1892_v55  ;;  %v896_v61 = vsel %vm5971_vm4, %v891_v15, %v895_v32  ;;  %v2333_v55 = vshll.u32 %v4992_v62, 16  ;;  %v2393_v15 = vunpack.c.l.b16 %v2322_v51 }
 0x144   : > { %1867 = vmatmul.bf16.gmra.mxu3 %v5500_v12  ;;  %v967_v4 = vunpack.c.l.b16 %v896_v61  ;;  %v2327_v12 = vshll.u32 %v4991_v53, 16  ;;  %v903_v41 = vrot.slane %v901_v37, 5  ;;  %v6705_v57 = vrot.slane %v907_v34, 5  ;;  %v5042_v61 = vld [vmem:[%s5831_s26 + $0xc] sm:$0xe] }
 0x145   : > { %2549 = vmatmul.bf16.gmra.mxu0 %v2409_v6  ;;  %v913_v42 = vrot.slane %v911_v43, 4  ;;  %v1413_v52 = vpack.c.b16 %v1396_v33, %v1395_v45  ;;  %v6711_v18 = vrot.slane %v2333_v55, 5  ;;  %v5058_v37 = vrot.slane %v5042_v61, 9 }
 0x146   : > { %v1513_v49 = vpop.f32.mrf.mxu2  ;;  %v2329_v35 = vrot.slane %v2327_v12, 5  ;;  %v984_v53 = vpack.c.b16 %v967_v4, %v966_v59  ;;  %v917_v51 = vshll.u32 %v6703_v39, 16  ;;  %v1345_v34 = vrot.slane %v6684_v17, 5 }
 0x147   : > { %v1578_v38 = vadd.f32 %v1513_v49, %v1149_v25  ;;  %v1828_v56 = vpop.f32.mrf.mxu3  ;;  %v2337_v25 = vshrl.u32 %v4992_v62, 16  ;;  %v1186_v49 = vld [vmem:[%s5831_s26 + $0xb4] sm:$0xe]  ;;  %v914_v33 = vor.u32 %v913_v42, %v6705_v57  ;;  %v2667_v59 = vsel %vm5975_vm5, %v2665_v50, %v2666_v22  ;;  %v5266_v22 = vld [vmem:[%s5831_s26 + $0x18] sm:$0xf] }
 0x148   : > { %v1086_v29 = vpop.f32.mrf.mxu1  ;;  %v4753_v12 = vrot.slane %v1186_v49, 9  ;;  %v6728_v50 = vld [vmem:[%s5831_s26 + $0x1c] sm:$0xf]  ;;  %v1347_v61 = vrot.slane %v1345_v34, 4 }
 0x149   : > { %v1893_v6 = vadd.f32 %v1828_v56, %v1578_v38  ;;  %v1150_v21 = vadd.f32 %v1086_v29, %v6265_v60  ;;  %v2326_v60 = vrot.slane %v2324_v47, 4  ;;  %v2339_v63 = vrot.slane %v2337_v25, 4  ;;  %v5501_v47 = vld [vmem:[%s5831_s26 + $0xb4] sm:$0xff] }
 0x14a   : > { %v2512_v32 = vpop.f32.mrf.mxu0  ;;  %v2410_v38 = vpack.c.b16 %v2393_v15, %v2392_v0  ;;  %v904_v56 = vor.u32 %v903_v41, %v900_v30  ;;  %v2664_v29 = vsel %vm5975_vm5, %v5058_v37, %v2663_v20  ;;  %v2791_v25 = vunpack.c.l.b16 %v2667_v59 }
 0x14b   : > { %v6707_v54 = vadd.f32 %v2510_v14, %v1893_v6  ;;  %v4993_v14 = vld [vmem:[%s5831_s26 + $0xc8] sm:$0x1]  ;;  %v2330_v6 = vor.u32 %v2329_v35, %v2326_v60  ;;  %v2790_v55 = vunpack.c.l.b16 %v2664_v29  ;;  %v2340_v15 = vor.u32 %v2339_v63, %v6711_v18 }
 0x14c   : > { %v2343_v30 = vshll.u32 %v4993_v14, 16  ;;  %v919_v20 = vrot.slane %v917_v51, 5  ;;  %v905_v60 = vrot.slane %v904_v56, 4  ;;  %v915_v35 = vrot.slane %v914_v33, 4 }
 0x14d   : > { %v6724_v41 = vpack.c.b16 %v2791_v25, %v2790_v55  ;;  %v1346_v49 = vsel %vm5975_vm5, %v4753_v12, %v1345_v34  ;;  %v2331_v63 = vrot.slane %v2330_v6, 4  ;;  %v2341_v37 = vrot.slane %v2340_v15, 4 }
 0x14e   : > { %v1515_v62 = vpop.f32.mrf.mxu2  ;;  %v3390_v51 = vshll.u32 %v5266_v22, 16  ;;  %v3396_v14 = vshll.u32 %v6728_v50, 16  ;;  %v920_v34 = vsel %vm5971_vm4, %v915_v35, %v919_v20  ;;  %v1397_v33 = vunpack.c.l.b16 %v1346_v49 }
 0x14f   : > { %v1579_v43 = vadd.f32 %v1515_v62, %v1150_v21  ;;  %v1830_v45 = vpop.f32.mrf.mxu3  ;;  %v3387_v62 = vshrl.u32 %v5266_v22, 16 }
 0x150   : > { %v1089_v4 = vpop.f32.mrf.mxu1  ;;  %v3392_v6 = vrot.slane %v3390_v51, 5  ;;  %v3398_v55 = vrot.slane %v3396_v14, 5  ;;  %v5362_v14 = vld [vmem:[%s5831_s26 + $0x18] sm:$0xe] }
 0x151   : > { %v1894_v17 = vadd.f32 %v1830_v45, %v1579_v43  ;;  %v1151_v21 = vadd.f32 %v1089_v4, %v6284_v40  ;;  %v1348_v40 = vrot.slane %v6703_v39, 5  ;;  %v910_v39 = vsel %vm5971_vm4, %v905_v60, %v6705_v57 }
 0x152   : > { %v2515_v0 = vpop.f32.mrf.mxu0  ;;  %v3389_v57 = vrot.slane %v3387_v62, 4  ;;  %v5502_v62 = vld [vmem:[%s5831_s26 + $0xc0] sm:$0xff] }
 0x153   : > { %1128 = vmatmul.bf16.gmra.mxu1 %v984_v53  ;;  %1557 = vmatmul.bf16.gmra.mxu2 %v1413_v52  ;;  %v6730_v42 = vadd.f32 %v2512_v32, %v1894_v17  ;;  %v2345_v53 = vrot.slane %v2343_v30, 5  ;;  %v3400_v32 = vshrl.u32 %v6728_v50, 16  ;;  %v1349_v45 = vsel %vm5975_vm5, %v1347_v61, %v1348_v40  ;;  %v5268_v30 = vld [vmem:[%s5831_s26 + $0x20] sm:$0x1] }
 0x154   : > { %1872 = vmatmul.bf16.gmra.mxu3 %v5501_v47  ;;  %v2336_v47 = vsel %vm5971_vm4, %v2331_v63, %v6711_v18  ;;  %v968_v17 = vunpack.c.l.b16 %v910_v39  ;;  %v1398_v15 = vunpack.c.l.b16 %v1349_v45  ;;  %v3393_v35 = vor.u32 %v3392_v6, %v3389_v57 }
 0x155   : > { %2554 = vmatmul.bf16.gmra.mxu0 %v2410_v38  ;;  %v2346_v12 = vsel %vm5971_vm4, %v2341_v37, %v2345_v53  ;;  %v3402_v25 = vrot.slane %v3400_v32, 4  ;;  %v3406_v61 = vshll.u32 %v5268_v30, 16  ;;  %v4086_v53 = vrot.slane %v6728_v50, 5  ;;  %v5269_v50 = vld [vmem:[%s5831_s26 + $0x24] sm:$0xf] }
 0x156   : > { %v1518_v52 = vpop.f32.mrf.mxu2  ;;  %v2395_v22 = vunpack.c.l.b16 %v2346_v12  ;;  %v1414_v37 = vpack.c.b16 %v1398_v15, %v1397_v33  ;;  %v4089_v33 = vrot.slane %v5268_v30, 5  ;;  %v3414_v15 = vshll.u32 %v5269_v50, 16 }
 0x157   : > { %v1580_v43 = vadd.f32 %v1518_v52, %v1151_v21  ;;  %v1833_v38 = vpop.f32.mrf.mxu3  ;;  %v969_v21 = vunpack.c.l.b16 %v920_v34  ;;  %v3403_v18 = vor.u32 %v3402_v25, %v3398_v55  ;;  %v3408_v39 = vrot.slane %v3406_v61, 5 }
 0x158   : > { %v1091_v56 = vpop.f32.mrf.mxu1  ;;  %v5378_v34 = vrot.slane %v5362_v14, 9  ;;  %v4088_v45 = vrot.slane %v4086_v53, 4 }
 0x159   : > { %v1895_v29 = vadd.f32 %v1833_v38, %v1580_v43  ;;  %v1152_v59 = vadd.f32 %v1091_v56, %v6323_v28  ;;  %v2394_v28 = vunpack.c.l.b16 %v2336_v47  ;;  %v985_v63 = vpack.c.b16 %v969_v21, %v968_v17 }
 0x15a   : > { %v2517_v4 = vpop.f32.mrf.mxu0  ;;  %v3394_v38 = vrot.slane %v3393_v35, 4  ;;  %v3404_v56 = vrot.slane %v3403_v18, 4  ;;  %v4087_v25 = vsel %vm5975_vm5, %v5378_v34, %v4086_v53  ;;  %v3411_v21 = vshrl.u32 %v5269_v50, 16 }
 0x15b   : > { %v6751_v20 = vadd.f32 %v2515_v0, %v1895_v29  ;;  %v2411_v51 = vpack.c.b16 %v2395_v22, %v2394_v28  ;;  %v4213_v61 = vunpack.c.l.b16 %v4087_v25 }
 0x15c   : > { %v3409_v6 = vsel %vm5971_vm4, %v3404_v56, %v3408_v39 }
 0x15d   : > { %v3788_v18 = vunpack.c.l.b16 %v3409_v6  ;;  %v5363_v6 = vld [vmem:[%s5831_s26 + $0x24] sm:$0xe] }
 0x15e   : > { %v1520_v60 = vpop.f32.mrf.mxu2 }
 0x15f   : > { %v1581_v40 = vadd.f32 %v1520_v60, %v1152_v59  ;;  %v1835_v49 = vpop.f32.mrf.mxu3  ;;  %v6761_v59 = vld [vmem:[%s5831_s26 + $0x28] sm:$0xf] }
 0x160   : > { %v1094_v52 = vpop.f32.mrf.mxu1  ;;  %v3420_v30 = vshll.u32 %v6761_v59, 16  ;;  %v3424_v28 = vshrl.u32 %v6761_v59, 16 }
 0x161   : > { %v1896_v0 = vadd.f32 %v1835_v49, %v1581_v40  ;;  %v1153_v32 = vadd.f32 %v1094_v52, %v6354_v24  ;;  %v3399_v24 = vsel %vm5971_vm4, %v3394_v38, %v3398_v55  ;;  %v5638_v38 = vld [vmem:[%s5831_s26 + $0x1c] sm:$0xf] }
 0x162   : > { %v2520_v43 = vpop.f32.mrf.mxu0  ;;  %v3787_v35 = vunpack.c.l.b16 %v3399_v24  ;;  %v6776_v53 = vrot.slane %v3420_v30, 5  ;;  %v3426_v52 = vrot.slane %v3424_v28, 4  ;;  %v2670_v56 = vrot.slane %v5638_v38, 5  ;;  %v5639_v30 = vld [vmem:[%s5831_s26 + $0x20] sm:$0x1] }
 0x163   : > { %1133 = vmatmul.bf16.gmra.mxu1 %v985_v63  ;;  %1562 = vmatmul.bf16.gmra.mxu2 %v1414_v37  ;;  %v6757_v29 = vadd.f32 %v2517_v4, %v1896_v0  ;;  %v4090_v4 = vsel %vm5975_vm5, %v4088_v45, %v4089_v33  ;;  %v3413_v63 = vrot.slane %v3411_v21, 4  ;;  %v3416_v37 = vrot.slane %v3414_v15, 5  ;;  %v6789_v21 = vld [vmem:[%s5831_s26 + $0x34] sm:$0xf] }
 0x164   : > { %1877 = vmatmul.bf16.gmra.mxu3 %v5502_v62  ;;  %v4214_v40 = vunpack.c.l.b16 %v4090_v4  ;;  %v5271_v62 = vld [vmem:[%s5831_s26 + $0x2c] sm:$0x1]  ;;  %v3427_v33 = vor.u32 %v3426_v52, %v6776_v53  ;;  %v2672_v4 = vrot.slane %v2670_v56, 4  ;;  %v2673_v28 = vrot.slane %v5639_v30, 5 }
 0x165   : > { %2559 = vmatmul.bf16.gmra.mxu0 %v2411_v51  ;;  %v3417_v45 = vor.u32 %v3416_v37, %v3413_v63  ;;  %v3430_v50 = vshll.u32 %v5271_v62, 16  ;;  %v3444_v63 = vshll.u32 %v6789_v21, 16  ;;  %v3448_v37 = vshrl.u32 %v6789_v21, 16 }
 0x166   : > { %v1523_v47 = vpop.f32.mrf.mxu2  ;;  %v4245_v34 = vpack.c.b16 %v4214_v40, %v4213_v61 }
 0x167   : > { %v1582_v12 = vadd.f32 %v1523_v47, %v1153_v32  ;;  %v1838_v57 = vpop.f32.mrf.mxu3  ;;  %v3819_v32 = vpack.c.b16 %v3788_v18, %v3787_v35  ;;  %v5379_v35 = vrot.slane %v5363_v6, 9  ;;  %v4096_v18 = vrot.slane %v5271_v62, 5 }
 0x168   : > { %v1096_v17 = vpop.f32.mrf.mxu1 }
 0x169   : > { %v1897_v55 = vadd.f32 %v1838_v57, %v1582_v12  ;;  %v1154_v22 = vadd.f32 %v1096_v17, %v6391_v16  ;;  %v5527_v16 = vld [vmem:[%s5831_s26 + $0x18] sm:$0xff]  ;;  %v4093_v57 = vrot.slane %v6761_v59, 5  ;;  %v5272_v17 = vld [vmem:[%s5831_s26 + $0x30] sm:$0xf] }
 0x16a   : > { %v2522_v60 = vpop.f32.mrf.mxu0  ;;  %v3438_v40 = vshll.u32 %v5272_v17, 16 }
 0x16b   : > { %v6774_v49 = vadd.f32 %v2520_v43, %v1897_v55  ;;  %v5043_v43 = vld [vmem:[%s5831_s26 + $0x18] sm:$0xe]  ;;  %v3418_v55 = vrot.slane %v3417_v45, 4  ;;  %v4095_v59 = vrot.slane %v4093_v57, 4 }
 0x16c   : > { %v5059_v25 = vrot.slane %v5043_v43, 9  ;;  %v3440_v45 = vrot.slane %v3438_v40, 5 }
 0x16d   : > { %v3423_v62 = vsel %vm5971_vm4, %v3418_v55, %v6776_v53  ;;  %v3450_v53 = vrot.slane %v3448_v37, 4  ;;  %v5044_v55 = vld [vmem:[%s5831_s26 + $0x24] sm:$0xe] }
 0x16e   : > { %v1525_v51 = vpop.f32.mrf.mxu2 }
 0x16f   : > { %v1583_v14 = vadd.f32 %v1525_v51, %v1154_v22  ;;  %v1840_v0 = vpop.f32.mrf.mxu3  ;;  %v3432_v22 = vrot.slane %v3430_v50, 5 }
 0x170   : > { %v1099_v39 = vpop.f32.mrf.mxu1 }
 0x171   : > { %v1898_v47 = vadd.f32 %v1840_v0, %v1583_v14  ;;  %v1155_v24 = vadd.f32 %v1099_v39, %v6188_v31  ;;  %v3428_v31 = vrot.slane %v3427_v33, 4  ;;  %v2671_v14 = vsel %vm5975_vm5, %v5059_v25, %v2670_v56 }
 0x172   : > { %v2525_v12 = vpop.f32.mrf.mxu0  ;;  %v2674_v0 = vsel %vm5975_vm5, %v2672_v4, %v2673_v28  ;;  %v4097_v56 = vsel %vm5975_vm5, %v4095_v59, %v4096_v18  ;;  %v6810_v33 = vrot.slane %v3444_v63, 5  ;;  %v2792_v50 = vunpack.c.l.b16 %v2671_v14 }
 0x173   : > { %2910 = vmatmul.bf16.vlgmr.msra.gmra.mxu1 %v6724_v41  ;;  %3225 = vmatmul.bf16.vlgmr.msra.gmra.mxu2 %v5527_v16  ;;  %v6791_v15 = vadd.f32 %v2522_v60, %v1898_v47  ;;  %v3435_v41 = vshrl.u32 %v5272_v17, 16  ;;  %v3433_v16 = vsel %vm5971_vm4, %v3428_v31, %v3432_v22  ;;  %v2793_v47 = vunpack.c.l.b16 %v2674_v0 }
 0x174   : > { %3907 = vmatmul.bf16.vlgmr.msra.gmra.mxu3 %v3819_v32  ;;  %v3790_v25 = vunpack.c.l.b16 %v3433_v16  ;;  %v4216_v17 = vunpack.c.l.b16 %v4097_v56  ;;  %v3451_v22 = vor.u32 %v3450_v53, %v6810_v33  ;;  %v5060_v0 = vrot.slane %v5044_v55, 9  ;;  %v5641_v16 = vld [vmem:[%s5831_s26 + $0x2c] sm:$0x1] }
 0x175   : > { %4333 = vmatmul.bf16.vlgmr.msra.gmra.mxu0 %v4245_v34  ;;  %v4094_v34 = vsel %vm5975_vm5, %v5379_v35, %v4093_v57  ;;  %v3437_v43 = vrot.slane %v3435_v41, 4  ;;  %v5640_v57 = vld [vmem:[%s5831_s26 + $0x28] sm:$0xf] }
 0x176   : > { %v1528_v61 = vpop.f32.mrf.mxu2  ;;  %v4215_v4 = vunpack.c.l.b16 %v4094_v34  ;;  %v2677_v30 = vrot.slane %v5640_v57, 5  ;;  %v5528_v41 = vld [vmem:[%s5831_s26 + $0x24] sm:$0xff]  ;;  %v3452_v34 = vrot.slane %v3451_v22, 4 }
 0x177   : > { %v1584_v52 = vadd.f32 %v1528_v61, %v1155_v24  ;;  %v1843_v60 = vpop.f32.mrf.mxu3  ;;  %v5274_v24 = vld [vmem:[%s5831_s26 + $0x38] sm:$0x1]  ;;  %v3441_v31 = vor.u32 %v3440_v45, %v3437_v43  ;;  %v2823_v61 = vpack.c.b16 %v2793_v47, %v2792_v50  ;;  %v6827_v50 = vld [vmem:[%s5831_s26 + $0x40] sm:$0xf] }
 0x178   : > { %v1101_v51 = vpop.f32.mrf.mxu1  ;;  %v3454_v35 = vshll.u32 %v5274_v24, 16  ;;  %v4246_v37 = vpack.c.b16 %v4216_v17, %v4215_v4  ;;  %v4103_v45 = vrot.slane %v5274_v24, 5  ;;  %v3468_v22 = vshll.u32 %v6827_v50, 16 }
 0x179   : > { %v1899_v32 = vadd.f32 %v1843_v60, %v1584_v52  ;;  %v1156_v38 = vadd.f32 %v1101_v51, %v6221_v7  ;;  %v3789_v7 = vunpack.c.l.b16 %v3423_v62  ;;  %v5364_v52 = vld [vmem:[%s5831_s26 + $0x30] sm:$0xe]  ;;  %v2679_v62 = vrot.slane %v2677_v30, 4 }
 0x17a   : > { %v2527_v39 = vpop.f32.mrf.mxu0  ;;  %v3456_v56 = vrot.slane %v3454_v35, 5  ;;  %v3472_v35 = vshrl.u32 %v6827_v50, 16 }
 0x17b   : > { %v6813_v6 = vadd.f32 %v2525_v12, %v1899_v32  ;;  %v4100_v12 = vrot.slane %v6789_v21, 5  ;;  %v3820_v63 = vpack.c.b16 %v3790_v25, %v3789_v7  ;;  %v2680_v32 = vrot.slane %v5641_v16, 5  ;;  %v5277_v16 = vld [vmem:[%s5831_s26 + $0x44] sm:$0x1] }
 0x17c   : > { %v5380_v21 = vrot.slane %v5364_v52, 9  ;;  %v2678_v7 = vsel %vm5975_vm5, %v5060_v0, %v2677_v30  ;;  %v6847_v0 = vrot.slane %v3468_v22, 5  ;;  %v6859_v22 = vld [vmem:[%s5831_s26 + $0x4c] sm:$0xf] }
 0x17d   : > { %v4102_v43 = vrot.slane %v4100_v12, 4  ;;  %v2681_v25 = vsel %vm5975_vm5, %v2679_v62, %v2680_v32  ;;  %v3474_v62 = vrot.slane %v3472_v35, 4 }
 0x17e   : > { %v1530_v28 = vpop.f32.mrf.mxu2  ;;  %v4101_v57 = vsel %vm5975_vm5, %v5380_v21, %v4100_v12 }
 0x17f   : > { %v1585_v59 = vadd.f32 %v1530_v28, %v1156_v38  ;;  %v1845_v18 = vpop.f32.mrf.mxu3  ;;  %v3442_v38 = vrot.slane %v3441_v31, 4  ;;  %v4104_v28 = vsel %vm5975_vm5, %v4102_v43, %v4103_v45  ;;  %v5642_v43 = vld [vmem:[%s5831_s26 + $0x34] sm:$0xf] }
 0x180   : > { %v1104_v40 = vpop.f32.mrf.mxu1  ;;  %v2684_v45 = vrot.slane %v5642_v43, 5 }
 0x181   : > { %v1900_v60 = vadd.f32 %v1845_v18, %v1585_v59  ;;  %v1157_v51 = vadd.f32 %v1104_v40, %v6254_v48  ;;  %v5275_v48 = vld [vmem:[%s5831_s26 + $0x3c] sm:$0xf]  ;;  %v3447_v4 = vsel %vm5971_vm4, %v3442_v38, %v6810_v33 }
 0x182   : > { %v2530_v14 = vpop.f32.mrf.mxu0  ;;  %v3459_v30 = vshrl.u32 %v5275_v48, 16  ;;  %v3462_v31 = vshll.u32 %v5275_v48, 16  ;;  %v3791_v40 = vunpack.c.l.b16 %v3447_v4  ;;  %v3478_v4 = vshll.u32 %v5277_v16, 16 }
 0x183   : > { %2915 = vmatmul.bf16.gmra.mxu1 %v2823_v61  ;;  %3230 = vmatmul.bf16.gmra.mxu2 %v5528_v41  ;;  %v6823_v53 = vadd.f32 %v2527_v39, %v1900_v60  ;;  %v3457_v39 = vsel %vm5971_vm4, %v3452_v34, %v3456_v56  ;;  %v2794_v61 = vunpack.c.l.b16 %v2678_v7  ;;  %v2795_v41 = vunpack.c.l.b16 %v2681_v25  ;;  %v5529_v56 = vld [vmem:[%s5831_s26 + $0x30] sm:$0xff] }
 0x184   : > { %3912 = vmatmul.bf16.gmra.mxu3 %v3820_v63  ;;  %v3792_v12 = vunpack.c.l.b16 %v3457_v39  ;;  %v4217_v63 = vunpack.c.l.b16 %v4101_v57  ;;  %v3461_v60 = vrot.slane %v3459_v30, 4  ;;  %v3475_v25 = vor.u32 %v3474_v62, %v6847_v0 }
 0x185   : > { %4338 = vmatmul.bf16.gmra.mxu0 %v4246_v37  ;;  %v4218_v37 = vunpack.c.l.b16 %v4104_v28  ;;  %v2824_v34 = vpack.c.b16 %v2795_v41, %v2794_v61  ;;  %v4107_v57 = vrot.slane %v6827_v50, 5  ;;  %v5365_v28 = vld [vmem:[%s5831_s26 + $0x3c] sm:$0xe]  ;;  %v2686_v30 = vrot.slane %v2684_v45, 4 }
 0x186   : > { %v1533_v47 = vpop.f32.mrf.mxu2  ;;  %v3821_v21 = vpack.c.b16 %v3792_v12, %v3791_v40  ;;  %v3476_v41 = vrot.slane %v3475_v25, 4  ;;  %v5381_v40 = vrot.slane %v5365_v28, 9  ;;  %v4110_v50 = vrot.slane %v5277_v16, 5 }
 0x187   : > { %v1586_v17 = vadd.f32 %v1533_v47, %v1157_v51  ;;  %v1848_v24 = vpop.f32.mrf.mxu3  ;;  %v3464_v51 = vrot.slane %v3462_v31, 5  ;;  %v5045_v47 = vld [vmem:[%s5831_s26 + $0x30] sm:$0xe]  ;;  %v5278_v31 = vld [vmem:[%s5831_s26 + $0x48] sm:$0xf]  ;;  %v4109_v12 = vrot.slane %v4107_v57, 4 }
 0x188   : > { %v1106_v55 = vpop.f32.mrf.mxu1  ;;  %v3496_v62 = vshrl.u32 %v6859_v22, 16 }
 0x189   : > { %v1901_v33 = vadd.f32 %v1848_v24, %v1586_v17  ;;  %v1158_v59 = vadd.f32 %v1106_v55, %v6276_v26  ;;  %v3465_v7 = vor.u32 %v3464_v51, %v3461_v60  ;;  %v5061_v55 = vrot.slane %v5045_v47, 9 }
 0x18a   : > { %v2532_v18 = vpop.f32.mrf.mxu0  ;;  %v3486_v60 = vshll.u32 %v5278_v31, 16  ;;  %v3492_v51 = vshll.u32 %v6859_v22, 16 }
 0x18b   : > { %v6845_v52 = vadd.f32 %v2530_v14, %v1901_v33  ;;  %v4247_v14 = vpack.c.b16 %v4218_v37, %v4217_v63  ;;  %v5643_v33 = vld [vmem:[%s5831_s26 + $0x38] sm:$0x1]  ;;  %v3466_v61 = vrot.slane %v3465_v7, 4  ;;  %v3483_v37 = vshrl.u32 %v5278_v31, 16 }
 0x18c   : > { %v3488_v7 = vrot.slane %v3486_v60, 5  ;;  %v6880_v25 = vrot.slane %v3492_v51, 5 }
 0x18d   : > { %v3471_v16 = vsel %vm5971_vm4, %v3466_v61, %v6847_v0  ;;  %v3485_v47 = vrot.slane %v3483_v37, 4  ;;  %v3498_v0 = vrot.slane %v3496_v62, 4  ;;  %v5046_v61 = vld [vmem:[%s5831_s26 + $0x3c] sm:$0xe] }
 0x18e   : > { %v1535_v32 = vpop.f32.mrf.mxu2  ;;  %v5530_v37 = vld [vmem:[%s5831_s26 + $0x3c] sm:$0xff] }
 0x18f   : > { %v1587_v26 = vadd.f32 %v1535_v32, %v1158_v59  ;;  %v1850_v38 = vpop.f32.mrf.mxu3  ;;  %v2687_v59 = vrot.slane %v5643_v33, 5 }
 0x190   : > { %v1109_v48 = vpop.f32.mrf.mxu1 }
 0x191   : > { %v1902_v17 = vadd.f32 %v1850_v38, %v1587_v26  ;;  %v1159_v24 = vadd.f32 %v1109_v48, %v6312_v11  ;;  %v3480_v11 = vrot.slane %v3478_v4, 5  ;;  %v2685_v38 = vsel %vm5975_vm5, %v5061_v55, %v2684_v45 }
 0x192   : > { %v2535_v39 = vpop.f32.mrf.mxu0  ;;  %v4111_v45 = vsel %vm5975_vm5, %v4109_v12, %v4110_v50  ;;  %v2796_v4 = vunpack.c.l.b16 %v2685_v38 }
 0x193   : > { %2920 = vmatmul.bf16.gmra.mxu1 %v2824_v34  ;;  %3235 = vmatmul.bf16.gmra.mxu2 %v5529_v56  ;;  %v6861_v35 = vadd.f32 %v2532_v18, %v1902_v17  ;;  %v2688_v34 = vsel %vm5975_vm5, %v2686_v30, %v2687_v59  ;;  %v3481_v56 = vsel %vm5971_vm4, %v3476_v41, %v3480_v11  ;;  %v4220_v31 = vunpack.c.l.b16 %v4111_v45 }
 0x194   : > { %3917 = vmatmul.bf16.gmra.mxu3 %v3821_v21  ;;  %v2797_v17 = vunpack.c.l.b16 %v2688_v34  ;;  %v3794_v55 = vunpack.c.l.b16 %v3481_v56  ;;  %v3489_v41 = vor.u32 %v3488_v7, %v3485_v47  ;;  %v3499_v11 = vor.u32 %v3498_v0, %v6880_v25  ;;  %v5645_v56 = vld [vmem:[%s5831_s26 + $0x44] sm:$0x1] }
 0x195   : > { %4343 = vmatmul.bf16.gmra.mxu0 %v4247_v14  ;;  %v4108_v14 = vsel %vm5975_vm5, %v5381_v40, %v4107_v57  ;;  %v5644_v57 = vld [vmem:[%s5831_s26 + $0x40] sm:$0xf]  ;;  %v5062_v34 = vrot.slane %v5046_v61, 9 }
 0x196   : > { %v1538_v63 = vpop.f32.mrf.mxu2  ;;  %v4219_v30 = vunpack.c.l.b16 %v4108_v14  ;;  %v2691_v33 = vrot.slane %v5644_v57, 5  ;;  %v3500_v14 = vrot.slane %v3499_v11, 4 }
 0x197   : > { %v1588_v32 = vadd.f32 %v1538_v63, %v1159_v24  ;;  %v1853_v18 = vpop.f32.mrf.mxu3  ;;  %v5280_v24 = vld [vmem:[%s5831_s26 + $0x50] sm:$0x1]  ;;  %v2825_v63 = vpack.c.b16 %v2797_v17, %v2796_v4  ;;  %v6897_v4 = vld [vmem:[%s5831_s26 + $0x58] sm:$0xf] }
 0x198   : > { %v1111_v26 = vpop.f32.mrf.mxu1  ;;  %v3502_v40 = vshll.u32 %v5280_v24, 16  ;;  %v4248_v62 = vpack.c.b16 %v4220_v31, %v4219_v30  ;;  %v4117_v7 = vrot.slane %v5280_v24, 5  ;;  %v3516_v11 = vshll.u32 %v6897_v4, 16 }
 0x199   : > { %v1903_v21 = vadd.f32 %v1853_v18, %v1588_v32  ;;  %v1160_v43 = vadd.f32 %v1111_v26, %v6345_v2  ;;  %v3793_v2 = vunpack.c.l.b16 %v3471_v16  ;;  %v5366_v32 = vld [vmem:[%s5831_s26 + $0x48] sm:$0xe]  ;;  %v2693_v16 = vrot.slane %v2691_v33, 4 }
 0x19a   : > { %v2537_v48 = vpop.f32.mrf.mxu0  ;;  %v3504_v45 = vrot.slane %v3502_v40, 5  ;;  %v3520_v40 = vshrl.u32 %v6897_v4, 16 }
 0x19b   : > { %v6883_v28 = vadd.f32 %v2535_v39, %v1903_v21  ;;  %v4114_v39 = vrot.slane %v6859_v22, 5  ;;  %v3822_v51 = vpack.c.b16 %v3794_v55, %v3793_v2  ;;  %v2694_v21 = vrot.slane %v5645_v56, 5  ;;  %v5283_v56 = vld [vmem:[%s5831_s26 + $0x5c] sm:$0x1] }
 0x19c   : > { %v5382_v22 = vrot.slane %v5366_v32, 9  ;;  %v2692_v2 = vsel %vm5975_vm5, %v5062_v34, %v2691_v33  ;;  %v6917_v34 = vrot.slane %v3516_v11, 5  ;;  %v6929_v11 = vld [vmem:[%s5831_s26 + $0x64] sm:$0xf] }
 0x19d   : > { %v4116_v47 = vrot.slane %v4114_v39, 4  ;;  %v2695_v55 = vsel %vm5975_vm5, %v2693_v16, %v2694_v21  ;;  %v3522_v16 = vrot.slane %v3520_v40, 4 }
 0x19e   : > { %v1540_v59 = vpop.f32.mrf.mxu2  ;;  %v4115_v57 = vsel %vm5975_vm5, %v5382_v22, %v4114_v39 }
 0x19f   : > { %v1589_v12 = vadd.f32 %v1540_v59, %v1160_v43  ;;  %v1855_v50 = vpop.f32.mrf.mxu3  ;;  %v3490_v43 = vrot.slane %v3489_v41, 4  ;;  %v4118_v59 = vsel %vm5975_vm5, %v4116_v47, %v4117_v7  ;;  %v5646_v47 = vld [vmem:[%s5831_s26 + $0x4c] sm:$0xf] }
 0x1a0   : > { %v1114_v60 = vpop.f32.mrf.mxu1  ;;  %v2698_v7 = vrot.slane %v5646_v47, 5  ;;  %v7374_v47 = vld [vmem:[#allocation5_spill] sm:$0xff] }
 0x1a1   : > { %v1904_v18 = vadd.f32 %v1855_v50, %v1589_v12  ;;  %v1161_v26 = vadd.f32 %v1114_v60, %v6378_v1  ;;  %v5281_v1 = vld [vmem:[%s5831_s26 + $0x54] sm:$0xf]  ;;  %v3495_v30 = vsel %vm5971_vm4, %v3490_v43, %v6880_v25 }
 0x1a2   : > { %v2540_v38 = vpop.f32.mrf.mxu0  ;;  %v3507_v33 = vshrl.u32 %v5281_v1, 16  ;;  %v3510_v41 = vshll.u32 %v5281_v1, 16  ;;  %v3795_v60 = vunpack.c.l.b16 %v3495_v30  ;;  %v3526_v30 = vshll.u32 %v5283_v56, 16 }
 0x1a3   : > { %2925 = vmatmul.bf16.gmra.mxu1 %v2825_v63  ;;  %3240 = vmatmul.bf16.gmra.mxu2 %v5530_v37  ;;  %v6893_v0 = vadd.f32 %v2537_v48, %v1904_v18  ;;  %v3505_v48 = vsel %vm5971_vm4, %v3500_v14, %v3504_v45  ;;  %v2798_v63 = vunpack.c.l.b16 %v2692_v2  ;;  %v2799_v37 = vunpack.c.l.b16 %v2695_v55  ;;  %v5531_v45 = vld [vmem:[%s5831_s26 + $0x48] sm:$0xff] }
 0x1a4   : > { %3922 = vmatmul.bf16.gmra.mxu3 %v3822_v51  ;;  %v3796_v39 = vunpack.c.l.b16 %v3505_v48  ;;  %v4221_v51 = vunpack.c.l.b16 %v4115_v57  ;;  %v3509_v18 = vrot.slane %v3507_v33, 4  ;;  %v3523_v55 = vor.u32 %v3522_v16, %v6917_v34 }
 0x1a5   : > { %4348 = vmatmul.bf16.gmra.mxu0 %v4248_v62  ;;  %v4222_v62 = vunpack.c.l.b16 %v4118_v59  ;;  %v2826_v14 = vpack.c.b16 %v2799_v37, %v2798_v63  ;;  %v4121_v57 = vrot.slane %v6897_v4, 5  ;;  %v5367_v59 = vld [vmem:[%s5831_s26 + $0x54] sm:$0xe]  ;;  %v2700_v33 = vrot.slane %v2698_v7, 4 }
 0x1a6   : > { %v1543_v17 = vpop.f32.mrf.mxu2  ;;  %v3823_v22 = vpack.c.b16 %v3796_v39, %v3795_v60  ;;  %v3524_v37 = vrot.slane %v3523_v55, 4  ;;  %v5383_v60 = vrot.slane %v5367_v59, 9  ;;  %v4124_v4 = vrot.slane %v5283_v56, 5  ;;  %v5286_v59 = vld [vmem:[%s5831_s26 + $0x68] sm:$0x1] }
 0x1a7   : > { %v1590_v31 = vadd.f32 %v1543_v17, %v1161_v26  ;;  %v1858_v24 = vpop.f32.mrf.mxu3  ;;  %v3512_v26 = vrot.slane %v3510_v41, 5  ;;  %v5047_v17 = vld [vmem:[%s5831_s26 + $0x48] sm:$0xe]  ;;  %v5284_v41 = vld [vmem:[%s5831_s26 + $0x60] sm:$0xf]  ;;  %v4123_v39 = vrot.slane %v4121_v57, 4 }
 0x1a8   : > { %v1116_v61 = vpop.f32.mrf.mxu1  ;;  %v3544_v16 = vshrl.u32 %v6929_v11, 16 }
 0x1a9   : > { %v1905_v25 = vadd.f32 %v1858_v24, %v1590_v31  ;;  %v1162_v12 = vadd.f32 %v1116_v61, %v6405_v5  ;;  %v3513_v2 = vor.u32 %v3512_v26, %v3509_v18  ;;  %v5063_v61 = vrot.slane %v5047_v17, 9 }
 0x1aa   : > { %v2542_v50 = vpop.f32.mrf.mxu0  ;;  %v3534_v18 = vshll.u32 %v5284_v41, 16  ;;  %v3540_v26 = vshll.u32 %v6929_v11, 16  ;;  %v4122_v17 = vsel %vm5975_vm5, %v5383_v60, %v4121_v57  ;;  %v5648_v57 = vld [vmem:[%s5831_s26 + $0x58] sm:$0xf] }
 0x1ab   : > { %v6915_v32 = vadd.f32 %v2540_v38, %v1905_v25  ;;  %v4249_v38 = vpack.c.b16 %v4222_v62, %v4221_v51  ;;  %v5647_v25 = vld [vmem:[%s5831_s26 + $0x50] sm:$0x1]  ;;  %v3514_v63 = vrot.slane %v3513_v2, 4  ;;  %v3531_v62 = vshrl.u32 %v5284_v41, 16 }
 0x1ac   : > { %v3536_v55 = vrot.slane %v3534_v18, 5 }
 0x1ad   : > { %v3519_v56 = vsel %vm5971_vm4, %v3514_v63, %v6917_v34  ;;  %v3533_v2 = vrot.slane %v3531_v62, 4  ;;  %v3546_v34 = vrot.slane %v3544_v16, 4  ;;  %v2705_v63 = vrot.slane %v5648_v57, 5 }
 0x1ae   : > { %v1545_v21 = vpop.f32.mrf.mxu2 }
 0x1af   : > { %v1591_v5 = vadd.f32 %v1545_v21, %v1162_v12  ;;  %v1860_v43 = vpop.f32.mrf.mxu3  ;;  %v2701_v12 = vrot.slane %v5647_v25, 5  ;;  %v4223_v25 = vunpack.c.l.b16 %v4122_v17  ;;  %v3537_v60 = vor.u32 %v3536_v55, %v3533_v2  ;;  %v5649_v17 = vld [vmem:[%s5831_s26 + $0x5c] sm:$0x1] }
 0x1b0   : > { %v1119_v1 = vpop.f32.mrf.mxu1 }
 0x1b1   : > { %v1906_v31 = vadd.f32 %v1860_v43, %v1591_v5  ;;  %v1163_v24 = vadd.f32 %v1119_v1, %v6193_v36  ;;  %v3528_v36 = vrot.slane %v3526_v30, 5  ;;  %v2699_v43 = vsel %vm5975_vm5, %v5063_v61, %v2698_v7 }
 0x1b2   : > { %v2545_v48 = vpop.f32.mrf.mxu0  ;;  %v4125_v7 = vsel %vm5975_vm5, %v4123_v39, %v4124_v4  ;;  %v6950_v30 = vrot.slane %v3540_v26, 5  ;;  %v3550_v4 = vshll.u32 %v5286_v59, 16  ;;  %v5532_v26 = vld [vmem:[%s5831_s26 + $0x54] sm:$0xff] }
 0x1b3   : > { %2930 = vmatmul.bf16.gmra.mxu1 %v2826_v14  ;;  %3245 = vmatmul.bf16.gmra.mxu2 %v5531_v45  ;;  %v6931_v40 = vadd.f32 %v2542_v50, %v1906_v31  ;;  %v2702_v14 = vsel %vm5975_vm5, %v2700_v33, %v2701_v12  ;;  %v3529_v45 = vsel %vm5971_vm4, %v3524_v37, %v3528_v36  ;;  %v2800_v31 = vunpack.c.l.b16 %v2699_v43  ;;  %v5048_v36 = vld [vmem:[%s5831_s26 + $0x54] sm:$0xe] }
 0x1b4   : > { %3927 = vmatmul.bf16.gmra.mxu3 %v3823_v22  ;;  %v3797_v33 = vunpack.c.l.b16 %v3519_v56  ;;  %v3798_v41 = vunpack.c.l.b16 %v3529_v45  ;;  %v4224_v12 = vunpack.c.l.b16 %v4125_v7  ;;  %v3547_v39 = vor.u32 %v3546_v34, %v6950_v30 }
 0x1b5   : > { %4353 = vmatmul.bf16.gmra.mxu0 %v4249_v38  ;;  %v2708_v7 = vrot.slane %v5649_v17, 5  ;;  %v3552_v55 = vrot.slane %v3550_v4, 5 }
 0x1b6   : > { %v1548_v51 = vpop.f32.mrf.mxu2  ;;  %v3548_v2 = vrot.slane %v3547_v39, 4 }
 0x1b7   : > { %v1592_v21 = vadd.f32 %v1548_v51, %v1163_v24  ;;  %v1863_v50 = vpop.f32.mrf.mxu3  ;;  %v2801_v24 = vunpack.c.l.b16 %v2702_v14  ;;  %v7375_v14 = vld [vmem:[#allocation6_spill] sm:$0xff] }
 0x1b8   : > { %v1121_v5 = vpop.f32.mrf.mxu1 }
 0x1b9   : > { %v1907_v22 = vadd.f32 %v1863_v50, %v1592_v21  ;;  %v1164_v1 = vadd.f32 %v1121_v5, %v7374_v47  ;;  %v2827_v18 = vpack.c.b16 %v2801_v24, %v2800_v31  ;;  %v3824_v21 = vpack.c.b16 %v3798_v41, %v3797_v33  ;;  %v5368_v5 = vld [vmem:[%s5831_s26 + $0x60] sm:$0xe]  ;;  %v5287_v33 = vld [vmem:[%s5831_s26 + $0x6c] sm:$0xf]  ;;  %v6967_v41 = vld [vmem:[%s5831_s26 + $0x70] sm:$0xf] }
 0x1ba   : > { %v2547_v38 = vpop.f32.mrf.mxu0  ;;  %v4250_v50 = vpack.c.b16 %v4224_v12, %v4223_v25  ;;  %v2707_v47 = vrot.slane %v2705_v63, 4  ;;  %v4131_v31 = vrot.slane %v5286_v59, 5 }
 0x1bb   : > { %v6953_v61 = vadd.f32 %v2545_v48, %v1907_v22  ;;  %v4128_v48 = vrot.slane %v6929_v11, 5  ;;  %v5064_v22 = vrot.slane %v5048_v36, 9  ;;  %v5384_v11 = vrot.slane %v5368_v5, 9 }
 0x1bc   : > { %v2709_v57 = vsel %vm5975_vm5, %v2707_v47, %v2708_v7 }
 0x1bd   : > { %v4130_v34 = vrot.slane %v4128_v48, 4  ;;  %v2706_v12 = vsel %vm5975_vm5, %v5064_v22, %v2705_v63  ;;  %v3555_v63 = vshrl.u32 %v5287_v33, 16  ;;  %v2803_v5 = vunpack.c.l.b16 %v2709_v57 }
 0x1be   : > { %v1550_v37 = vpop.f32.mrf.mxu2 }
 0x1bf   : > { %v1593_v51 = vadd.f32 %v1550_v37, %v1164_v1  ;;  %v1865_v62 = vpop.f32.mrf.mxu3  ;;  %v3538_v1 = vrot.slane %v3537_v60, 4  ;;  %v4129_v60 = vsel %vm5975_vm5, %v5384_v11, %v4128_v48  ;;  %v4132_v39 = vsel %vm5975_vm5, %v4130_v34, %v4131_v31 }
 0x1c0   : > { %v1124_v16 = vpop.f32.mrf.mxu1  ;;  %v3557_v47 = vrot.slane %v3555_v63, 4 }
 0x1c1   : > { %v1908_v43 = vadd.f32 %v1865_v62, %v1593_v51  ;;  %v1165_v56 = vadd.f32 %v1124_v16, %v7375_v14  ;;  %v3543_v37 = vsel %vm5971_vm4, %v3538_v1, %v6950_v30  ;;  %v3558_v51 = vshll.u32 %v5287_v33, 16  ;;  %v5533_v33 = vld [vmem:[%s5831_s26 + $0x60] sm:$0xff] }
 0x1c2   : > { %v2550_v45 = vpop.f32.mrf.mxu0  ;;  %v3564_v62 = vshll.u32 %v6967_v41, 16  ;;  %v4225_v14 = vunpack.c.l.b16 %v4129_v60 }
 0x1c3   : > { %2935 = vmatmul.bf16.gmra.mxu1 %v2827_v18  ;;  %3250 = vmatmul.bf16.gmra.mxu2 %v5532_v26  ;;  %v6963_v24 = vadd.f32 %v2547_v38, %v1908_v43  ;;  %v3553_v38 = vsel %vm5971_vm4, %v3548_v2, %v3552_v55  ;;  %v3568_v18 = vshrl.u32 %v6967_v41, 16  ;;  %v7376_v26 = vld [vmem:[#allocation7_spill] sm:$0xff]  ;;  %v3799_v43 = vunpack.c.l.b16 %v3543_v37 }
 0x1c4   : > { %3932 = vmatmul.bf16.gmra.mxu3 %v3824_v21  ;;  %v3800_v48 = vunpack.c.l.b16 %v3553_v38  ;;  %v3560_v17 = vrot.slane %v3558_v51, 5  ;;  %v6987_v7 = vrot.slane %v3564_v62, 5  ;;  %v5289_v2 = vld [vmem:[%s5831_s26 + $0x74] sm:$0x1]  ;;  %v4135_v62 = vrot.slane %v6967_v41, 5 }
 0x1c5   : > { %4358 = vmatmul.bf16.gmra.mxu0 %v4250_v50  ;;  %v2802_v50 = vunpack.c.l.b16 %v2706_v12  ;;  %v3570_v1 = vrot.slane %v3568_v18, 4  ;;  %v5650_v12 = vld [vmem:[%s5831_s26 + $0x64] sm:$0xf]  ;;  %v3574_v60 = vshll.u32 %v5289_v2, 16  ;;  %v5369_v18 = vld [vmem:[%s5831_s26 + $0x6c] sm:$0xe] }
 0x1c6   : > { %v1553_v25 = vpop.f32.mrf.mxu2  ;;  %v2712_v57 = vrot.slane %v5650_v12, 5  ;;  %v4138_v41 = vrot.slane %v5289_v2, 5 }
 0x1c7   : > { %v1594_v36 = vadd.f32 %v1553_v25, %v1165_v56  ;;  %v1868_v59 = vpop.f32.mrf.mxu3  ;;  %v4226_v56 = vunpack.c.l.b16 %v4132_v39  ;;  %v2828_v31 = vpack.c.b16 %v2803_v5, %v2802_v50  ;;  %v3825_v25 = vpack.c.b16 %v3800_v48, %v3799_v43  ;;  %v6999_v50 = vld [vmem:[%s5831_s26 + $0x7c] sm:$0xf]  ;;  %v5651_v43 = vld [vmem:[%s5831_s26 + $0x68] sm:$0x1] }
 0x1c8   : > { %v1126_v4 = vpop.f32.mrf.mxu1  ;;  %v3571_v38 = vor.u32 %v3570_v1, %v6987_v7  ;;  %v2715_v48 = vrot.slane %v5651_v43, 5  ;;  %v4137_v1 = vrot.slane %v4135_v62, 4  ;;  %v5292_v43 = vld [vmem:[%s5831_s26 + $0x80] sm:$0x1] }
 0x1c9   : > { %v1909_v30 = vadd.f32 %v1868_v59, %v1594_v36  ;;  %v1166_v16 = vadd.f32 %v1126_v4, %v7376_v26  ;;  %v5049_v36 = vld [vmem:[%s5831_s26 + $0x60] sm:$0xe]  ;;  %v3561_v59 = vor.u32 %v3560_v17, %v3557_v47  ;;  %v7377_v4 = vld [vmem:[#allocation8_spill] sm:$0xff]  ;;  %v2714_v26 = vrot.slane %v2712_v57, 4 }
 0x1ca   : > { %v2552_v21 = vpop.f32.mrf.mxu0  ;;  %v3576_v47 = vrot.slane %v3574_v60, 5  ;;  %v5385_v17 = vrot.slane %v5369_v18, 9 }
 0x1cb   : > { %v6985_v22 = vadd.f32 %v2550_v45, %v1909_v30  ;;  %v4251_v45 = vpack.c.b16 %v4226_v56, %v4225_v14  ;;  %v5065_v30 = vrot.slane %v5049_v36, 9  ;;  %v3562_v14 = vrot.slane %v3561_v59, 4 }
 0x1cc   : > { %v3572_v56 = vrot.slane %v3571_v38, 4  ;;  %v7378_v38 = vld [vmem:[#allocation9_spill] sm:$0xff] }
 0x1cd   : > { %v3567_v2 = vsel %vm5971_vm4, %v3562_v14, %v6987_v7 }
 0x1ce   : > { %v1555_v55 = vpop.f32.mrf.mxu2  ;;  %v3577_v36 = vsel %vm5971_vm4, %v3572_v56, %v3576_v47  ;;  %v3801_v14 = vunpack.c.l.b16 %v3567_v2 }
 0x1cf   : > { %v1595_v11 = vadd.f32 %v1555_v55, %v1166_v16  ;;  %v1870_v34 = vpop.f32.mrf.mxu3  ;;  %v5290_v16 = vld [vmem:[%s5831_s26 + $0x78] sm:$0xf]  ;;  %v3802_v56 = vunpack.c.l.b16 %v3577_v36 }
 0x1d0   : > { %v1129_v37 = vpop.f32.mrf.mxu1  ;;  %v5370_v36 = vld [vmem:[%s5831_s26 + $0x78] sm:$0xe] }
 0x1d1   : > { %v1910_v39 = vadd.f32 %v1870_v34, %v1595_v11  ;;  %v1167_v63 = vadd.f32 %v1129_v37, %v7377_v4  ;;  %v3579_v11 = vshrl.u32 %v5290_v16, 16  ;;  %v3582_v34 = vshll.u32 %v5290_v16, 16 }
 0x1d2   : > { %v2555_v51 = vpop.f32.mrf.mxu0  ;;  %v4136_v4 = vsel %vm5975_vm5, %v5385_v17, %v4135_v62  ;;  %v5050_v17 = vld [vmem:[%s5831_s26 + $0x6c] sm:$0xe] }
 0x1d3   : > { %2940 = vmatmul.bf16.gmra.mxu1 %v2828_v31  ;;  %3255 = vmatmul.bf16.gmra.mxu2 %v5533_v33  ;;  %v7001_v5 = vadd.f32 %v2552_v21, %v1910_v39  ;;  %v3588_v31 = vshll.u32 %v6999_v50, 16  ;;  %v3592_v33 = vshrl.u32 %v6999_v50, 16  ;;  %v3584_v18 = vrot.slane %v3582_v34, 5 }
 0x1d4   : > { %3937 = vmatmul.bf16.gmra.mxu3 %v3825_v25  ;;  %v2713_v25 = vsel %vm5975_vm5, %v5065_v30, %v2712_v57  ;;  %v4139_v57 = vsel %vm5975_vm5, %v4137_v1, %v4138_v41  ;;  %v4227_v47 = vunpack.c.l.b16 %v4136_v4  ;;  %v3598_v34 = vshll.u32 %v5292_v43, 16 }
 0x1d5   : > { %4363 = vmatmul.bf16.gmra.mxu0 %v4251_v45  ;;  %v2716_v45 = vsel %vm5975_vm5, %v2714_v26, %v2715_v48  ;;  %v7020_v30 = vrot.slane %v3588_v31, 5  ;;  %v3594_v7 = vrot.slane %v3592_v33, 4  ;;  %v2804_v26 = vunpack.c.l.b16 %v2713_v25 }
 0x1d6   : > { %v1558_v55 = vpop.f32.mrf.mxu2  ;;  %v2805_v16 = vunpack.c.l.b16 %v2716_v45  ;;  %v3826_v45 = vpack.c.b16 %v3802_v56, %v3801_v14  ;;  %v4145_v14 = vrot.slane %v5292_v43, 5 }
 0x1d7   : > { %v1596_v12 = vadd.f32 %v1558_v55, %v1167_v63  ;;  %v1873_v21 = vpop.f32.mrf.mxu3  ;;  %v3581_v63 = vrot.slane %v3579_v11, 4  ;;  %v4228_v55 = vunpack.c.l.b16 %v4139_v57  ;;  %v3595_v11 = vor.u32 %v3594_v7, %v7020_v30 }
 0x1d8   : > { %v1131_v37 = vpop.f32.mrf.mxu1 }
 0x1d9   : > { %v1911_v59 = vadd.f32 %v1873_v21, %v1596_v12  ;;  %v1168_v60 = vadd.f32 %v1131_v37, %v7378_v38  ;;  %v5652_v12 = vld [vmem:[%s5831_s26 + $0x70] sm:$0xf]  ;;  %v3585_v41 = vor.u32 %v3584_v18, %v3581_v63  ;;  %v2829_v21 = vpack.c.b16 %v2805_v16, %v2804_v26  ;;  %v7379_v38 = vld [vmem:[#allocation10_spill] sm:$0xff]  ;;  %v5653_v18 = vld [vmem:[%s5831_s26 + $0x74] sm:$0x1] }
 0x1da   : > { %v2557_v39 = vpop.f32.mrf.mxu0  ;;  %v2719_v1 = vrot.slane %v5652_v12, 5  ;;  %v5534_v37 = vld [vmem:[%s5831_s26 + $0x6c] sm:$0xff]  ;;  %v4252_v2 = vpack.c.b16 %v4228_v55, %v4227_v47  ;;  %v5066_v63 = vrot.slane %v5050_v17, 9  ;;  %v2722_v7 = vrot.slane %v5653_v18, 5  ;;  %v5293_v47 = vld [vmem:[%s5831_s26 + $0x84] sm:$0xf] }
 0x1db   : > { %v7023_v48 = vadd.f32 %v2555_v51, %v1911_v59  ;;  %v4142_v51 = vrot.slane %v6999_v50, 5  ;;  %v3600_v26 = vrot.slane %v3598_v34, 5  ;;  %v5386_v50 = vrot.slane %v5370_v36, 9  ;;  %v7037_v55 = vld [vmem:[%s5831_s26 + $0x88] sm:$0xf]  ;;  %v7380_v36 = vld [vmem:[#allocation11_spill] sm:$0xff] }
 0x1dc   : > { %v2721_v12 = vrot.slane %v2719_v1, 4 }
 0x1dd   : > { %v4144_v16 = vrot.slane %v4142_v51, 4 }
 0x1de   : > { %v1560_v62 = vpop.f32.mrf.mxu2 }
 0x1df   : > { %v1597_v31 = vadd.f32 %v1560_v62, %v1168_v60  ;;  %v1875_v33 = vpop.f32.mrf.mxu3  ;;  %v3586_v60 = vrot.slane %v3585_v41, 4  ;;  %v3596_v62 = vrot.slane %v3595_v11, 4  ;;  %v2723_v41 = vsel %vm5975_vm5, %v2721_v12, %v2722_v7 }
 0x1e0   : > { %v1134_v25 = vpop.f32.mrf.mxu1 }
 0x1e1   : > { %v1912_v59 = vadd.f32 %v1875_v33, %v1597_v31  ;;  %v1169_v4 = vadd.f32 %v1134_v25, %v7379_v38  ;;  %v2720_v31 = vsel %vm5975_vm5, %v5066_v63, %v2719_v1  ;;  %v3591_v11 = vsel %vm5971_vm4, %v3586_v60, %v7020_v30 }
 0x1e2   : > { %v2560_v57 = vpop.f32.mrf.mxu0  ;;  %v4143_v33 = vsel %vm5975_vm5, %v5386_v50, %v4142_v51  ;;  %v3603_v1 = vshrl.u32 %v5293_v47, 16  ;;  %v3606_v25 = vshll.u32 %v5293_v47, 16  ;;  %v2807_v63 = vunpack.c.l.b16 %v2723_v41  ;;  %v5535_v41 = vld [vmem:[%s5831_s26 + $0x78] sm:$0xff] }
 0x1e3   : > { %2945 = vmatmul.bf16.gmra.mxu1 %v2829_v21  ;;  %3260 = vmatmul.bf16.gmra.mxu2 %v5534_v37  ;;  %v7033_v56 = vadd.f32 %v2557_v39, %v1912_v59  ;;  %v3601_v39 = vsel %vm5971_vm4, %v3596_v62, %v3600_v26  ;;  %v4146_v21 = vsel %vm5975_vm5, %v4144_v16, %v4145_v14  ;;  %v3803_v18 = vunpack.c.l.b16 %v3591_v11  ;;  %v5295_v14 = vld [vmem:[%s5831_s26 + $0x8c] sm:$0x1] }
 0x1e4   : > { %3942 = vmatmul.bf16.gmra.mxu3 %v3826_v45  ;;  %v3612_v45 = vshll.u32 %v7037_v55, 16  ;;  %v3804_v51 = vunpack.c.l.b16 %v3601_v39  ;;  %v4229_v7 = vunpack.c.l.b16 %v4143_v33  ;;  %v4230_v12 = vunpack.c.l.b16 %v4146_v21  ;;  %v5051_v21 = vld [vmem:[%s5831_s26 + $0x78] sm:$0xe] }
 0x1e5   : > { %4368 = vmatmul.bf16.gmra.mxu0 %v4252_v2  ;;  %v3616_v2 = vshrl.u32 %v7037_v55, 16  ;;  %v3605_v62 = vrot.slane %v3603_v1, 4  ;;  %v3608_v26 = vrot.slane %v3606_v25, 5  ;;  %v3622_v25 = vshll.u32 %v5295_v14, 16 }
 0x1e6   : > { %v1563_v17 = vpop.f32.mrf.mxu2  ;;  %v7057_v50 = vrot.slane %v3612_v45, 5  ;;  %v3827_v11 = vpack.c.b16 %v3804_v51, %v3803_v18  ;;  %v4253_v33 = vpack.c.b16 %v4230_v12, %v4229_v7  ;;  %v7068_v18 = vld [vmem:[%s5831_s26 + $0x94] sm:$0xf]  ;;  %v5655_v7 = vld [vmem:[%s5831_s26 + $0x80] sm:$0x1] }
 0x1e7   : > { %v1598_v34 = vadd.f32 %v1563_v17, %v1169_v4  ;;  %v1878_v43 = vpop.f32.mrf.mxu3  ;;  %v2806_v4 = vunpack.c.l.b16 %v2720_v31  ;;  %v3618_v16 = vrot.slane %v3616_v2, 4  ;;  %v2729_v12 = vrot.slane %v5655_v7, 5 }
 0x1e8   : > { %v1136_v37 = vpop.f32.mrf.mxu1 }
 0x1e9   : > { %v1913_v30 = vadd.f32 %v1878_v43, %v1598_v34  ;;  %v1170_v59 = vadd.f32 %v1136_v37, %v7380_v36  ;;  %v2830_v34 = vpack.c.b16 %v2807_v63, %v2806_v4  ;;  %v5654_v43 = vld [vmem:[%s5831_s26 + $0x7c] sm:$0xf]  ;;  %v3609_v37 = vor.u32 %v3608_v26, %v3605_v62  ;;  %v5371_v36 = vld [vmem:[%s5831_s26 + $0x84] sm:$0xe]  ;;  %v5296_v63 = vld [vmem:[%s5831_s26 + $0x90] sm:$0xf] }
 0x1ea   : > { %v2562_v38 = vpop.f32.mrf.mxu0  ;;  %v2726_v39 = vrot.slane %v5654_v43, 5  ;;  %v3619_v1 = vor.u32 %v3618_v16, %v7057_v50  ;;  %v3624_v16 = vrot.slane %v3622_v25, 5  ;;  %v3630_v43 = vshll.u32 %v5296_v63, 16 }
 0x1eb   : > { %v7055_v60 = vadd.f32 %v2560_v57, %v1913_v30  ;;  %v4149_v30 = vrot.slane %v7037_v55, 5  ;;  %v3610_v62 = vrot.slane %v3609_v37, 4 }
 0x1ec   : > { %v2728_v4 = vrot.slane %v2726_v39, 4  ;;  %v3620_v26 = vrot.slane %v3619_v1, 4 }
 0x1ed   : > { %7381 = vst [vmem:[#allocation5_spill] sm:$0xff] %v7055_v60 }
 0x1ee   : > { %v1565_v47 = vpop.f32.mrf.mxu2  ;;  %v3625_v25 = vsel %vm5971_vm4, %v3620_v26, %v3624_v16 }
 0x1ef   : > { %v1599_v17 = vadd.f32 %v1565_v47, %v1170_v59  ;;  %v1880_v31 = vpop.f32.mrf.mxu3  ;;  %v5067_v59 = vrot.slane %v5051_v21, 9  ;;  %v5387_v47 = vrot.slane %v5371_v36, 9 }
 0x1f0   : > { %v2911_v57 = vpop.f32.mrf.mxu1 }
 0x1f1   : > { %v1914_v45 = vadd.f32 %v1880_v31, %v1599_v17  ;;  %v2991_v55 = vadd.f32 %v2911_v57, %v6481_v8  ;;  %v4151_v17 = vrot.slane %v4149_v30, 4  ;;  %v4152_v31 = vrot.slane %v5295_v14, 5 }
 0x1f2   : > { %v4334_v2 = vpop.f32.mrf.mxu0  ;;  %v2727_v37 = vsel %vm5975_vm5, %v5067_v59, %v2726_v39  ;;  %v2730_v8 = vsel %vm5975_vm5, %v2728_v4, %v2729_v12  ;;  %v3615_v14 = vsel %vm5971_vm4, %v3610_v62, %v7057_v50  ;;  %v4150_v36 = vsel %vm5975_vm5, %v5387_v47, %v4149_v30  ;;  %v7383_v47 = vld [vmem:[#allocation12_spill] sm:$0xff] }
 0x1f3   : > { %2950 = vmatmul.bf16.gmra.mxu1 %v2830_v34  ;;  %3265 = vmatmul.bf16.gmra.mxu2 %v5535_v41  ;;  %v7070_v51 = vadd.f32 %v2562_v38, %v1914_v45  ;;  %v3627_v41 = vshrl.u32 %v5296_v63, 16  ;;  %v3636_v38 = vshll.u32 %v7068_v18, 16  ;;  %v4153_v39 = vsel %vm5975_vm5, %v4151_v17, %v4152_v31 }
 0x1f4   : > { %3947 = vmatmul.bf16.gmra.mxu3 %v3827_v11  ;;  %v3640_v11 = vshrl.u32 %v7068_v18, 16  ;;  %v3632_v4 = vrot.slane %v3630_v43, 5  ;;  %v2808_v12 = vunpack.c.l.b16 %v2727_v37  ;;  %v2809_v62 = vunpack.c.l.b16 %v2730_v8 }
 0x1f5   : > { %7382 = vst [vmem:[#allocation6_spill] sm:$0xff] %v7070_v51  ;;  %4373 = vmatmul.bf16.gmra.mxu0 %v4253_v33  ;;  %v3629_v59 = vrot.slane %v3627_v41, 4  ;;  %v7092_v63 = vrot.slane %v3636_v38, 5  ;;  %v4231_v26 = vunpack.c.l.b16 %v4150_v36  ;;  %v4232_v16 = vunpack.c.l.b16 %v4153_v39  ;;  %v5656_v51 = vld [vmem:[%s5831_s26 + $0x88] sm:$0xf] }
 0x1f6   : > { %v3226_v34 = vpop.f32.mrf.mxu2  ;;  %v3642_v50 = vrot.slane %v3640_v11, 4  ;;  %v2733_v17 = vrot.slane %v5656_v51, 5  ;;  %v5052_v41 = vld [vmem:[%s5831_s26 + $0x84] sm:$0xe]  ;;  %v2831_v8 = vpack.c.b16 %v2809_v62, %v2808_v12  ;;  %v5372_v36 = vld [vmem:[%s5831_s26 + $0x90] sm:$0xe] }
 0x1f7   : > { %v3306_v33 = vadd.f32 %v3226_v34, %v2991_v55  ;;  %v3908_v21 = vpop.f32.mrf.mxu3  ;;  %v5298_v55 = vld [vmem:[%s5831_s26 + $0x98] sm:$0x1]  ;;  %v3805_v34 = vunpack.c.l.b16 %v3615_v14  ;;  %v3633_v43 = vor.u32 %v3632_v4, %v3629_v59  ;;  %v5536_v14 = vld [vmem:[%s5831_s26 + $0x84] sm:$0xff]  ;;  %v5068_v4 = vrot.slane %v5052_v41, 9 }
 0x1f8   : > { %v2913_v45 = vpop.f32.mrf.mxu1  ;;  %v3643_v38 = vor.u32 %v3642_v50, %v7092_v63  ;;  %v2735_v50 = vrot.slane %v2733_v17, 4  ;;  %v4159_v62 = vrot.slane %v5298_v55, 5 }
 0x1f9   : > { %v3988_v57 = vadd.f32 %v3908_v21, %v3306_v33  ;;  %v3806_v33 = vunpack.c.l.b16 %v3625_v25  ;;  %v2992_v21 = vadd.f32 %v2913_v45, %v7383_v47  ;;  %v4156_v45 = vrot.slane %v7068_v18, 5 }
 0x1fa   : > { %v4336_v1 = vpop.f32.mrf.mxu0  ;;  %v4254_v25 = vpack.c.b16 %v4232_v16, %v4231_v26  ;;  %v3634_v60 = vrot.slane %v3633_v43, 4  ;;  %v5388_v18 = vrot.slane %v5372_v36, 9  ;;  %v5299_v26 = vld [vmem:[%s5831_s26 + $0x9c] sm:$0xf]  ;;  %v7109_v16 = vld [vmem:[%s5831_s26 + $0xa0] sm:$0xf]  ;;  %v2734_v43 = vsel %vm5975_vm5, %v5068_v4, %v2733_v17 }
 0x1fb   : > { %v4414_v7 = vadd.f32 %v4334_v2, %v3988_v57  ;;  %v3646_v2 = vshll.u32 %v5298_v55, 16  ;;  %v3828_v51 = vpack.c.b16 %v3806_v33, %v3805_v34  ;;  %v4158_v12 = vrot.slane %v4156_v45, 4 }
 0x1fd   : > { %v4446_v30 = vmax.f32 %v4414_v7, 0.0  ;;  %v5657_v7 = vld [vmem:[%s5831_s26 + $0x8c] sm:$0x1] }
 0x1fe   : > { %v3228_v31 = vpop.f32.mrf.mxu2  ;;  %v2736_v47 = vrot.slane %v5657_v7, 5 }
 0x1ff   : > { %4478 = vst [vmem:[%s7099_s24] sm:$0xff] %v4446_v30  ;;  %v3307_v11 = vadd.f32 %v3228_v31, %v2992_v21  ;;  %v3910_v37 = vpop.f32.mrf.mxu3  ;;  %v3644_v30 = vrot.slane %v3643_v38, 4  ;;  %v3648_v21 = vrot.slane %v3646_v2, 5  ;;  %v3639_v38 = vsel %vm5971_vm4, %v3634_v60, %v7092_v63 }
 0x200   : > { %v2916_v57 = vpop.f32.mrf.mxu1 }
 0x201   : > { %v3989_v39 = vadd.f32 %v3910_v37, %v3307_v11  ;;  %v2993_v33 = vadd.f32 %v2916_v57, %v6524_v58  ;;  %v3649_v58 = vsel %vm5971_vm4, %v3644_v30, %v3648_v21  ;;  %v4157_v11 = vsel %vm5975_vm5, %v5388_v18, %v4156_v45 }
 0x202   : > { %v4339_v59 = vpop.f32.mrf.mxu0  ;;  %v4160_v37 = vsel %vm5975_vm5, %v4158_v12, %v4159_v62  ;;  %v3660_v57 = vshll.u32 %v7109_v16, 16  ;;  %v3808_v45 = vunpack.c.l.b16 %v3649_v58  ;;  %v5301_v62 = vld [vmem:[%s5831_s26 + $0xa4] sm:$0x1] }
 0x203   : > { %v4415_v31 = vadd.f32 %v4336_v1, %v3989_v39  ;;  %2955 = vmatmul.bf16.gmra.mxu1 %v2831_v8  ;;  %3270 = vmatmul.bf16.gmra.mxu2 %v5536_v14  ;;  %v2737_v1 = vsel %vm5975_vm5, %v2735_v50, %v2736_v47  ;;  %v3651_v8 = vshrl.u32 %v5299_v26, 16  ;;  %v3654_v14 = vshll.u32 %v5299_v26, 16 }
 0x204   : > { %3952 = vmatmul.bf16.gmra.mxu3 %v3828_v51  ;;  %v3664_v51 = vshrl.u32 %v7109_v16, 16  ;;  %v2811_v36 = vunpack.c.l.b16 %v2737_v1  ;;  %v3807_v39 = vunpack.c.l.b16 %v3639_v38  ;;  %v4233_v50 = vunpack.c.l.b16 %v4157_v11  ;;  %v5053_v1 = vld [vmem:[%s5831_s26 + $0x90] sm:$0xe]  ;;  %v5658_v38 = vld [vmem:[%s5831_s26 + $0x94] sm:$0xf] }
 0x205   : > { %4378 = vmatmul.bf16.gmra.mxu0 %v4254_v25  ;;  %v4447_v34 = vmax.f32 %v4415_v31, 0.0  ;;  %v2810_v25 = vunpack.c.l.b16 %v2734_v43  ;;  %v4234_v7 = vunpack.c.l.b16 %v4160_v37  ;;  %v3653_v47 = vrot.slane %v3651_v8, 4 }
 0x206   : > { %v3231_v41 = vpop.f32.mrf.mxu2  ;;  %v3656_v30 = vrot.slane %v3654_v14, 5  ;;  %v7127_v21 = vrot.slane %v3660_v57, 5  ;;  %v3666_v31 = vrot.slane %v3664_v51, 4  ;;  %v3829_v43 = vpack.c.b16 %v3808_v45, %v3807_v39  ;;  %v5373_v14 = vld [vmem:[%s5831_s26 + $0x9c] sm:$0xe] }
 0x207   : > { %4479 = vst [vmem:[%s7099_s24 + $0x8] sm:$0xff] %v4447_v34  ;;  %v3308_v55 = vadd.f32 %v3231_v41, %v2993_v33  ;;  %v3913_v2 = vpop.f32.mrf.mxu3  ;;  %v2832_v26 = vpack.c.b16 %v2811_v36, %v2810_v25  ;;  %v5537_v41 = vld [vmem:[%s5831_s26 + $0x90] sm:$0xff]  ;;  %v4255_v58 = vpack.c.b16 %v4234_v7, %v4233_v50  ;;  %v3670_v37 = vshll.u32 %v5301_v62, 16  ;;  %v5659_v36 = vld [vmem:[%s5831_s26 + $0x98] sm:$0x1] }
 0x208   : > { %v2918_v17 = vpop.f32.mrf.mxu1  ;;  %v3657_v11 = vor.u32 %v3656_v30, %v3653_v47  ;;  %v4163_v57 = vrot.slane %v7109_v16, 5  ;;  %v5069_v51 = vrot.slane %v5053_v1, 9  ;;  %v2743_v39 = vrot.slane %v5659_v36, 5  ;;  %v7141_v45 = vld [vmem:[%s5831_s26 + $0xac] sm:$0xf] }
 0x209   : > { %v3990_v60 = vadd.f32 %v3913_v2, %v3308_v55  ;;  %v2994_v12 = vadd.f32 %v2918_v17, %v6526_v9  ;;  %v2740_v55 = vrot.slane %v5658_v38, 5  ;;  %v3667_v9 = vor.u32 %v3666_v31, %v7127_v21  ;;  %v5304_v36 = vld [vmem:[%s5831_s26 + $0xb0] sm:$0x1] }
 0x20a   : > { %v4341_v63 = vpop.f32.mrf.mxu0  ;;  %v3658_v50 = vrot.slane %v3657_v11, 4  ;;  %v3672_v47 = vrot.slane %v3670_v37, 5  ;;  %v5389_v30 = vrot.slane %v5373_v14, 9 }
 0x20b   : > { %v4416_v4 = vadd.f32 %v4339_v59, %v3990_v60  ;;  %v2742_v25 = vrot.slane %v2740_v55, 4  ;;  %v3668_v7 = vrot.slane %v3667_v9, 4  ;;  %v2741_v38 = vsel %vm5975_vm5, %v5069_v51, %v2740_v55 }
 0x20c   : > { %v4164_v9 = vsel %vm5975_vm5, %v5389_v30, %v4163_v57  ;;  %v5660_v30 = vld [vmem:[%s5831_s26 + $0xa0] sm:$0xf] }
 0x20d   : > { %v4448_v18 = vmax.f32 %v4416_v4, 0.0  ;;  %v5302_v4 = vld [vmem:[%s5831_s26 + $0xa8] sm:$0xf]  ;;  %v3673_v11 = vsel %vm5971_vm4, %v3668_v7, %v3672_v47 }
 0x20e   : > { %v3233_v34 = vpop.f32.mrf.mxu2 }
 0x20f   : > { %4480 = vst [vmem:[%s7099_s24 + $0x10] sm:$0xff] %v4448_v18  ;;  %v3309_v33 = vadd.f32 %v3233_v34, %v2994_v12  ;;  %v3915_v59 = vpop.f32.mrf.mxu3  ;;  %v4165_v18 = vrot.slane %v4163_v57, 4  ;;  %v3675_v34 = vshrl.u32 %v5302_v4, 16 }
 0x210   : > { %v2921_v2 = vpop.f32.mrf.mxu1 }
 0x211   : > { %v3991_v17 = vadd.f32 %v3915_v59, %v3309_v33  ;;  %v2995_v16 = vadd.f32 %v2921_v2, %v6585_v10  ;;  %v3678_v33 = vshll.u32 %v5302_v4, 16  ;;  %v3684_v59 = vshll.u32 %v7141_v45, 16 }
 0x212   : > { %v4344_v8 = vpop.f32.mrf.mxu0  ;;  %v2744_v10 = vsel %vm5975_vm5, %v2742_v25, %v2743_v39  ;;  %v3677_v55 = vrot.slane %v3675_v34, 4  ;;  %v3810_v4 = vunpack.c.l.b16 %v3673_v11 }
 0x213   : > { %v4417_v60 = vadd.f32 %v4341_v63, %v3991_v17  ;;  %2960 = vmatmul.bf16.gmra.mxu1 %v2832_v26  ;;  %3275 = vmatmul.bf16.gmra.mxu2 %v5537_v41  ;;  %v4166_v63 = vrot.slane %v5301_v62, 5  ;;  %v3688_v26 = vshrl.u32 %v7141_v45, 16  ;;  %v3663_v62 = vsel %vm5971_vm4, %v3658_v50, %v7127_v21 }
 0x214   : > { %3957 = vmatmul.bf16.gmra.mxu3 %v3829_v43  ;;  %v3680_v17 = vrot.slane %v3678_v33, 5  ;;  %v7160_v14 = vrot.slane %v3684_v59, 5  ;;  %v2812_v21 = vunpack.c.l.b16 %v2741_v38  ;;  %v2813_v25 = vunpack.c.l.b16 %v2744_v10 }
 0x215   : > { %4383 = vmatmul.bf16.gmra.mxu0 %v4255_v58  ;;  %v4449_v31 = vmax.f32 %v4417_v60, 0.0  ;;  %v4167_v37 = vsel %vm5975_vm5, %v4165_v18, %v4166_v63  ;;  %v3690_v51 = vrot.slane %v3688_v26, 4  ;;  %v3809_v39 = vunpack.c.l.b16 %v3663_v62  ;;  %v5054_v18 = vld [vmem:[%s5831_s26 + $0x9c] sm:$0xe] }
 0x216   : > { %v3236_v12 = vpop.f32.mrf.mxu2  ;;  %v4235_v50 = vunpack.c.l.b16 %v4164_v9  ;;  %v4236_v57 = vunpack.c.l.b16 %v4167_v37  ;;  %v3681_v63 = vor.u32 %v3680_v17, %v3677_v55  ;;  %v2833_v59 = vpack.c.b16 %v2813_v25, %v2812_v21  ;;  %v5538_v26 = vld [vmem:[%s5831_s26 + $0x9c] sm:$0xff]  ;;  %v5661_v9 = vld [vmem:[%s5831_s26 + $0xa4] sm:$0x1] }
 0x217   : > { %4481 = vst [vmem:[%s7099_s24 + $0x18] sm:$0xff] %v4449_v31  ;;  %v3310_v41 = vadd.f32 %v3236_v12, %v2995_v16  ;;  %v3918_v43 = vpop.f32.mrf.mxu3  ;;  %v2747_v31 = vrot.slane %v5660_v30, 5  ;;  %v3694_v12 = vshll.u32 %v5304_v36, 16  ;;  %v3830_v38 = vpack.c.b16 %v3810_v4, %v3809_v39 }
 0x218   : > { %v2923_v1 = vpop.f32.mrf.mxu1  ;;  %v2750_v37 = vrot.slane %v5661_v9, 5  ;;  %v3682_v55 = vrot.slane %v3681_v63, 4  ;;  %v4173_v25 = vrot.slane %v5304_v36, 5 }
 0x219   : > { %v3992_v2 = vadd.f32 %v3918_v43, %v3310_v41  ;;  %v2996_v47 = vadd.f32 %v2923_v1, %v6587_v44  ;;  %v4170_v41 = vrot.slane %v7141_v45, 5  ;;  %v4256_v44 = vpack.c.b16 %v4236_v57, %v4235_v50  ;;  %v5374_v1 = vld [vmem:[%s5831_s26 + $0xa8] sm:$0xe]  ;;  %v5305_v50 = vld [vmem:[%s5831_s26 + $0xb4] sm:$0xf] }
 0x21a   : > { %v4346_v58 = vpop.f32.mrf.mxu0  ;;  %v2749_v11 = vrot.slane %v2747_v31, 4  ;;  %v5390_v45 = vrot.slane %v5374_v1, 9  ;;  %v7175_v57 = vld [vmem:[%s5831_s26 + $0xb8] sm:$0xf]  ;;  %v3687_v30 = vsel %vm5971_vm4, %v3682_v55, %v7160_v14 }
 0x21b   : > { %v4418_v60 = vadd.f32 %v4344_v8, %v3992_v2  ;;  %v3691_v8 = vor.u32 %v3690_v51, %v7160_v14  ;;  %v5070_v2 = vrot.slane %v5054_v18, 9  ;;  %v3696_v51 = vrot.slane %v3694_v12, 5 }
 0x21c   : > { %v4172_v21 = vrot.slane %v4170_v41, 4  ;;  %v4171_v18 = vsel %vm5975_vm5, %v5390_v45, %v4170_v41  ;;  %v3702_v12 = vshll.u32 %v5305_v50, 16 }
 0x21d   : > { %v4450_v7 = vmax.f32 %v4418_v60, 0.0  ;;  %v3692_v17 = vrot.slane %v3691_v8, 4  ;;  %v3699_v8 = vshrl.u32 %v5305_v50, 16  ;;  %v4237_v1 = vunpack.c.l.b16 %v4171_v18  ;;  %v5662_v50 = vld [vmem:[%s5831_s26 + $0xac] sm:$0xf] }
 0x21e   : > { %v3238_v16 = vpop.f32.mrf.mxu2  ;;  %v4174_v63 = vsel %vm5975_vm5, %v4172_v21, %v4173_v25  ;;  %v5539_v25 = vld [vmem:[%s5831_s26 + $0xa8] sm:$0xff]  ;;  %v5375_v18 = vld [vmem:[%s5831_s26 + $0xb4] sm:$0xe] }
 0x21f   : > { %4482 = vst [vmem:[%s7099_s24 + $0x20] sm:$0xff] %v4450_v7  ;;  %v3311_v34 = vadd.f32 %v3238_v16, %v2996_v47  ;;  %v3920_v33 = vpop.f32.mrf.mxu3  ;;  %v2748_v47 = vsel %vm5975_vm5, %v5070_v2, %v2747_v31  ;;  %v3701_v2 = vrot.slane %v3699_v8, 4 }
 0x220   : > { %v2926_v43 = vpop.f32.mrf.mxu1 }
 0x221   : > { %v3993_v10 = vadd.f32 %v3920_v33, %v3311_v34  ;;  %v2997_v4 = vadd.f32 %v2926_v43, %v6628_v3  ;;  %v3697_v3 = vsel %vm5971_vm4, %v3692_v17, %v3696_v51  ;;  %v3708_v34 = vshll.u32 %v7175_v57, 16  ;;  %v5307_v51 = vld [vmem:[%s5831_s26 + $0xbc] sm:$0x1] }
 0x222   : > { %v4349_v62 = vpop.f32.mrf.mxu0  ;;  %v3712_v33 = vshrl.u32 %v7175_v57, 16  ;;  %v3812_v41 = vunpack.c.l.b16 %v3697_v3 }
 0x223   : > { %v4419_v60 = vadd.f32 %v4346_v58, %v3993_v10  ;;  %2965 = vmatmul.bf16.gmra.mxu1 %v2833_v59  ;;  %3280 = vmatmul.bf16.gmra.mxu2 %v5538_v26  ;;  %v2751_v58 = vsel %vm5975_vm5, %v2749_v11, %v2750_v37  ;;  %v2814_v26 = vunpack.c.l.b16 %v2748_v47  ;;  %v4238_v10 = vunpack.c.l.b16 %v4174_v63 }
 0x224   : > { %3962 = vmatmul.bf16.gmra.mxu3 %v3830_v38  ;;  %v2815_v43 = vunpack.c.l.b16 %v2751_v58  ;;  %v3811_v38 = vunpack.c.l.b16 %v3687_v30  ;;  %v3704_v11 = vrot.slane %v3702_v12, 5  ;;  %v7193_v9 = vrot.slane %v3708_v34, 5  ;;  %v5663_v34 = vld [vmem:[%s5831_s26 + $0xb0] sm:$0x1] }
 0x225   : > { %4388 = vmatmul.bf16.gmra.mxu0 %v4256_v44  ;;  %v4451_v39 = vmax.f32 %v4419_v60, 0.0  ;;  %v3714_v37 = vrot.slane %v3712_v33, 4  ;;  %v4257_v58 = vpack.c.b16 %v4238_v10, %v4237_v1  ;;  %v4177_v63 = vrot.slane %v7175_v57, 5 }
 0x226   : > { %v3241_v7 = vpop.f32.mrf.mxu2  ;;  %v2834_v21 = vpack.c.b16 %v2815_v43, %v2814_v26  ;;  %v3705_v30 = vor.u32 %v3704_v11, %v3701_v2  ;;  %v2757_v33 = vrot.slane %v5663_v34, 5  ;;  %v7207_v26 = vld [vmem:[%s5831_s26 + $0xc4] sm:$0xf] }
 0x227   : > { %4483 = vst [vmem:[%s7099_s24 + $0x28] sm:$0xff] %v4451_v39  ;;  %v3312_v36 = vadd.f32 %v3241_v7, %v2997_v4  ;;  %v3923_v16 = vpop.f32.mrf.mxu3  ;;  %v3831_v39 = vpack.c.b16 %v3812_v41, %v3811_v38  ;;  %v5055_v4 = vld [vmem:[%s5831_s26 + $0xa8] sm:$0xe]  ;;  %v2754_v7 = vrot.slane %v5662_v50, 5  ;;  %v5391_v41 = vrot.slane %v5375_v18, 9 }
 0x228   : > { %v2928_v31 = vpop.f32.mrf.mxu1  ;;  %v3706_v43 = vrot.slane %v3705_v30, 4  ;;  %v4179_v10 = vrot.slane %v4177_v63, 4  ;;  %v5310_v18 = vld [vmem:[%s5831_s26 + $0xc8] sm:$0x1] }
 0x229   : > { %v3994_v14 = vadd.f32 %v3923_v16, %v3312_v36  ;;  %v2998_v17 = vadd.f32 %v2928_v31, %v6630_v46  ;;  %v3715_v46 = vor.u32 %v3714_v37, %v7193_v9  ;;  %v3718_v36 = vshll.u32 %v5307_v51, 16 }
 0x22a   : > { %v4351_v59 = vpop.f32.mrf.mxu0  ;;  %v5071_v31 = vrot.slane %v5055_v4, 9  ;;  %v2756_v12 = vrot.slane %v2754_v7, 4  ;;  %v4178_v50 = vsel %vm5975_vm5, %v5391_v41, %v4177_v63 }
 0x22b   : > { %v4420_v44 = vadd.f32 %v4349_v62, %v3994_v14  ;;  %v5308_v14 = vld [vmem:[%s5831_s26 + $0xc0] sm:$0xf]  ;;  %v3716_v38 = vrot.slane %v3715_v46, 4 }
 0x22c   : > { %v3723_v11 = vshrl.u32 %v5308_v14, 16  ;;  %v3726_v37 = vshll.u32 %v5308_v14, 16  ;;  %v5664_v14 = vld [vmem:[%s5831_s26 + $0xb8] sm:$0xf] }
 0x22d   : > { %v4452_v55 = vmax.f32 %v4420_v44, 0.0  ;;  %v3720_v44 = vrot.slane %v3718_v36, 5 }
 0x22e   : > { %v3243_v60 = vpop.f32.mrf.mxu2 }
 0x22f   : > { %4484 = vst [vmem:[%s7099_s24 + $0x30] sm:$0xff] %v4452_v55  ;;  %v3313_v45 = vadd.f32 %v3243_v60, %v2998_v17  ;;  %v3925_v62 = vpop.f32.mrf.mxu3  ;;  %v3732_v55 = vshll.u32 %v7207_v26, 16  ;;  %v3736_v17 = vshrl.u32 %v7207_v26, 16  ;;  %v3721_v4 = vsel %vm5971_vm4, %v3716_v38, %v3720_v44  ;;  %v5056_v44 = vld [vmem:[%s5831_s26 + $0xb4] sm:$0xe] }
 0x230   : > { %v2931_v47 = vpop.f32.mrf.mxu1 }
 0x231   : > { %v3995_v16 = vadd.f32 %v3925_v62, %v3313_v45  ;;  %v2999_v57 = vadd.f32 %v2931_v47, %v6678_v19  ;;  %v2758_v19 = vsel %vm5975_vm5, %v2756_v12, %v2757_v33  ;;  %v7226_v30 = vrot.slane %v3732_v55, 5 }
 0x232   : > { %v4354_v3 = vpop.f32.mrf.mxu0  ;;  %v3738_v46 = vrot.slane %v3736_v17, 4  ;;  %v4239_v12 = vunpack.c.l.b16 %v4178_v50  ;;  %v5376_v17 = vld [vmem:[%s5831_s26 + $0xc0] sm:$0xe] }
 0x233   : > { %v4421_v8 = vadd.f32 %v4351_v59, %v3995_v16  ;;  %2970 = vmatmul.bf16.gmra.mxu1 %v2834_v21  ;;  %3285 = vmatmul.bf16.gmra.mxu2 %v5539_v25  ;;  %v4180_v59 = vrot.slane %v5307_v51, 5  ;;  %v2755_v21 = vsel %vm5975_vm5, %v5071_v31, %v2754_v7  ;;  %v3711_v51 = vsel %vm5971_vm4, %v3706_v43, %v7193_v9 }
 0x234   : > { %3967 = vmatmul.bf16.gmra.mxu3 %v3831_v39  ;;  %v3725_v7 = vrot.slane %v3723_v11, 4  ;;  %v2816_v9 = vunpack.c.l.b16 %v2755_v21  ;;  %v2817_v16 = vunpack.c.l.b16 %v2758_v19  ;;  %v3813_v31 = vunpack.c.l.b16 %v3711_v51  ;;  %v5665_v19 = vld [vmem:[%s5831_s26 + $0xbc] sm:$0x1] }
 0x235   : > { %4393 = vmatmul.bf16.gmra.mxu0 %v4257_v58  ;;  %v4453_v1 = vmax.f32 %v4421_v8, 0.0  ;;  %v4181_v47 = vsel %vm5975_vm5, %v4179_v10, %v4180_v59  ;;  %v3728_v58 = vrot.slane %v3726_v37, 5  ;;  %v3814_v8 = vunpack.c.l.b16 %v3721_v4 }
 0x236   : > { %v3246_v2 = vpop.f32.mrf.mxu2  ;;  %v4240_v63 = vunpack.c.l.b16 %v4181_v47  ;;  %v2761_v43 = vrot.slane %v5664_v14, 5  ;;  %v2835_v59 = vpack.c.b16 %v2817_v16, %v2816_v9  ;;  %v4184_v11 = vrot.slane %v7207_v26, 5  ;;  %v5311_v9 = vld [vmem:[%s5831_s26 + $0xcc] sm:$0xf]  ;;  %v7241_v16 = vld [vmem:[%s5831_s26 + $0xd0] sm:$0xf] }
 0x237   : > { %4485 = vst [vmem:[%s7099_s24 + $0x38] sm:$0xff] %v4453_v1  ;;  %v3314_v60 = vadd.f32 %v3246_v2, %v2999_v57  ;;  %v3928_v45 = vpop.f32.mrf.mxu3  ;;  %v3729_v41 = vor.u32 %v3728_v58, %v3725_v7  ;;  %v3742_v1 = vshll.u32 %v5310_v18, 16  ;;  %v5540_v2 = vld [vmem:[%s5831_s26 + $0xb4] sm:$0xff]  ;;  %v3832_v55 = vpack.c.b16 %v3814_v8, %v3813_v31 }
 0x238   : > { %v2933_v62 = vpop.f32.mrf.mxu1  ;;  %v2763_v21 = vrot.slane %v2761_v43, 4  ;;  %v2764_v51 = vrot.slane %v5665_v19, 5  ;;  %v5392_v26 = vrot.slane %v5376_v17, 9  ;;  %v4186_v7 = vrot.slane %v4184_v11, 4  ;;  %v5313_v19 = vld [vmem:[%s5831_s26 + $0xd4] sm:$0x1] }
 0x239   : > { %v3996_v25 = vadd.f32 %v3928_v45, %v3314_v60  ;;  %v3000_v33 = vadd.f32 %v2933_v62, %v6680_v13  ;;  %v4258_v13 = vpack.c.b16 %v4240_v63, %v4239_v12  ;;  %v5072_v62 = vrot.slane %v5056_v44, 9 }
 0x23a   : > { %v4356_v39 = vpop.f32.mrf.mxu0  ;;  %v3744_v50 = vrot.slane %v3742_v1, 5  ;;  %v4187_v58 = vrot.slane %v5310_v18, 5  ;;  %v3756_v44 = vshll.u32 %v7241_v16, 16 }
 0x23b   : > { %v4422_v36 = vadd.f32 %v4354_v3, %v3996_v25  ;;  %v3739_v3 = vor.u32 %v3738_v46, %v7226_v30  ;;  %v3730_v25 = vrot.slane %v3729_v41, 4  ;;  %v2762_v8 = vsel %vm5975_vm5, %v5072_v62, %v2761_v43 }
 0x23c   : > { %v3747_v43 = vshrl.u32 %v5311_v9, 16  ;;  %v3760_v41 = vshrl.u32 %v7241_v16, 16  ;;  %v2818_v1 = vunpack.c.l.b16 %v2762_v8  ;;  %v3758_v17 = vrot.slane %v3756_v44, 5 }
 0x23d   : > { %v4454_v34 = vmax.f32 %v4422_v36, 0.0  ;;  %v3740_v4 = vrot.slane %v3739_v3, 4  ;;  %v3735_v12 = vsel %vm5971_vm4, %v3730_v25, %v7226_v30  ;;  %v3766_v8 = vshll.u32 %v5313_v19, 16 }
 0x23e   : > { %v3248_v38 = vpop.f32.mrf.mxu2 }
 0x23f   : > { %4486 = vst [vmem:[%s7099_s24 + $0x40] sm:$0xff] %v4454_v34  ;;  %v3315_v57 = vadd.f32 %v3248_v38, %v3000_v33  ;;  %v3930_v10 = vpop.f32.mrf.mxu3  ;;  %v4185_v34 = vsel %vm5975_vm5, %v5392_v26, %v4184_v11  ;;  %v4188_v33 = vsel %vm5975_vm5, %v4186_v7, %v4187_v58  ;;  %v3750_v38 = vshll.u32 %v5311_v9, 16  ;;  %v5666_v26 = vld [vmem:[%s5831_s26 + $0xc4] sm:$0xf] }
 0x240   : > { %v2936_v37 = vpop.f32.mrf.mxu1  ;;  %v4241_v11 = vunpack.c.l.b16 %v4185_v34  ;;  %v2768_v7 = vrot.slane %v5666_v26, 5  ;;  %v3768_v44 = vrot.slane %v3766_v8, 5 }
 0x241   : > { %v3997_v60 = vadd.f32 %v3930_v10, %v3315_v57  ;;  %v3001_v36 = vadd.f32 %v2936_v37, %v6707_v54  ;;  %v3745_v54 = vsel %vm5971_vm4, %v3740_v4, %v3744_v50  ;;  %v3815_v10 = vunpack.c.l.b16 %v3735_v12  ;;  %v5541_v50 = vld [vmem:[%s5831_s26 + $0xc0] sm:$0xff]  ;;  %v5377_v12 = vld [vmem:[%s5831_s26 + $0xcc] sm:$0xe] }
 0x242   : > { %v4359_v45 = vpop.f32.mrf.mxu0  ;;  %v4242_v37 = vunpack.c.l.b16 %v4188_v33  ;;  %v2770_v34 = vrot.slane %v2768_v7, 4  ;;  %v5667_v33 = vld [vmem:[%s5831_s26 + $0xc8] sm:$0x1] }
 0x243   : > { %v4423_v47 = vadd.f32 %v4356_v39, %v3997_v60  ;;  %2975 = vmatmul.bf16.gmra.mxu1 %v2835_v59  ;;  %3290 = vmatmul.bf16.gmra.mxu2 %v5540_v2  ;;  %v2765_v39 = vsel %vm5975_vm5, %v2763_v21, %v2764_v51  ;;  %v3816_v2 = vunpack.c.l.b16 %v3745_v54  ;;  %v3762_v60 = vrot.slane %v3760_v41, 4 }
 0x244   : > { %3972 = vmatmul.bf16.gmra.mxu3 %v3832_v55  ;;  %v2819_v57 = vunpack.c.l.b16 %v2765_v39  ;;  %v3749_v55 = vrot.slane %v3747_v43, 4  ;;  %v5393_v41 = vrot.slane %v5377_v12, 9 }
 0x245   : > { %4398 = vmatmul.bf16.gmra.mxu0 %v4258_v13  ;;  %v4455_v46 = vmax.f32 %v4423_v47, 0.0  ;;  %v3752_v13 = vrot.slane %v3750_v38, 5  ;;  %v3833_v47 = vpack.c.b16 %v3816_v2, %v3815_v10  ;;  %v4194_v10 = vrot.slane %v5313_v19, 5 }
 0x246   : > { %v3251_v31 = vpop.f32.mrf.mxu2 }
 0x247   : > { %4487 = vst [vmem:[%s7099_s24 + $0x48] sm:$0xff] %v4455_v46  ;;  %v3316_v18 = vadd.f32 %v3251_v31, %v3001_v36  ;;  %v3933_v63 = vpop.f32.mrf.mxu3  ;;  %v4259_v46 = vpack.c.b16 %v4242_v37, %v4241_v11  ;;  %v5057_v36 = vld [vmem:[%s5831_s26 + $0xc0] sm:$0xe]  ;;  %v3753_v9 = vor.u32 %v3752_v13, %v3749_v55  ;;  %v3763_v31 = vor.u32 %v3762_v60, %v3758_v17 }
 0x248   : > { %v2938_v14 = vpop.f32.mrf.mxu1  ;;  %v5073_v54 = vrot.slane %v5057_v36, 9  ;;  %v5542_v36 = vld [vmem:[%s5831_s26 + $0xcc] sm:$0xff]  ;;  %s5567_s26 = sshll.u32 %s5775_s16, 8  ;;  %s4511_s16 = scalar_lea.sflag [#allocation3], %s161_s19 }
 0x249   : > { %v3998_v30 = vadd.f32 %v3933_v63, %v3316_v18  ;;  %v3002_v21 = vadd.f32 %v2938_v14, %v6730_v42  ;;  %v4191_v18 = vrot.slane %v7241_v16, 5  ;;  %v2771_v14 = vrot.slane %v5667_v33, 5  ;;  %s4522_s28 = scalar_lea.hbm %s7359_s3, %s5567_s26 }
 0x24a   : > { %v4361_v3 = vpop.f32.mrf.mxu0  ;;  %v3754_v43 = vrot.slane %v3753_v9, 4  ;;  %v3764_v38 = vrot.slane %v3763_v31, 4  ;;  %v2769_v11 = vsel %vm5975_vm5, %v5073_v54, %v2768_v7  ;;  %s4525_s30 = sshll.u32 %s4522_s28, 4  ;;  %s4526_s30 = int_to_ptr.hbm [resolvable:$true] %s4525_s30 }
 0x24b   : > { %v4424_v59 = vadd.f32 %v4359_v45, %v3998_v30  ;;  %v2836_v45 = vpack.c.b16 %v2819_v57, %v2818_v1  ;;  %v4193_v57 = vrot.slane %v4191_v18, 4  ;;  %v2772_v37 = vsel %vm5975_vm5, %v2770_v34, %v2771_v14  ;;  %s5682_s4 = sshra.s32 %s4526_s30, 4  ;;  %s5683_s4 = int_to_ptr.hbm [resolvable:$true] %s5682_s4 }
 0x24c   : > { %v3759_v55 = vsel %vm5971_vm4, %v3754_v43, %v3758_v17  ;;  %s5684_s5 = scalar_lea.hbm %s5683_s4, 256  ;;  %p5689_p0 = scmp.lt.s32.totalorder %s5683_s4, %s7359_s3 }
 0x24d   : > { %v4456_v62 = vmax.f32 %v4424_v59, 0.0  ;;  %p5685_p11 = scmp.ne.s32.totalorder %s5683_s4, %s5684_s5  ;;  %p5690_p1 = scmp.lt.s32.totalorder %s5688_s8, %s5684_s5 }
 0x24e   : > { %v3253_v51 = vpop.f32.mrf.mxu2 }
 0x24f   : > { %4488 = vst [vmem:[%s7099_s24 + $0x50] sm:$0xff] %v4456_v62  ;;  %v3317_v25 = vadd.f32 %v3253_v51, %v3002_v21  ;;  %v3935_v4 = vpop.f32.mrf.mxu3  ;;  %v4192_v62 = vsel %vm5975_vm5, %v5393_v41, %v4191_v18  ;;  %v4195_v21 = vsel %vm5975_vm5, %v4193_v57, %v4194_v10  ;;  %v2820_v51 = vunpack.c.l.b16 %v2769_v11  ;;  %p5686_p12 = pnand %p5685_p11, %p5792_p5  ;;  %p5691_p2 = por %p5690_p1, %p5689_p0 }
 0x250   : > { %v2941_v58 = vpop.f32.mrf.mxu1  ;;  %v4244_v17 = vunpack.c.l.b16 %v4195_v21 }
 0x251   : > { %v3999_v39 = vadd.f32 %v3935_v4, %v3317_v25  ;;  %v3003_v1 = vadd.f32 %v2941_v58, %v6751_v20  ;;  %v3769_v20 = vsel %vm5971_vm4, %v3764_v38, %v3768_v44  ;;  %v2821_v25 = vunpack.c.l.b16 %v2772_v37  ;;  %p5687_p13 = pneg %p5686_p12 }
 0x252   : > { %v4364_v42 = vpop.f32.mrf.mxu0  ;;  %v3817_v4 = vunpack.c.l.b16 %v3759_v55 }
 0x253   : > { %v4425_v63 = vadd.f32 %v4361_v3, %v3999_v39  ;;  %2980 = vmatmul.bf16.gmra.mxu1 %v2836_v45  ;;  %3295 = vmatmul.bf16.gmra.mxu2 %v5541_v50  ;;  %v3818_v45 = vunpack.c.l.b16 %v3769_v20  ;;  %v4243_v50 = vunpack.c.l.b16 %v4192_v62  ;;  %p5692_p3 = pnand %p5691_p2, %p5687_p13 }
 0x254   : > { %3977 = vmatmul.bf16.gmra.mxu3 %v3833_v47 }
 0x255   : > { %4403 = vmatmul.bf16.gmra.mxu0 %v4259_v46  ;;  %v4457_v30 = vmax.f32 %v4425_v63, 0.0  ;;  %v2837_v46 = vpack.c.b16 %v2821_v25, %v2820_v51  ;;  %v3834_v9 = vpack.c.b16 %v3818_v45, %v3817_v4  ;;  %v4260_v31 = vpack.c.b16 %v4244_v17, %v4243_v50 }
 0x256   : > { %v3256_v16 = vpop.f32.mrf.mxu2 }
 0x257   : > { %4489 = vst [vmem:[%s7099_s24 + $0x58] sm:$0xff] %v4457_v30  ;;  %v3318_v3 = vadd.f32 %v3256_v16, %v3003_v1  ;;  %v3938_v59 = vpop.f32.mrf.mxu3 }
 0x258   : > { %v2943_v2 = vpop.f32.mrf.mxu1 }
 0x259   : > { %v4000_v13 = vadd.f32 %v3938_v59, %v3318_v3  ;;  %v3004_v26 = vadd.f32 %v2943_v2, %v6757_v29 }
 0x25a   : > { %v4366_v60 = vpop.f32.mrf.mxu0 }
 0x25b   : > { %v4426_v19 = vadd.f32 %v4364_v42, %v4000_v13 }
 0x25d   : > { %v4458_v47 = vmax.f32 %v4426_v19, 0.0 }
 0x25e   : > { %v3258_v7 = vpop.f32.mrf.mxu2 }
 0x25f   : > { %4490 = vst [vmem:[%s7099_s24 + $0x60] sm:$0xff] %v4458_v47  ;;  %v3319_v23 = vadd.f32 %v3258_v7, %v3004_v26  ;;  %v3940_v58 = vpop.f32.mrf.mxu3 }
 0x260   : > { %v2946_v27 = vpop.f32.mrf.mxu1 }
 0x261   : > { %v4001_v8 = vadd.f32 %v3940_v58, %v3319_v23  ;;  %v3005_v29 = vadd.f32 %v2946_v27, %v6774_v49 }
 0x262   : > { %v4369_v39 = vpop.f32.mrf.mxu0 }
 0x263   : > { %v4427_v42 = vadd.f32 %v4366_v60, %v4001_v8  ;;  %2985 = vmatmul.bf16.gmra.mxu1 %v2837_v46  ;;  %3300 = vmatmul.bf16.gmra.mxu2 %v5542_v36 }
 0x264   : > { %3982 = vmatmul.bf16.gmra.mxu3 %v3834_v9 }
 0x265   : > { %4408 = vmatmul.bf16.gmra.mxu0 %v4260_v31  ;;  %v4459_v12 = vmax.f32 %v4427_v42, 0.0 }
 0x266   : > { %v3261_v18 = vpop.f32.mrf.mxu2 }
 0x267   : > { %4491 = vst [vmem:[%s7099_s24 + $0x68] sm:$0xff] %v4459_v12  ;;  %v3320_v63 = vadd.f32 %v3261_v18, %v3005_v29  ;;  %v3943_v54 = vpop.f32.mrf.mxu3 }
 0x268   : > { %v2948_v34 = vpop.f32.mrf.mxu1 }
 0x269   : > { %v4002_v33 = vadd.f32 %v3943_v54, %v3320_v63  ;;  %v3006_v44 = vadd.f32 %v2948_v34, %v6791_v15 }
 0x26a   : > { %v4371_v14 = vpop.f32.mrf.mxu0 }
 0x26b   : > { %v4428_v43 = vadd.f32 %v4369_v39, %v4002_v33 }
 0x26d   : > { %v4460_v38 = vmax.f32 %v4428_v43, 0.0 }
 0x26e   : > { %v3263_v41 = vpop.f32.mrf.mxu2 }
 0x26f   : > { %4492 = vst [vmem:[%s7099_s24 + $0x70] sm:$0xff] %v4460_v38  ;;  %v3321_v30 = vadd.f32 %v3263_v41, %v3006_v44  ;;  %v3945_v1 = vpop.f32.mrf.mxu3 }
 0x270   : > { %v2951_v57 = vpop.f32.mrf.mxu1 }
 0x271   : > { %v4003_v10 = vadd.f32 %v3945_v1, %v3321_v30  ;;  %v3007_v59 = vadd.f32 %v2951_v57, %v6813_v6 }
 0x272   : > { %v4374_v49 = vpop.f32.mrf.mxu0 }
 0x273   : > { %v4429_v16 = vadd.f32 %v4371_v14, %v4003_v10 }
 0x275   : > { %v4461_v3 = vmax.f32 %v4429_v16, 0.0 }
 0x276   : > { %v3266_v2 = vpop.f32.mrf.mxu2 }
 0x277   : > { %4493 = vst [vmem:[%s7099_s24 + $0x78] sm:$0xff] %v4461_v3  ;;  %v3322_v11 = vadd.f32 %v3266_v2, %v3007_v59  ;;  %v3948_v37 = vpop.f32.mrf.mxu3 }
 0x278   : > { %v2953_v55 = vpop.f32.mrf.mxu1 }
 0x279   : > { %v4004_v13 = vadd.f32 %v3948_v37, %v3322_v11  ;;  %v3008_v62 = vadd.f32 %v2953_v55, %v6823_v53 }
 0x27a   : > { %v4376_v15 = vpop.f32.mrf.mxu0 }
 0x27b   : > { %v4430_v60 = vadd.f32 %v4374_v49, %v4004_v13 }
 0x27d   : > { %v4462_v20 = vmax.f32 %v4430_v60, 0.0 }
 0x27e   : > { %v3268_v21 = vpop.f32.mrf.mxu2 }
 0x27f   : > { %4494 = vst [vmem:[%s7099_s24 + $0x80] sm:$0xff] %v4462_v20  ;;  %v3323_v19 = vadd.f32 %v3268_v21, %v3008_v62  ;;  %v3950_v51 = vpop.f32.mrf.mxu3 }
 0x280   : > { %v2956_v25 = vpop.f32.mrf.mxu1 }
 0x281   : > { %v4005_v4 = vadd.f32 %v3950_v51, %v3323_v19  ;;  %v3009_v17 = vadd.f32 %v2956_v25, %v6845_v52 }
 0x282   : > { %v4379_v6 = vpop.f32.mrf.mxu0 }
 0x283   : > { %v4431_v45 = vadd.f32 %v4376_v15, %v4005_v4 }
 0x285   : > { %v4463_v50 = vmax.f32 %v4431_v45, 0.0 }
 0x286   : > { %v3271_v47 = vpop.f32.mrf.mxu2 }
 0x287   : > { %4495 = vst [vmem:[%s7099_s24 + $0x88] sm:$0xff] %v4463_v50  ;;  %v3324_v26 = vadd.f32 %v3271_v47, %v3009_v17  ;;  %v3953_v7 = vpop.f32.mrf.mxu3 }
 0x288   : > { %v2958_v23 = vpop.f32.mrf.mxu1 }
 0x289   : > { %v4006_v58 = vadd.f32 %v3953_v7, %v3324_v26  ;;  %v3010_v27 = vadd.f32 %v2958_v23, %v6861_v35 }
 0x28a   : > { %v4381_v53 = vpop.f32.mrf.mxu0 }
 0x28b   : > { %v4432_v46 = vadd.f32 %v4379_v6, %v4006_v58 }
 0x28d   : > { %v4464_v36 = vmax.f32 %v4432_v46, 0.0 }
 0x28e   : > { %v3273_v9 = vpop.f32.mrf.mxu2 }
 0x28f   : > { %4496 = vst [vmem:[%s7099_s24 + $0x90] sm:$0xff] %v4464_v36  ;;  %v3325_v31 = vadd.f32 %v3273_v9, %v3010_v27  ;;  %v3955_v8 = vpop.f32.mrf.mxu3 }
 0x290   : > { %v2961_v39 = vpop.f32.mrf.mxu1 }
 0x291   : > { %v4007_v42 = vadd.f32 %v3955_v8, %v3325_v31  ;;  %v3011_v18 = vadd.f32 %v2961_v39, %v6883_v28 }
 0x292   : > { %v4384_v52 = vpop.f32.mrf.mxu0 }
 0x293   : > { %v4433_v12 = vadd.f32 %v4381_v53, %v4007_v42 }
 0x295   : > { %v4465_v29 = vmax.f32 %v4433_v12, 0.0 }
 0x296   : > { %v3276_v63 = vpop.f32.mrf.mxu2 }
 0x297   : > { %4497 = vst [vmem:[%s7099_s24 + $0x98] sm:$0xff] %v4465_v29  ;;  %v3326_v54 = vadd.f32 %v3276_v63, %v3011_v18  ;;  %v3958_v34 = vpop.f32.mrf.mxu3 }
 0x298   : > { %v2963_v33 = vpop.f32.mrf.mxu1 }
 0x299   : > { %v4008_v14 = vadd.f32 %v3958_v34, %v3326_v54  ;;  %v3012_v44 = vadd.f32 %v2963_v33, %v6893_v0 }
 0x29a   : > { %v4386_v35 = vpop.f32.mrf.mxu0 }
 0x29b   : > { %v4434_v43 = vadd.f32 %v4384_v52, %v4008_v14 }
 0x29d   : > { %v4466_v38 = vmax.f32 %v4434_v43, 0.0 }
 0x29e   : > { %v3278_v41 = vpop.f32.mrf.mxu2 }
 0x29f   : > { %4498 = vst [vmem:[%s7099_s24 + $0xa0] sm:$0xff] %v4466_v38  ;;  %v3327_v30 = vadd.f32 %v3278_v41, %v3012_v44  ;;  %v3960_v1 = vpop.f32.mrf.mxu3 }
 0x2a0   : > { %v2966_v57 = vpop.f32.mrf.mxu1 }
 0x2a1   : > { %v4009_v10 = vadd.f32 %v3960_v1, %v3327_v30  ;;  %v3013_v3 = vadd.f32 %v2966_v57, %v6915_v32 }
 0x2a2   : > { %v4389_v28 = vpop.f32.mrf.mxu0 }
 0x2a3   : > { %v4435_v49 = vadd.f32 %v4386_v35, %v4009_v10 }
 0x2a5   : > { %v4467_v16 = vmax.f32 %v4435_v49, 0.0 }
 0x2a6   : > { %v3281_v59 = vpop.f32.mrf.mxu2 }
 0x2a7   : > { %4499 = vst [vmem:[%s7099_s24 + $0xa8] sm:$0xff] %v4467_v16  ;;  %v3328_v2 = vadd.f32 %v3281_v59, %v3013_v3  ;;  %v3963_v11 = vpop.f32.mrf.mxu3 }
 0x2a8   : > { %v2968_v37 = vpop.f32.mrf.mxu1 }
 0x2a9   : > { %v4010_v55 = vadd.f32 %v3963_v11, %v3328_v2  ;;  %v3014_v60 = vadd.f32 %v2968_v37, %v6931_v40 }
 0x2aa   : > { %v4391_v0 = vpop.f32.mrf.mxu0 }
 0x2ab   : > { %v4436_v13 = vadd.f32 %v4389_v28, %v4010_v55 }
 0x2ad   : > { %v4468_v15 = vmax.f32 %v4436_v13, 0.0 }
 0x2ae   : > { %v3283_v20 = vpop.f32.mrf.mxu2 }
 0x2af   : > { %4500 = vst [vmem:[%s7099_s24 + $0xb0] sm:$0xff] %v4468_v15  ;;  %v3329_v62 = vadd.f32 %v3283_v20, %v3014_v60  ;;  %v3965_v21 = vpop.f32.mrf.mxu3  ;;  %v7384_v15 = vld [vmem:[#allocation5_spill] sm:$0xff] }
 0x2b0   : > { %v2971_v19 = vpop.f32.mrf.mxu1 }
 0x2b1   : > { %v4011_v51 = vadd.f32 %v3965_v21, %v3329_v62  ;;  %v3015_v6 = vadd.f32 %v2971_v19, %v6953_v61 }
 0x2b2   : > { %v4394_v32 = vpop.f32.mrf.mxu0 }
 0x2b3   : > { %v4437_v25 = vadd.f32 %v4391_v0, %v4011_v51 }
 0x2b5   : > { %v4469_v4 = vmax.f32 %v4437_v25, 0.0 }
 0x2b6   : > { %v3286_v45 = vpop.f32.mrf.mxu2 }
 0x2b7   : > { %4501 = vst [vmem:[%s7099_s24 + $0xb8] sm:$0xff] %v4469_v4  ;;  %v3330_v50 = vadd.f32 %v3286_v45, %v3015_v6  ;;  %v3968_v17 = vpop.f32.mrf.mxu3  ;;  %v7385_v4 = vld [vmem:[#allocation6_spill] sm:$0xff] }
 0x2b8   : > { %v2973_v47 = vpop.f32.mrf.mxu1 }
 0x2b9   : > { %v4012_v26 = vadd.f32 %v3968_v17, %v3330_v50  ;;  %v3016_v58 = vadd.f32 %v2973_v47, %v6963_v24 }
 0x2ba   : > { %v4396_v40 = vpop.f32.mrf.mxu0 }
 0x2bb   : > { %v4438_v7 = vadd.f32 %v4394_v32, %v4012_v26 }
 0x2bd   : > { %v4470_v23 = vmax.f32 %v4438_v7, 0.0 }
 0x2be   : > { %v3288_v53 = vpop.f32.mrf.mxu2 }
 0x2bf   : > { %4502 = vst [vmem:[%s7099_s24 + $0xc0] sm:$0xff] %v4470_v23  ;;  %v3331_v46 = vadd.f32 %v3288_v53, %v3016_v58  ;;  %v3970_v36 = vpop.f32.mrf.mxu3 }
 0x2c0   : > { %v2976_v27 = vpop.f32.mrf.mxu1 }
 0x2c1   : > { %v4013_v9 = vadd.f32 %v3970_v36, %v3331_v46  ;;  %v3017_v39 = vadd.f32 %v2976_v27, %v6985_v22 }
 0x2c2   : > { %v4399_v61 = vpop.f32.mrf.mxu0 }
 0x2c3   : > { %v4439_v31 = vadd.f32 %v4396_v40, %v4013_v9 }
 0x2c5   : > { %v4471_v8 = vmax.f32 %v4439_v31, 0.0 }
 0x2c6   : > { %v3291_v42 = vpop.f32.mrf.mxu2 }
 0x2c7   : > { %4503 = vst [vmem:[%s7099_s24 + $0xc8] sm:$0xff] %v4471_v8  ;;  %v3332_v52 = vadd.f32 %v3291_v42, %v3017_v39  ;;  %v3973_v12 = vpop.f32.mrf.mxu3 }
 0x2c8   : > { %v2978_v29 = vpop.f32.mrf.mxu1 }
 0x2c9   : > { %v4014_v18 = vadd.f32 %v3973_v12, %v3332_v52  ;;  %v3018_v34 = vadd.f32 %v2978_v29, %v7001_v5 }
 0x2ca   : > { %v4401_v24 = vpop.f32.mrf.mxu0 }
 0x2cb   : > { %v4440_v63 = vadd.f32 %v4399_v61, %v4014_v18 }
 0x2cd   : > { %v4472_v54 = vmax.f32 %v4440_v63, 0.0 }
 0x2ce   : > { %v3293_v33 = vpop.f32.mrf.mxu2 }
 0x2cf   : > { %4504 = vst [vmem:[%s7099_s24 + $0xd0] sm:$0xff] %v4472_v54  ;;  %v3333_v14 = vadd.f32 %v3293_v33, %v3018_v34  ;;  %v3975_v35 = vpop.f32.mrf.mxu3 }
 0x2d0   : > { %v2981_v43 = vpop.f32.mrf.mxu1 }
 0x2d1   : > { %v4015_v38 = vadd.f32 %v3975_v35, %v3333_v14  ;;  %v3019_v30 = vadd.f32 %v2981_v43, %v7023_v48 }
 0x2d2   : > { %v4404_v44 = vpop.f32.mrf.mxu0 }
 0x2d3   : > { %v4441_v22 = vadd.f32 %v4401_v24, %v4015_v38 }
 0x2d5   : > { %v4473_v41 = vmax.f32 %v4441_v22, 0.0 }
 0x2d6   : > { %v3296_v1 = vpop.f32.mrf.mxu2 }
 0x2d7   : > { %4505 = vst [vmem:[%s7099_s24 + $0xd8] sm:$0xff] %v4473_v41  ;;  %v3334_v57 = vadd.f32 %v3296_v1, %v3019_v30  ;;  %v3978_v10 = vpop.f32.mrf.mxu3 }
 0x2d8   : > { %v2983_v28 = vpop.f32.mrf.mxu1 }
 0x2d9   : > { %v4016_v49 = vadd.f32 %v3978_v10, %v3334_v57  ;;  %v3020_v3 = vadd.f32 %v2983_v28, %v7033_v56 }
 0x2da   : > { %v4406_v59 = vpop.f32.mrf.mxu0 }
 0x2db   : > { %v4442_v5 = vadd.f32 %v4404_v44, %v4016_v49 }
 0x2dd   : > { %v4474_v16 = vmax.f32 %v4442_v5, 0.0 }
 0x2de   : > { %v3298_v2 = vpop.f32.mrf.mxu2 }
 0x2df   : > { %4506 = vst [vmem:[%s7099_s24 + $0xe0] sm:$0xff] %v4474_v16  ;;  %v3335_v11 = vadd.f32 %v3298_v2, %v3020_v3  ;;  %v3980_v37 = vpop.f32.mrf.mxu3 }
 0x2e0   : > { %v2986_v55 = vpop.f32.mrf.mxu1 }
 0x2e1   : > { %v4017_v0 = vadd.f32 %v3980_v37, %v3335_v11  ;;  %v3021_v60 = vadd.f32 %v2986_v55, %v7384_v15 }
 0x2e2   : > { %v4409_v19 = vpop.f32.mrf.mxu0 }
 0x2e3   : > { %v4443_v48 = vadd.f32 %v4406_v59, %v4017_v0 }
 0x2e5   : > { %v4475_v13 = vmax.f32 %v4443_v48, 0.0 }
 0x2e6   : > { %v3301_v20 = vpop.f32.mrf.mxu2 }
 0x2e7   : > { %4507 = vst [vmem:[%s7099_s24 + $0xe8] sm:$0xff] %v4475_v13  ;;  %v3336_v62 = vadd.f32 %v3301_v20, %v3021_v60  ;;  %v3983_v21 = vpop.f32.mrf.mxu3 }
 0x2e8   : > { %v2988_v51 = vpop.f32.mrf.mxu1 }
 0x2e9   : > { %v4018_v56 = vadd.f32 %v3983_v21, %v3336_v62  ;;  %v3022_v6 = vadd.f32 %v2988_v51, %v7385_v4 }
 0x2ea   : > { %v4411_v26 = vpop.f32.mrf.mxu0 }
 0x2eb   : > { %v4444_v32 = vadd.f32 %v4409_v19, %v4018_v56 }
 0x2ed   : > { %v4476_v25 = vmax.f32 %v4444_v32, 0.0 }
 0x2ee   : > { %v3303_v45 = vpop.f32.mrf.mxu2 }
 0x2ef   : > { %4508 = vst [vmem:[%s7099_s24 + $0xf0] sm:$0xff] %v4476_v25  ;;  %v3337_v50 = vadd.f32 %v3303_v45, %v3022_v6  ;;  %v3985_v17 = vpop.f32.mrf.mxu3 }
 0x2f1   : > { %v4019_v47 = vadd.f32 %v3985_v17, %v3337_v50 }
 0x2f3   : > { %v4445_v40 = vadd.f32 %v4411_v26, %v4019_v47 }
 0x2f5   : > { %v4477_v7 = vmax.f32 %v4445_v40, 0.0 }
 0x2f7   : > { %4509 = vst [vmem:[%s7099_s24 + $0xf8] sm:$0xff] %v4477_v7 }
 0x2f8   : > { %5695 = shalt.err (!%p5692_p3)
}
 0x2f9   : > { %s5732_s11 = smov 128   ;;  %s5733_s17 = smov 8  }
 0x2fa   : > { %5593 = dma.vmem_to_hbm [thread:$0]  (%p5792_p5), %s4524_s29, 4096, %s4526_s30, %s4511_s16, %s5732_s11, %s5732_s11, %s5733_s17  }
 0x2fb PF: > { %p5599_p4 = scmp.ge.s32.totalorder %s5730_s15, 2  ;;  %s4540_s19 = sand.u32 1, %s5718_s12  }
 0x2fc   : > { %s4541_s20 = scalar_lea.sflag [#allocation3], %s4540_s19 }
 0x2fd   : > { %p5596_p7 = pnand %p5599_p4, %p5796_p6 }
 0x2ff   : > { %p5597_p8 = pneg %p5596_p7 }
 0x301   : > { %5713 = dma.done.wait (%p5597_p8), %s4541_s20, 4096  }
 0x302   : > { %5715 = vsyncadd (%p5597_p8), %s4541_s20, 4294963200  ;;  %p13_p9 = scmp.ge.s32.totalorder %s5779_s18, 4   ;;  %s7386_s12 = smov %s5722_s13 }
 0x303   : > { %s7387_s13 = smov %s5726_s14  ;;  %s7388_s14 = smov %s5790_s21 }
 0x304   : > { %s7389_s15 = smov %s5779_s18  ;;  %15 = sbr.rel (!%p13_p9) target bundleno = 3 (0x3), region = 77 }
 0x309   :  { %4547 = vsyncpa [#allocation3], 1 }
 0x30a   :  { %4549 = vsyncpa [#allocation3 + $0x1], 1 }

// kernel: up_forward.2
= control target key start
LH: loop header
LB: loop body
LE: loop exit
PB: predicated region body
PF: predicated region fallthrough
CT: control target
= control target key end

     0   :  { %s8314_s12 = smov 0   ;;  %s10193_s0 = inlined_call_operand.vmem [shape: bf16[2,18,18,256], index: 0, kind: input, shape index: {}]   ;;  %s10194_s1 = inlined_call_operand.vmem [shape: bf16[3,3,256,128], index: 1, kind: input, shape index: {}]   ;;  %s10195_s2 = inlined_call_operand.vmem [shape: f32[1,128], index: 2, kind: input, shape index: {}]   ;;  %s10196_s3 = inlined_call_operand.vmem [shape: f32[2,16,16,128], index: 3, kind: output, shape index: {}]  }
   0x1 LB: > { %s6520_s13 = sadd.s32 4294967295, %s8292_s12   ;;  %p6524_p0 = scmp.ge.s32.totalorder %s8292_s12, 1  ;;  %s8292_s12 = sphi %s8314_s12, %s13_s12  }
   0x2   : > { %p137_p1 = scmp.lt.s32.totalorder %s8292_s12, 3 }
   0x4   : > { %p138_p2 = pnand %p6524_p0, %p137_p1 }
   0x6   : > { %141 = sbr.rel (%p138_p2) target bundleno = 1331 (0x533), region = 32 }
   0xb   : > { %v8026_v0 = vld [vmem:[%s10194_s1 + $0x38] sm:$0xff]  ;;  %v8025_v2 = vld [vmem:[%s10194_s1 + $0x30] sm:$0xff]  ;;  %v8024_v4 = vld [vmem:[%s10194_s1 + $0x28] sm:$0xff]  ;;  %p161_p3 = scmp.lt.s32.totalorder %s6520_s13, 1  ;;  %vm753_vm0 = vsmask.f32 3328 }
   0xc   : > { %v8034_v1 = vld [vmem:[%s10194_s1 + $0x78] sm:$0xff]  ;;  %495 = vmatpush.bf16.msra.mxu0 %v8026_v0  ;;  %8227 = vmatpush.bf16.msra.mxu2 %v8026_v0  ;;  %v8033_v3 = vld [vmem:[%s10194_s1 + $0x70] sm:$0xff]  ;;  %v8032_v5 = vld [vmem:[%s10194_s1 + $0x68] sm:$0xff]  ;;  %vm754_vm1 = vsmask.f32 7440  ;;  %vm1671_vm2 = vcmask 1042432  }
   0xd   : > { %584 = vmatpush.bf16.msra.mxu1 %v8034_v1  ;;  %8235 = vmatpush.bf16.msra.mxu3 %v8034_v1  ;;  %v8023_v6 = vld [vmem:[%s10194_s1 + $0x20] sm:$0xff]  ;;  %v8022_v8 = vld [vmem:[%s10194_s1 + $0x18] sm:$0xff]  ;;  %s10222_s13 = smov (!%p161_p3, %s6520_s13), 1  ;;  %v8021_v10 = vld [vmem:[%s10194_s1 + $0x10] sm:$0xff]  ;;  %vm1672_vm3 = vcmask 1046532  }
   0xe   : > { %v8031_v7 = vld [vmem:[%s10194_s1 + $0x60] sm:$0xff]  ;;  %v8030_v9 = vld [vmem:[%s10194_s1 + $0x58] sm:$0xff]  ;;  %s8243_s9 = smul.u32 432, %s10222_s13  ;;  %v8029_v11 = vld [vmem:[%s10194_s1 + $0x50] sm:$0xff]  ;;  %s7986_s21 = sshll.u32 %s10222_s13, 8 }
   0xf   : > { %v8020_v12 = vld [vmem:[%s10194_s1 + $0x8] sm:$0xff]  ;;  %v8019_v14 = vld [vmem:[%s10194_s1] sm:$0xff]  ;;  %v8042_v24 = vld [vmem:[%s10194_s1 + $0xb8] sm:$0xff]  ;;  %s10030_s24 = scalar_lea.vmem %s10196_s3, %s7986_s21 }
  0x10   : > { %496 = vmatpush.bf16.msra.mxu0 %v8025_v2  ;;  %8228 = vmatpush.bf16.msra.mxu2 %v8025_v2  ;;  %s8367_s18 = scalar_lea.vmem %s10193_s0, %s8243_s9  ;;  %v8028_v13 = vld [vmem:[%s10194_s1 + $0x48] sm:$0xff]  ;;  %v8027_v15 = vld [vmem:[%s10194_s1 + $0x40] sm:$0xff]  ;;  %v8050_v25 = vld [vmem:[%s10194_s1 + $0xf8] sm:$0xff] }
  0x11   : > { %585 = vmatpush.bf16.msra.mxu1 %v8033_v3  ;;  %8236 = vmatpush.bf16.msra.mxu3 %v8033_v3  ;;  %v6530_v16 = vld [vmem:[%s8367_s18] sm:$0xf]  ;;  %v7988_v17 = vld [vmem:[%s8367_s18 + $0x4] sm:$0xf0]  ;;  %v7987_v20 = vld [vmem:[%s8367_s18 + $0x4] sm:$0xf] }
  0x12   : > { %v6594_v18 = vld [vmem:[%s8367_s18 + $0xc0] sm:$0xf]  ;;  %v8004_v19 = vld [vmem:[%s8367_s18 + $0xc4] sm:$0xf0]  ;;  %v6532_v21 = vld [vmem:[%s8367_s18 + $0x8] sm:$0xf0]  ;;  %v6531_v26 = vor.u32 %v7988_v17, %v6530_v16 }
  0x13   : > { %v8003_v22 = vld [vmem:[%s8367_s18 + $0xc4] sm:$0xf]  ;;  %v6596_v23 = vld [vmem:[%s8367_s18 + $0xc8] sm:$0xf0]  ;;  %v6595_v27 = vor.u32 %v8004_v19, %v6594_v18  ;;  %v6535_v28 = vor.u32 %v7987_v20, %v6532_v21  ;;  %v8058_v30 = vld [vmem:[%s10194_s1 + $0x138] sm:$0xff] }
  0x14   : > { %497 = vmatpush.bf16.msra.mxu0 %v8024_v4  ;;  %8229 = vmatpush.bf16.msra.mxu2 %v8024_v4  ;;  %v6599_v29 = vor.u32 %v8003_v22, %v6596_v23  ;;  %v8066_v31 = vld [vmem:[%s10194_s1 + $0x178] sm:$0xff]  ;;  %v8041_v32 = vld [vmem:[%s10194_s1 + $0xb0] sm:$0xff]  ;;  %v8040_v36 = vld [vmem:[%s10194_s1 + $0xa8] sm:$0xff] }
  0x15   : > { %586 = vmatpush.bf16.msra.mxu1 %v8032_v5  ;;  %8237 = vmatpush.bf16.msra.mxu3 %v8032_v5  ;;  %v8049_v33 = vld [vmem:[%s10194_s1 + $0xf0] sm:$0xff]  ;;  %v8048_v37 = vld [vmem:[%s10194_s1 + $0xe8] sm:$0xff]  ;;  %v6538_v40 = vld [vmem:[%s8367_s18 + $0x18] sm:$0xf] }
  0x16   : > { %v8057_v34 = vld [vmem:[%s10194_s1 + $0x130] sm:$0xff]  ;;  %v8056_v38 = vld [vmem:[%s10194_s1 + $0x128] sm:$0xff]  ;;  %v7990_v41 = vld [vmem:[%s8367_s18 + $0x1c] sm:$0xf0] }
  0x17   : > { %v8065_v35 = vld [vmem:[%s10194_s1 + $0x170] sm:$0xff]  ;;  %v8064_v39 = vld [vmem:[%s10194_s1 + $0x168] sm:$0xff]  ;;  %v6602_v42 = vld [vmem:[%s8367_s18 + $0xd8] sm:$0xf]  ;;  %v6539_v48 = vor.u32 %v7990_v41, %v6538_v40 }
  0x18   : > { %498 = vmatpush.bf16.msra.mxu0 %v8023_v6  ;;  %8230 = vmatpush.bf16.msra.mxu2 %v8023_v6  ;;  %v8006_v43 = vld [vmem:[%s8367_s18 + $0xdc] sm:$0xf0]  ;;  %v7989_v44 = vld [vmem:[%s8367_s18 + $0x1c] sm:$0xf]  ;;  %v6540_v45 = vld [vmem:[%s8367_s18 + $0x20] sm:$0xf0] }
  0x19   : > { %587 = vmatpush.bf16.msra.mxu1 %v8031_v7  ;;  %8238 = vmatpush.bf16.msra.mxu3 %v8031_v7  ;;  %v8005_v46 = vld [vmem:[%s8367_s18 + $0xdc] sm:$0xf]  ;;  %v6604_v47 = vld [vmem:[%s8367_s18 + $0xe0] sm:$0xf0]  ;;  %v6603_v49 = vor.u32 %v8006_v43, %v6602_v42  ;;  %v6543_v50 = vor.u32 %v7989_v44, %v6540_v45  ;;  %v6546_v56 = vld [vmem:[%s8367_s18 + $0x30] sm:$0xf] }
  0x1a   : > { %v6607_v51 = vor.u32 %v8005_v46, %v6604_v47  ;;  %v8039_v52 = vld [vmem:[%s10194_s1 + $0xa0] sm:$0xff]  ;;  %v7992_v57 = vld [vmem:[%s8367_s18 + $0x34] sm:$0xf0]  ;;  %v6610_v58 = vld [vmem:[%s8367_s18 + $0xf0] sm:$0xf] }
  0x1b   : > { %v8047_v53 = vld [vmem:[%s10194_s1 + $0xe0] sm:$0xff]  ;;  %v8008_v59 = vld [vmem:[%s8367_s18 + $0xf4] sm:$0xf0]  ;;  %v7991_v60 = vld [vmem:[%s8367_s18 + $0x34] sm:$0xf]  ;;  %v6547_v0 = vor.u32 %v7992_v57, %v6546_v56 }
  0x1c   : > { %499 = vmatpush.bf16.msra.mxu0 %v8022_v8  ;;  %8231 = vmatpush.bf16.msra.mxu2 %v8022_v8  ;;  %v8055_v54 = vld [vmem:[%s10194_s1 + $0x120] sm:$0xff]  ;;  %v6548_v61 = vld [vmem:[%s8367_s18 + $0x38] sm:$0xf0]  ;;  %v8007_v62 = vld [vmem:[%s8367_s18 + $0xf4] sm:$0xf]  ;;  %v6611_v1 = vor.u32 %v8008_v59, %v6610_v58 }
  0x1d   : > { %588 = vmatpush.bf16.msra.mxu1 %v8030_v9  ;;  %8239 = vmatpush.bf16.msra.mxu3 %v8030_v9  ;;  %v8063_v55 = vld [vmem:[%s10194_s1 + $0x160] sm:$0xff]  ;;  %v6612_v63 = vld [vmem:[%s8367_s18 + $0xf8] sm:$0xf0]  ;;  %v6551_v2 = vor.u32 %v7991_v60, %v6548_v61  ;;  %v6554_v8 = vld [vmem:[%s8367_s18 + $0x48] sm:$0xf] }
  0x1e   : > { %v6615_v3 = vor.u32 %v8007_v62, %v6612_v63  ;;  %v8038_v4 = vld [vmem:[%s10194_s1 + $0x98] sm:$0xff]  ;;  %v7994_v9 = vld [vmem:[%s8367_s18 + $0x4c] sm:$0xf0]  ;;  %v7998_v41 = vld [vmem:[%s8367_s18 + $0x7c] sm:$0xf0] }
  0x1f   : > { %v8046_v5 = vld [vmem:[%s10194_s1 + $0xd8] sm:$0xff]  ;;  %v6555_v16 = vor.u32 %v7994_v9, %v6554_v8  ;;  %v8037_v20 = vld [vmem:[%s10194_s1 + $0x90] sm:$0xff]  ;;  %v8014_v43 = vld [vmem:[%s8367_s18 + $0x13c] sm:$0xf0] }
  0x20   : > { %500 = vmatpush.bf16.msra.mxu0 %v8021_v10  ;;  %8232 = vmatpush.bf16.msra.mxu2 %v8021_v10  ;;  %v8054_v6 = vld [vmem:[%s10194_s1 + $0x118] sm:$0xff]  ;;  %v6618_v10 = vld [vmem:[%s8367_s18 + $0x108] sm:$0xf]  ;;  %v8045_v21 = vld [vmem:[%s10194_s1 + $0xd0] sm:$0xff] }
  0x21   : > { %589 = vmatpush.bf16.msra.mxu1 %v8029_v11  ;;  %8240 = vmatpush.bf16.msra.mxu3 %v8029_v11  ;;  %v8062_v7 = vld [vmem:[%s10194_s1 + $0x158] sm:$0xff]  ;;  %v8010_v11 = vld [vmem:[%s8367_s18 + $0x10c] sm:$0xf0]  ;;  %v6572_v45 = vld [vmem:[%s8367_s18 + $0x80] sm:$0xf0] }
  0x22   : > { %v6619_v17 = vor.u32 %v8010_v11, %v6618_v10  ;;  %v8053_v22 = vld [vmem:[%s10194_s1 + $0x110] sm:$0xff]  ;;  %v6570_v40 = vld [vmem:[%s8367_s18 + $0x78] sm:$0xf]  ;;  %v7997_v44 = vld [vmem:[%s8367_s18 + $0x7c] sm:$0xf] }
  0x23   : > { %v8061_v23 = vld [vmem:[%s10194_s1 + $0x150] sm:$0xff]  ;;  %v6634_v42 = vld [vmem:[%s8367_s18 + $0x138] sm:$0xf]  ;;  %v8013_v46 = vld [vmem:[%s8367_s18 + $0x13c] sm:$0xf] }
  0x24   : > { %501 = vmatpush.bf16.msra.mxu0 %v8020_v12  ;;  %8233 = vmatpush.bf16.msra.mxu2 %v8020_v12  ;;  %v7993_v12 = vld [vmem:[%s8367_s18 + $0x4c] sm:$0xf]  ;;  %v6636_v47 = vld [vmem:[%s8367_s18 + $0x140] sm:$0xf0]  ;;  %v6578_v56 = vld [vmem:[%s8367_s18 + $0x90] sm:$0xf] }
  0x25   : > { %590 = vmatpush.bf16.msra.mxu1 %v8028_v13  ;;  %8241 = vmatpush.bf16.msra.mxu3 %v8028_v13  ;;  %v6556_v13 = vld [vmem:[%s8367_s18 + $0x50] sm:$0xf0]  ;;  %v8000_v57 = vld [vmem:[%s8367_s18 + $0x94] sm:$0xf0]  ;;  %v6642_v58 = vld [vmem:[%s8367_s18 + $0x150] sm:$0xf] }
  0x26   : > { %v6559_v18 = vor.u32 %v7993_v12, %v6556_v13  ;;  %v8016_v59 = vld [vmem:[%s8367_s18 + $0x154] sm:$0xf0]  ;;  %v7999_v60 = vld [vmem:[%s8367_s18 + $0x94] sm:$0xf]  ;;  %v6580_v61 = vld [vmem:[%s8367_s18 + $0x98] sm:$0xf0] }
  0x27   : > { %v8015_v62 = vld [vmem:[%s8367_s18 + $0x154] sm:$0xf]  ;;  %v6644_v63 = vld [vmem:[%s8367_s18 + $0x158] sm:$0xf0]  ;;  %v6586_v12 = vld [vmem:[%s8367_s18 + $0xa8] sm:$0xf] }
  0x28   : > { %502 = vmatpush.bf16.msra.mxu0 %v8019_v14  ;;  %8234 = vmatpush.bf16.msra.mxu2 %v8019_v14  ;;  %v8009_v14 = vld [vmem:[%s8367_s18 + $0x10c] sm:$0xf]  ;;  %v8002_v13 = vld [vmem:[%s8367_s18 + $0xac] sm:$0xf0]  ;;  %vm8558_vm4 = vmor %vm753_vm0, %vm754_vm1 }
  0x29   : > { %591 = vmatpush.bf16.msra.mxu1 %v8027_v15  ;;  %8242 = vmatpush.bf16.msra.mxu3 %v8027_v15  ;;  %v6620_v15 = vld [vmem:[%s8367_s18 + $0x110] sm:$0xf0]  ;;  %vm8563_vm5 = vmor %vm1671_vm2, %vm1672_vm3 }
  0x2a   : > { %v6623_v19 = vor.u32 %v8009_v14, %v6620_v15  ;;  %v6650_v14 = vld [vmem:[%s8367_s18 + $0x168] sm:$0xf]  ;;  %v8018_v15 = vld [vmem:[%s8367_s18 + $0x16c] sm:$0xf0] }
  0x2b   : > { %503 = vmatmul.bf16.vlgmr.msra.gmra.mxu0 %v6531_v26  ;;  %543 = vmatmul.bf16.vlgmr.msra.gmra.mxu2 %v6595_v27  ;;  %v6626_v26 = vld [vmem:[%s8367_s18 + $0x120] sm:$0xf]  ;;  %v8012_v27 = vld [vmem:[%s8367_s18 + $0x124] sm:$0xf0] }
  0x2c   : > { %1397 = vmatpush.bf16.msrb.mxu2 %v8042_v24  ;;  %592 = vmatmul.bf16.vlgmr.msra.gmra.mxu1 %v6535_v28  ;;  %v6562_v24 = vld [vmem:[%s8367_s18 + $0x60] sm:$0xf]  ;;  %v7995_v28 = vld [vmem:[%s8367_s18 + $0x64] sm:$0xf] }
  0x2d   : > { %1486 = vmatpush.bf16.msrb.mxu3 %v8050_v25  ;;  %2043 = vmatpush.bf16.msrb.mxu0 %v8058_v30  ;;  %v7996_v25 = vld [vmem:[%s8367_s18 + $0x64] sm:$0xf0]  ;;  %v8011_v30 = vld [vmem:[%s8367_s18 + $0x124] sm:$0xf] }
  0x2e   : > { %632 = vmatmul.bf16.vlgmr.msra.gmra.mxu3 %v6599_v29  ;;  %2132 = vmatpush.bf16.msrb.mxu1 %v8066_v31  ;;  %v6564_v29 = vld [vmem:[%s8367_s18 + $0x68] sm:$0xf0] }
  0x2f   : > { %v6628_v31 = vld [vmem:[%s8367_s18 + $0x128] sm:$0xf0] }
  0x30   : > { %1398 = vmatpush.bf16.msrb.mxu2 %v8041_v32  ;;  %v6563_v32 = vor.u32 %v7996_v25, %v6562_v24  ;;  %v8017_v24 = vld [vmem:[%s8367_s18 + $0x16c] sm:$0xf]  ;;  %v6652_v25 = vld [vmem:[%s8367_s18 + $0x170] sm:$0xf0] }
  0x31   : > { %1487 = vmatpush.bf16.msrb.mxu3 %v8049_v33  ;;  %2044 = vmatpush.bf16.msrb.mxu0 %v8057_v34  ;;  %v6627_v33 = vor.u32 %v8012_v27, %v6626_v26  ;;  %v6567_v34 = vor.u32 %v7995_v28, %v6564_v29  ;;  %v707_v26 = vld [vmem:[%s8367_s18 + $0x10] sm:$0x11]  ;;  %v6587_v27 = vor.u32 %v8002_v13, %v6586_v12 }
  0x32   : > { %2133 = vmatpush.bf16.msrb.mxu1 %v8065_v35  ;;  %v6631_v35 = vor.u32 %v8011_v30, %v6628_v31  ;;  %v6651_v28 = vor.u32 %v8018_v15, %v6650_v14 }
  0x34   : > { %1399 = vmatpush.bf16.msrb.mxu2 %v8040_v36  ;;  %v8036_v36 = vld [vmem:[%s10194_s1 + $0x88] sm:$0xff] }
  0x35   : > { %1488 = vmatpush.bf16.msrb.mxu3 %v8048_v37  ;;  %2045 = vmatpush.bf16.msrb.mxu0 %v8056_v38  ;;  %v8044_v37 = vld [vmem:[%s10194_s1 + $0xc8] sm:$0xff] }
  0x36   : > { %2134 = vmatpush.bf16.msrb.mxu1 %v8064_v39  ;;  %v8052_v38 = vld [vmem:[%s10194_s1 + $0x108] sm:$0xff] }
  0x37   : > { %v8060_v39 = vld [vmem:[%s10194_s1 + $0x148] sm:$0xff] }
  0x38   : > { %1400 = vmatpush.bf16.msrb.mxu2 %v8039_v52  ;;  %v8035_v52 = vld [vmem:[%s10194_s1 + $0x80] sm:$0xff] }
  0x39   : > { %1489 = vmatpush.bf16.msrb.mxu3 %v8047_v53  ;;  %2046 = vmatpush.bf16.msrb.mxu0 %v8055_v54  ;;  %v8043_v53 = vld [vmem:[%s10194_s1 + $0xc0] sm:$0xff] }
  0x3a   : > { %2135 = vmatpush.bf16.msrb.mxu1 %v8063_v55  ;;  %v8051_v54 = vld [vmem:[%s10194_s1 + $0x100] sm:$0xff] }
  0x3b   : > { %508 = vmatmul.bf16.gmra.mxu0 %v6539_v48  ;;  %548 = vmatmul.bf16.gmra.mxu2 %v6603_v49  ;;  %v6571_v48 = vor.u32 %v7998_v41, %v6570_v40  ;;  %v6635_v49 = vor.u32 %v8014_v43, %v6634_v42  ;;  %v8059_v55 = vld [vmem:[%s10194_s1 + $0x140] sm:$0xff] }
  0x3c   : > { %597 = vmatmul.bf16.gmra.mxu1 %v6543_v50  ;;  %1401 = vmatpush.bf16.msrb.mxu2 %v8038_v4  ;;  %v6575_v50 = vor.u32 %v7997_v44, %v6572_v45  ;;  %v705_v4 = vld [vmem:[%s8367_s18] sm:$0xff]  ;;  %v1679_v44 = vrot.slane %v707_v26, 5 }
  0x3d   : > { %1490 = vmatpush.bf16.msrb.mxu3 %v8046_v5  ;;  %2047 = vmatpush.bf16.msrb.mxu0 %v8054_v6  ;;  %v706_v5 = vld [vmem:[%s8367_s18 + $0x8] sm:$0xff]  ;;  %v8106_v6 = vld [vmem:[%s10194_s1 + $0x1b8] sm:$0xff]  ;;  %v757_v8 = vshrl.u32 %v705_v4, 16  ;;  %v760_v9 = vshll.u32 %v705_v4, 16 }
  0x3e   : > { %637 = vmatmul.bf16.gmra.mxu3 %v6607_v51  ;;  %2136 = vmatpush.bf16.msrb.mxu1 %v8062_v7  ;;  %v6639_v51 = vor.u32 %v8013_v46, %v6636_v47  ;;  %v8114_v7 = vld [vmem:[%s10194_s1 + $0x1f8] sm:$0xff]  ;;  %v766_v10 = vshll.u32 %v706_v5, 16  ;;  %v770_v11 = vshrl.u32 %v706_v5, 16 }
  0x40   : > { %1402 = vmatpush.bf16.msrb.mxu2 %v8037_v20  ;;  %v772_v20 = vrot.slane %v770_v11, 4 }
  0x41   : > { %1491 = vmatpush.bf16.msrb.mxu3 %v8045_v21  ;;  %2048 = vmatpush.bf16.msrb.mxu0 %v8053_v22  ;;  %v6588_v21 = vld [vmem:[%s8367_s18 + $0xb0] sm:$0xf0]  ;;  %v8122_v22 = vld [vmem:[%s10194_s1 + $0x238] sm:$0xff] }
  0x42   : > { %2137 = vmatpush.bf16.msrb.mxu1 %v8061_v23  ;;  %v8130_v23 = vld [vmem:[%s10194_s1 + $0x278] sm:$0xff] }
  0x44   : > { %1403 = vmatpush.bf16.msrb.mxu2 %v8036_v36  ;;  %v708_v36 = vld [vmem:[%s8367_s18 + $0x18] sm:$0xff] }
  0x45   : > { %1492 = vmatpush.bf16.msrb.mxu3 %v8044_v37  ;;  %2049 = vmatpush.bf16.msrb.mxu0 %v8052_v38  ;;  %v8556_v37 = vld [vmem:[%s8367_s18 + $0x20] sm:$0xff]  ;;  %v781_v46 = vshrl.u32 %v708_v36, 16  ;;  %v784_v47 = vshll.u32 %v708_v36, 16 }
  0x46   : > { %2138 = vmatpush.bf16.msrb.mxu1 %v8060_v39 }
  0x48   : > { %1404 = vmatpush.bf16.msrb.mxu2 %v8035_v52 }
  0x49   : > { %1493 = vmatpush.bf16.msrb.mxu3 %v8043_v53  ;;  %2050 = vmatpush.bf16.msrb.mxu0 %v8051_v54  ;;  %v783_v54 = vrot.slane %v781_v46, 4 }
  0x4a   : > { %2139 = vmatpush.bf16.msrb.mxu1 %v8059_v55  ;;  %v786_v55 = vrot.slane %v784_v47, 5 }
  0x4b   : > { %513 = vmatmul.bf16.gmra.mxu0 %v6547_v0  ;;  %553 = vmatmul.bf16.gmra.mxu2 %v6611_v1  ;;  %v6579_v0 = vor.u32 %v8000_v57, %v6578_v56  ;;  %v6643_v1 = vor.u32 %v8016_v59, %v6642_v58  ;;  %v710_v58 = vld [vmem:[%s8367_s18 + $0x28] sm:$0x11] }
  0x4c   : > { %602 = vmatmul.bf16.gmra.mxu1 %v6551_v2  ;;  %v6583_v2 = vor.u32 %v7999_v60, %v6580_v61  ;;  %2575 = vmatpush.bf16.msra.mxu2 %v8106_v6  ;;  %v1683_v6 = vrot.slane %v8556_v37, 5 }
  0x4d   : > { %2664 = vmatpush.bf16.msra.mxu3 %v8114_v7  ;;  %3474 = vmatpush.bf16.msra.mxu0 %v8122_v22  ;;  %v8584_v22 = vld [vmem:[%s8367_s18 + $0x38] sm:$0xff] }
  0x4e   : > { %642 = vmatmul.bf16.gmra.mxu3 %v6615_v3  ;;  %v6647_v3 = vor.u32 %v8015_v62, %v6644_v63  ;;  %3563 = vmatpush.bf16.msra.mxu1 %v8130_v23  ;;  %v8105_v23 = vld [vmem:[%s10194_s1 + $0x1b0] sm:$0xff] }
  0x50   : > { %2576 = vmatpush.bf16.msra.mxu2 %v8105_v23 }
  0x5b   : > { %518 = vmatmul.bf16.gmra.mxu0 %v6555_v16  ;;  %558 = vmatmul.bf16.gmra.mxu2 %v6619_v17  ;;  %v8001_v16 = vld [vmem:[%s8367_s18 + $0xac] sm:$0xf]  ;;  %v759_v17 = vrot.slane %v757_v8, 4 }
  0x5c   : > { %607 = vmatmul.bf16.gmra.mxu1 %v6559_v18  ;;  %v762_v18 = vrot.slane %v760_v9, 5  ;;  %v6591_v31 = vor.u32 %v8001_v16, %v6588_v21  ;;  %v1608_v9 = vld [vmem:[%s8367_s18 + $0x18] sm:$0xee]  ;;  %v711_v21 = vld [vmem:[%s8367_s18 + $0x30] sm:$0xff] }
  0x5e   : > { %647 = vmatmul.bf16.gmra.mxu3 %v6623_v19  ;;  %v768_v19 = vrot.slane %v766_v10, 5  ;;  %v763_v29 = vor.u32 %v762_v18, %v759_v17  ;;  %v6817_v18 = vrot.slane %v1608_v9, 9 }
  0x60   : > { %v773_v30 = vor.u32 %v772_v20, %v768_v19  ;;  %v764_v38 = vrot.slane %v763_v29, 4  ;;  %v1686_v20 = vrot.slane %v710_v58, 5 }
  0x62   : > { %v774_v39 = vrot.slane %v773_v30, 4 }
  0x6b   : > { %523 = vmatmul.bf16.gmra.mxu0 %v6563_v32  ;;  %563 = vmatmul.bf16.gmra.mxu2 %v6627_v33  ;;  %v6655_v32 = vor.u32 %v8017_v24, %v6652_v25  ;;  %v776_v33 = vshll.u32 %v707_v26, 16  ;;  %v8113_v24 = vld [vmem:[%s10194_s1 + $0x1f0] sm:$0xff] }
  0x6c   : > { %612 = vmatmul.bf16.gmra.mxu1 %v6567_v34  ;;  %v1676_v34 = vrot.slane %v706_v5, 5  ;;  %v800_v5 = vshll.u32 %v710_v58, 16  ;;  %2665 = vmatpush.bf16.msra.mxu3 %v8113_v24 }
  0x6d   : > { %v778_v41 = vrot.slane %v776_v33, 5  ;;  %v814_v33 = vshll.u32 %v8584_v22, 16 }
  0x6e   : > { %652 = vmatmul.bf16.gmra.mxu3 %v6631_v35  ;;  %v1607_v35 = vld [vmem:[%s8367_s18] sm:$0xee]  ;;  %v1678_v43 = vrot.slane %v1676_v34, 4  ;;  %v802_v16 = vrot.slane %v800_v5, 5  ;;  %v1609_v5 = vld [vmem:[%s8367_s18 + $0x30] sm:$0xee] }
  0x6f   : > { %v6816_v42 = vrot.slane %v1607_v35, 9 }
  0x70   : > { %v1680_v53 = vsel %vm8563_vm5, %v1678_v43, %v1679_v44 }
  0x71   : > { %v1677_v52 = vsel %vm8563_vm5, %v6816_v42, %v1676_v34  ;;  %v1821_v62 = vunpack.c.l.b16 %v1680_v53  ;;  %v818_v34 = vshrl.u32 %v8584_v22, 16 }
  0x72   : > { %v1819_v61 = vunpack.c.l.b16 %v1677_v52 }
  0x74   : > { %v1883_v8 = vpack.c.b16 %v1821_v62, %v1819_v61 }
  0x7b   : > { %528 = vmatmul.bf16.gmra.mxu0 %v6571_v48  ;;  %568 = vmatmul.bf16.gmra.mxu2 %v6635_v49  ;;  %v790_v48 = vshll.u32 %v8556_v37, 16  ;;  %v794_v49 = vshrl.u32 %v8556_v37, 16 }
  0x7c   : > { %617 = vmatmul.bf16.gmra.mxu1 %v6575_v50  ;;  %v769_v50 = vsel %vm8558_vm4, %v764_v38, %v768_v19  ;;  %v1685_v19 = vrot.slane %v1683_v6, 4 }
  0x7d   : > { %v792_v56 = vrot.slane %v790_v48, 5  ;;  %v796_v57 = vrot.slane %v794_v49, 4  ;;  %v1173_v59 = vunpack.c.l.b16 %v769_v50  ;;  %v1174_v63 = vunpack.c.h.b16 %v769_v50 }
  0x7e   : > { %657 = vmatmul.bf16.gmra.mxu3 %v6639_v51  ;;  %v779_v51 = vsel %vm8558_vm4, %v774_v39, %v778_v41  ;;  %v1687_v29 = vsel %vm8563_vm5, %v1685_v19, %v1686_v20  ;;  %v816_v49 = vrot.slane %v814_v33, 5  ;;  %v820_v50 = vrot.slane %v818_v34, 4  ;;  %v716_v34 = vld [vmem:[%s8367_s18 + $0x58] sm:$0x11] }
  0x7f   : > { %v1175_v60 = vunpack.c.l.b16 %v779_v51  ;;  %v797_v4 = vor.u32 %v796_v57, %v792_v56  ;;  %v1825_v46 = vunpack.c.l.b16 %v1687_v29 }
  0x80   : > { %v821_v62 = vor.u32 %v820_v50, %v816_v49 }
  0x81   : > { %v1237_v7 = vpack.c.b16 %v1175_v60, %v1173_v59  ;;  %v798_v15 = vrot.slane %v797_v4, 4 }
  0x8b   : > { %533 = vmatmul.bf16.gmra.mxu0 %v6579_v0  ;;  %573 = vmatmul.bf16.gmra.mxu2 %v6643_v1  ;;  %v1176_v0 = vunpack.c.h.b16 %v779_v51  ;;  %v1820_v1 = vunpack.c.h.b16 %v1677_v52  ;;  %v1826_v52 = vunpack.c.h.b16 %v1687_v29 }
  0x8c   : > { %622 = vmatmul.bf16.gmra.mxu1 %v6583_v2  ;;  %v1822_v2 = vunpack.c.h.b16 %v1680_v53  ;;  %v8121_v53 = vld [vmem:[%s10194_s1 + $0x230] sm:$0xff] }
  0x8d   : > { %v1238_v11 = vpack.c.b16 %v1176_v0, %v1174_v63  ;;  %3475 = vmatpush.bf16.msra.mxu0 %v8121_v53 }
  0x8e   : > { %662 = vmatmul.bf16.gmra.mxu3 %v6647_v3  ;;  %v787_v3 = vor.u32 %v786_v55, %v783_v54  ;;  %v1884_v12 = vpack.c.b16 %v1822_v2, %v1820_v1  ;;  %v8129_v54 = vld [vmem:[%s10194_s1 + $0x270] sm:$0xff]  ;;  %v713_v55 = vld [vmem:[%s8367_s18 + $0x40] sm:$0x11] }
  0x8f   : > { %3564 = vmatpush.bf16.msra.mxu1 %v8129_v54  ;;  %v824_v2 = vshll.u32 %v713_v55, 16 }
  0x90   : > { %v788_v14 = vrot.slane %v787_v3, 4  ;;  %v1690_v3 = vrot.slane %v8584_v22, 5 }
  0x92   : > { %v793_v25 = vsel %vm8558_vm4, %v788_v14, %v792_v56  ;;  %v1693_v14 = vrot.slane %v713_v55, 5  ;;  %v1610_v55 = vld [vmem:[%s8367_s18 + $0x48] sm:$0xee] }
  0x93   : > { %v1177_v38 = vunpack.c.l.b16 %v793_v25  ;;  %v1178_v41 = vunpack.c.h.b16 %v793_v25 }
  0x9b   : > { %538 = vmatmul.bf16.gmra.mxu0 %v6587_v27  ;;  %578 = vmatmul.bf16.gmra.mxu2 %v6651_v28  ;;  %v803_v27 = vsel %vm8558_vm4, %v798_v15, %v802_v16  ;;  %v1684_v28 = vsel %vm8563_vm5, %v6817_v18, %v1683_v6 }
  0x9c   : > { %627 = vmatmul.bf16.gmra.mxu1 %v6591_v31  ;;  %v805_v31 = vshrl.u32 %v711_v21, 16  ;;  %v1179_v39 = vunpack.c.l.b16 %v803_v27  ;;  %v1180_v43 = vunpack.c.h.b16 %v803_v27  ;;  %v1823_v44 = vunpack.c.l.b16 %v1684_v28 }
  0x9d   : > { %v1824_v51 = vunpack.c.h.b16 %v1684_v28 }
  0x9e   : > { %667 = vmatmul.bf16.gmra.mxu3 %v6655_v32  ;;  %v808_v32 = vshll.u32 %v711_v21, 16  ;;  %v807_v47 = vrot.slane %v805_v31, 4  ;;  %v1239_v57 = vpack.c.b16 %v1179_v39, %v1177_v38  ;;  %v1240_v59 = vpack.c.b16 %v1180_v43, %v1178_v41 }
  0x9f   : > { %v1885_v60 = vpack.c.b16 %v1825_v46, %v1823_v44  ;;  %v1886_v1 = vpack.c.b16 %v1826_v52, %v1824_v51 }
  0xa0   : > { %v810_v48 = vrot.slane %v808_v32, 5 }
  0xa2   : > { %v811_v61 = vor.u32 %v810_v48, %v807_v47 }
  0xa4   : > { %v812_v9 = vrot.slane %v811_v61, 4 }
  0xa6   : > { %v817_v22 = vsel %vm8558_vm4, %v812_v9, %v816_v49  ;;  %v848_v49 = vshll.u32 %v716_v34, 16  ;;  %v8112_v9 = vld [vmem:[%s10194_s1 + $0x1e8] sm:$0xff] }
  0xa7   : > { %v1182_v41 = vunpack.c.h.b16 %v817_v22  ;;  %2666 = vmatpush.bf16.msra.mxu3 %v8112_v9 }
  0xa8   : > { %v504_v10 = vpop.f32.mrf.mxu0 }
  0xa9   : > { %v593_v13 = vpop.f32.mrf.mxu1 }
  0xaa   : > { %v8580_v17 = vadd.f32 %v593_v13, %v504_v10  ;;  %v822_v10 = vrot.slane %v821_v62, 4  ;;  %v1692_v13 = vrot.slane %v1690_v3, 4 }
  0xab   : > { %1405 = vmatmul.bf16.vlgmr.msrb.gmra.mxu2 %v1237_v7  ;;  %2051 = vmatmul.bf16.vlgmr.msrb.gmra.mxu0 %v1883_v8  ;;  %v714_v7 = vld [vmem:[%s8367_s18 + $0x48] sm:$0xff]  ;;  %v8621_v8 = vld [vmem:[%s8367_s18 + $0x50] sm:$0xff] }
  0xac   : > { %2140 = vmatmul.bf16.vlgmr.msrb.gmra.mxu1 %v1884_v12  ;;  %v6818_v12 = vrot.slane %v1609_v5, 9  ;;  %v829_v15 = vshrl.u32 %v714_v7, 16  ;;  %v832_v16 = vshll.u32 %v714_v7, 16  ;;  %v838_v18 = vshll.u32 %v8621_v8, 16  ;;  %v717_v5 = vld [vmem:[%s8367_s18 + $0x60] sm:$0xff]  ;;  %v8646_v7 = vld [vmem:[%s8367_s18 + $0x68] sm:$0xff] }
  0xad   : > { %v842_v19 = vshrl.u32 %v8621_v8, 16  ;;  %v1694_v27 = vsel %vm8563_vm5, %v1692_v13, %v1693_v14  ;;  %v1697_v51 = vrot.slane %v8621_v8, 5  ;;  %v8104_v8 = vld [vmem:[%s10194_s1 + $0x1a8] sm:$0xff] }
  0xae   : > { %1494 = vmatmul.bf16.vlgmr.msrb.gmra.mxu3 %v1238_v11  ;;  %v544_v26 = vpop.f32.mrf.mxu2  ;;  %v826_v11 = vrot.slane %v824_v2, 5  ;;  %v831_v29 = vrot.slane %v829_v15, 4  ;;  %v840_v31 = vrot.slane %v838_v18, 5  ;;  %v1829_v39 = vunpack.c.l.b16 %v1694_v27  ;;  %2577 = vmatpush.bf16.msra.mxu2 %v8104_v8 }
  0xaf   : > { %v844_v32 = vrot.slane %v842_v19, 4  ;;  %v1830_v46 = vunpack.c.h.b16 %v1694_v27  ;;  %v6819_v2 = vrot.slane %v1610_v55, 9  ;;  %v856_v18 = vshll.u32 %v717_v5, 16 }
  0xb0   : > { %v506_v36 = vpop.f32.mrf.mxu0  ;;  %v827_v25 = vsel %vm8558_vm4, %v822_v10, %v826_v11  ;;  %v862_v19 = vshll.u32 %v8646_v7, 16 }
  0xb1   : > { %v633_v30 = vpop.f32.mrf.mxu3  ;;  %v595_v37 = vpop.f32.mrf.mxu1  ;;  %v1184_v43 = vunpack.c.h.b16 %v827_v25  ;;  %v845_v48 = vor.u32 %v844_v32, %v840_v31  ;;  %v1698_v13 = vsel %vm8563_vm5, %v6819_v2, %v1697_v51 }
  0xb2   : > { %v8602_v35 = vadd.f32 %v633_v30, %v544_v26  ;;  %v8604_v42 = vadd.f32 %v595_v37, %v506_v36  ;;  %v1691_v26 = vsel %vm8563_vm5, %v6818_v12, %v1690_v3  ;;  %v834_v30 = vrot.slane %v832_v16, 5 }
  0xb3   : > { %v1181_v36 = vunpack.c.l.b16 %v817_v22  ;;  %v1183_v37 = vunpack.c.l.b16 %v827_v25  ;;  %v1827_v38 = vunpack.c.l.b16 %v1691_v26  ;;  %v1828_v44 = vunpack.c.h.b16 %v1691_v26 }
  0xb4   : > { %v835_v47 = vor.u32 %v834_v30, %v831_v29  ;;  %v846_v62 = vrot.slane %v845_v48, 4  ;;  %v1699_v3 = vrot.slane %v1697_v51, 4  ;;  %v853_v16 = vshrl.u32 %v717_v5, 16 }
  0xb5   : > { %v1241_v53 = vpack.c.b16 %v1183_v37, %v1181_v36  ;;  %v1887_v54 = vpack.c.b16 %v1829_v39, %v1827_v38  ;;  %v1831_v30 = vunpack.c.l.b16 %v1698_v13  ;;  %v864_v36 = vrot.slane %v862_v19, 5 }
  0xb6   : > { %v546_v56 = vpop.f32.mrf.mxu2  ;;  %v836_v61 = vrot.slane %v835_v47, 4  ;;  %v855_v32 = vrot.slane %v853_v16, 4  ;;  %v1832_v38 = vunpack.c.h.b16 %v1698_v13 }
  0xb8   : > { %v509_v0 = vpop.f32.mrf.mxu0  ;;  %v841_v10 = vsel %vm8558_vm4, %v836_v61, %v840_v31 }
  0xb9   : > { %v635_v58 = vpop.f32.mrf.mxu3  ;;  %v598_v4 = vpop.f32.mrf.mxu1  ;;  %v1185_v25 = vunpack.c.l.b16 %v841_v10  ;;  %v1186_v27 = vunpack.c.h.b16 %v841_v10 }
  0xba   : > { %v8613_v63 = vadd.f32 %v635_v58, %v546_v56  ;;  %v8617_v6 = vadd.f32 %v598_v4, %v509_v0  ;;  %v1242_v58 = vpack.c.b16 %v1184_v43, %v1182_v41  ;;  %v850_v0 = vrot.slane %v848_v49, 5  ;;  %v8120_v41 = vld [vmem:[%s10194_s1 + $0x228] sm:$0xff] }
  0xbb   : > { %1410 = vmatmul.bf16.gmra.mxu2 %v1239_v57  ;;  %2056 = vmatmul.bf16.gmra.mxu0 %v1885_v60  ;;  %v1700_v4 = vrot.slane %v716_v34, 5  ;;  %v858_v34 = vrot.slane %v856_v18, 5  ;;  %v8128_v43 = vld [vmem:[%s10194_s1 + $0x268] sm:$0xff] }
  0xbc   : > { %2145 = vmatmul.bf16.gmra.mxu1 %v1886_v1  ;;  %v851_v12 = vsel %vm8558_vm4, %v846_v62, %v850_v0  ;;  %3476 = vmatpush.bf16.msra.mxu0 %v8120_v41  ;;  %v720_v62 = vld [vmem:[%s8367_s18 + $0x78] sm:$0xff]  ;;  %v8683_v0 = vld [vmem:[%s8367_s18 + $0x80] sm:$0xff] }
  0xbd   : > { %v1701_v14 = vsel %vm8563_vm5, %v1699_v3, %v1700_v4  ;;  %v1187_v26 = vunpack.c.l.b16 %v851_v12  ;;  %v1188_v29 = vunpack.c.h.b16 %v851_v12  ;;  %3565 = vmatpush.bf16.msra.mxu1 %v8128_v43  ;;  %v859_v51 = vor.u32 %v858_v34, %v855_v32 }
  0xbe   : > { %1499 = vmatmul.bf16.gmra.mxu3 %v1240_v59  ;;  %v549_v20 = vpop.f32.mrf.mxu2  ;;  %v1888_v59 = vpack.c.b16 %v1830_v46, %v1828_v44  ;;  %v1833_v31 = vunpack.c.l.b16 %v1701_v14  ;;  %v1834_v39 = vunpack.c.h.b16 %v1701_v14  ;;  %v719_v44 = vld [vmem:[%s8367_s18 + $0x70] sm:$0x11]  ;;  %v877_v10 = vshrl.u32 %v720_v62, 16 }
  0xbf   : > { %v1243_v47 = vpack.c.b16 %v1187_v26, %v1185_v25  ;;  %v1244_v49 = vpack.c.b16 %v1188_v29, %v1186_v27  ;;  %v860_v2 = vrot.slane %v859_v51, 4  ;;  %v1707_v9 = vrot.slane %v719_v44, 5 }
  0xc0   : > { %v511_v24 = vpop.f32.mrf.mxu0  ;;  %v1890_v55 = vpack.c.b16 %v1834_v39, %v1832_v38  ;;  %v890_v12 = vshrl.u32 %v8683_v0, 16  ;;  %v879_v25 = vrot.slane %v877_v10, 4  ;;  %v8708_v10 = vld [vmem:[%s8367_s18 + $0x98] sm:$0xff] }
  0xc1   : > { %v638_v21 = vpop.f32.mrf.mxu3  ;;  %v600_v28 = vpop.f32.mrf.mxu1 }
  0xc2   : > { %v8627_v23 = vadd.f32 %v638_v21, %v549_v20  ;;  %v8635_v33 = vadd.f32 %v600_v28, %v511_v24  ;;  %v866_v20 = vshrl.u32 %v8646_v7, 16  ;;  %v892_v29 = vrot.slane %v890_v12, 4 }
  0xc4   : > { %v868_v37 = vrot.slane %v866_v20, 4 }
  0xc6   : > { %v551_v50 = vpop.f32.mrf.mxu2 }
  0xc8   : > { %v514_v57 = vpop.f32.mrf.mxu0 }
  0xc9   : > { %v640_v52 = vpop.f32.mrf.mxu3  ;;  %v603_v60 = vpop.f32.mrf.mxu1 }
  0xca   : > { %v8640_v56 = vadd.f32 %v640_v52, %v551_v50  ;;  %v8642_v1 = vadd.f32 %v603_v60, %v514_v57  ;;  %v1889_v50 = vpack.c.b16 %v1833_v31, %v1831_v30  ;;  %v869_v52 = vor.u32 %v868_v37, %v864_v36  ;;  %v1611_v60 = vld [vmem:[%s8367_s18 + $0x60] sm:$0xee]  ;;  %v722_v31 = vld [vmem:[%s8367_s18 + $0x88] sm:$0x11] }
  0xcb   : > { %1415 = vmatmul.bf16.gmra.mxu2 %v1241_v53  ;;  %2061 = vmatmul.bf16.gmra.mxu0 %v1887_v54  ;;  %v872_v57 = vshll.u32 %v719_v44, 16  ;;  %v6820_v5 = vrot.slane %v1611_v60, 9 }
  0xcc   : > { %2150 = vmatmul.bf16.gmra.mxu1 %v1888_v59  ;;  %v870_v3 = vrot.slane %v869_v52, 4 }
  0xcd   : > { %v874_v4 = vrot.slane %v872_v57, 5 }
  0xce   : > { %1504 = vmatmul.bf16.gmra.mxu3 %v1242_v58  ;;  %v554_v11 = vpop.f32.mrf.mxu2  ;;  %v1704_v58 = vrot.slane %v8646_v7, 5  ;;  %v886_v7 = vshll.u32 %v8683_v0, 16 }
  0xcf   : > { %v875_v19 = vsel %vm8558_vm4, %v870_v3, %v874_v4 }
  0xd0   : > { %v516_v22 = vpop.f32.mrf.mxu0  ;;  %v1706_v8 = vrot.slane %v1704_v58, 4  ;;  %v1705_v20 = vsel %vm8563_vm5, %v6820_v5, %v1704_v58  ;;  %v888_v27 = vrot.slane %v886_v7, 5  ;;  %v1191_v34 = vunpack.c.l.b16 %v875_v19  ;;  %v8111_v7 = vld [vmem:[%s10194_s1 + $0x1e0] sm:$0xff] }
  0xd1   : > { %v643_v15 = vpop.f32.mrf.mxu3  ;;  %v605_v24 = vpop.f32.mrf.mxu1  ;;  %v1192_v39 = vunpack.c.h.b16 %v875_v19  ;;  %v1836_v41 = vunpack.c.h.b16 %v1705_v20  ;;  %2667 = vmatpush.bf16.msra.mxu3 %v8111_v7 }
  0xd2   : > { %v8664_v21 = vadd.f32 %v643_v15, %v554_v11  ;;  %v8666_v28 = vadd.f32 %v605_v24, %v516_v22  ;;  %v880_v11 = vshll.u32 %v720_v62, 16  ;;  %v865_v15 = vsel %vm8558_vm4, %v860_v2, %v864_v36 }
  0xd3   : > { %v1708_v22 = vsel %vm8563_vm5, %v1706_v8, %v1707_v9  ;;  %v1189_v32 = vunpack.c.l.b16 %v865_v15  ;;  %v1835_v36 = vunpack.c.l.b16 %v1705_v20  ;;  %v1190_v38 = vunpack.c.h.b16 %v865_v15  ;;  %v723_v9 = vld [vmem:[%s8367_s18 + $0x90] sm:$0xff] }
  0xd4   : > { %v882_v26 = vrot.slane %v880_v11, 5  ;;  %v1837_v37 = vunpack.c.l.b16 %v1708_v22  ;;  %v1838_v43 = vunpack.c.h.b16 %v1708_v22  ;;  %v8103_v11 = vld [vmem:[%s10194_s1 + $0x1a0] sm:$0xff]  ;;  %v901_v20 = vshrl.u32 %v723_v9, 16 }
  0xd5   : > { %v1245_v51 = vpack.c.b16 %v1191_v34, %v1189_v32  ;;  %v1246_v58 = vpack.c.b16 %v1192_v39, %v1190_v38  ;;  %2578 = vmatpush.bf16.msra.mxu2 %v8103_v11  ;;  %v904_v22 = vshll.u32 %v723_v9, 16  ;;  %v1613_v11 = vld [vmem:[%s8367_s18 + $0x90] sm:$0xee] }
  0xd6   : > { %v556_v46 = vpop.f32.mrf.mxu2  ;;  %v883_v44 = vor.u32 %v882_v26, %v879_v25  ;;  %v1891_v52 = vpack.c.b16 %v1837_v37, %v1835_v36  ;;  %v914_v25 = vshrl.u32 %v8708_v10, 16 }
  0xd8   : > { %v519_v54 = vpop.f32.mrf.mxu0  ;;  %v884_v62 = vrot.slane %v883_v44, 4 }
  0xd9   : > { %v645_v48 = vpop.f32.mrf.mxu3  ;;  %v608_v59 = vpop.f32.mrf.mxu1 }
  0xda   : > { %v8675_v53 = vadd.f32 %v645_v48, %v556_v46  ;;  %v8679_v61 = vadd.f32 %v608_v59, %v519_v54  ;;  %v893_v46 = vor.u32 %v892_v29, %v888_v27  ;;  %v1612_v54 = vld [vmem:[%s8367_s18 + $0x78] sm:$0xee]  ;;  %v1892_v59 = vpack.c.b16 %v1838_v43, %v1836_v41 }
  0xdb   : > { %1420 = vmatmul.bf16.gmra.mxu2 %v1243_v47  ;;  %2066 = vmatmul.bf16.gmra.mxu0 %v1889_v50  ;;  %v896_v47 = vshll.u32 %v722_v31, 16  ;;  %v6821_v5 = vrot.slane %v1612_v54, 9  ;;  %v889_v12 = vsel %vm8558_vm4, %v884_v62, %v888_v27  ;;  %v903_v41 = vrot.slane %v901_v20, 4 }
  0xdc   : > { %2155 = vmatmul.bf16.gmra.mxu1 %v1890_v55  ;;  %v894_v2 = vrot.slane %v893_v46, 4  ;;  %v1194_v34 = vunpack.c.h.b16 %v889_v12  ;;  %v906_v43 = vrot.slane %v904_v22, 5  ;;  %v916_v46 = vrot.slane %v914_v25, 4 }
  0xdd   : > { %v898_v3 = vrot.slane %v896_v47, 5 }
  0xde   : > { %1509 = vmatmul.bf16.gmra.mxu3 %v1244_v49  ;;  %v559_v13 = vpop.f32.mrf.mxu2  ;;  %v1711_v49 = vrot.slane %v8683_v0, 5  ;;  %v1714_v0 = vrot.slane %v722_v31, 5  ;;  %v1193_v31 = vunpack.c.l.b16 %v889_v12  ;;  %v726_v12 = vld [vmem:[%s8367_s18 + $0xa8] sm:$0xff] }
  0xdf   : > { %v928_v25 = vshll.u32 %v726_v12, 16 }
  0xe0   : > { %v521_v18 = vpop.f32.mrf.mxu0  ;;  %v1713_v8 = vrot.slane %v1711_v49, 4  ;;  %v1712_v15 = vsel %vm8563_vm5, %v6821_v5, %v1711_v49  ;;  %v8119_v49 = vld [vmem:[%s10194_s1 + $0x220] sm:$0xff] }
  0xe1   : > { %v648_v14 = vpop.f32.mrf.mxu3  ;;  %v610_v24 = vpop.f32.mrf.mxu1  ;;  %v1839_v38 = vunpack.c.l.b16 %v1712_v15  ;;  %v1840_v47 = vunpack.c.h.b16 %v1712_v15  ;;  %3477 = vmatpush.bf16.msra.mxu0 %v8119_v49 }
  0xe2   : > { %v8689_v16 = vadd.f32 %v648_v14, %v559_v13  ;;  %v8697_v30 = vadd.f32 %v610_v24, %v521_v18  ;;  %v899_v14 = vsel %vm8558_vm4, %v894_v2, %v898_v3  ;;  %v1715_v18 = vsel %vm8563_vm5, %v1713_v8, %v1714_v0 }
  0xe3   : > { %v910_v24 = vshll.u32 %v8708_v10, 16  ;;  %v1195_v32 = vunpack.c.l.b16 %v899_v14  ;;  %v1196_v37 = vunpack.c.h.b16 %v899_v14  ;;  %v1841_v39 = vunpack.c.l.b16 %v1715_v18 }
  0xe4   : > { %v1718_v0 = vrot.slane %v8708_v10, 5 }
  0xe5   : > { %v912_v44 = vrot.slane %v910_v24, 5  ;;  %v1247_v54 = vpack.c.b16 %v1195_v32, %v1193_v31  ;;  %v925_v24 = vshrl.u32 %v726_v12, 16 }
  0xe6   : > { %v561_v48 = vpop.f32.mrf.mxu2  ;;  %v1720_v20 = vrot.slane %v1718_v0, 4 }
  0xe7   : > { %v917_v62 = vor.u32 %v916_v46, %v912_v44  ;;  %v927_v46 = vrot.slane %v925_v24, 4 }
  0xe8   : > { %v524_v57 = vpop.f32.mrf.mxu0 }
  0xe9   : > { %v650_v50 = vpop.f32.mrf.mxu3  ;;  %v613_v60 = vpop.f32.mrf.mxu1  ;;  %v918_v15 = vrot.slane %v917_v62, 4 }
  0xea   : > { %v8702_v55 = vadd.f32 %v650_v50, %v561_v48  ;;  %v8704_v4 = vadd.f32 %v613_v60, %v524_v57  ;;  %v1842_v48 = vunpack.c.h.b16 %v1715_v18  ;;  %v8127_v50 = vld [vmem:[%s10194_s1 + $0x260] sm:$0xff]  ;;  %v907_v60 = vor.u32 %v906_v43, %v903_v41 }
  0xeb   : > { %1425 = vmatmul.bf16.gmra.mxu2 %v1245_v51  ;;  %2071 = vmatmul.bf16.gmra.mxu0 %v1891_v52  ;;  %v725_v51 = vld [vmem:[%s8367_s18 + $0xa0] sm:$0x11] }
  0xec   : > { %2160 = vmatmul.bf16.gmra.mxu1 %v1892_v59  ;;  %v1893_v59 = vpack.c.b16 %v1841_v39, %v1839_v38  ;;  %v1894_v5 = vpack.c.b16 %v1842_v48, %v1840_v47  ;;  %v920_v8 = vshll.u32 %v725_v51, 16  ;;  %v908_v14 = vrot.slane %v907_v60, 4 }
  0xed   : > { %3566 = vmatpush.bf16.msra.mxu1 %v8127_v50  ;;  %v1721_v22 = vrot.slane %v725_v51, 5  ;;  %v930_v47 = vrot.slane %v928_v25, 5 }
  0xee   : > { %1514 = vmatmul.bf16.gmra.mxu3 %v1246_v58  ;;  %v564_v13 = vpop.f32.mrf.mxu2  ;;  %v1248_v58 = vpack.c.b16 %v1196_v37, %v1194_v34  ;;  %v922_v18 = vrot.slane %v920_v8, 5  ;;  %v913_v32 = vsel %vm8558_vm4, %v908_v14, %v912_v44  ;;  %v728_v44 = vld [vmem:[%s8367_s18 + $0xb8] sm:$0x11] }
  0xef   : > { %v1722_v41 = vsel %vm8563_vm5, %v1720_v20, %v1721_v22  ;;  %v1197_v51 = vunpack.c.l.b16 %v913_v32  ;;  %v944_v8 = vshll.u32 %v728_v44, 16 }
  0xf0   : > { %v526_v27 = vpop.f32.mrf.mxu0  ;;  %v923_v38 = vsel %vm8558_vm4, %v918_v15, %v922_v18  ;;  %v1846_v62 = vunpack.c.h.b16 %v1722_v41  ;;  %v1614_v15 = vld [vmem:[%s8367_s18 + $0xa8] sm:$0xee] }
  0xf1   : > { %v653_v19 = vpop.f32.mrf.mxu3  ;;  %v615_v29 = vpop.f32.mrf.mxu1 }
  0xf2   : > { %v8726_v26 = vadd.f32 %v653_v19, %v564_v13  ;;  %v8728_v36 = vadd.f32 %v615_v29, %v526_v27  ;;  %v8745_v13 = vld [vmem:[%s8367_s18 + $0xb0] sm:$0xff]  ;;  %v6822_v19 = vrot.slane %v1613_v11, 9 }
  0xf3   : > { %v934_v10 = vshll.u32 %v8745_v13, 16  ;;  %v938_v27 = vshrl.u32 %v8745_v13, 16 }
  0xf4   : > { %v1719_v39 = vsel %vm8563_vm5, %v6822_v19, %v1718_v0 }
  0xf5   : > { %v936_v48 = vrot.slane %v934_v10, 5  ;;  %v940_v49 = vrot.slane %v938_v27, 4  ;;  %v1844_v60 = vunpack.c.h.b16 %v1719_v39  ;;  %v946_v27 = vrot.slane %v944_v8, 5 }
  0xf6   : > { %v566_v52 = vpop.f32.mrf.mxu2 }
  0xf7   : > { %v1896_v22 = vpack.c.b16 %v1846_v62, %v1844_v60 }
  0xf8   : > { %v529_v3 = vpop.f32.mrf.mxu0 }
  0xf9   : > { %v655_v57 = vpop.f32.mrf.mxu3  ;;  %v618_v9 = vpop.f32.mrf.mxu1 }
  0xfa   : > { %v8737_v2 = vadd.f32 %v655_v57, %v566_v52  ;;  %v8741_v7 = vadd.f32 %v618_v9, %v529_v3  ;;  %v1199_v52 = vunpack.c.l.b16 %v923_v38  ;;  %v1845_v57 = vunpack.c.l.b16 %v1722_v41  ;;  %v8110_v41 = vld [vmem:[%s10194_s1 + $0x1d8] sm:$0xff] }
  0xfb   : > { %1430 = vmatmul.bf16.gmra.mxu2 %v1247_v54  ;;  %2076 = vmatmul.bf16.gmra.mxu0 %v1893_v59  ;;  %v1843_v54 = vunpack.c.l.b16 %v1719_v39  ;;  %v1200_v59 = vunpack.c.h.b16 %v923_v38  ;;  %v931_v3 = vor.u32 %v930_v47, %v927_v46  ;;  %v1725_v9 = vrot.slane %v8745_v13, 5  ;;  %v8770_v38 = vld [vmem:[%s8367_s18 + $0xc8] sm:$0xff]  ;;  %v8102_v39 = vld [vmem:[%s10194_s1 + $0x198] sm:$0xff] }
  0xfc   : > { %2165 = vmatmul.bf16.gmra.mxu1 %v1894_v5  ;;  %v941_v5 = vor.u32 %v940_v49, %v936_v48  ;;  %v1249_v12 = vpack.c.b16 %v1199_v52, %v1197_v51  ;;  %v1728_v13 = vrot.slane %v728_v44, 5  ;;  %2579 = vmatpush.bf16.msra.mxu2 %v8102_v39 }
  0xfd   : > { %v1895_v14 = vpack.c.b16 %v1845_v57, %v1843_v54  ;;  %v932_v25 = vrot.slane %v931_v3, 4  ;;  %2668 = vmatpush.bf16.msra.mxu3 %v8110_v41  ;;  %v958_v57 = vshll.u32 %v8770_v38, 16 }
  0xfe   : > { %1519 = vmatmul.bf16.gmra.mxu3 %v1248_v58  ;;  %v569_v29 = vpop.f32.mrf.mxu2  ;;  %v1198_v58 = vunpack.c.h.b16 %v913_v32  ;;  %v942_v10 = vrot.slane %v941_v5, 4  ;;  %v1727_v32 = vrot.slane %v1725_v9, 4 }
 0x100   : > { %v531_v37 = vpop.f32.mrf.mxu0  ;;  %v1250_v20 = vpack.c.b16 %v1200_v59, %v1198_v58  ;;  %v947_v47 = vsel %vm8558_vm4, %v942_v10, %v946_v27  ;;  %v1729_v44 = vsel %vm8563_vm5, %v1727_v32, %v1728_v13  ;;  %v962_v58 = vshrl.u32 %v8770_v38, 16  ;;  %v731_v10 = vld [vmem:[%s8367_s18 + $0xd0] sm:$0x11] }
 0x101   : > { %v658_v31 = vpop.f32.mrf.mxu3  ;;  %v620_v43 = vpop.f32.mrf.mxu1  ;;  %v1203_v3 = vunpack.c.l.b16 %v947_v47 }
 0x102   : > { %v8751_v34 = vadd.f32 %v658_v31, %v569_v29  ;;  %v8759_v50 = vadd.f32 %v620_v43, %v531_v37  ;;  %v6823_v31 = vrot.slane %v1614_v15, 9  ;;  %v729_v37 = vld [vmem:[%s8367_s18 + $0xc0] sm:$0xff]  ;;  %v937_v43 = vsel %vm8558_vm4, %v932_v25, %v936_v48 }
 0x103   : > { %v949_v52 = vshrl.u32 %v729_v37, 16  ;;  %v952_v54 = vshll.u32 %v729_v37, 16  ;;  %v1201_v62 = vunpack.c.l.b16 %v937_v43  ;;  %v1202_v5 = vunpack.c.h.b16 %v937_v43 }
 0x104   : > { %v1726_v49 = vsel %vm8563_vm5, %v6823_v31, %v1725_v9  ;;  %v1850_v25 = vunpack.c.h.b16 %v1729_v44 }
 0x105   : > { %v1847_v9 = vunpack.c.l.b16 %v1726_v49  ;;  %v951_v15 = vrot.slane %v949_v52, 4  ;;  %v1251_v31 = vpack.c.b16 %v1203_v3, %v1201_v62  ;;  %v1615_v52 = vld [vmem:[%s8367_s18 + $0xc0] sm:$0xee] }
 0x106   : > { %v571_v0 = vpop.f32.mrf.mxu2  ;;  %v6824_v3 = vrot.slane %v1615_v52, 9 }
 0x108   : > { %v534_v19 = vpop.f32.mrf.mxu0 }
 0x109   : > { %v660_v11 = vpop.f32.mrf.mxu3  ;;  %v623_v24 = vpop.f32.mrf.mxu1 }
 0x10a   : > { %v8764_v18 = vadd.f32 %v660_v11, %v571_v0  ;;  %v8766_v29 = vadd.f32 %v623_v24, %v534_v19  ;;  %v1204_v0 = vunpack.c.h.b16 %v947_v47  ;;  %v1849_v11 = vunpack.c.l.b16 %v1729_v44 }
 0x10b   : > { %1435 = vmatmul.bf16.gmra.mxu2 %v1249_v12  ;;  %2081 = vmatmul.bf16.gmra.mxu0 %v1895_v14  ;;  %v8118_v12 = vld [vmem:[%s10194_s1 + $0x218] sm:$0xff]  ;;  %v954_v19 = vrot.slane %v952_v54, 5  ;;  %v1848_v24 = vunpack.c.h.b16 %v1726_v49  ;;  %v1732_v49 = vrot.slane %v8770_v38, 5 }
 0x10c   : > { %2170 = vmatmul.bf16.gmra.mxu1 %v1896_v22  ;;  %v8126_v14 = vld [vmem:[%s10194_s1 + $0x258] sm:$0xff]  ;;  %v964_v22 = vrot.slane %v962_v58, 4  ;;  %3478 = vmatpush.bf16.msra.mxu0 %v8118_v12  ;;  %v1252_v13 = vpack.c.b16 %v1204_v0, %v1202_v5  ;;  %v1897_v37 = vpack.c.b16 %v1849_v11, %v1847_v9  ;;  %v1735_v0 = vrot.slane %v731_v10, 5 }
 0x10d   : > { %3567 = vmatpush.bf16.msra.mxu1 %v8126_v14  ;;  %v955_v39 = vor.u32 %v954_v19, %v951_v15  ;;  %v1898_v47 = vpack.c.b16 %v1850_v25, %v1848_v24  ;;  %v1734_v5 = vrot.slane %v1732_v49, 4 }
 0x10e   : > { %1524 = vmatmul.bf16.gmra.mxu3 %v1250_v20  ;;  %v574_v46 = vpop.f32.mrf.mxu2  ;;  %v960_v20 = vrot.slane %v958_v57, 5  ;;  %v732_v57 = vld [vmem:[%s8367_s18 + $0xd8] sm:$0xff] }
 0x10f   : > { %v956_v58 = vrot.slane %v955_v39, 4  ;;  %v973_v9 = vshrl.u32 %v732_v57, 16  ;;  %v976_v38 = vshll.u32 %v732_v57, 16 }
 0x110   : > { %v536_v59 = vpop.f32.mrf.mxu0  ;;  %v965_v41 = vor.u32 %v964_v22, %v960_v20 }
 0x111   : > { %v663_v51 = vpop.f32.mrf.mxu3  ;;  %v625_v60 = vpop.f32.mrf.mxu1  ;;  %v961_v19 = vsel %vm8558_vm4, %v956_v58, %v960_v20 }
 0x112   : > { %v8788_v48 = vadd.f32 %v663_v51, %v574_v46  ;;  %v8790_v8 = vadd.f32 %v625_v60, %v536_v59  ;;  %v968_v51 = vshll.u32 %v731_v10, 16  ;;  %v966_v59 = vrot.slane %v965_v41, 4  ;;  %v8807_v60 = vld [vmem:[%s8367_s18 + $0xe0] sm:$0xff] }
 0x113   : > { %v982_v12 = vshll.u32 %v8807_v60, 16  ;;  %v986_v14 = vshrl.u32 %v8807_v60, 16  ;;  %v1733_v10 = vsel %vm8563_vm5, %v6824_v3, %v1732_v49  ;;  %v1205_v41 = vunpack.c.l.b16 %v961_v19 }
 0x114   : > { %v970_v62 = vrot.slane %v968_v51, 5  ;;  %v1206_v52 = vunpack.c.h.b16 %v961_v19  ;;  %v1852_v58 = vunpack.c.h.b16 %v1733_v10  ;;  %v1739_v19 = vrot.slane %v8807_v60, 5  ;;  %v8101_v60 = vld [vmem:[%s10194_s1 + $0x190] sm:$0xff] }
 0x115   : > { %v984_v39 = vrot.slane %v982_v12, 5  ;;  %v988_v20 = vrot.slane %v986_v14, 4  ;;  %2580 = vmatpush.bf16.msra.mxu2 %v8101_v60 }
 0x116   : > { %v576_v27 = vpop.f32.mrf.mxu2  ;;  %v971_v25 = vsel %vm8558_vm4, %v966_v59, %v970_v62 }
 0x117   : > { %v1208_v57 = vunpack.c.h.b16 %v971_v25  ;;  %v989_v3 = vor.u32 %v988_v20, %v984_v39 }
 0x118   : > { %v539_v46 = vpop.f32.mrf.mxu0 }
 0x119   : > { %v665_v32 = vpop.f32.mrf.mxu3  ;;  %v628_v44 = vpop.f32.mrf.mxu1  ;;  %v1254_v14 = vpack.c.b16 %v1208_v57, %v1206_v52  ;;  %v8841_v52 = vld [vmem:[%s10195_s2] ss:$0 sm:$0xff] }
 0x11a   : > { %v8799_v43 = vadd.f32 %v665_v32, %v576_v27  ;;  %v8803_v54 = vadd.f32 %v628_v44, %v539_v46  ;;  %v1736_v27 = vsel %vm8563_vm5, %v1734_v5, %v1735_v0  ;;  %v975_v32 = vrot.slane %v973_v9, 4  ;;  %v734_v44 = vld [vmem:[%s8367_s18 + $0xe8] sm:$0x11] }
 0x11b   : > { %1440 = vmatmul.bf16.gmra.mxu2 %v1251_v31  ;;  %2086 = vmatmul.bf16.gmra.mxu0 %v1897_v37  ;;  %v978_v37 = vrot.slane %v976_v38, 5  ;;  %v1207_v46 = vunpack.c.l.b16 %v971_v25  ;;  %v1853_v51 = vunpack.c.l.b16 %v1736_v27  ;;  %v1854_v49 = vunpack.c.h.b16 %v1736_v27  ;;  %v1616_v25 = vld [vmem:[%s8367_s18 + $0xd8] sm:$0xee] }
 0x11c   : > { %10201 = vst [vmem:[#allocation2_spill] sm:$0xff] %v8799_v43  ;;  %2175 = vmatmul.bf16.gmra.mxu1 %v1898_v47  ;;  %v1851_v47 = vunpack.c.l.b16 %v1733_v10  ;;  %v992_v5 = vshll.u32 %v734_v44, 16  ;;  %v6825_v20 = vrot.slane %v1616_v25, 9  ;;  %v738_v43 = vld [vmem:[%s8367_s18 + $0x108] sm:$0xff] }
 0x11d   : > { %v979_v62 = vor.u32 %v978_v37, %v975_v32  ;;  %v1253_v9 = vpack.c.b16 %v1207_v46, %v1205_v41  ;;  %v735_v37 = vld [vmem:[%s8367_s18 + $0xf0] sm:$0xff]  ;;  %v1741_v41 = vrot.slane %v1739_v19, 4  ;;  %v1742_v46 = vrot.slane %v734_v44, 5 }
 0x11e   : > { %1529 = vmatmul.bf16.gmra.mxu3 %v1252_v13  ;;  %v579_v11 = vpop.f32.mrf.mxu2  ;;  %v994_v32 = vrot.slane %v992_v5, 5 }
 0x11f   : > { %v980_v27 = vrot.slane %v979_v62, 4 }
 0x120   : > { %v541_v24 = vpop.f32.mrf.mxu0 }
 0x121   : > { %v668_v15 = vpop.f32.mrf.mxu3  ;;  %v630_v31 = vpop.f32.mrf.mxu1 }
 0x122   : > { %v8813_v22 = vadd.f32 %v668_v15, %v579_v11  ;;  %v8821_v13 = vadd.f32 %v630_v31, %v541_v24  ;;  %v1899_v11 = vpack.c.b16 %v1853_v51, %v1851_v47  ;;  %v1900_v15 = vpack.c.b16 %v1854_v49, %v1852_v58  ;;  %v8830_v47 = vld [vmem:[%s8367_s18 + $0xf8] sm:$0xff]  ;;  %v8109_v51 = vld [vmem:[%s10194_s1 + $0x1d0] sm:$0xff] }
 0x123   : > { %v990_v31 = vrot.slane %v989_v3, 4  ;;  %v985_v58 = vsel %vm8558_vm4, %v980_v27, %v984_v39  ;;  %v997_v49 = vshrl.u32 %v735_v37, 16  ;;  %2669 = vmatpush.bf16.msra.mxu3 %v8109_v51  ;;  %v1006_v3 = vshll.u32 %v8830_v47, 16 }
 0x124   : > { %10202 = vst [vmem:[#allocation3_spill] sm:$0xff] %v8813_v22  ;;  %v1010_v5 = vshrl.u32 %v8830_v47, 16  ;;  %v1740_v39 = vsel %vm8563_vm5, %v6825_v20, %v1739_v19  ;;  %v1210_v25 = vunpack.c.h.b16 %v985_v58  ;;  %v8125_v19 = vld [vmem:[%s10194_s1 + $0x250] sm:$0xff] }
 0x125   : > { %v995_v44 = vsel %vm8558_vm4, %v990_v31, %v994_v32  ;;  %v999_v32 = vrot.slane %v997_v49, 4  ;;  %v1855_v20 = vunpack.c.l.b16 %v1740_v39  ;;  %3568 = vmatpush.bf16.msra.mxu1 %v8125_v19  ;;  %v1746_v19 = vrot.slane %v8830_v47, 5 }
 0x126   : > { %v581_v59 = vpop.f32.mrf.mxu2  ;;  %v1212_v51 = vunpack.c.h.b16 %v995_v44  ;;  %v1021_v47 = vshrl.u32 %v738_v43, 16 }
 0x128   : > { %v2052_v12 = vpop.f32.mrf.mxu0 }
 0x129   : > { %v670_v0 = vpop.f32.mrf.mxu3  ;;  %v2141_v24 = vpop.f32.mrf.mxu1 }
 0x12a   : > { %v8824_v38 = vadd.f32 %v670_v0, %v581_v59  ;;  %v2142_v10 = vadd.f32 %v2141_v24, %v2052_v12  ;;  %v1000_v59 = vshll.u32 %v735_v37, 16  ;;  %v673_v0 = vadd.f32 %v8841_v52, %v8580_v17  ;;  %v8117_v17 = vld [vmem:[%s10194_s1 + $0x210] sm:$0xff] }
 0x12b   : > { %1445 = vmatmul.bf16.gmra.mxu2 %v1253_v9  ;;  %2091 = vmatmul.bf16.gmra.mxu0 %v1899_v11  ;;  %v1743_v12 = vsel %vm8563_vm5, %v1741_v41, %v1742_v46  ;;  %v1211_v24 = vunpack.c.l.b16 %v995_v44  ;;  %v1008_v41 = vrot.slane %v1006_v3, 5  ;;  %v1012_v46 = vrot.slane %v1010_v5, 4 }
 0x12c   : > { %10203 = vst [vmem:[#allocation4_spill] sm:$0xff] %v8824_v38  ;;  %2180 = vmatmul.bf16.gmra.mxu1 %v1900_v15  ;;  %v1209_v15 = vunpack.c.l.b16 %v985_v58  ;;  %v1002_v37 = vrot.slane %v1000_v59, 5  ;;  %v1857_v60 = vunpack.c.l.b16 %v1743_v12  ;;  %v737_v58 = vld [vmem:[%s8367_s18 + $0x100] sm:$0x11]  ;;  %3479 = vmatpush.bf16.msra.mxu0 %v8117_v17  ;;  %v674_v59 = vadd.f32 %v8841_v52, %v8604_v42 }
 0x12d   : > { %v1013_v3 = vor.u32 %v1012_v46, %v1008_v41  ;;  %v1016_v5 = vshll.u32 %v737_v58, 16  ;;  %v1024_v46 = vshll.u32 %v738_v43, 16 }
 0x12e   : > { %1534 = vmatmul.bf16.gmra.mxu3 %v1254_v14  ;;  %v1406_v57 = vpop.f32.mrf.mxu2  ;;  %v1901_v38 = vpack.c.b16 %v1857_v60, %v1855_v20  ;;  %v1748_v20 = vrot.slane %v1746_v19, 4 }
 0x130   : > { %v2054_v11 = vpop.f32.mrf.mxu0 }
 0x131   : > { %v1495_v62 = vpop.f32.mrf.mxu3  ;;  %v2143_v14 = vpop.f32.mrf.mxu1 }
 0x132   : > { %v1496_v9 = vadd.f32 %v1495_v62, %v1406_v57  ;;  %v2144_v31 = vadd.f32 %v2143_v14, %v2054_v11  ;;  %v1856_v57 = vunpack.c.h.b16 %v1740_v39  ;;  %v1858_v62 = vunpack.c.h.b16 %v1743_v12 }
 0x133   : > { %v1255_v14 = vpack.c.b16 %v1211_v24, %v1209_v15  ;;  %v1256_v12 = vpack.c.b16 %v1212_v51, %v1210_v25  ;;  %v1018_v15 = vrot.slane %v1016_v5, 5  ;;  %v8870_v24 = vld [vmem:[%s8367_s18 + $0x110] sm:$0xff]  ;;  %v1749_v25 = vrot.slane %v737_v58, 5 }
 0x134   : > { %v1575_v27 = vadd.f32 %v1496_v9, %v673_v0  ;;  %v1003_v9 = vor.u32 %v1002_v37, %v999_v32  ;;  %v1902_v17 = vpack.c.b16 %v1858_v62, %v1856_v57  ;;  %v1014_v32 = vrot.slane %v1013_v3, 4 }
 0x135   : > { %v1030_v62 = vshll.u32 %v8870_v24, 16  ;;  %v1026_v3 = vrot.slane %v1024_v46, 5  ;;  %v676_v46 = vadd.f32 %v8841_v52, %v8635_v33  ;;  %v741_v33 = vld [vmem:[%s8367_s18 + $0x120] sm:$0xff] }
 0x136   : > { %v8862_v49 = vadd.f32 %v2142_v10, %v1575_v27  ;;  %v1408_v0 = vpop.f32.mrf.mxu2  ;;  %v1617_v27 = vld [vmem:[%s8367_s18 + $0xf0] sm:$0xee]  ;;  %v1004_v42 = vrot.slane %v1003_v9, 4 }
 0x137   : > { %v6826_v37 = vrot.slane %v1617_v27, 9 }
 0x138   : > { %10204 = vst [vmem:[#allocation5_spill] sm:$0xff] %v8862_v49  ;;  %v2057_v39 = vpop.f32.mrf.mxu0  ;;  %v1009_v57 = vsel %vm8558_vm4, %v1004_v42, %v1008_v41  ;;  %v1750_v41 = vsel %vm8563_vm5, %v1748_v20, %v1749_v25  ;;  %v740_v42 = vld [vmem:[%s8367_s18 + $0x118] sm:$0x11] }
 0x139   : > { %v1497_v11 = vpop.f32.mrf.mxu3  ;;  %v2146_v10 = vpop.f32.mrf.mxu1  ;;  %v1747_v43 = vsel %vm8563_vm5, %v6826_v37, %v1746_v19  ;;  %v1861_v27 = vunpack.c.l.b16 %v1750_v41 }
 0x13a   : > { %v1498_v44 = vadd.f32 %v1497_v11, %v1408_v0  ;;  %v2147_v22 = vadd.f32 %v2146_v10, %v2057_v39  ;;  %v1859_v10 = vunpack.c.l.b16 %v1747_v43 }
 0x13b   : > { %1450 = vmatmul.bf16.gmra.mxu2 %v1255_v14  ;;  %2096 = vmatmul.bf16.gmra.mxu0 %v1901_v38  ;;  %v1034_v38 = vshrl.u32 %v8870_v24, 16  ;;  %v1023_v14 = vrot.slane %v1021_v47, 4  ;;  %v1040_v47 = vshll.u32 %v740_v42, 16 }
 0x13c   : > { %v1576_v49 = vadd.f32 %v1498_v44, %v674_v59  ;;  %2185 = vmatmul.bf16.gmra.mxu1 %v1902_v17  ;;  %v675_v59 = vadd.f32 %v8841_v52, %v8617_v6  ;;  %v1032_v6 = vrot.slane %v1030_v62, 5  ;;  %v1214_v17 = vunpack.c.h.b16 %v1009_v57 }
 0x13d   : > { %v1036_v39 = vrot.slane %v1034_v38, 4  ;;  %v1027_v37 = vor.u32 %v1026_v3, %v1023_v14 }
 0x13e   : > { %1539 = vmatmul.bf16.gmra.mxu3 %v1256_v12  ;;  %v8872_v60 = vadd.f32 %v2144_v31, %v1576_v49  ;;  %v1411_v51 = vpop.f32.mrf.mxu2  ;;  %v1019_v31 = vsel %vm8558_vm4, %v1014_v32, %v1018_v15  ;;  %v1213_v49 = vunpack.c.l.b16 %v1009_v57  ;;  %v1860_v15 = vunpack.c.h.b16 %v1747_v43 }
 0x13f   : > { %v1215_v12 = vunpack.c.l.b16 %v1019_v31  ;;  %v1216_v32 = vunpack.c.h.b16 %v1019_v31  ;;  %v1037_v25 = vor.u32 %v1036_v39, %v1032_v6  ;;  %v1903_v57 = vpack.c.b16 %v1861_v27, %v1859_v10  ;;  %v8108_v10 = vld [vmem:[%s10194_s1 + $0x1c8] sm:$0xff] }
 0x140   : > { %v2059_v11 = vpop.f32.mrf.mxu0  ;;  %v1753_v31 = vrot.slane %v8870_v24, 5  ;;  %v1028_v43 = vrot.slane %v1027_v37, 4  ;;  %v8100_v24 = vld [vmem:[%s10194_s1 + $0x188] sm:$0xff]  ;;  %v1048_v37 = vshll.u32 %v741_v33, 16  ;;  %2670 = vmatpush.bf16.msra.mxu3 %v8108_v10 }
 0x141   : > { %v1500_v0 = vpop.f32.mrf.mxu3  ;;  %v2148_v58 = vpop.f32.mrf.mxu1  ;;  %v1257_v38 = vpack.c.b16 %v1215_v12, %v1213_v49  ;;  %v1038_v3 = vrot.slane %v1037_v25, 4  ;;  %v1756_v12 = vrot.slane %v740_v42, 5  ;;  %v1045_v42 = vshrl.u32 %v741_v33, 16  ;;  %2581 = vmatpush.bf16.msra.mxu2 %v8100_v24  ;;  %v743_v24 = vld [vmem:[%s8367_s18 + $0x130] sm:$0x11] }
 0x142   : > { %v1501_v9 = vadd.f32 %v1500_v0, %v1411_v51  ;;  %v2149_v44 = vadd.f32 %v2148_v58, %v2059_v11  ;;  %v1862_v51 = vunpack.c.h.b16 %v1750_v41  ;;  %v1618_v41 = vld [vmem:[%s8367_s18 + $0x108] sm:$0xee]  ;;  %v1755_v39 = vrot.slane %v1753_v31, 4 }
 0x143   : > { %v6827_v49 = vrot.slane %v1618_v41, 9  ;;  %v1050_v41 = vrot.slane %v1048_v37, 5 }
 0x144   : > { %v1577_v5 = vadd.f32 %v1501_v9, %v675_v59  ;;  %v1258_v9 = vpack.c.b16 %v1216_v32, %v1214_v17  ;;  %v1904_v11 = vpack.c.b16 %v1862_v51, %v1860_v15  ;;  %v8895_v17 = vld [vmem:[%s8367_s18 + $0x128] sm:$0xff]  ;;  %v1033_v15 = vsel %vm8558_vm4, %v1028_v43, %v1032_v6 }
 0x145   : > { %v1054_v25 = vshll.u32 %v8895_v17, 16  ;;  %v1754_v6 = vsel %vm8563_vm5, %v6827_v49, %v1753_v31  ;;  %v1047_v43 = vrot.slane %v1045_v42, 4  ;;  %v8124_v31 = vld [vmem:[%s10194_s1 + $0x248] sm:$0xff] }
 0x146   : > { %v8887_v19 = vadd.f32 %v2147_v22, %v1577_v5  ;;  %v1413_v20 = vpop.f32.mrf.mxu2  ;;  %v1042_v5 = vrot.slane %v1040_v47, 5  ;;  %v1058_v47 = vshrl.u32 %v8895_v17, 16  ;;  %3569 = vmatpush.bf16.msra.mxu1 %v8124_v31  ;;  %v744_v31 = vld [vmem:[%s8367_s18 + $0x138] sm:$0xff] }
 0x147   : > { %v1051_v42 = vor.u32 %v1050_v41, %v1047_v43 }
 0x148   : > { %v2062_v0 = vpop.f32.mrf.mxu0  ;;  %v1043_v51 = vsel %vm8558_vm4, %v1038_v3, %v1042_v5  ;;  %v1056_v5 = vrot.slane %v1054_v25, 5  ;;  %v1060_v33 = vrot.slane %v1058_v47, 4  ;;  %v1064_v47 = vshll.u32 %v743_v24, 16 }
 0x149   : > { %v1502_v62 = vpop.f32.mrf.mxu3  ;;  %v2151_v22 = vpop.f32.mrf.mxu1  ;;  %v1220_v49 = vunpack.c.h.b16 %v1043_v51 }
 0x14a   : > { %v1503_v59 = vadd.f32 %v1502_v62, %v1413_v20  ;;  %v2152_v14 = vadd.f32 %v2151_v22, %v2062_v0  ;;  %v1219_v0 = vunpack.c.l.b16 %v1043_v51  ;;  %v1061_v25 = vor.u32 %v1060_v33, %v1056_v5 }
 0x14b   : > { %1455 = vmatmul.bf16.gmra.mxu2 %v1257_v38  ;;  %2101 = vmatmul.bf16.gmra.mxu0 %v1903_v57  ;;  %v1757_v38 = vsel %vm8563_vm5, %v1755_v39, %v1756_v12  ;;  %v1864_v39 = vunpack.c.h.b16 %v1754_v6  ;;  %v1072_v33 = vshll.u32 %v744_v31, 16 }
 0x14c   : > { %v1578_v58 = vadd.f32 %v1503_v59, %v676_v46  ;;  %2190 = vmatmul.bf16.gmra.mxu1 %v1904_v11  ;;  %v1217_v59 = vunpack.c.l.b16 %v1033_v15  ;;  %v1865_v3 = vunpack.c.l.b16 %v1757_v38  ;;  %v1866_v12 = vunpack.c.h.b16 %v1757_v38 }
 0x14d   : > { %v1760_v38 = vrot.slane %v8895_v17, 5  ;;  %v1062_v43 = vrot.slane %v1061_v25, 4  ;;  %v1069_v17 = vshrl.u32 %v744_v31, 16  ;;  %v746_v31 = vld [vmem:[%s8367_s18 + $0x148] sm:$0x11] }
 0x14e   : > { %1544 = vmatmul.bf16.gmra.mxu3 %v1258_v9  ;;  %v8903_v27 = vadd.f32 %v2149_v44, %v1578_v58  ;;  %v1416_v32 = vpop.f32.mrf.mxu2  ;;  %v677_v44 = vadd.f32 %v8841_v52, %v8642_v1  ;;  %v1218_v9 = vunpack.c.h.b16 %v1033_v15  ;;  %v8116_v1 = vld [vmem:[%s10194_s1 + $0x208] sm:$0xff]  ;;  %v1863_v58 = vunpack.c.l.b16 %v1754_v6 }
 0x14f   : > { %3480 = vmatpush.bf16.msra.mxu0 %v8116_v1  ;;  %v1906_v6 = vpack.c.b16 %v1866_v12, %v1864_v39 }
 0x150   : > { %v2064_v62 = vpop.f32.mrf.mxu0 }
 0x151   : > { %v1505_v20 = vpop.f32.mrf.mxu3  ;;  %v2153_v57 = vpop.f32.mrf.mxu1 }
 0x152   : > { %v1506_v46 = vadd.f32 %v1505_v20, %v1416_v32  ;;  %v2154_v22 = vadd.f32 %v2153_v57, %v2064_v62  ;;  %v678_v32 = vadd.f32 %v8841_v52, %v8666_v28  ;;  %v1259_v20 = vpack.c.b16 %v1219_v0, %v1217_v59  ;;  %v1619_v57 = vld [vmem:[%s8367_s18 + $0x120] sm:$0xee] }
 0x153   : > { %v1260_v62 = vpack.c.b16 %v1220_v49, %v1218_v9  ;;  %v1052_v28 = vrot.slane %v1051_v42, 4  ;;  %v1066_v59 = vrot.slane %v1064_v47, 5  ;;  %v8932_v0 = vld [vmem:[%s8367_s18 + $0x140] sm:$0xff]  ;;  %v6828_v41 = vrot.slane %v1619_v57, 9 }
 0x154   : > { %v1579_v11 = vadd.f32 %v1506_v46, %v677_v44  ;;  %v1905_v44 = vpack.c.b16 %v1865_v3, %v1863_v58  ;;  %v1762_v58 = vrot.slane %v1760_v38, 4  ;;  %v1763_v9 = vrot.slane %v743_v24, 5 }
 0x155   : > { %v1057_v39 = vsel %vm8558_vm4, %v1052_v28, %v1056_v5  ;;  %v1078_v12 = vshll.u32 %v8932_v0, 16  ;;  %v1761_v24 = vsel %vm8563_vm5, %v6828_v41, %v1760_v38  ;;  %v1071_v47 = vrot.slane %v1069_v17, 4 }
 0x156   : > { %v8924_v10 = vadd.f32 %v2152_v14, %v1579_v11  ;;  %v1418_v15 = vpop.f32.mrf.mxu2  ;;  %v1764_v5 = vsel %vm8563_vm5, %v1762_v58, %v1763_v9  ;;  %v1221_v25 = vunpack.c.l.b16 %v1057_v39  ;;  %v1222_v57 = vunpack.c.h.b16 %v1057_v39 }
 0x157   : > { %v1869_v28 = vunpack.c.l.b16 %v1764_v5  ;;  %v1088_v17 = vshll.u32 %v746_v31, 16 }
 0x158   : > { %v2067_v46 = vpop.f32.mrf.mxu0 }
 0x159   : > { %v1507_v37 = vpop.f32.mrf.mxu3  ;;  %v2156_v14 = vpop.f32.mrf.mxu1 }
 0x15a   : > { %v1508_v51 = vadd.f32 %v1507_v37, %v1418_v15  ;;  %v2157_v1 = vadd.f32 %v2156_v14, %v2067_v46  ;;  %v679_v15 = vadd.f32 %v8841_v52, %v8679_v61  ;;  %v1080_v61 = vrot.slane %v1078_v12, 5 }
 0x15b   : > { %1460 = vmatmul.bf16.gmra.mxu2 %v1259_v20  ;;  %2106 = vmatmul.bf16.gmra.mxu0 %v1905_v44 }
 0x15c   : > { %v1580_v11 = vadd.f32 %v1508_v51, %v678_v32  ;;  %2195 = vmatmul.bf16.gmra.mxu1 %v1906_v6  ;;  %v1082_v32 = vshrl.u32 %v8932_v0, 16  ;;  %v1074_v51 = vrot.slane %v1072_v33, 5  ;;  %v680_v33 = vadd.f32 %v8841_v52, %v8697_v30  ;;  %v747_v30 = vld [vmem:[%s8367_s18 + $0x150] sm:$0xff] }
 0x15e   : > { %1549 = vmatmul.bf16.gmra.mxu3 %v1260_v62  ;;  %v8934_v3 = vadd.f32 %v2154_v22, %v1580_v11  ;;  %v1421_v49 = vpop.f32.mrf.mxu2  ;;  %v1067_v22 = vsel %vm8558_vm4, %v1062_v43, %v1066_v59  ;;  %v1084_v6 = vrot.slane %v1082_v32, 4  ;;  %v1867_v11 = vunpack.c.l.b16 %v1761_v24 }
 0x15f   : > { %v1223_v14 = vunpack.c.l.b16 %v1067_v22  ;;  %v1224_v43 = vunpack.c.h.b16 %v1067_v22  ;;  %v1868_v59 = vunpack.c.h.b16 %v1761_v24  ;;  %v1075_v41 = vor.u32 %v1074_v51, %v1071_v47 }
 0x160   : > { %v2069_v20 = vpop.f32.mrf.mxu0  ;;  %v1085_v9 = vor.u32 %v1084_v6, %v1080_v61  ;;  %v1907_v39 = vpack.c.b16 %v1869_v28, %v1867_v11  ;;  %v1767_v22 = vrot.slane %v8932_v0, 5  ;;  %v8099_v0 = vld [vmem:[%s10194_s1 + $0x180] sm:$0xff] }
 0x161   : > { %v1510_v42 = vpop.f32.mrf.mxu3  ;;  %v2158_v44 = vpop.f32.mrf.mxu1  ;;  %v1261_v32 = vpack.c.b16 %v1223_v14, %v1221_v25  ;;  %v1076_v24 = vrot.slane %v1075_v41, 4  ;;  %v1770_v14 = vrot.slane %v746_v31, 5  ;;  %v8107_v11 = vld [vmem:[%s10194_s1 + $0x1c0] sm:$0xff]  ;;  %v1093_v31 = vshrl.u32 %v747_v30, 16  ;;  %2582 = vmatpush.bf16.msra.mxu2 %v8099_v0 }
 0x162   : > { %v1511_v37 = vadd.f32 %v1510_v42, %v1421_v49  ;;  %v2159_v62 = vadd.f32 %v2158_v44, %v2069_v20  ;;  %v1870_v49 = vunpack.c.h.b16 %v1764_v5  ;;  %v1620_v5 = vld [vmem:[%s8367_s18 + $0x138] sm:$0xee]  ;;  %v1086_v51 = vrot.slane %v1085_v9, 4  ;;  %2671 = vmatpush.bf16.msra.mxu3 %v8107_v11  ;;  %v749_v0 = vld [vmem:[%s8367_s18 + $0x160] sm:$0x11] }
 0x163   : > { %v6829_v25 = vrot.slane %v1620_v5, 9  ;;  %v1769_v6 = vrot.slane %v1767_v22, 4  ;;  %v1096_v41 = vshll.u32 %v747_v30, 16 }
 0x164   : > { %v1581_v46 = vadd.f32 %v1511_v37, %v679_v15  ;;  %v1262_v37 = vpack.c.b16 %v1224_v43, %v1222_v57  ;;  %v1908_v20 = vpack.c.b16 %v1870_v49, %v1868_v59  ;;  %v8957_v57 = vld [vmem:[%s8367_s18 + $0x158] sm:$0xff]  ;;  %v1081_v59 = vsel %vm8558_vm4, %v1076_v24, %v1080_v61 }
 0x165   : > { %v1102_v9 = vshll.u32 %v8957_v57, 16  ;;  %v1768_v61 = vsel %vm8563_vm5, %v6829_v25, %v1767_v22  ;;  %v1095_v24 = vrot.slane %v1093_v31, 4  ;;  %v1098_v5 = vrot.slane %v1096_v41, 5  ;;  %v8123_v22 = vld [vmem:[%s10194_s1 + $0x240] sm:$0xff] }
 0x166   : > { %v8949_v38 = vadd.f32 %v2157_v1, %v1581_v46  ;;  %v1423_v58 = vpop.f32.mrf.mxu2  ;;  %v1090_v46 = vrot.slane %v1088_v17, 5  ;;  %v1106_v17 = vshrl.u32 %v8957_v57, 16  ;;  %3570 = vmatpush.bf16.msra.mxu1 %v8123_v22  ;;  %v750_v22 = vld [vmem:[%s8367_s18 + $0x168] sm:$0xff] }
 0x167   : > { %v1099_v31 = vor.u32 %v1098_v5, %v1095_v24 }
 0x168   : > { %v2072_v42 = vpop.f32.mrf.mxu0  ;;  %v1091_v49 = vsel %vm8558_vm4, %v1086_v51, %v1090_v46  ;;  %v1104_v46 = vrot.slane %v1102_v9, 5  ;;  %v1108_v30 = vrot.slane %v1106_v17, 4  ;;  %v1112_v17 = vshll.u32 %v749_v0, 16 }
 0x169   : > { %v1512_v12 = vpop.f32.mrf.mxu3  ;;  %v2161_v1 = vpop.f32.mrf.mxu1  ;;  %v1228_v25 = vunpack.c.h.b16 %v1091_v49 }
 0x16a   : > { %v1513_v15 = vadd.f32 %v1512_v12, %v1423_v58  ;;  %v2162_v47 = vadd.f32 %v2161_v1, %v2072_v42  ;;  %v1227_v42 = vunpack.c.l.b16 %v1091_v49  ;;  %v1109_v9 = vor.u32 %v1108_v30, %v1104_v46 }
 0x16b   : > { %1465 = vmatmul.bf16.gmra.mxu2 %v1261_v32  ;;  %2111 = vmatmul.bf16.gmra.mxu0 %v1907_v39  ;;  %v1771_v32 = vsel %vm8563_vm5, %v1769_v6, %v1770_v14  ;;  %v1872_v6 = vunpack.c.h.b16 %v1768_v61  ;;  %v1120_v30 = vshll.u32 %v750_v22, 16 }
 0x16c   : > { %v1582_v44 = vadd.f32 %v1513_v15, %v680_v33  ;;  %2200 = vmatmul.bf16.gmra.mxu1 %v1908_v20  ;;  %v1225_v15 = vunpack.c.l.b16 %v1081_v59  ;;  %v1873_v51 = vunpack.c.l.b16 %v1771_v32  ;;  %v1874_v14 = vunpack.c.h.b16 %v1771_v32 }
 0x16d   : > { %v1774_v32 = vrot.slane %v8957_v57, 5  ;;  %v1110_v24 = vrot.slane %v1109_v9, 4  ;;  %v1117_v57 = vshrl.u32 %v750_v22, 16  ;;  %v752_v22 = vld [vmem:[%s8367_s18 + $0x178] sm:$0x11] }
 0x16e   : > { %1554 = vmatmul.bf16.gmra.mxu3 %v1262_v37  ;;  %v8965_v28 = vadd.f32 %v2159_v62, %v1582_v44  ;;  %v1426_v43 = vpop.f32.mrf.mxu2  ;;  %v681_v62 = vadd.f32 %v8841_v52, %v8704_v4  ;;  %v1226_v37 = vunpack.c.h.b16 %v1081_v59  ;;  %v8115_v4 = vld [vmem:[%s10194_s1 + $0x200] sm:$0xff]  ;;  %v1871_v44 = vunpack.c.l.b16 %v1768_v61 }
 0x16f   : > { %3481 = vmatpush.bf16.msra.mxu0 %v8115_v4  ;;  %v1910_v61 = vpack.c.b16 %v1874_v14, %v1872_v6 }
 0x170   : > { %v2074_v12 = vpop.f32.mrf.mxu0 }
 0x171   : > { %v1515_v58 = vpop.f32.mrf.mxu3  ;;  %v2163_v39 = vpop.f32.mrf.mxu1 }
 0x172   : > { %v1516_v33 = vadd.f32 %v1515_v58, %v1426_v43  ;;  %v2164_v1 = vadd.f32 %v2163_v39, %v2074_v12  ;;  %v682_v43 = vadd.f32 %v8841_v52, %v8728_v36  ;;  %v1263_v58 = vpack.c.b16 %v1227_v42, %v1225_v15  ;;  %v1621_v39 = vld [vmem:[%s8367_s18 + $0x150] sm:$0xee] }
 0x173   : > { %v1264_v12 = vpack.c.b16 %v1228_v25, %v1226_v37  ;;  %v1100_v36 = vrot.slane %v1099_v31, 4  ;;  %v1114_v15 = vrot.slane %v1112_v17, 5  ;;  %v8994_v42 = vld [vmem:[%s8367_s18 + $0x170] sm:$0xff]  ;;  %v6830_v5 = vrot.slane %v1621_v39, 9 }
 0x174   : > { %v1583_v20 = vadd.f32 %v1516_v33, %v681_v62  ;;  %v1909_v62 = vpack.c.b16 %v1873_v51, %v1871_v44  ;;  %v1776_v44 = vrot.slane %v1774_v32, 4  ;;  %v1777_v37 = vrot.slane %v749_v0, 5 }
 0x175   : > { %v1105_v6 = vsel %vm8558_vm4, %v1100_v36, %v1104_v46  ;;  %v1126_v14 = vshll.u32 %v8994_v42, 16  ;;  %v1775_v0 = vsel %vm8563_vm5, %v6830_v5, %v1774_v32  ;;  %v1119_v17 = vrot.slane %v1117_v57, 4 }
 0x176   : > { %v8986_v11 = vadd.f32 %v2162_v47, %v1583_v20  ;;  %v1428_v59 = vpop.f32.mrf.mxu2  ;;  %v1778_v46 = vsel %vm8563_vm5, %v1776_v44, %v1777_v37  ;;  %v1229_v9 = vunpack.c.l.b16 %v1105_v6  ;;  %v1230_v39 = vunpack.c.h.b16 %v1105_v6 }
 0x177   : > { %v1877_v36 = vunpack.c.l.b16 %v1778_v46  ;;  %v1878_v32 = vunpack.c.h.b16 %v1778_v46  ;;  %v1136_v57 = vshll.u32 %v752_v22, 16  ;;  %v684_v6 = vadd.f32 %v8841_v52, %v8759_v50  ;;  %v7184_v50 = vld [vmem:[%s8367_s18 + $0x18] sm:$0xff] }
 0x178   : > { %v2077_v33 = vpop.f32.mrf.mxu0 }
 0x179   : > { %v1517_v41 = vpop.f32.mrf.mxu3  ;;  %v2166_v47 = vpop.f32.mrf.mxu1 }
 0x17a   : > { %v1518_v49 = vadd.f32 %v1517_v41, %v1428_v59  ;;  %v2167_v4 = vadd.f32 %v2166_v47, %v2077_v33  ;;  %v683_v59 = vadd.f32 %v8841_v52, %v8741_v7  ;;  %v1128_v7 = vrot.slane %v1126_v14, 5 }
 0x17b   : > { %1470 = vmatmul.bf16.gmra.mxu2 %v1263_v58  ;;  %2116 = vmatmul.bf16.gmra.mxu0 %v1909_v62  ;;  %v1781_v14 = vrot.slane %v8994_v42, 5 }
 0x17c   : > { %v1584_v20 = vadd.f32 %v1518_v49, %v682_v43  ;;  %2205 = vmatmul.bf16.gmra.mxu1 %v1910_v61  ;;  %v1130_v43 = vshrl.u32 %v8994_v42, 16  ;;  %v1122_v49 = vrot.slane %v1120_v30, 5 }
 0x17d   : > { %v1783_v42 = vrot.slane %v1781_v14, 4 }
 0x17e   : > { %1559 = vmatmul.bf16.gmra.mxu3 %v1264_v12  ;;  %v8996_v51 = vadd.f32 %v2164_v1, %v1584_v20  ;;  %v1431_v25 = vpop.f32.mrf.mxu2  ;;  %v1115_v1 = vsel %vm8558_vm4, %v1110_v24, %v1114_v15  ;;  %v1132_v61 = vrot.slane %v1130_v43, 4  ;;  %v1875_v20 = vunpack.c.l.b16 %v1775_v0 }
 0x17f   : > { %v1231_v47 = vunpack.c.l.b16 %v1115_v1  ;;  %v1232_v24 = vunpack.c.h.b16 %v1115_v1  ;;  %v1876_v15 = vunpack.c.h.b16 %v1775_v0  ;;  %v1123_v44 = vor.u32 %v1122_v49, %v1119_v17  ;;  %v1622_v0 = vld [vmem:[%s8367_s18 + $0x168] sm:$0xee] }
 0x180   : > { %v2079_v58 = vpop.f32.mrf.mxu0 }
 0x181   : > { %v1520_v31 = vpop.f32.mrf.mxu3  ;;  %v2168_v62 = vpop.f32.mrf.mxu1  ;;  %v1912_v1 = vpack.c.b16 %v1878_v32, %v1876_v15  ;;  %v1124_v46 = vrot.slane %v1123_v44, 4  ;;  %v685_v32 = vadd.f32 %v8841_v52, %v8766_v29 }
 0x182   : > { %v1521_v41 = vadd.f32 %v1520_v31, %v1431_v25  ;;  %v2169_v12 = vadd.f32 %v2168_v62, %v2079_v58  ;;  %v1133_v25 = vor.u32 %v1132_v61, %v1128_v7  ;;  %v1911_v31 = vpack.c.b16 %v1877_v36, %v1875_v20  ;;  %v7185_v36 = vld [vmem:[%s8367_s18 + $0x20] sm:$0xff] }
 0x183   : > { %v1266_v58 = vpack.c.b16 %v1232_v24, %v1230_v39  ;;  %v1784_v61 = vrot.slane %v752_v22, 5  ;;  %v8146_v39 = vld [vmem:[%s10194_s1 + $0x2f8] sm:$0xff]  ;;  %v1129_v15 = vsel %vm8558_vm4, %v1124_v46, %v1128_v7  ;;  %v2843_v7 = vshll.u32 %v7185_v36, 16 }
 0x184   : > { %v1585_v33 = vadd.f32 %v1521_v41, %v683_v59  ;;  %v1265_v59 = vpack.c.b16 %v1231_v47, %v1229_v9  ;;  %v1134_v49 = vrot.slane %v1133_v25, 4  ;;  %v6831_v9 = vrot.slane %v1622_v0, 9  ;;  %v8138_v47 = vld [vmem:[%s10194_s1 + $0x2b8] sm:$0xff]  ;;  %4206 = vmatpush.bf16.msrb.mxu3 %v8146_v39  ;;  %v7186_v39 = vld [vmem:[%s8367_s18 + $0x28] sm:$0x11] }
 0x185   : > { %4117 = vmatpush.bf16.msrb.mxu2 %v8138_v47  ;;  %v2834_v25 = vshrl.u32 %v7184_v50, 16  ;;  %v8194_v46 = vld [vmem:[%s10194_s1 + $0x378] sm:$0xff] }
 0x186   : > { %v9011_v5 = vadd.f32 %v2167_v4, %v1585_v33  ;;  %v1433_v37 = vpop.f32.mrf.mxu2  ;;  %v1138_v33 = vrot.slane %v1136_v57, 5  ;;  %4738 = vmatpush.bf16.msrb.mxu1 %v8194_v46 }
 0x188   : > { %v2082_v41 = vpop.f32.mrf.mxu0  ;;  %v1139_v22 = vsel %vm8558_vm4, %v1134_v49, %v1138_v33 }
 0x189   : > { %v1522_v30 = vpop.f32.mrf.mxu3  ;;  %v2171_v4 = vpop.f32.mrf.mxu1  ;;  %v1236_v0 = vunpack.c.h.b16 %v1139_v22 }
 0x18a   : > { %v1523_v43 = vadd.f32 %v1522_v30, %v1433_v37  ;;  %v2172_v17 = vadd.f32 %v2171_v4, %v2082_v41  ;;  %v1782_v37 = vsel %vm8563_vm5, %v6831_v9, %v1781_v14  ;;  %v1235_v41 = vunpack.c.l.b16 %v1139_v22  ;;  %v8186_v14 = vld [vmem:[%s10194_s1 + $0x338] sm:$0xff] }
 0x18b   : > { %1475 = vmatmul.bf16.gmra.mxu2 %v1265_v59  ;;  %2121 = vmatmul.bf16.gmra.mxu0 %v1911_v31  ;;  %v2837_v59 = vshll.u32 %v7184_v50, 16  ;;  %v2847_v31 = vshrl.u32 %v7185_v36, 16  ;;  %v1879_v4 = vunpack.c.l.b16 %v1782_v37  ;;  %v1880_v49 = vunpack.c.h.b16 %v1782_v37 }
 0x18c   : > { %v1586_v62 = vadd.f32 %v1523_v43, %v684_v6  ;;  %2210 = vmatmul.bf16.gmra.mxu1 %v1912_v1  ;;  %v1233_v43 = vunpack.c.l.b16 %v1129_v15  ;;  %v2836_v9 = vrot.slane %v2834_v25, 4  ;;  %4649 = vmatpush.bf16.msrb.mxu0 %v8186_v14  ;;  %v686_v36 = vadd.f32 %v8841_v52, %v8790_v8 }
 0x18d   : > { %v2849_v50 = vrot.slane %v2847_v31, 4 }
 0x18e   : > { %1564 = vmatmul.bf16.gmra.mxu3 %v1266_v58  ;;  %v9024_v20 = vadd.f32 %v2169_v12, %v1586_v62  ;;  %v1436_v24 = vpop.f32.mrf.mxu2  ;;  %v1785_v12 = vsel %vm8563_vm5, %v1783_v42, %v1784_v61  ;;  %v1234_v58 = vunpack.c.h.b16 %v1129_v15  ;;  %v2839_v42 = vrot.slane %v2837_v59, 5 }
 0x18f   : > { %v1881_v62 = vunpack.c.l.b16 %v1785_v12  ;;  %v1882_v33 = vunpack.c.h.b16 %v1785_v12  ;;  %v2845_v61 = vrot.slane %v2843_v7, 5  ;;  %v1267_v22 = vpack.c.b16 %v1235_v41, %v1233_v43 }
 0x190   : > { %v2084_v30 = vpop.f32.mrf.mxu0  ;;  %v2853_v59 = vshll.u32 %v7186_v39, 16 }
 0x191   : > { %v1525_v44 = vpop.f32.mrf.mxu3  ;;  %v2173_v6 = vpop.f32.mrf.mxu1  ;;  %v1914_v37 = vpack.c.b16 %v1882_v33, %v1880_v49  ;;  %v687_v33 = vadd.f32 %v8841_v52, %v8803_v54 }
 0x192   : > { %v1526_v57 = vadd.f32 %v1525_v44, %v1436_v24  ;;  %v2174_v29 = vadd.f32 %v2173_v6, %v2084_v30  ;;  %v1913_v44 = vpack.c.b16 %v1881_v62, %v1879_v4  ;;  %v2850_v30 = vor.u32 %v2849_v50, %v2845_v61  ;;  %v7187_v6 = vld [vmem:[%s8367_s18 + $0x30] sm:$0xff] }
 0x193   : > { %v2855_v43 = vrot.slane %v2853_v59, 5 }
 0x194   : > { %v1587_v1 = vadd.f32 %v1526_v57, %v685_v32  ;;  %v1268_v32 = vpack.c.b16 %v1236_v0, %v1234_v58  ;;  %v2840_v57 = vor.u32 %v2839_v42, %v2836_v9  ;;  %v2851_v14 = vrot.slane %v2850_v30, 4 }
 0x195   : > { %v2858_v58 = vshrl.u32 %v7187_v6, 16  ;;  %v2861_v0 = vshll.u32 %v7187_v6, 16 }
 0x196   : > { %v9043_v47 = vadd.f32 %v2172_v17, %v1587_v1  ;;  %v1438_v24 = vpop.f32.mrf.mxu2  ;;  %v7188_v1 = vld [vmem:[%s8367_s18 + $0x38] sm:$0xff]  ;;  %v2841_v8 = vrot.slane %v2840_v57, 4  ;;  %v8068_v57 = vld [vmem:[%s8367_s18 + $0x1c] sm:$0xf0] }
 0x197   : > { %v2867_v46 = vshll.u32 %v7188_v1, 16  ;;  %v2871_v62 = vshrl.u32 %v7188_v1, 16 }
 0x198   : > { %v2087_v25 = vpop.f32.mrf.mxu0  ;;  %v2846_v50 = vsel %vm8558_vm4, %v2841_v8, %v2845_v61 }
 0x199   : > { %v1527_v15 = vpop.f32.mrf.mxu3  ;;  %v2176_v7 = vpop.f32.mrf.mxu1  ;;  %v3251_v30 = vunpack.c.h.b16 %v2846_v50 }
 0x19a   : > { %v1528_v12 = vadd.f32 %v1527_v15, %v1438_v24  ;;  %v2177_v31 = vadd.f32 %v2176_v7, %v2087_v25  ;;  %v2863_v24 = vrot.slane %v2861_v0, 5  ;;  %v6994_v25 = vld [vmem:[%s8367_s18 + $0x18] sm:$0xf]  ;;  %v8067_v7 = vld [vmem:[%s8367_s18 + $0x1c] sm:$0xf] }
 0x19b   : > { %1480 = vmatmul.bf16.gmra.mxu2 %v1267_v22  ;;  %2126 = vmatmul.bf16.gmra.mxu0 %v1913_v44  ;;  %v2873_v44 = vrot.slane %v2871_v62, 4 }
 0x19c   : > { %v1588_v17 = vadd.f32 %v1528_v12, %v686_v36  ;;  %2215 = vmatmul.bf16.gmra.mxu1 %v1914_v37  ;;  %v2860_v36 = vrot.slane %v2858_v58, 4  ;;  %v3250_v37 = vunpack.c.l.b16 %v2846_v50  ;;  %v7189_v12 = vld [vmem:[%s8367_s18 + $0x40] sm:$0x11]  ;;  %v6995_v58 = vor.u32 %v8068_v57, %v6994_v25 }
 0x19e   : > { %1569 = vmatmul.bf16.gmra.mxu3 %v1268_v32  ;;  %v9050_v41 = vadd.f32 %v2174_v29, %v1588_v17  ;;  %v1441_v4 = vpop.f32.mrf.mxu2  ;;  %v2856_v29 = vsel %vm8558_vm4, %v2851_v14, %v2855_v43  ;;  %v2869_v32 = vrot.slane %v2867_v46, 5  ;;  %v6996_v17 = vld [vmem:[%s8367_s18 + $0x20] sm:$0xf0]  ;;  %v2864_v6 = vor.u32 %v2863_v24, %v2860_v36  ;;  %v7190_v36 = vld [vmem:[%s8367_s18 + $0x48] sm:$0xff]  ;;  %v7191_v24 = vld [vmem:[%s8367_s18 + $0x50] sm:$0xff] }
 0x19f   : > { %v3252_v54 = vunpack.c.l.b16 %v2856_v29  ;;  %v3253_v59 = vunpack.c.h.b16 %v2856_v29  ;;  %v2877_v14 = vshll.u32 %v7189_v12, 16  ;;  %v2882_v57 = vshrl.u32 %v7190_v36, 16 }
 0x1a0   : > { %v2089_v42 = vpop.f32.mrf.mxu0  ;;  %v2874_v8 = vor.u32 %v2873_v44, %v2869_v32 }
 0x1a1   : > { %v1530_v49 = vpop.f32.mrf.mxu3  ;;  %v2178_v39 = vpop.f32.mrf.mxu1  ;;  %v3314_v0 = vpack.c.b16 %v3252_v54, %v3250_v37 }
 0x1a2   : > { %v1531_v9 = vadd.f32 %v1530_v49, %v1441_v4  ;;  %v2179_v22 = vadd.f32 %v2178_v39, %v2089_v42  ;;  %v688_v4 = vadd.f32 %v8841_v52, %v8821_v13  ;;  %v6999_v49 = vor.u32 %v8067_v7, %v6996_v17  ;;  %v8137_v13 = vld [vmem:[%s10194_s1 + $0x2b0] sm:$0xff] }
 0x1a3   : > { %v2875_v29 = vrot.slane %v2874_v8, 4  ;;  %v2879_v39 = vrot.slane %v2877_v14, 5  ;;  %4118 = vmatpush.bf16.msrb.mxu2 %v8137_v13  ;;  %v2895_v7 = vshrl.u32 %v7191_v24, 16  ;;  %v7002_v14 = vld [vmem:[%s8367_s18 + $0x30] sm:$0xf] }
 0x1a4   : > { %v1589_v15 = vadd.f32 %v1531_v9, %v687_v33  ;;  %v3315_v33 = vpack.c.b16 %v3253_v59, %v3251_v30  ;;  %v2865_v9 = vrot.slane %v2864_v6, 4  ;;  %v2885_v30 = vshll.u32 %v7190_v36, 16 }
 0x1a5   : > { %v2880_v12 = vsel %vm8558_vm4, %v2875_v29, %v2879_v39  ;;  %v2891_v59 = vshll.u32 %v7191_v24, 16  ;;  %v8069_v29 = vld [vmem:[%s8367_s18 + $0x34] sm:$0xf]  ;;  %v7004_v39 = vld [vmem:[%s8367_s18 + $0x38] sm:$0xf0] }
 0x1a6   : > { %v9061_v61 = vadd.f32 %v2177_v31, %v1589_v15  ;;  %v1443_v1 = vpop.f32.mrf.mxu2  ;;  %v8145_v15 = vld [vmem:[%s10194_s1 + $0x2f0] sm:$0xff]  ;;  %v2870_v54 = vsel %vm8558_vm4, %v2865_v9, %v2869_v32  ;;  %v7192_v9 = vld [vmem:[%s8367_s18 + $0x58] sm:$0x11] }
 0x1a7   : > { %4207 = vmatpush.bf16.msrb.mxu3 %v8145_v15 }
 0x1a8   : > { %v2092_v62 = vpop.f32.mrf.mxu0 }
 0x1a9   : > { %v1532_v43 = vpop.f32.mrf.mxu3  ;;  %v2181_v31 = vpop.f32.mrf.mxu1 }
 0x1aa   : > { %v1533_v46 = vadd.f32 %v1532_v43, %v1443_v1  ;;  %v2182_v50 = vadd.f32 %v2181_v31, %v2092_v62  ;;  %v3254_v43 = vunpack.c.l.b16 %v2870_v54  ;;  %v2893_v62 = vrot.slane %v2891_v59, 5 }
 0x1ab   : > { %2583 = vmatmul.bf16.vlgmr.msra.gmra.mxu2 %v6995_v58  ;;  %3482 = vmatmul.bf16.vlgmr.msra.gmra.mxu0 %v3314_v0  ;;  %v3256_v58 = vunpack.c.l.b16 %v2880_v12  ;;  %v8185_v0 = vld [vmem:[%s10194_s1 + $0x330] sm:$0xff]  ;;  %v3257_v31 = vunpack.c.h.b16 %v2880_v12 }
 0x1ac   : > { %v1590_v42 = vadd.f32 %v1533_v46, %v688_v4  ;;  %3571 = vmatmul.bf16.vlgmr.msra.gmra.mxu1 %v3315_v33  ;;  %v8193_v4 = vld [vmem:[%s10194_s1 + $0x370] sm:$0xff]  ;;  %v2887_v46 = vrot.slane %v2885_v30, 5  ;;  %v3255_v33 = vunpack.c.h.b16 %v2870_v54  ;;  %4650 = vmatpush.bf16.msrb.mxu0 %v8185_v0  ;;  %v7007_v30 = vor.u32 %v8069_v29, %v7004_v39 }
 0x1ad   : > { %4739 = vmatpush.bf16.msrb.mxu1 %v8193_v4  ;;  %v3316_v15 = vpack.c.b16 %v3256_v58, %v3254_v43  ;;  %v7193_v43 = vld [vmem:[%s8367_s18 + $0x60] sm:$0xff] }
 0x1ae   : > { %2672 = vmatmul.bf16.vlgmr.msra.gmra.mxu3 %v6999_v49  ;;  %v9075_v44 = vadd.f32 %v2179_v22, %v1590_v42  ;;  %v1446_v37 = vpop.f32.mrf.mxu2  ;;  %v689_v22 = vadd.f32 %v8841_v52, %v8602_v35  ;;  %v8070_v35 = vld [vmem:[%s8367_s18 + $0x34] sm:$0xf0]  ;;  %v2884_v52 = vrot.slane %v2882_v57, 4  ;;  %v2897_v49 = vrot.slane %v2895_v7, 4  ;;  %v9099_v57 = vld [vmem:[%s10195_s2] ss:$0 sm:$0xff] }
 0x1af   : > { %v7003_v24 = vor.u32 %v8070_v35, %v7002_v14  ;;  %v690_v54 = vadd.f32 %v9099_v57, %v8613_v63  ;;  %v3317_v59 = vpack.c.b16 %v3257_v31, %v3255_v33  ;;  %v7194_v63 = vld [vmem:[%s8367_s18 + $0x68] sm:$0xff]  ;;  %v691_v4 = vadd.f32 %v9099_v57, %v8627_v23 }
 0x1b0   : > { %v2094_v6 = vpop.f32.mrf.mxu0  ;;  %v2909_v31 = vshll.u32 %v7193_v43, 16  ;;  %v2919_v29 = vshrl.u32 %v7194_v63, 16  ;;  %v7010_v23 = vld [vmem:[%s8367_s18 + $0x48] sm:$0xf] }
 0x1b1   : > { %v1535_v25 = vpop.f32.mrf.mxu3  ;;  %v2183_v1 = vpop.f32.mrf.mxu1 }
 0x1b2   : > { %v1536_v17 = vadd.f32 %v1535_v25, %v1446_v37  ;;  %v2184_v32 = vadd.f32 %v2183_v1, %v2094_v6  ;;  %v2888_v37 = vor.u32 %v2887_v46, %v2884_v52  ;;  %v2898_v25 = vor.u32 %v2897_v49, %v2893_v62 }
 0x1b3   : > { %v2906_v49 = vshrl.u32 %v7193_v43, 16 }
 0x1b4   : > { %v1591_v8 = vadd.f32 %v1536_v17, %v689_v22  ;;  %v2901_v22 = vshll.u32 %v7192_v9, 16  ;;  %v2889_v1 = vrot.slane %v2888_v37, 4  ;;  %v2915_v9 = vshll.u32 %v7194_v63, 16  ;;  %v8071_v37 = vld [vmem:[%s8367_s18 + $0x4c] sm:$0xf] }
 0x1b6   : > { %v9092_v42 = vadd.f32 %v2182_v50, %v1591_v8  ;;  %v1448_v36 = vpop.f32.mrf.mxu2  ;;  %v2899_v8 = vrot.slane %v2898_v25, 4  ;;  %v2903_v14 = vrot.slane %v2901_v22, 5  ;;  %v2894_v52 = vsel %vm8558_vm4, %v2889_v1, %v2893_v62 }
 0x1b7   : > { %v3259_v62 = vunpack.c.h.b16 %v2894_v52  ;;  %v692_v1 = vadd.f32 %v9099_v57, %v8640_v56 }
 0x1b8   : > { %v2097_v12 = vpop.f32.mrf.mxu0  ;;  %v2904_v46 = vsel %vm8558_vm4, %v2899_v8, %v2903_v14 }
 0x1b9   : > { %v1537_v13 = vpop.f32.mrf.mxu3  ;;  %v2186_v7 = vpop.f32.mrf.mxu1  ;;  %v3260_v25 = vunpack.c.l.b16 %v2904_v46  ;;  %v3261_v22 = vunpack.c.h.b16 %v2904_v46 }
 0x1ba   : > { %v1538_v50 = vadd.f32 %v1537_v13, %v1448_v36  ;;  %v2187_v6 = vadd.f32 %v2186_v7, %v2097_v12  ;;  %v3258_v13 = vunpack.c.l.b16 %v2894_v52  ;;  %v2911_v12 = vrot.slane %v2909_v31, 5 }
 0x1bb   : > { %2588 = vmatmul.bf16.gmra.mxu2 %v7003_v24  ;;  %3487 = vmatmul.bf16.gmra.mxu0 %v3316_v15  ;;  %v8072_v15 = vld [vmem:[%s8367_s18 + $0x4c] sm:$0xf0] }
 0x1bc   : > { %v1592_v17 = vadd.f32 %v1538_v50, %v690_v54  ;;  %3576 = vmatmul.bf16.gmra.mxu1 %v3317_v59  ;;  %v2908_v54 = vrot.slane %v2906_v49, 4  ;;  %v7012_v50 = vld [vmem:[%s8367_s18 + $0x50] sm:$0xf0]  ;;  %v2921_v59 = vrot.slane %v2919_v29, 4  ;;  %v7011_v43 = vor.u32 %v8072_v15, %v7010_v23  ;;  %v7197_v29 = vld [vmem:[%s8367_s18 + $0x80] sm:$0xff]  ;;  %v8136_v23 = vld [vmem:[%s10194_s1 + $0x2a8] sm:$0xff] }
 0x1bd   : > { %v7015_v63 = vor.u32 %v8071_v37, %v7012_v50  ;;  %4119 = vmatpush.bf16.msrb.mxu2 %v8136_v23 }
 0x1be   : > { %2677 = vmatmul.bf16.gmra.mxu3 %v7007_v30  ;;  %v9104_v58 = vadd.f32 %v2184_v32, %v1592_v17  ;;  %v1451_v0 = vpop.f32.mrf.mxu2  ;;  %v2917_v30 = vrot.slane %v2915_v9, 5  ;;  %v7195_v17 = vld [vmem:[%s8367_s18 + $0x70] sm:$0x11]  ;;  %v2912_v46 = vor.u32 %v2911_v12, %v2908_v54  ;;  %v7196_v9 = vld [vmem:[%s8367_s18 + $0x78] sm:$0xff]  ;;  %v2943_v54 = vshrl.u32 %v7197_v29, 16 }
 0x1bf   : > { %v2930_v37 = vshrl.u32 %v7196_v9, 16  ;;  %v693_v12 = vadd.f32 %v9099_v57, %v8664_v21 }
 0x1c0   : > { %v2099_v32 = vpop.f32.mrf.mxu0  ;;  %v2922_v49 = vor.u32 %v2921_v59, %v2917_v30  ;;  %v2913_v56 = vrot.slane %v2912_v46, 4  ;;  %v2945_v21 = vrot.slane %v2943_v54, 4  ;;  %v694_v54 = vadd.f32 %v9099_v57, %v8675_v53 }
 0x1c1   : > { %v1540_v35 = vpop.f32.mrf.mxu3  ;;  %v2188_v39 = vpop.f32.mrf.mxu1 }
 0x1c2   : > { %v1541_v33 = vadd.f32 %v1540_v35, %v1451_v0  ;;  %v2189_v24 = vadd.f32 %v2188_v39, %v2099_v32  ;;  %v3318_v0 = vpack.c.b16 %v3260_v25, %v3258_v13  ;;  %v2923_v39 = vrot.slane %v2922_v49, 4  ;;  %v8144_v13 = vld [vmem:[%s10194_s1 + $0x2e8] sm:$0xff] }
 0x1c3   : > { %v2933_v25 = vshll.u32 %v7196_v9, 16  ;;  %4208 = vmatpush.bf16.msrb.mxu3 %v8144_v13  ;;  %v7198_v49 = vld [vmem:[%s8367_s18 + $0x88] sm:$0x11] }
 0x1c4   : > { %v1593_v36 = vadd.f32 %v1541_v33, %v691_v4  ;;  %v3319_v4 = vpack.c.b16 %v3261_v22, %v3259_v62  ;;  %v2925_v33 = vshll.u32 %v7195_v17, 16  ;;  %v2939_v22 = vshll.u32 %v7197_v29, 16 }
 0x1c6   : > { %v9117_v7 = vadd.f32 %v2187_v6, %v1593_v36  ;;  %v1453_v8 = vpop.f32.mrf.mxu2  ;;  %v2927_v36 = vrot.slane %v2925_v33, 5  ;;  %v7018_v33 = vld [vmem:[%s8367_s18 + $0x60] sm:$0xf] }
 0x1c8   : > { %v2102_v52 = vpop.f32.mrf.mxu0 }
 0x1c9   : > { %v1542_v14 = vpop.f32.mrf.mxu3  ;;  %v2191_v32 = vpop.f32.mrf.mxu1 }
 0x1ca   : > { %v1543_v35 = vadd.f32 %v1542_v14, %v1453_v8  ;;  %v2192_v31 = vadd.f32 %v2191_v32, %v2102_v52  ;;  %v2932_v14 = vrot.slane %v2930_v37, 4  ;;  %v8074_v32 = vld [vmem:[%s8367_s18 + $0x64] sm:$0xf0]  ;;  %v2949_v37 = vshll.u32 %v7198_v49, 16 }
 0x1cb   : > { %2593 = vmatmul.bf16.gmra.mxu2 %v7011_v43  ;;  %3492 = vmatmul.bf16.gmra.mxu0 %v3318_v0  ;;  %v2935_v43 = vrot.slane %v2933_v25, 5 }
 0x1cc   : > { %v1594_v6 = vadd.f32 %v1543_v35, %v692_v1  ;;  %3581 = vmatmul.bf16.gmra.mxu1 %v3319_v4  ;;  %v2928_v1 = vsel %vm8558_vm4, %v2923_v39, %v2927_v36  ;;  %v2941_v4 = vrot.slane %v2939_v22, 5  ;;  %v8184_v35 = vld [vmem:[%s10194_s1 + $0x328] sm:$0xff] }
 0x1cd   : > { %v3264_v46 = vunpack.c.l.b16 %v2928_v1  ;;  %v3265_v9 = vunpack.c.h.b16 %v2928_v1  ;;  %4651 = vmatpush.bf16.msrb.mxu0 %v8184_v35  ;;  %v7020_v39 = vld [vmem:[%s8367_s18 + $0x68] sm:$0xf0]  ;;  %v2936_v36 = vor.u32 %v2935_v43, %v2932_v14  ;;  %v2951_v43 = vrot.slane %v2949_v37, 5 }
 0x1ce   : > { %2682 = vmatmul.bf16.gmra.mxu3 %v7015_v63  ;;  %v9130_v15 = vadd.f32 %v2189_v24, %v1594_v6  ;;  %v1456_v62 = vpop.f32.mrf.mxu2  ;;  %v2918_v24 = vsel %vm8558_vm4, %v2913_v56, %v2917_v30  ;;  %v8192_v30 = vld [vmem:[%s10194_s1 + $0x368] sm:$0xff]  ;;  %v8073_v56 = vld [vmem:[%s8367_s18 + $0x64] sm:$0xf]  ;;  %v2946_v13 = vor.u32 %v2945_v21, %v2941_v4  ;;  %v7200_v21 = vld [vmem:[%s8367_s18 + $0x98] sm:$0xff] }
 0x1cf   : > { %v3262_v52 = vunpack.c.l.b16 %v2918_v24  ;;  %v3263_v6 = vunpack.c.h.b16 %v2918_v24  ;;  %4740 = vmatpush.bf16.msrb.mxu1 %v8192_v30  ;;  %v2937_v24 = vrot.slane %v2936_v36, 4 }
 0x1d0   : > { %v2104_v17 = vpop.f32.mrf.mxu0  ;;  %v2947_v14 = vrot.slane %v2946_v13, 4 }
 0x1d1   : > { %v1545_v50 = vpop.f32.mrf.mxu3  ;;  %v2193_v8 = vpop.f32.mrf.mxu1  ;;  %v3320_v22 = vpack.c.b16 %v3264_v46, %v3262_v52  ;;  %v2942_v30 = vsel %vm8558_vm4, %v2937_v24, %v2941_v4  ;;  %v7028_v24 = vld [vmem:[%s8367_s18 + $0x80] sm:$0xf0] }
 0x1d2   : > { %v1546_v59 = vadd.f32 %v1545_v50, %v1456_v62  ;;  %v2194_v0 = vadd.f32 %v2193_v8, %v2104_v17  ;;  %v7019_v62 = vor.u32 %v8074_v32, %v7018_v33  ;;  %v3321_v17 = vpack.c.b16 %v3265_v9, %v3263_v6 }
 0x1d3   : > { %v2952_v52 = vsel %vm8558_vm4, %v2947_v14, %v2951_v43  ;;  %v2963_v32 = vshll.u32 %v7200_v21, 16  ;;  %v2967_v6 = vshrl.u32 %v7200_v21, 16  ;;  %v695_v9 = vadd.f32 %v9099_v57, %v8689_v16 }
 0x1d4   : > { %v1595_v63 = vadd.f32 %v1546_v59, %v693_v12  ;;  %v7023_v59 = vor.u32 %v8073_v56, %v7020_v39  ;;  %v3266_v13 = vunpack.c.l.b16 %v2942_v30  ;;  %v3268_v37 = vunpack.c.l.b16 %v2952_v52 }
 0x1d6   : > { %v9147_v29 = vadd.f32 %v2192_v31, %v1595_v63  ;;  %v1458_v23 = vpop.f32.mrf.mxu2  ;;  %v7199_v63 = vld [vmem:[%s8367_s18 + $0x90] sm:$0xff] }
 0x1d7   : > { %v2954_v49 = vshrl.u32 %v7199_v63, 16  ;;  %v2957_v33 = vshll.u32 %v7199_v63, 16  ;;  %v3322_v63 = vpack.c.b16 %v3268_v37, %v3266_v13  ;;  %v7203_v37 = vld [vmem:[%s8367_s18 + $0xb0] sm:$0xff] }
 0x1d8   : > { %v2107_v12 = vpop.f32.mrf.mxu0 }
 0x1d9   : > { %v1547_v25 = vpop.f32.mrf.mxu3  ;;  %v2196_v31 = vpop.f32.mrf.mxu1 }
 0x1da   : > { %v1548_v50 = vadd.f32 %v1547_v25, %v1458_v23  ;;  %v2197_v8 = vadd.f32 %v2196_v31, %v2107_v12  ;;  %v7026_v23 = vld [vmem:[%s8367_s18 + $0x78] sm:$0xf]  ;;  %v8076_v25 = vld [vmem:[%s8367_s18 + $0x7c] sm:$0xf0]  ;;  %v3267_v12 = vunpack.c.h.b16 %v2942_v30  ;;  %v8075_v31 = vld [vmem:[%s8367_s18 + $0x7c] sm:$0xf] }
 0x1db   : > { %2598 = vmatmul.bf16.gmra.mxu2 %v7019_v62  ;;  %3497 = vmatmul.bf16.gmra.mxu0 %v3320_v22  ;;  %v2956_v62 = vrot.slane %v2954_v49, 4  ;;  %v2959_v22 = vrot.slane %v2957_v33, 5  ;;  %v7027_v14 = vor.u32 %v8076_v25, %v7026_v23  ;;  %v696_v49 = vadd.f32 %v9099_v57, %v8702_v55  ;;  %v8135_v55 = vld [vmem:[%s10194_s1 + $0x2a0] sm:$0xff] }
 0x1dc   : > { %v1596_v1 = vadd.f32 %v1548_v50, %v694_v54  ;;  %3586 = vmatmul.bf16.gmra.mxu1 %v3321_v17  ;;  %v2965_v54 = vrot.slane %v2963_v32, 5  ;;  %v2969_v50 = vrot.slane %v2967_v6, 4  ;;  %v7201_v17 = vld [vmem:[%s8367_s18 + $0xa0] sm:$0x11]  ;;  %v7031_v30 = vor.u32 %v8075_v31, %v7028_v24  ;;  %4120 = vmatpush.bf16.msrb.mxu2 %v8135_v55 }
 0x1dd   : > { %v2960_v21 = vor.u32 %v2959_v22, %v2956_v62  ;;  %v8143_v23 = vld [vmem:[%s10194_s1 + $0x2e0] sm:$0xff]  ;;  %v697_v62 = vadd.f32 %v9099_v57, %v8726_v26  ;;  %v2987_v24 = vshll.u32 %v7203_v37, 16  ;;  %v7034_v26 = vld [vmem:[%s8367_s18 + $0x90] sm:$0xf]  ;;  %v698_v55 = vadd.f32 %v9099_v57, %v8737_v2 }
 0x1de   : > { %2687 = vmatmul.bf16.gmra.mxu3 %v7023_v59  ;;  %v9155_v35 = vadd.f32 %v2194_v0, %v1596_v1  ;;  %v1461_v53 = vpop.f32.mrf.mxu2  ;;  %v3269_v59 = vunpack.c.h.b16 %v2952_v52 }
 0x1df   : > { %4209 = vmatpush.bf16.msrb.mxu3 %v8143_v23 }
 0x1e0   : > { %v2109_v0 = vpop.f32.mrf.mxu0  ;;  %v3323_v52 = vpack.c.b16 %v3269_v59, %v3267_v12 }
 0x1e1   : > { %v1550_v46 = vpop.f32.mrf.mxu3  ;;  %v2198_v39 = vpop.f32.mrf.mxu1 }
 0x1e2   : > { %v1551_v56 = vadd.f32 %v1550_v46, %v1461_v53  ;;  %v2199_v4 = vadd.f32 %v2198_v39, %v2109_v0  ;;  %v2970_v53 = vor.u32 %v2969_v50, %v2965_v54  ;;  %v2973_v46 = vshll.u32 %v7201_v17, 16 }
 0x1e4   : > { %v1597_v36 = vadd.f32 %v1551_v56, %v695_v9  ;;  %v2961_v56 = vrot.slane %v2960_v21, 4  ;;  %v2971_v0 = vrot.slane %v2970_v53, 4  ;;  %v2975_v39 = vrot.slane %v2973_v46, 5  ;;  %v8191_v53 = vld [vmem:[%s10194_s1 + $0x360] sm:$0xff]  ;;  %v8078_v46 = vld [vmem:[%s8367_s18 + $0x94] sm:$0xf0] }
 0x1e5   : > { %4741 = vmatpush.bf16.msrb.mxu1 %v8191_v53 }
 0x1e6   : > { %v9166_v16 = vadd.f32 %v2197_v8, %v1597_v36  ;;  %v1463_v1 = vpop.f32.mrf.mxu2  ;;  %v7202_v36 = vld [vmem:[%s8367_s18 + $0xa8] sm:$0xff]  ;;  %v2966_v50 = vsel %vm8558_vm4, %v2961_v56, %v2965_v54  ;;  %v2976_v12 = vsel %vm8558_vm4, %v2971_v0, %v2975_v39  ;;  %v8183_v54 = vld [vmem:[%s10194_s1 + $0x320] sm:$0xff]  ;;  %v2989_v56 = vrot.slane %v2987_v24, 5 }
 0x1e7   : > { %v2978_v59 = vshrl.u32 %v7202_v36, 16  ;;  %v2981_v31 = vshll.u32 %v7202_v36, 16  ;;  %v3270_v21 = vunpack.c.l.b16 %v2966_v50  ;;  %4652 = vmatpush.bf16.msrb.mxu0 %v8183_v54  ;;  %v7204_v36 = vld [vmem:[%s8367_s18 + $0xb8] sm:$0x11] }
 0x1e8   : > { %v2112_v32 = vpop.f32.mrf.mxu0 }
 0x1e9   : > { %v1552_v43 = vpop.f32.mrf.mxu3  ;;  %v2201_v8 = vpop.f32.mrf.mxu1 }
 0x1ea   : > { %v1553_v33 = vadd.f32 %v1552_v43, %v1463_v1  ;;  %v2202_v9 = vadd.f32 %v2201_v8, %v2112_v32  ;;  %v2991_v1 = vshrl.u32 %v7203_v37, 16  ;;  %v3271_v32 = vunpack.c.h.b16 %v2966_v50  ;;  %v7036_v8 = vld [vmem:[%s8367_s18 + $0x98] sm:$0xf0] }
 0x1eb   : > { %2603 = vmatmul.bf16.gmra.mxu2 %v7027_v14  ;;  %3502 = vmatmul.bf16.gmra.mxu0 %v3322_v63 }
 0x1ec   : > { %v1598_v6 = vadd.f32 %v1553_v33, %v696_v49  ;;  %3591 = vmatmul.bf16.gmra.mxu1 %v3323_v52  ;;  %v8077_v49 = vld [vmem:[%s8367_s18 + $0x94] sm:$0xf]  ;;  %v3272_v33 = vunpack.c.l.b16 %v2976_v12  ;;  %v2980_v52 = vrot.slane %v2978_v59, 4  ;;  %v2993_v0 = vrot.slane %v2991_v1, 4 }
 0x1ee   : > { %2692 = vmatmul.bf16.gmra.mxu3 %v7031_v30  ;;  %v9179_v13 = vadd.f32 %v2199_v4, %v1598_v6  ;;  %v1466_v25 = vpop.f32.mrf.mxu2  ;;  %v3273_v30 = vunpack.c.h.b16 %v2976_v12  ;;  %v2983_v6 = vrot.slane %v2981_v31, 5  ;;  %v2997_v31 = vshll.u32 %v7204_v36, 16 }
 0x1f0   : > { %v2114_v17 = vpop.f32.mrf.mxu0  ;;  %v3325_v50 = vpack.c.b16 %v3273_v30, %v3271_v32 }
 0x1f1   : > { %v1555_v22 = vpop.f32.mrf.mxu3  ;;  %v2203_v14 = vpop.f32.mrf.mxu1 }
 0x1f2   : > { %v1556_v4 = vadd.f32 %v1555_v22, %v1466_v25  ;;  %v2204_v63 = vadd.f32 %v2203_v14, %v2114_v17  ;;  %v7035_v25 = vor.u32 %v8078_v46, %v7034_v26  ;;  %v3324_v22 = vpack.c.b16 %v3272_v33, %v3270_v21  ;;  %v7205_v14 = vld [vmem:[%s8367_s18 + $0xc0] sm:$0xff] }
 0x1f3   : > { %v2994_v17 = vor.u32 %v2993_v0, %v2989_v56  ;;  %v2999_v26 = vrot.slane %v2997_v31, 5  ;;  %v3002_v21 = vshrl.u32 %v7205_v14, 16  ;;  %v3005_v46 = vshll.u32 %v7205_v14, 16 }
 0x1f4   : > { %v1599_v43 = vadd.f32 %v1556_v4, %v697_v62  ;;  %v7039_v62 = vor.u32 %v8077_v49, %v7036_v8  ;;  %v2984_v4 = vor.u32 %v2983_v6, %v2980_v52  ;;  %v699_v52 = vadd.f32 %v9099_v57, %v8751_v34 }
 0x1f5   : > { %v2995_v54 = vrot.slane %v2994_v17, 4 }
 0x1f6   : > { %v9198_v39 = vadd.f32 %v2202_v9, %v1599_v43  ;;  %v1468_v23 = vpop.f32.mrf.mxu2  ;;  %v7206_v43 = vld [vmem:[%s8367_s18 + $0xc8] sm:$0xff]  ;;  %v2985_v2 = vrot.slane %v2984_v4, 4  ;;  %v8080_v4 = vld [vmem:[%s8367_s18 + $0xac] sm:$0xf0] }
 0x1f7   : > { %v3011_v33 = vshll.u32 %v7206_v43, 16  ;;  %v3015_v32 = vshrl.u32 %v7206_v43, 16 }
 0x1f8   : > { %v2117_v59 = vpop.f32.mrf.mxu0  ;;  %v2990_v0 = vsel %vm8558_vm4, %v2985_v2, %v2989_v56 }
 0x1f9   : > { %v1557_v37 = vpop.f32.mrf.mxu3  ;;  %v2206_v24 = vpop.f32.mrf.mxu1  ;;  %v3275_v17 = vunpack.c.h.b16 %v2990_v0 }
 0x1fa   : > { %v1558_v12 = vadd.f32 %v1557_v37, %v1468_v23  ;;  %v2207_v1 = vadd.f32 %v2206_v24, %v2117_v59  ;;  %v3007_v23 = vrot.slane %v3005_v46, 5  ;;  %v7042_v59 = vld [vmem:[%s8367_s18 + $0xa8] sm:$0xf]  ;;  %v8079_v24 = vld [vmem:[%s8367_s18 + $0xac] sm:$0xf] }
 0x1fb   : > { %2608 = vmatmul.bf16.gmra.mxu2 %v7035_v25  ;;  %3507 = vmatmul.bf16.gmra.mxu0 %v3324_v22  ;;  %v3017_v22 = vrot.slane %v3015_v32, 4 }
 0x1fc   : > { %v1600_v9 = vadd.f32 %v1558_v12, %v698_v55  ;;  %3596 = vmatmul.bf16.gmra.mxu1 %v3325_v50  ;;  %v3004_v55 = vrot.slane %v3002_v21, 4  ;;  %v3274_v50 = vunpack.c.l.b16 %v2990_v0  ;;  %v7207_v12 = vld [vmem:[%s8367_s18 + $0xd0] sm:$0x11]  ;;  %v7043_v21 = vor.u32 %v8080_v4, %v7042_v59 }
 0x1fe   : > { %2697 = vmatmul.bf16.gmra.mxu3 %v7039_v62  ;;  %v9205_v53 = vadd.f32 %v2204_v63, %v1600_v9  ;;  %v1471_v49 = vpop.f32.mrf.mxu2  ;;  %v3000_v63 = vsel %vm8558_vm4, %v2995_v54, %v2999_v26  ;;  %v3013_v62 = vrot.slane %v3011_v33, 5  ;;  %v7044_v9 = vld [vmem:[%s8367_s18 + $0xb0] sm:$0xf0]  ;;  %v3008_v14 = vor.u32 %v3007_v23, %v3004_v55  ;;  %v7208_v55 = vld [vmem:[%s8367_s18 + $0xd8] sm:$0xff]  ;;  %v7209_v23 = vld [vmem:[%s8367_s18 + $0xe0] sm:$0xff] }
 0x1ff   : > { %v3276_v34 = vunpack.c.l.b16 %v3000_v63  ;;  %v3277_v31 = vunpack.c.h.b16 %v3000_v63  ;;  %v3021_v54 = vshll.u32 %v7207_v12, 16  ;;  %v3026_v4 = vshrl.u32 %v7208_v55, 16 }
 0x200   : > { %v2119_v6 = vpop.f32.mrf.mxu0  ;;  %v3018_v2 = vor.u32 %v3017_v22, %v3013_v62 }
 0x201   : > { %v1560_v30 = vpop.f32.mrf.mxu3  ;;  %v2208_v36 = vpop.f32.mrf.mxu1  ;;  %v3326_v46 = vpack.c.b16 %v3276_v34, %v3274_v50 }
 0x202   : > { %v1561_v8 = vadd.f32 %v1560_v30, %v1471_v49  ;;  %v2209_v25 = vadd.f32 %v2208_v36, %v2119_v6  ;;  %v700_v49 = vadd.f32 %v9099_v57, %v8764_v18  ;;  %v7047_v30 = vor.u32 %v8079_v24, %v7044_v9  ;;  %v8134_v18 = vld [vmem:[%s10194_s1 + $0x298] sm:$0xff] }
 0x203   : > { %v3019_v63 = vrot.slane %v3018_v2, 4  ;;  %v3023_v36 = vrot.slane %v3021_v54, 5  ;;  %4121 = vmatpush.bf16.msrb.mxu2 %v8134_v18  ;;  %v3039_v24 = vshrl.u32 %v7209_v23, 16  ;;  %v7050_v54 = vld [vmem:[%s8367_s18 + $0xc0] sm:$0xf] }
 0x204   : > { %v1601_v37 = vadd.f32 %v1561_v8, %v699_v52  ;;  %v3327_v52 = vpack.c.b16 %v3277_v31, %v3275_v17  ;;  %v3009_v8 = vrot.slane %v3008_v14, 4  ;;  %v3029_v17 = vshll.u32 %v7208_v55, 16  ;;  %v7052_v55 = vld [vmem:[%s8367_s18 + $0xc8] sm:$0xf0] }
 0x205   : > { %v3024_v12 = vsel %vm8558_vm4, %v3019_v63, %v3023_v36  ;;  %v3035_v31 = vshll.u32 %v7209_v23, 16  ;;  %v8081_v36 = vld [vmem:[%s8367_s18 + $0xc4] sm:$0xf] }
 0x206   : > { %v9216_v56 = vadd.f32 %v2207_v1, %v1601_v37  ;;  %v1473_v43 = vpop.f32.mrf.mxu2  ;;  %v8142_v37 = vld [vmem:[%s10194_s1 + $0x2d8] sm:$0xff]  ;;  %v3014_v34 = vsel %vm8558_vm4, %v3009_v8, %v3013_v62  ;;  %v3281_v8 = vunpack.c.h.b16 %v3024_v12 }
 0x207   : > { %4210 = vmatpush.bf16.msrb.mxu3 %v8142_v37 }
 0x208   : > { %v2122_v32 = vpop.f32.mrf.mxu0 }
 0x209   : > { %v1562_v26 = vpop.f32.mrf.mxu3  ;;  %v2211_v1 = vpop.f32.mrf.mxu1 }
 0x20a   : > { %v1563_v33 = vadd.f32 %v1562_v26, %v1473_v43  ;;  %v2212_v0 = vadd.f32 %v2211_v1, %v2122_v32  ;;  %v3278_v26 = vunpack.c.l.b16 %v3014_v34  ;;  %v3031_v32 = vrot.slane %v3029_v17, 5 }
 0x20b   : > { %2613 = vmatmul.bf16.gmra.mxu2 %v7043_v21  ;;  %3512 = vmatmul.bf16.gmra.mxu0 %v3326_v46  ;;  %v3280_v21 = vunpack.c.l.b16 %v3024_v12  ;;  %v8182_v46 = vld [vmem:[%s10194_s1 + $0x318] sm:$0xff]  ;;  %v3279_v1 = vunpack.c.h.b16 %v3014_v34 }
 0x20c   : > { %v1602_v6 = vadd.f32 %v1563_v33, %v700_v49  ;;  %3601 = vmatmul.bf16.gmra.mxu1 %v3327_v52  ;;  %v8190_v49 = vld [vmem:[%s10194_s1 + $0x358] sm:$0xff]  ;;  %v3028_v33 = vrot.slane %v3026_v4, 4  ;;  %v3041_v52 = vrot.slane %v3039_v24, 4  ;;  %4653 = vmatpush.bf16.msrb.mxu0 %v8182_v46  ;;  %v10205_v4 = vld [vmem:[#allocation2_spill] sm:$0xff] }
 0x20d   : > { %4742 = vmatpush.bf16.msrb.mxu1 %v8190_v49  ;;  %v702_v17 = vadd.f32 %v9099_v57, %v10205_v4  ;;  %v3329_v24 = vpack.c.b16 %v3281_v8, %v3279_v1  ;;  %v7212_v49 = vld [vmem:[%s8367_s18 + $0xf8] sm:$0xff]  ;;  %v8084_v4 = vld [vmem:[%s8367_s18 + $0xdc] sm:$0xf0] }
 0x20e   : > { %2702 = vmatmul.bf16.gmra.mxu3 %v7047_v30  ;;  %v9230_v22 = vadd.f32 %v2209_v25, %v1602_v6  ;;  %v1476_v50 = vpop.f32.mrf.mxu2  ;;  %v701_v25 = vadd.f32 %v9099_v57, %v8788_v48  ;;  %v8082_v48 = vld [vmem:[%s8367_s18 + $0xc4] sm:$0xf0]  ;;  %v3037_v30 = vrot.slane %v3035_v31, 5  ;;  %v7055_v31 = vor.u32 %v8081_v36, %v7052_v55 }
 0x20f   : > { %v7210_v6 = vld [vmem:[%s8367_s18 + $0xe8] sm:$0x11]  ;;  %v7051_v18 = vor.u32 %v8082_v48, %v7050_v54 }
 0x210   : > { %v2124_v14 = vpop.f32.mrf.mxu0 }
 0x211   : > { %v1565_v59 = vpop.f32.mrf.mxu3  ;;  %v2213_v43 = vpop.f32.mrf.mxu1 }
 0x212   : > { %v1566_v9 = vadd.f32 %v1565_v59, %v1476_v50  ;;  %v2214_v62 = vadd.f32 %v2213_v43, %v2124_v14  ;;  %v3328_v50 = vpack.c.b16 %v3280_v21, %v3278_v26  ;;  %v3032_v59 = vor.u32 %v3031_v32, %v3028_v33  ;;  %v7211_v21 = vld [vmem:[%s8367_s18 + $0xf0] sm:$0xff]  ;;  %v10206_v33 = vld [vmem:[#allocation3_spill] sm:$0xff] }
 0x213   : > { %v703_v32 = vadd.f32 %v9099_v57, %v10206_v33  ;;  %v3053_v55 = vshll.u32 %v7211_v21, 16 }
 0x214   : > { %v1603_v2 = vadd.f32 %v1566_v9, %v701_v25  ;;  %v3042_v25 = vor.u32 %v3041_v52, %v3037_v30  ;;  %v3045_v9 = vshll.u32 %v7210_v6, 16  ;;  %v3050_v6 = vshrl.u32 %v7211_v21, 16  ;;  %v10208_v21 = vld [vmem:[#allocation4_spill] sm:$0xff] }
 0x216   : > { %v9247_v63 = vadd.f32 %v2212_v0, %v1603_v2  ;;  %v1478_v23 = vpop.f32.mrf.mxu2  ;;  %v3033_v2 = vrot.slane %v3032_v59, 4  ;;  %v3043_v54 = vrot.slane %v3042_v25, 4  ;;  %v3047_v26 = vrot.slane %v3045_v9, 5  ;;  %v7058_v25 = vld [vmem:[%s8367_s18 + $0xd8] sm:$0xf] }
 0x218   : > { %v2127_v12 = vpop.f32.mrf.mxu0  ;;  %v3038_v1 = vsel %vm8558_vm4, %v3033_v2, %v3037_v30  ;;  %v3048_v8 = vsel %vm8558_vm4, %v3043_v54, %v3047_v26  ;;  %v7213_v26 = vld [vmem:[%s8367_s18 + $0x100] sm:$0x11] }
 0x219   : > { %v1567_v37 = vpop.f32.mrf.mxu3  ;;  %v2216_v0 = vpop.f32.mrf.mxu1  ;;  %v3282_v9 = vunpack.c.l.b16 %v3038_v1  ;;  %v3283_v30 = vunpack.c.h.b16 %v3038_v1 }
 0x21a   : > { %v1568_v34 = vadd.f32 %v1567_v37, %v1478_v23  ;;  %v2217_v43 = vadd.f32 %v2216_v0, %v2127_v12  ;;  %v3059_v23 = vshll.u32 %v7212_v49, 16  ;;  %v3285_v12 = vunpack.c.h.b16 %v3048_v8 }
 0x21b   : > { %2618 = vmatmul.bf16.gmra.mxu2 %v7051_v18  ;;  %3517 = vmatmul.bf16.gmra.mxu0 %v3328_v50  ;;  %v3063_v18 = vshrl.u32 %v7212_v49, 16  ;;  %v3055_v0 = vrot.slane %v3053_v55, 5  ;;  %v704_v49 = vadd.f32 %v9099_v57, %v10208_v21 }
 0x21c   : > { %v1604_v14 = vadd.f32 %v1568_v34, %v702_v17  ;;  %3606 = vmatmul.bf16.gmra.mxu1 %v3329_v24  ;;  %v8083_v17 = vld [vmem:[%s8367_s18 + $0xdc] sm:$0xf]  ;;  %v3284_v34 = vunpack.c.l.b16 %v3048_v8  ;;  %v7060_v24 = vld [vmem:[%s8367_s18 + $0xe0] sm:$0xf0]  ;;  %v3331_v1 = vpack.c.b16 %v3285_v12, %v3283_v30 }
 0x21d   : > { %v3065_v2 = vrot.slane %v3063_v18, 4 }
 0x21e   : > { %2707 = vmatmul.bf16.gmra.mxu3 %v7055_v31  ;;  %v9254_v46 = vadd.f32 %v2214_v62, %v1604_v14  ;;  %v1481_v48 = vpop.f32.mrf.mxu2  ;;  %v3052_v31 = vrot.slane %v3050_v6, 4  ;;  %v3061_v14 = vrot.slane %v3059_v23, 5  ;;  %v3069_v23 = vshll.u32 %v7213_v26, 16 }
 0x220   : > { %v2129_v62 = vpop.f32.mrf.mxu0  ;;  %v3066_v55 = vor.u32 %v3065_v2, %v3061_v14 }
 0x221   : > { %v1570_v52 = vpop.f32.mrf.mxu3  ;;  %v2218_v37 = vpop.f32.mrf.mxu1 }
 0x222   : > { %v1571_v36 = vadd.f32 %v1570_v52, %v1481_v48  ;;  %v2219_v59 = vadd.f32 %v2218_v37, %v2129_v62  ;;  %v7063_v52 = vor.u32 %v8083_v17, %v7060_v24  ;;  %v3056_v62 = vor.u32 %v3055_v0, %v3052_v31 }
 0x223   : > { %v3067_v21 = vrot.slane %v3066_v55, 4 }
 0x224   : > { %v1605_v50 = vadd.f32 %v1571_v36, %v703_v32  ;;  %v7059_v32 = vor.u32 %v8084_v4, %v7058_v25  ;;  %v3330_v36 = vpack.c.b16 %v3284_v34, %v3282_v9  ;;  %v3057_v57 = vrot.slane %v3056_v62, 4  ;;  %v8133_v9 = vld [vmem:[%s10194_s1 + $0x290] sm:$0xff] }
 0x225   : > { %v3071_v25 = vrot.slane %v3069_v23, 5  ;;  %v8141_v4 = vld [vmem:[%s10194_s1 + $0x2d0] sm:$0xff]  ;;  %4122 = vmatpush.bf16.msrb.mxu2 %v8133_v9  ;;  %v7216_v23 = vld [vmem:[%s8367_s18 + $0x118] sm:$0x11] }
 0x226   : > { %v9267_v54 = vadd.f32 %v2217_v43, %v1605_v50  ;;  %v1483_v48 = vpop.f32.mrf.mxu2  ;;  %v7214_v50 = vld [vmem:[%s8367_s18 + $0x108] sm:$0xff]  ;;  %4211 = vmatpush.bf16.msrb.mxu3 %v8141_v4  ;;  %v7068_v9 = vld [vmem:[%s8367_s18 + $0xf8] sm:$0xf0] }
 0x227   : > { %v3074_v34 = vshrl.u32 %v7214_v50, 16  ;;  %v3077_v30 = vshll.u32 %v7214_v50, 16 }
 0x228   : > { %10207 = vst [vmem:[#allocation2_spill] sm:$0xff] %v9267_v54  ;;  %v3483_v6 = vpop.f32.mrf.mxu0  ;;  %v7215_v54 = vld [vmem:[%s8367_s18 + $0x110] sm:$0xff] }
 0x229   : > { %v1572_v33 = vpop.f32.mrf.mxu3  ;;  %v3572_v18 = vpop.f32.mrf.mxu1  ;;  %v3083_v31 = vshll.u32 %v7215_v54, 16  ;;  %v3087_v24 = vshrl.u32 %v7215_v54, 16 }
 0x22a   : > { %v1573_v8 = vadd.f32 %v1572_v33, %v1483_v48  ;;  %v3573_v37 = vadd.f32 %v3572_v18, %v3483_v6  ;;  %v3076_v33 = vrot.slane %v3074_v34, 4  ;;  %v8181_v6 = vld [vmem:[%s10194_s1 + $0x310] sm:$0xff] }
 0x22b   : > { %2623 = vmatmul.bf16.gmra.mxu2 %v7059_v32  ;;  %3522 = vmatmul.bf16.gmra.mxu0 %v3330_v36  ;;  %v3079_v32 = vrot.slane %v3077_v30, 5  ;;  %v7066_v18 = vld [vmem:[%s8367_s18 + $0xf0] sm:$0xf] }
 0x22c   : > { %v1606_v43 = vadd.f32 %v1573_v8, %v704_v49  ;;  %3611 = vmatmul.bf16.gmra.mxu1 %v3331_v1  ;;  %v3062_v49 = vsel %vm8558_vm4, %v3057_v57, %v3061_v14  ;;  %v3085_v1 = vrot.slane %v3083_v31, 5  ;;  %v3089_v8 = vrot.slane %v3087_v24, 4  ;;  %v8189_v14 = vld [vmem:[%s10194_s1 + $0x350] sm:$0xff]  ;;  %4654 = vmatpush.bf16.msrb.mxu0 %v8181_v6 }
 0x22d   : > { %v3286_v62 = vunpack.c.l.b16 %v3062_v49  ;;  %v3287_v50 = vunpack.c.h.b16 %v3062_v49  ;;  %4743 = vmatpush.bf16.msrb.mxu1 %v8189_v14  ;;  %v3080_v4 = vor.u32 %v3079_v32, %v3076_v33  ;;  %v7217_v33 = vld [vmem:[%s8367_s18 + $0x120] sm:$0xff]  ;;  %v7218_v32 = vld [vmem:[%s8367_s18 + $0x128] sm:$0xff] }
 0x22e   : > { %2712 = vmatmul.bf16.gmra.mxu3 %v7063_v52  ;;  %v9280_v17 = vadd.f32 %v2219_v59, %v1606_v43  ;;  %v2584_v12 = vpop.f32.mrf.mxu2  ;;  %v3072_v59 = vsel %vm8558_vm4, %v3067_v21, %v3071_v25  ;;  %v10209_v52 = vld [vmem:[#allocation5_spill] sm:$0xff]  ;;  %v8085_v25 = vld [vmem:[%s8367_s18 + $0xf4] sm:$0xf]  ;;  %v3090_v30 = vor.u32 %v3089_v8, %v3085_v1 }
 0x22f   : > { %v3288_v55 = vunpack.c.l.b16 %v3072_v59  ;;  %v8086_v43 = vld [vmem:[%s8367_s18 + $0xf4] sm:$0xf0]  ;;  %v3289_v57 = vunpack.c.h.b16 %v3072_v59 }
 0x230   : > { %v3485_v26 = vpop.f32.mrf.mxu0  ;;  %v7067_v24 = vor.u32 %v8086_v43, %v7066_v18  ;;  %v3091_v6 = vrot.slane %v3090_v30, 4  ;;  %v3098_v18 = vshrl.u32 %v7217_v33, 16  ;;  %v3101_v43 = vshll.u32 %v7217_v33, 16  ;;  %v7074_v30 = vld [vmem:[%s8367_s18 + $0x108] sm:$0xf] }
 0x231   : > { %v2673_v0 = vpop.f32.mrf.mxu3  ;;  %v3574_v48 = vpop.f32.mrf.mxu1  ;;  %v3333_v49 = vpack.c.b16 %v3289_v57, %v3287_v50  ;;  %v3107_v50 = vshll.u32 %v7218_v32, 16  ;;  %v3111_v57 = vshrl.u32 %v7218_v32, 16 }
 0x232   : > { %v2674_v2 = vadd.f32 %v2673_v0, %v2584_v12  ;;  %v3575_v54 = vadd.f32 %v3574_v48, %v3485_v26  ;;  %v3093_v12 = vshll.u32 %v7216_v23, 16  ;;  %v3332_v0 = vpack.c.b16 %v3288_v55, %v3286_v62 }
 0x233   : > { %v7071_v48 = vor.u32 %v8085_v25, %v7068_v9 }
 0x234   : > { %v2753_v36 = vadd.f32 %v2674_v2, %v10209_v52  ;;  %v3081_v52 = vrot.slane %v3080_v4, 4  ;;  %v3095_v14 = vrot.slane %v3093_v12, 5 }
 0x236   : > { %v9296_v21 = vadd.f32 %v3573_v37, %v2753_v36  ;;  %v2586_v34 = vpop.f32.mrf.mxu2  ;;  %v3086_v55 = vsel %vm8558_vm4, %v3081_v52, %v3085_v1 }
 0x237   : > { %v3290_v12 = vunpack.c.l.b16 %v3086_v55 }
 0x238   : > { %v3488_v26 = vpop.f32.mrf.mxu0 }
 0x239   : > { %v2675_v31 = vpop.f32.mrf.mxu3  ;;  %v3577_v59 = vpop.f32.mrf.mxu1 }
 0x23a   : > { %v2676_v2 = vadd.f32 %v2675_v31, %v2586_v34  ;;  %v3578_v36 = vadd.f32 %v3577_v59, %v3488_v26  ;;  %v8088_v31 = vld [vmem:[%s8367_s18 + $0x10c] sm:$0xf0]  ;;  %v3113_v26 = vrot.slane %v3111_v57, 4 }
 0x23b   : > { %2628 = vmatmul.bf16.gmra.mxu2 %v7067_v24  ;;  %3527 = vmatmul.bf16.gmra.mxu0 %v3332_v0  ;;  %v3100_v24 = vrot.slane %v3098_v18, 4  ;;  %v3103_v0 = vrot.slane %v3101_v43, 5  ;;  %v7219_v59 = vld [vmem:[%s8367_s18 + $0x130] sm:$0x11]  ;;  %v7075_v33 = vor.u32 %v8088_v31, %v7074_v30  ;;  %v7220_v30 = vld [vmem:[%s8367_s18 + $0x138] sm:$0xff] }
 0x23c   : > { %v2754_v37 = vadd.f32 %v2676_v2, %v8872_v60  ;;  %3616 = vmatmul.bf16.gmra.mxu1 %v3333_v49  ;;  %v3096_v60 = vsel %vm8558_vm4, %v3091_v6, %v3095_v14  ;;  %v3109_v2 = vrot.slane %v3107_v50, 5  ;;  %v7076_v6 = vld [vmem:[%s8367_s18 + $0x110] sm:$0xf0] }
 0x23d   : > { %v3292_v1 = vunpack.c.l.b16 %v3096_v60  ;;  %v3293_v49 = vunpack.c.h.b16 %v3096_v60 }
 0x23e   : > { %2717 = vmatmul.bf16.gmra.mxu3 %v7071_v48  ;;  %v9303_v8 = vadd.f32 %v3575_v54, %v2754_v37  ;;  %v2589_v62 = vpop.f32.mrf.mxu2  ;;  %v3291_v48 = vunpack.c.h.b16 %v3086_v55  ;;  %v8087_v37 = vld [vmem:[%s8367_s18 + $0x10c] sm:$0xf] }
 0x23f   : > { %v7079_v43 = vor.u32 %v8087_v37, %v7076_v6  ;;  %v3125_v6 = vshll.u32 %v7220_v30, 16 }
 0x240   : > { %v3490_v9 = vpop.f32.mrf.mxu0  ;;  %v3335_v50 = vpack.c.b16 %v3293_v49, %v3291_v48  ;;  %v3122_v49 = vshrl.u32 %v7220_v30, 16 }
 0x241   : > { %v2678_v23 = vpop.f32.mrf.mxu3  ;;  %v3579_v4 = vpop.f32.mrf.mxu1 }
 0x242   : > { %v2679_v25 = vadd.f32 %v2678_v23, %v2589_v62  ;;  %v3580_v34 = vadd.f32 %v3579_v4, %v3490_v9  ;;  %v3104_v62 = vor.u32 %v3103_v0, %v3100_v24  ;;  %v3114_v23 = vor.u32 %v3113_v26, %v3109_v2 }
 0x244   : > { %v2755_v54 = vadd.f32 %v2679_v25, %v8887_v19  ;;  %v3334_v19 = vpack.c.b16 %v3292_v1, %v3290_v12  ;;  %v3117_v25 = vshll.u32 %v7219_v59, 16  ;;  %v3105_v57 = vrot.slane %v3104_v62, 4  ;;  %v8132_v12 = vld [vmem:[%s10194_s1 + $0x288] sm:$0xff]  ;;  %v7082_v62 = vld [vmem:[%s8367_s18 + $0x120] sm:$0xf] }
 0x245   : > { %v3115_v4 = vrot.slane %v3114_v23, 4  ;;  %v8140_v1 = vld [vmem:[%s10194_s1 + $0x2c8] sm:$0xff]  ;;  %4123 = vmatpush.bf16.msrb.mxu2 %v8132_v12 }
 0x246   : > { %v9313_v52 = vadd.f32 %v3578_v36, %v2755_v54  ;;  %v2591_v14 = vpop.f32.mrf.mxu2  ;;  %v3119_v54 = vrot.slane %v3117_v25, 5  ;;  %4212 = vmatpush.bf16.msrb.mxu3 %v8140_v1  ;;  %v3110_v26 = vsel %vm8558_vm4, %v3105_v57, %v3109_v2  ;;  %v8180_v2 = vld [vmem:[%s10194_s1 + $0x308] sm:$0xff] }
 0x247   : > { %v3294_v23 = vunpack.c.l.b16 %v3110_v26  ;;  %v8188_v25 = vld [vmem:[%s10194_s1 + $0x348] sm:$0xff]  ;;  %4655 = vmatpush.bf16.msrb.mxu0 %v8180_v2 }
 0x248   : > { %v3493_v18 = vpop.f32.mrf.mxu0  ;;  %v3120_v48 = vsel %vm8558_vm4, %v3115_v4, %v3119_v54  ;;  %v7084_v57 = vld [vmem:[%s8367_s18 + $0x128] sm:$0xf0]  ;;  %4744 = vmatpush.bf16.msrb.mxu1 %v8188_v25 }
 0x249   : > { %v2680_v32 = vpop.f32.mrf.mxu3  ;;  %v3582_v55 = vpop.f32.mrf.mxu1  ;;  %v7222_v12 = vld [vmem:[%s8367_s18 + $0x148] sm:$0x11] }
 0x24a   : > { %v2681_v9 = vadd.f32 %v2680_v32, %v2591_v14  ;;  %v3583_v36 = vadd.f32 %v3582_v55, %v3493_v18  ;;  %v8089_v18 = vld [vmem:[%s8367_s18 + $0x124] sm:$0xf]  ;;  %v3297_v55 = vunpack.c.h.b16 %v3120_v48 }
 0x24b   : > { %2633 = vmatmul.bf16.gmra.mxu2 %v7075_v33  ;;  %3532 = vmatmul.bf16.gmra.mxu0 %v3334_v19 }
 0x24c   : > { %v2756_v60 = vadd.f32 %v2681_v9, %v8903_v27  ;;  %3621 = vmatmul.bf16.gmra.mxu1 %v3335_v50  ;;  %v7221_v27 = vld [vmem:[%s8367_s18 + $0x140] sm:$0xff]  ;;  %v8090_v9 = vld [vmem:[%s8367_s18 + $0x124] sm:$0xf0]  ;;  %v3295_v50 = vunpack.c.h.b16 %v3110_v26 }
 0x24d   : > { %v3135_v14 = vshrl.u32 %v7221_v27, 16 }
 0x24e   : > { %2722 = vmatmul.bf16.gmra.mxu3 %v7079_v43  ;;  %v9325_v31 = vadd.f32 %v3580_v34, %v2756_v60  ;;  %v2594_v24 = vpop.f32.mrf.mxu2  ;;  %v3131_v34 = vshll.u32 %v7221_v27, 16  ;;  %v3296_v43 = vunpack.c.l.b16 %v3120_v48  ;;  %v3124_v60 = vrot.slane %v3122_v49, 4 }
 0x24f   : > { %v3137_v54 = vrot.slane %v3135_v14, 4 }
 0x250   : > { %v3495_v37 = vpop.f32.mrf.mxu0  ;;  %v3133_v4 = vrot.slane %v3131_v34, 5 }
 0x251   : > { %v2683_v0 = vpop.f32.mrf.mxu3  ;;  %v3584_v33 = vpop.f32.mrf.mxu1 }
 0x252   : > { %v2684_v59 = vadd.f32 %v2683_v0, %v2594_v24  ;;  %v3585_v19 = vadd.f32 %v3584_v33, %v3495_v37  ;;  %v7083_v24 = vor.u32 %v8090_v9, %v7082_v62  ;;  %v7087_v0 = vor.u32 %v8089_v18, %v7084_v57 }
 0x253   : > { %v3337_v37 = vpack.c.b16 %v3297_v55, %v3295_v50  ;;  %v3138_v33 = vor.u32 %v3137_v54, %v3133_v4 }
 0x254   : > { %v2757_v32 = vadd.f32 %v2684_v59, %v8924_v10  ;;  %v3127_v10 = vrot.slane %v3125_v6, 5  ;;  %v3336_v59 = vpack.c.b16 %v3296_v43, %v3294_v23  ;;  %v3141_v6 = vshll.u32 %v7222_v12, 16 }
 0x255   : > { %v3139_v62 = vrot.slane %v3138_v33, 4  ;;  %v7090_v33 = vld [vmem:[%s8367_s18 + $0x138] sm:$0xf] }
 0x256   : > { %v9343_v30 = vadd.f32 %v3583_v36, %v2757_v32  ;;  %v2596_v1 = vpop.f32.mrf.mxu2  ;;  %v3128_v49 = vor.u32 %v3127_v10, %v3124_v60  ;;  %v7223_v36 = vld [vmem:[%s8367_s18 + $0x150] sm:$0xff]  ;;  %v7224_v32 = vld [vmem:[%s8367_s18 + $0x158] sm:$0xff]  ;;  %v3143_v9 = vrot.slane %v3141_v6, 5  ;;  %v8092_v6 = vld [vmem:[%s8367_s18 + $0x13c] sm:$0xf0] }
 0x257   : > { %v3146_v18 = vshrl.u32 %v7223_v36, 16  ;;  %v3149_v43 = vshll.u32 %v7223_v36, 16  ;;  %v3155_v55 = vshll.u32 %v7224_v32, 16  ;;  %v3159_v60 = vshrl.u32 %v7224_v32, 16  ;;  %v8091_v36 = vld [vmem:[%s8367_s18 + $0x13c] sm:$0xf] }
 0x258   : > { %v3498_v48 = vpop.f32.mrf.mxu0  ;;  %v3129_v25 = vrot.slane %v3128_v49, 4  ;;  %v3144_v12 = vsel %vm8558_vm4, %v3139_v62, %v3143_v9  ;;  %v7225_v49 = vld [vmem:[%s8367_s18 + $0x160] sm:$0x11] }
 0x259   : > { %v2685_v27 = vpop.f32.mrf.mxu3  ;;  %v3587_v34 = vpop.f32.mrf.mxu1  ;;  %v7092_v32 = vld [vmem:[%s8367_s18 + $0x140] sm:$0xf0] }
 0x25a   : > { %v2686_v26 = vadd.f32 %v2685_v27, %v2596_v1  ;;  %v3588_v2 = vadd.f32 %v3587_v34, %v3498_v48  ;;  %v3134_v54 = vsel %vm8558_vm4, %v3129_v25, %v3133_v4  ;;  %v3148_v1 = vrot.slane %v3146_v18, 4 }
 0x25b   : > { %2638 = vmatmul.bf16.gmra.mxu2 %v7083_v24  ;;  %3537 = vmatmul.bf16.gmra.mxu0 %v3336_v59  ;;  %v3151_v27 = vrot.slane %v3149_v43, 5  ;;  %v3157_v59 = vrot.slane %v3155_v55, 5  ;;  %v3300_v48 = vunpack.c.l.b16 %v3144_v12  ;;  %v3299_v34 = vunpack.c.h.b16 %v3134_v54 }
 0x25c   : > { %v2758_v14 = vadd.f32 %v2686_v26, %v8934_v3  ;;  %3626 = vmatmul.bf16.gmra.mxu1 %v3337_v37  ;;  %v3161_v37 = vrot.slane %v3159_v60, 4  ;;  %v3298_v26 = vunpack.c.l.b16 %v3134_v54  ;;  %v3301_v4 = vunpack.c.h.b16 %v3144_v12 }
 0x25d   : > { %v3152_v25 = vor.u32 %v3151_v27, %v3148_v1  ;;  %v3165_v18 = vshll.u32 %v7225_v49, 16  ;;  %v7091_v43 = vor.u32 %v8092_v6, %v7090_v33  ;;  %v7226_v1 = vld [vmem:[%s8367_s18 + $0x168] sm:$0xff]  ;;  %v7227_v27 = vld [vmem:[%s8367_s18 + $0x170] sm:$0xff] }
 0x25e   : > { %2727 = vmatmul.bf16.gmra.mxu3 %v7087_v0  ;;  %v9349_v23 = vadd.f32 %v3585_v19, %v2758_v14  ;;  %v2599_v50 = vpop.f32.mrf.mxu2  ;;  %v3162_v9 = vor.u32 %v3161_v37, %v3157_v59  ;;  %v8131_v37 = vld [vmem:[%s10194_s1 + $0x280] sm:$0xff] }
 0x25f   : > { %v3153_v54 = vrot.slane %v3152_v25, 4  ;;  %4124 = vmatpush.bf16.msrb.mxu2 %v8131_v37 }
 0x260   : > { %v3500_v10 = vpop.f32.mrf.mxu0 }
 0x261   : > { %v2688_v3 = vpop.f32.mrf.mxu3  ;;  %v3589_v19 = vpop.f32.mrf.mxu1  ;;  %v3158_v49 = vsel %vm8558_vm4, %v3153_v54, %v3157_v59 }
 0x262   : > { %v2689_v57 = vadd.f32 %v2688_v3, %v2599_v50  ;;  %v3590_v0 = vadd.f32 %v3589_v19, %v3500_v10  ;;  %v3338_v50 = vpack.c.b16 %v3300_v48, %v3298_v26  ;;  %v7095_v3 = vor.u32 %v8091_v36, %v7092_v32  ;;  %v8139_v26 = vld [vmem:[%s10194_s1 + $0x2c0] sm:$0xff] }
 0x263   : > { %v3163_v19 = vrot.slane %v3162_v9, 4  ;;  %4213 = vmatpush.bf16.msrb.mxu3 %v8139_v26  ;;  %v3179_v36 = vshll.u32 %v7227_v27, 16  ;;  %v3183_v32 = vshrl.u32 %v7227_v27, 16  ;;  %v3302_v59 = vunpack.c.l.b16 %v3158_v49  ;;  %v7100_v27 = vld [vmem:[%s8367_s18 + $0x158] sm:$0xf0] }
 0x264   : > { %v2759_v24 = vadd.f32 %v2689_v57, %v8949_v38  ;;  %v3339_v57 = vpack.c.b16 %v3301_v4, %v3299_v34  ;;  %v3170_v34 = vshrl.u32 %v7226_v1, 16  ;;  %v3173_v4 = vshll.u32 %v7226_v1, 16  ;;  %v8093_v1 = vld [vmem:[%s8367_s18 + $0x154] sm:$0xf] }
 0x265   : > { %v3185_v54 = vrot.slane %v3183_v32, 4 }
 0x266   : > { %v9359_v14 = vadd.f32 %v3588_v2, %v2759_v24  ;;  %v2601_v62 = vpop.f32.mrf.mxu2  ;;  %v3167_v24 = vrot.slane %v3165_v18, 5 }
 0x268   : > { %v3503_v60 = vpop.f32.mrf.mxu0  ;;  %v3168_v33 = vsel %vm8558_vm4, %v3163_v19, %v3167_v24  ;;  %v7228_v19 = vld [vmem:[%s8367_s18 + $0x178] sm:$0x11] }
 0x269   : > { %v2690_v38 = vpop.f32.mrf.mxu3  ;;  %v3592_v10 = vpop.f32.mrf.mxu1 }
 0x26a   : > { %v2691_v55 = vadd.f32 %v2690_v38, %v2601_v62  ;;  %v3593_v12 = vadd.f32 %v3592_v10, %v3503_v60  ;;  %v7098_v38 = vld [vmem:[%s8367_s18 + $0x150] sm:$0xf]  ;;  %v8094_v60 = vld [vmem:[%s8367_s18 + $0x154] sm:$0xf0]  ;;  %v3181_v10 = vrot.slane %v3179_v36, 5 }
 0x26b   : > { %2643 = vmatmul.bf16.gmra.mxu2 %v7091_v43  ;;  %3542 = vmatmul.bf16.gmra.mxu0 %v3338_v50  ;;  %v3304_v43 = vunpack.c.l.b16 %v3168_v33  ;;  %v8179_v50 = vld [vmem:[%s10194_s1 + $0x300] sm:$0xff]  ;;  %v7099_v26 = vor.u32 %v8094_v60, %v7098_v38 }
 0x26c   : > { %v2760_v2 = vadd.f32 %v2691_v55, %v8965_v28  ;;  %3631 = vmatmul.bf16.gmra.mxu1 %v3339_v57  ;;  %v8187_v55 = vld [vmem:[%s10194_s1 + $0x340] sm:$0xff]  ;;  %v3175_v57 = vrot.slane %v3173_v4, 5  ;;  %4656 = vmatpush.bf16.msrb.mxu0 %v8179_v50 }
 0x26d   : > { %4745 = vmatpush.bf16.msrb.mxu1 %v8187_v55  ;;  %v7230_v55 = vld [vmem:[%s8367_s18 + $0x188] sm:$0xff] }
 0x26e   : > { %2732 = vmatmul.bf16.gmra.mxu3 %v7095_v3  ;;  %v9372_v48 = vadd.f32 %v3590_v0, %v2760_v2  ;;  %v2604_v28 = vpop.f32.mrf.mxu2  ;;  %v3172_v3 = vrot.slane %v3170_v34, 4  ;;  %v3305_v2 = vunpack.c.h.b16 %v3168_v33  ;;  %v3189_v34 = vshll.u32 %v7228_v19, 16 }
 0x270   : > { %v3505_v62 = vpop.f32.mrf.mxu0  ;;  %v3191_v38 = vrot.slane %v3189_v34, 5 }
 0x271   : > { %v2693_v6 = vpop.f32.mrf.mxu3  ;;  %v3594_v0 = vpop.f32.mrf.mxu1 }
 0x272   : > { %v2694_v25 = vadd.f32 %v2693_v6, %v2604_v28  ;;  %v3595_v18 = vadd.f32 %v3594_v0, %v3505_v62  ;;  %v3340_v6 = vpack.c.b16 %v3304_v43, %v3302_v59  ;;  %v3186_v62 = vor.u32 %v3185_v54, %v3181_v10  ;;  %v7229_v59 = vld [vmem:[%s8367_s18 + $0x180] sm:$0xff] }
 0x273   : > { %v3194_v54 = vshrl.u32 %v7229_v59, 16  ;;  %v3197_v19 = vshll.u32 %v7229_v59, 16 }
 0x274   : > { %v2761_v9 = vadd.f32 %v2694_v25, %v8986_v11  ;;  %v3303_v11 = vunpack.c.h.b16 %v3158_v49  ;;  %v3176_v25 = vor.u32 %v3175_v57, %v3172_v3  ;;  %v7103_v49 = vor.u32 %v8093_v1, %v7100_v27 }
 0x275   : > { %v3187_v50 = vrot.slane %v3186_v62, 4  ;;  %v3203_v1 = vshll.u32 %v7230_v55, 16  ;;  %v3207_v27 = vshrl.u32 %v7230_v55, 16  ;;  %v8095_v62 = vld [vmem:[%s8367_s18 + $0x16c] sm:$0xf] }
 0x276   : > { %v9388_v24 = vadd.f32 %v3593_v12, %v2761_v9  ;;  %v2606_v37 = vpop.f32.mrf.mxu2  ;;  %v3341_v33 = vpack.c.b16 %v3305_v2, %v3303_v11  ;;  %v3177_v9 = vrot.slane %v3176_v25, 4  ;;  %v8096_v25 = vld [vmem:[%s8367_s18 + $0x16c] sm:$0xf0] }
 0x277   : > { %v3192_v57 = vsel %vm8558_vm4, %v3187_v50, %v3191_v38  ;;  %v7231_v50 = vld [vmem:[%s8367_s18 + $0x190] sm:$0x11] }
 0x278   : > { %v3508_v36 = vpop.f32.mrf.mxu0 }
 0x279   : > { %v2695_v28 = vpop.f32.mrf.mxu3  ;;  %v3597_v32 = vpop.f32.mrf.mxu1 }
 0x27a   : > { %v2696_v4 = vadd.f32 %v2695_v28, %v2606_v37  ;;  %v3598_v12 = vadd.f32 %v3597_v32, %v3508_v36  ;;  %v7106_v28 = vld [vmem:[%s8367_s18 + $0x168] sm:$0xf]  ;;  %v3196_v36 = vrot.slane %v3194_v54, 4  ;;  %v3205_v32 = vrot.slane %v3203_v1, 5 }
 0x27b   : > { %2648 = vmatmul.bf16.gmra.mxu2 %v7099_v26  ;;  %3547 = vmatmul.bf16.gmra.mxu0 %v3340_v6  ;;  %v7107_v55 = vor.u32 %v8096_v25, %v7106_v28  ;;  %v8210_v28 = vld [vmem:[%s10194_s1 + $0x3f8] sm:$0xff] }
 0x27c   : > { %v2762_v0 = vadd.f32 %v2696_v4, %v8996_v51  ;;  %3636 = vmatmul.bf16.gmra.mxu1 %v3341_v33  ;;  %v3182_v51 = vsel %vm8558_vm4, %v3177_v9, %v3181_v10  ;;  %v3308_v10 = vunpack.c.l.b16 %v3192_v57  ;;  %v3309_v4 = vunpack.c.h.b16 %v3192_v57  ;;  %5637 = vmatpush.bf16.msra.mxu3 %v8210_v28  ;;  %v7328_v28 = vld [vmem:[%s8367_s18 + $0x18] sm:$0xee] }
 0x27d   : > { %v3306_v6 = vunpack.c.l.b16 %v3182_v51  ;;  %v3307_v34 = vunpack.c.h.b16 %v3182_v51  ;;  %v3199_v33 = vrot.slane %v3197_v19, 5  ;;  %v3213_v51 = vshll.u32 %v7231_v50, 16 }
 0x27e   : > { %2737 = vmatmul.bf16.gmra.mxu3 %v7103_v49  ;;  %v9394_v43 = vadd.f32 %v3595_v18, %v2762_v0  ;;  %v2609_v60 = vpop.f32.mrf.mxu2  ;;  %v7108_v49 = vld [vmem:[%s8367_s18 + $0x170] sm:$0xf0]  ;;  %v3209_v0 = vrot.slane %v3207_v27, 4 }
 0x27f   : > { %v3215_v27 = vrot.slane %v3213_v51, 5 }
 0x280   : > { %10210 = vst [vmem:[#allocation3_spill] sm:$0xff] %v9394_v43  ;;  %v3510_v2 = vpop.f32.mrf.mxu0  ;;  %v3210_v43 = vor.u32 %v3209_v0, %v3205_v32 }
 0x281   : > { %v2698_v3 = vpop.f32.mrf.mxu3  ;;  %v3599_v18 = vpop.f32.mrf.mxu1 }
 0x282   : > { %v2699_v11 = vadd.f32 %v2698_v3, %v2609_v60  ;;  %v3600_v26 = vadd.f32 %v3599_v18, %v3510_v2  ;;  %v3342_v60 = vpack.c.b16 %v3308_v10, %v3306_v6  ;;  %v3343_v3 = vpack.c.b16 %v3309_v4, %v3307_v34 }
 0x283   : > { %v3200_v18 = vor.u32 %v3199_v33, %v3196_v36  ;;  %v3211_v1 = vrot.slane %v3210_v43, 4  ;;  %v8226_v33 = vld [vmem:[%s10194_s1 + $0x478] sm:$0xff] }
 0x284   : > { %v2763_v37 = vadd.f32 %v2699_v11, %v9011_v5  ;;  %v7111_v5 = vor.u32 %v8095_v62, %v7108_v49  ;;  %v8218_v49 = vld [vmem:[%s10194_s1 + $0x438] sm:$0xff]  ;;  %6280 = vmatpush.bf16.msra.mxu1 %v8226_v33 }
 0x285   : > { %v3216_v34 = vsel %vm8558_vm4, %v3211_v1, %v3215_v27  ;;  %6191 = vmatpush.bf16.msra.mxu0 %v8218_v49  ;;  %v8254_v1 = vld [vmem:[%s8367_s18 + $0x20] sm:$0xff] }
 0x286   : > { %v9406_v9 = vadd.f32 %v3598_v12, %v2763_v37  ;;  %v2611_v38 = vpop.f32.mrf.mxu2  ;;  %v3201_v12 = vrot.slane %v3200_v18, 4  ;;  %v8202_v37 = vld [vmem:[%s10194_s1 + $0x3b8] sm:$0xff]  ;;  %v3312_v50 = vunpack.c.l.b16 %v3216_v34  ;;  %v3750_v27 = vrot.slane %v8254_v1, 5 }
 0x287   : > { %5548 = vmatpush.bf16.msra.mxu2 %v8202_v37 }
 0x288   : > { %v3513_v2 = vpop.f32.mrf.mxu0  ;;  %v3206_v43 = vsel %vm8558_vm4, %v3201_v12, %v3205_v32  ;;  %v7114_v32 = vld [vmem:[%s8367_s18 + $0x180] sm:$0xf] }
 0x289   : > { %v2700_v59 = vpop.f32.mrf.mxu3  ;;  %v3602_v57 = vpop.f32.mrf.mxu1  ;;  %v3310_v0 = vunpack.c.l.b16 %v3206_v43 }
 0x28a   : > { %v2701_v11 = vadd.f32 %v2700_v59, %v2611_v38  ;;  %v3603_v19 = vadd.f32 %v3602_v57, %v3513_v2  ;;  %v8098_v38 = vld [vmem:[%s8367_s18 + $0x184] sm:$0xf0]  ;;  %v3311_v59 = vunpack.c.h.b16 %v3206_v43 }
 0x28b   : > { %2653 = vmatmul.bf16.gmra.mxu2 %v7107_v55  ;;  %3552 = vmatmul.bf16.gmra.mxu0 %v3342_v60  ;;  %v3313_v55 = vunpack.c.h.b16 %v3216_v34  ;;  %v7116_v60 = vld [vmem:[%s8367_s18 + $0x188] sm:$0xf0]  ;;  %v7115_v2 = vor.u32 %v8098_v38, %v7114_v32  ;;  %v3344_v18 = vpack.c.b16 %v3312_v50, %v3310_v0 }
 0x28c   : > { %v2764_v54 = vadd.f32 %v2701_v11, %v9024_v20  ;;  %3641 = vmatmul.bf16.gmra.mxu1 %v3343_v3 }
 0x28d   : > { %v3345_v12 = vpack.c.b16 %v3313_v55, %v3311_v59 }
 0x28e   : > { %2742 = vmatmul.bf16.gmra.mxu3 %v7111_v5  ;;  %v9416_v6 = vadd.f32 %v3600_v26, %v2764_v54  ;;  %v2614_v20 = vpop.f32.mrf.mxu2  ;;  %v8097_v5 = vld [vmem:[%s8367_s18 + $0x184] sm:$0xf] }
 0x28f   : > { %v7119_v54 = vor.u32 %v8097_v5, %v7116_v60  ;;  %v7522_v60 = vld [vmem:[%s8367_s18 + $0x30] sm:$0xf] }
 0x290   : > { %v3515_v10 = vpop.f32.mrf.mxu0 }
 0x291   : > { %v2703_v25 = vpop.f32.mrf.mxu3  ;;  %v3604_v4 = vpop.f32.mrf.mxu1 }
 0x292   : > { %v2704_v62 = vadd.f32 %v2703_v25, %v2614_v20  ;;  %v3605_v36 = vadd.f32 %v3604_v4, %v3515_v10  ;;  %v8255_v10 = vld [vmem:[%s8367_s18 + $0x28] sm:$0x11] }
 0x293   : > { %v3753_v43 = vrot.slane %v8255_v10, 5 }
 0x294   : > { %v2765_v26 = vadd.f32 %v2704_v62, %v9043_v47  ;;  %v3752_v62 = vrot.slane %v3750_v27, 4 }
 0x296   : > { %v9431_v47 = vadd.f32 %v3603_v19, %v2765_v26  ;;  %v2616_v3 = vpop.f32.mrf.mxu2  ;;  %v7344_v19 = vrot.slane %v7328_v28, 9  ;;  %v3754_v0 = vsel %vm8563_vm5, %v3752_v62, %v3753_v43  ;;  %v8256_v28 = vld [vmem:[%s8367_s18 + $0x38] sm:$0xff]  ;;  %v7329_v62 = vld [vmem:[%s8367_s18 + $0x30] sm:$0xee] }
 0x297   : > { %v3895_v55 = vunpack.c.l.b16 %v3754_v0  ;;  %v3896_v5 = vunpack.c.h.b16 %v3754_v0 }
 0x298   : > { %v3518_v57 = vpop.f32.mrf.mxu0 }
 0x299   : > { %v2705_v11 = vpop.f32.mrf.mxu3  ;;  %v3607_v37 = vpop.f32.mrf.mxu1 }
 0x29a   : > { %v2706_v51 = vadd.f32 %v2705_v11, %v2616_v3  ;;  %v3608_v25 = vadd.f32 %v3607_v37, %v3518_v57  ;;  %v8148_v3 = vld [vmem:[%s8367_s18 + $0x34] sm:$0xf0] }
 0x29b   : > { %2658 = vmatmul.bf16.gmra.mxu2 %v7115_v2  ;;  %3557 = vmatmul.bf16.gmra.mxu0 %v3344_v18  ;;  %v8147_v2 = vld [vmem:[%s8367_s18 + $0x34] sm:$0xf]  ;;  %v7524_v18 = vld [vmem:[%s8367_s18 + $0x38] sm:$0xf0] }
 0x29c   : > { %v2766_v20 = vadd.f32 %v2706_v51, %v9050_v41  ;;  %3646 = vmatmul.bf16.gmra.mxu1 %v3345_v12  ;;  %v3751_v41 = vsel %vm8563_vm5, %v7344_v19, %v3750_v27  ;;  %v7523_v12 = vor.u32 %v8148_v3, %v7522_v60  ;;  %v7527_v37 = vor.u32 %v8147_v2, %v7524_v18  ;;  %v8217_v3 = vld [vmem:[%s10194_s1 + $0x430] sm:$0xff] }
 0x29d   : > { %v3893_v59 = vunpack.c.l.b16 %v3751_v41  ;;  %v8225_v2 = vld [vmem:[%s10194_s1 + $0x470] sm:$0xff]  ;;  %6192 = vmatpush.bf16.msra.mxu0 %v8217_v3 }
 0x29e   : > { %2747 = vmatmul.bf16.gmra.mxu3 %v7119_v54  ;;  %v9439_v34 = vadd.f32 %v3605_v36, %v2766_v20  ;;  %v2619_v4 = vpop.f32.mrf.mxu2  ;;  %v3894_v36 = vunpack.c.h.b16 %v3751_v41  ;;  %v3757_v20 = vrot.slane %v8256_v28, 5  ;;  %v8209_v41 = vld [vmem:[%s10194_s1 + $0x3f0] sm:$0xff]  ;;  %6281 = vmatpush.bf16.msra.mxu1 %v8225_v2 }
 0x29f   : > { %v3957_v54 = vpack.c.b16 %v3895_v55, %v3893_v59  ;;  %5638 = vmatpush.bf16.msra.mxu3 %v8209_v41  ;;  %v7330_v41 = vld [vmem:[%s8367_s18 + $0x48] sm:$0xee] }
 0x2a0   : > { %v3520_v33 = vpop.f32.mrf.mxu0  ;;  %v3958_v27 = vpack.c.b16 %v3896_v5, %v3894_v36 }
 0x2a1   : > { %v2708_v26 = vpop.f32.mrf.mxu3  ;;  %v3609_v50 = vpop.f32.mrf.mxu1 }
 0x2a2   : > { %v2709_v49 = vadd.f32 %v2708_v26, %v2619_v4  ;;  %v3610_v38 = vadd.f32 %v3609_v50, %v3520_v33  ;;  %v3759_v4 = vrot.slane %v3757_v20, 4  ;;  %v8257_v26 = vld [vmem:[%s8367_s18 + $0x40] sm:$0x11]  ;;  %v8201_v33 = vld [vmem:[%s10194_s1 + $0x3b0] sm:$0xff] }
 0x2a3   : > { %5549 = vmatpush.bf16.msra.mxu2 %v8201_v33 }
 0x2a4   : > { %v2767_v32 = vadd.f32 %v2709_v49, %v9061_v61  ;;  %v3760_v49 = vrot.slane %v8257_v26, 5  ;;  %v8258_v26 = vld [vmem:[%s8367_s18 + $0x50] sm:$0xff] }
 0x2a6   : > { %v9448_v11 = vadd.f32 %v3608_v25, %v2767_v32  ;;  %v2621_v51 = vpop.f32.mrf.mxu2  ;;  %v7345_v25 = vrot.slane %v7329_v62, 9  ;;  %v3761_v36 = vsel %vm8563_vm5, %v3759_v4, %v3760_v49  ;;  %v3764_v49 = vrot.slane %v8258_v26, 5 }
 0x2a8   : > { %v3523_v61 = vpop.f32.mrf.mxu0  ;;  %v3758_v55 = vsel %vm8563_vm5, %v7345_v25, %v3757_v20 }
 0x2a9   : > { %v2710_v57 = vpop.f32.mrf.mxu3  ;;  %v3612_v19 = vpop.f32.mrf.mxu1  ;;  %v3897_v18 = vunpack.c.l.b16 %v3758_v55 }
 0x2aa   : > { %v2711_v1 = vadd.f32 %v2710_v57, %v2621_v51  ;;  %v3613_v43 = vadd.f32 %v3612_v19, %v3523_v61  ;;  %v3899_v51 = vunpack.c.l.b16 %v3761_v36  ;;  %v3898_v57 = vunpack.c.h.b16 %v3758_v55  ;;  %v8149_v61 = vld [vmem:[%s8367_s18 + $0x4c] sm:$0xf] }
 0x2ab   : > { %4125 = vmatmul.bf16.vlgmr.msrb.gmra.mxu2 %v3957_v54  ;;  %4657 = vmatmul.bf16.vlgmr.msrb.gmra.mxu0 %v7523_v12  ;;  %v3900_v54 = vunpack.c.h.b16 %v3761_v36  ;;  %v7530_v12 = vld [vmem:[%s8367_s18 + $0x48] sm:$0xf] }
 0x2ac   : > { %v2768_v10 = vadd.f32 %v2711_v1, %v9075_v44  ;;  %4746 = vmatmul.bf16.vlgmr.msrb.gmra.mxu1 %v7527_v37  ;;  %v8150_v1 = vld [vmem:[%s8367_s18 + $0x4c] sm:$0xf0]  ;;  %v3959_v20 = vpack.c.b16 %v3899_v51, %v3897_v18 }
 0x2ad   : > { %v7531_v19 = vor.u32 %v8150_v1, %v7530_v12  ;;  %v3960_v25 = vpack.c.b16 %v3900_v54, %v3898_v57 }
 0x2ae   : > { %4214 = vmatmul.bf16.vlgmr.msrb.gmra.mxu3 %v3958_v27  ;;  %v9462_v0 = vadd.f32 %v3610_v38, %v2768_v10  ;;  %v2624_v44 = vpop.f32.mrf.mxu2  ;;  %v7532_v27 = vld [vmem:[%s8367_s18 + $0x50] sm:$0xf0] }
 0x2af   : > { %v7535_v4 = vor.u32 %v8149_v61, %v7532_v27  ;;  %v7538_v27 = vld [vmem:[%s8367_s18 + $0x60] sm:$0xf] }
 0x2b0   : > { %v3525_v59 = vpop.f32.mrf.mxu0 }
 0x2b1   : > { %v2713_v50 = vpop.f32.mrf.mxu3  ;;  %v3614_v5 = vpop.f32.mrf.mxu1 }
 0x2b2   : > { %v2714_v32 = vadd.f32 %v2713_v50, %v2624_v44  ;;  %v3615_v60 = vadd.f32 %v3614_v5, %v3525_v59  ;;  %v8259_v59 = vld [vmem:[%s8367_s18 + $0x58] sm:$0x11] }
 0x2b3   : > { %v3767_v55 = vrot.slane %v8259_v59, 5 }
 0x2b4   : > { %v2769_v38 = vadd.f32 %v2714_v32, %v9092_v42  ;;  %v3766_v32 = vrot.slane %v3764_v49, 4 }
 0x2b6   : > { %v9477_v42 = vadd.f32 %v3613_v43, %v2769_v38  ;;  %v2626_v37 = vpop.f32.mrf.mxu2  ;;  %v7346_v43 = vrot.slane %v7330_v41, 9  ;;  %v3768_v18 = vsel %vm8563_vm5, %v3766_v32, %v3767_v55  ;;  %v8260_v41 = vld [vmem:[%s8367_s18 + $0x68] sm:$0xff]  ;;  %v7331_v32 = vld [vmem:[%s8367_s18 + $0x60] sm:$0xee] }
 0x2b7   : > { %v3903_v1 = vunpack.c.l.b16 %v3768_v18  ;;  %v3904_v61 = vunpack.c.h.b16 %v3768_v18 }
 0x2b8   : > { %v3528_v10 = vpop.f32.mrf.mxu0 }
 0x2b9   : > { %v2715_v28 = vpop.f32.mrf.mxu3  ;;  %v3617_v33 = vpop.f32.mrf.mxu1 }
 0x2ba   : > { %v2716_v62 = vadd.f32 %v2715_v28, %v2626_v37  ;;  %v3618_v50 = vadd.f32 %v3617_v33, %v3528_v10  ;;  %v8152_v37 = vld [vmem:[%s8367_s18 + $0x64] sm:$0xf0] }
 0x2bb   : > { %4130 = vmatmul.bf16.gmra.mxu2 %v3959_v20  ;;  %4662 = vmatmul.bf16.gmra.mxu0 %v7531_v19  ;;  %v8151_v20 = vld [vmem:[%s8367_s18 + $0x64] sm:$0xf]  ;;  %v7540_v19 = vld [vmem:[%s8367_s18 + $0x68] sm:$0xf0] }
 0x2bc   : > { %v2770_v44 = vadd.f32 %v2716_v62, %v9104_v58  ;;  %4751 = vmatmul.bf16.gmra.mxu1 %v7535_v4  ;;  %v3765_v58 = vsel %vm8563_vm5, %v7346_v43, %v3764_v49  ;;  %v7539_v4 = vor.u32 %v8152_v37, %v7538_v27  ;;  %v7543_v33 = vor.u32 %v8151_v20, %v7540_v19  ;;  %v8216_v37 = vld [vmem:[%s10194_s1 + $0x428] sm:$0xff] }
 0x2bd   : > { %v3901_v12 = vunpack.c.l.b16 %v3765_v58  ;;  %v8224_v20 = vld [vmem:[%s10194_s1 + $0x468] sm:$0xff]  ;;  %6193 = vmatpush.bf16.msra.mxu0 %v8216_v37 }
 0x2be   : > { %4219 = vmatmul.bf16.gmra.mxu3 %v3960_v25  ;;  %v9485_v36 = vadd.f32 %v3615_v60, %v2770_v44  ;;  %v2629_v5 = vpop.f32.mrf.mxu2  ;;  %v3902_v60 = vunpack.c.h.b16 %v3765_v58  ;;  %v3771_v44 = vrot.slane %v8260_v41, 5  ;;  %v8208_v58 = vld [vmem:[%s10194_s1 + $0x3e8] sm:$0xff]  ;;  %6282 = vmatpush.bf16.msra.mxu1 %v8224_v20 }
 0x2bf   : > { %v3961_v25 = vpack.c.b16 %v3903_v1, %v3901_v12  ;;  %5639 = vmatpush.bf16.msra.mxu3 %v8208_v58  ;;  %v7332_v58 = vld [vmem:[%s8367_s18 + $0x78] sm:$0xee] }
 0x2c0   : > { %v3530_v2 = vpop.f32.mrf.mxu0  ;;  %v3962_v49 = vpack.c.b16 %v3904_v61, %v3902_v60 }
 0x2c1   : > { %v2718_v38 = vpop.f32.mrf.mxu3  ;;  %v3619_v51 = vpop.f32.mrf.mxu1 }
 0x2c2   : > { %v2719_v3 = vadd.f32 %v2718_v38, %v2629_v5  ;;  %v3620_v54 = vadd.f32 %v3619_v51, %v3530_v2  ;;  %v3773_v5 = vrot.slane %v3771_v44, 4  ;;  %v8261_v38 = vld [vmem:[%s8367_s18 + $0x70] sm:$0x11]  ;;  %v8200_v2 = vld [vmem:[%s10194_s1 + $0x3a8] sm:$0xff] }
 0x2c3   : > { %5550 = vmatpush.bf16.msra.mxu2 %v8200_v2 }
 0x2c4   : > { %v2771_v57 = vadd.f32 %v2719_v3, %v9117_v7  ;;  %v3774_v3 = vrot.slane %v8261_v38, 5  ;;  %v8262_v38 = vld [vmem:[%s8367_s18 + $0x80] sm:$0xff] }
 0x2c6   : > { %v9494_v28 = vadd.f32 %v3618_v50, %v2771_v57  ;;  %v2631_v62 = vpop.f32.mrf.mxu2  ;;  %v7347_v50 = vrot.slane %v7331_v32, 9  ;;  %v3775_v60 = vsel %vm8563_vm5, %v3773_v5, %v3774_v3  ;;  %v3778_v3 = vrot.slane %v8262_v38, 5 }
 0x2c8   : > { %v3533_v7 = vpop.f32.mrf.mxu0  ;;  %v3772_v1 = vsel %vm8563_vm5, %v7347_v50, %v3771_v44 }
 0x2c9   : > { %v2720_v10 = vpop.f32.mrf.mxu3  ;;  %v3622_v43 = vpop.f32.mrf.mxu1  ;;  %v3905_v19 = vunpack.c.l.b16 %v3772_v1 }
 0x2ca   : > { %v2721_v26 = vadd.f32 %v2720_v10, %v2631_v62  ;;  %v3623_v55 = vadd.f32 %v3622_v43, %v3533_v7  ;;  %v3907_v62 = vunpack.c.l.b16 %v3775_v60  ;;  %v3906_v10 = vunpack.c.h.b16 %v3772_v1  ;;  %v8153_v7 = vld [vmem:[%s8367_s18 + $0x7c] sm:$0xf] }
 0x2cb   : > { %4135 = vmatmul.bf16.gmra.mxu2 %v3961_v25  ;;  %4667 = vmatmul.bf16.gmra.mxu0 %v7539_v4  ;;  %v3908_v25 = vunpack.c.h.b16 %v3775_v60  ;;  %v7546_v4 = vld [vmem:[%s8367_s18 + $0x78] sm:$0xf] }
 0x2cc   : > { %v2772_v59 = vadd.f32 %v2721_v26, %v9130_v15  ;;  %4756 = vmatmul.bf16.gmra.mxu1 %v7543_v33  ;;  %v8154_v26 = vld [vmem:[%s8367_s18 + $0x7c] sm:$0xf0]  ;;  %v3963_v44 = vpack.c.b16 %v3907_v62, %v3905_v19 }
 0x2cd   : > { %v7547_v43 = vor.u32 %v8154_v26, %v7546_v4  ;;  %v3964_v50 = vpack.c.b16 %v3908_v25, %v3906_v10 }
 0x2ce   : > { %4224 = vmatmul.bf16.gmra.mxu3 %v3962_v49  ;;  %v9508_v18 = vadd.f32 %v3620_v54, %v2772_v59  ;;  %v2634_v15 = vpop.f32.mrf.mxu2  ;;  %v7548_v49 = vld [vmem:[%s8367_s18 + $0x80] sm:$0xf0] }
 0x2cf   : > { %v7551_v5 = vor.u32 %v8153_v7, %v7548_v49  ;;  %v7554_v49 = vld [vmem:[%s8367_s18 + $0x90] sm:$0xf] }
 0x2d0   : > { %v3535_v12 = vpop.f32.mrf.mxu0 }
 0x2d1   : > { %v2723_v51 = vpop.f32.mrf.mxu3  ;;  %v3624_v61 = vpop.f32.mrf.mxu1 }
 0x2d2   : > { %v2724_v57 = vadd.f32 %v2723_v51, %v2634_v15  ;;  %v3625_v27 = vadd.f32 %v3624_v61, %v3535_v12  ;;  %v8263_v12 = vld [vmem:[%s8367_s18 + $0x88] sm:$0x11] }
 0x2d3   : > { %v3781_v1 = vrot.slane %v8263_v12, 5 }
 0x2d4   : > { %v2773_v54 = vadd.f32 %v2724_v57, %v9147_v29  ;;  %v3780_v57 = vrot.slane %v3778_v3, 4 }
 0x2d6   : > { %v9523_v29 = vadd.f32 %v3623_v55, %v2773_v54  ;;  %v2636_v33 = vpop.f32.mrf.mxu2  ;;  %v7348_v55 = vrot.slane %v7332_v58, 9  ;;  %v3782_v19 = vsel %vm8563_vm5, %v3780_v57, %v3781_v1  ;;  %v8264_v58 = vld [vmem:[%s8367_s18 + $0x98] sm:$0xff]  ;;  %v7333_v57 = vld [vmem:[%s8367_s18 + $0x90] sm:$0xee] }
 0x2d7   : > { %v3911_v26 = vunpack.c.l.b16 %v3782_v19  ;;  %v3912_v7 = vunpack.c.h.b16 %v3782_v19 }
 0x2d8   : > { %v3538_v59 = vpop.f32.mrf.mxu0 }
 0x2d9   : > { %v2725_v41 = vpop.f32.mrf.mxu3  ;;  %v3627_v2 = vpop.f32.mrf.mxu1 }
 0x2da   : > { %v2726_v32 = vadd.f32 %v2725_v41, %v2636_v33  ;;  %v3628_v51 = vadd.f32 %v3627_v2, %v3538_v59  ;;  %v8156_v33 = vld [vmem:[%s8367_s18 + $0x94] sm:$0xf0] }
 0x2db   : > { %4140 = vmatmul.bf16.gmra.mxu2 %v3963_v44  ;;  %4672 = vmatmul.bf16.gmra.mxu0 %v7547_v43  ;;  %v8155_v44 = vld [vmem:[%s8367_s18 + $0x94] sm:$0xf]  ;;  %v7556_v43 = vld [vmem:[%s8367_s18 + $0x98] sm:$0xf0] }
 0x2dc   : > { %v2774_v15 = vadd.f32 %v2726_v32, %v9155_v35  ;;  %4761 = vmatmul.bf16.gmra.mxu1 %v7551_v5  ;;  %v3779_v35 = vsel %vm8563_vm5, %v7348_v55, %v3778_v3  ;;  %v7555_v5 = vor.u32 %v8156_v33, %v7554_v49  ;;  %v7559_v2 = vor.u32 %v8155_v44, %v7556_v43  ;;  %v8215_v33 = vld [vmem:[%s10194_s1 + $0x420] sm:$0xff] }
 0x2dd   : > { %v3909_v4 = vunpack.c.l.b16 %v3779_v35  ;;  %v8223_v44 = vld [vmem:[%s10194_s1 + $0x460] sm:$0xff]  ;;  %6194 = vmatpush.bf16.msra.mxu0 %v8215_v33 }
 0x2de   : > { %4229 = vmatmul.bf16.gmra.mxu3 %v3964_v50  ;;  %v9531_v60 = vadd.f32 %v3625_v27, %v2774_v15  ;;  %v2639_v61 = vpop.f32.mrf.mxu2  ;;  %v3910_v27 = vunpack.c.h.b16 %v3779_v35  ;;  %v3785_v15 = vrot.slane %v8264_v58, 5  ;;  %v8207_v35 = vld [vmem:[%s10194_s1 + $0x3e0] sm:$0xff]  ;;  %6283 = vmatpush.bf16.msra.mxu1 %v8223_v44 }
 0x2df   : > { %v3965_v50 = vpack.c.b16 %v3911_v26, %v3909_v4  ;;  %5640 = vmatpush.bf16.msra.mxu3 %v8207_v35  ;;  %v7334_v35 = vld [vmem:[%s8367_s18 + $0xa8] sm:$0xee] }
 0x2e0   : > { %v3540_v20 = vpop.f32.mrf.mxu0  ;;  %v3966_v3 = vpack.c.b16 %v3912_v7, %v3910_v27 }
 0x2e1   : > { %v2728_v54 = vpop.f32.mrf.mxu3  ;;  %v3629_v62 = vpop.f32.mrf.mxu1 }
 0x2e2   : > { %v2729_v37 = vadd.f32 %v2728_v54, %v2639_v61  ;;  %v3630_v25 = vadd.f32 %v3629_v62, %v3540_v20  ;;  %v3787_v61 = vrot.slane %v3785_v15, 4  ;;  %v8265_v54 = vld [vmem:[%s8367_s18 + $0xa0] sm:$0x11] }
 0x2e3   : > { %v8199_v20 = vld [vmem:[%s10194_s1 + $0x3a0] sm:$0xff] }
 0x2e4   : > { %v2775_v10 = vadd.f32 %v2729_v37, %v9166_v16  ;;  %v3788_v37 = vrot.slane %v8265_v54, 5  ;;  %5551 = vmatpush.bf16.msra.mxu2 %v8199_v20  ;;  %v8266_v54 = vld [vmem:[%s8367_s18 + $0xb0] sm:$0xff] }
 0x2e6   : > { %v9540_v41 = vadd.f32 %v3628_v51, %v2775_v10  ;;  %v2641_v32 = vpop.f32.mrf.mxu2  ;;  %v7349_v51 = vrot.slane %v7333_v57, 9  ;;  %v3789_v27 = vsel %vm8563_vm5, %v3787_v61, %v3788_v37  ;;  %v3792_v37 = vrot.slane %v8266_v54, 5 }
 0x2e8   : > { %v3543_v16 = vpop.f32.mrf.mxu0  ;;  %v3786_v26 = vsel %vm8563_vm5, %v7349_v51, %v3785_v15 }
 0x2e9   : > { %v2730_v59 = vpop.f32.mrf.mxu3  ;;  %v3632_v55 = vpop.f32.mrf.mxu1  ;;  %v3913_v43 = vunpack.c.l.b16 %v3786_v26 }
 0x2ea   : > { %v2731_v38 = vadd.f32 %v2730_v59, %v2641_v32  ;;  %v3633_v1 = vadd.f32 %v3632_v55, %v3543_v16  ;;  %v3915_v32 = vunpack.c.l.b16 %v3789_v27  ;;  %v3914_v59 = vunpack.c.h.b16 %v3786_v26  ;;  %v8157_v16 = vld [vmem:[%s8367_s18 + $0xac] sm:$0xf] }
 0x2eb   : > { %4145 = vmatmul.bf16.gmra.mxu2 %v3965_v50  ;;  %4677 = vmatmul.bf16.gmra.mxu0 %v7555_v5  ;;  %v3916_v50 = vunpack.c.h.b16 %v3789_v27  ;;  %v7562_v5 = vld [vmem:[%s8367_s18 + $0xa8] sm:$0xf] }
 0x2ec   : > { %v2776_v12 = vadd.f32 %v2731_v38, %v9179_v13  ;;  %4766 = vmatmul.bf16.gmra.mxu1 %v7559_v2  ;;  %v8158_v38 = vld [vmem:[%s8367_s18 + $0xac] sm:$0xf0]  ;;  %v3967_v15 = vpack.c.b16 %v3915_v32, %v3913_v43 }
 0x2ed   : > { %v7563_v55 = vor.u32 %v8158_v38, %v7562_v5  ;;  %v3968_v51 = vpack.c.b16 %v3916_v50, %v3914_v59 }
 0x2ee   : > { %4234 = vmatmul.bf16.gmra.mxu3 %v3966_v3  ;;  %v9554_v19 = vadd.f32 %v3630_v25, %v2776_v12  ;;  %v2644_v13 = vpop.f32.mrf.mxu2  ;;  %v7564_v3 = vld [vmem:[%s8367_s18 + $0xb0] sm:$0xf0] }
 0x2ef   : > { %v7567_v61 = vor.u32 %v8157_v16, %v7564_v3  ;;  %v7570_v3 = vld [vmem:[%s8367_s18 + $0xc0] sm:$0xf] }
 0x2f0   : > { %v3545_v4 = vpop.f32.mrf.mxu0 }
 0x2f1   : > { %v2733_v62 = vpop.f32.mrf.mxu3  ;;  %v3634_v7 = vpop.f32.mrf.mxu1 }
 0x2f2   : > { %v2734_v10 = vadd.f32 %v2733_v62, %v2644_v13  ;;  %v3635_v49 = vadd.f32 %v3634_v7, %v3545_v4  ;;  %v8267_v4 = vld [vmem:[%s8367_s18 + $0xb8] sm:$0x11] }
 0x2f3   : > { %v3795_v26 = vrot.slane %v8267_v4, 5 }
 0x2f4   : > { %v2777_v25 = vadd.f32 %v2734_v10, %v9198_v39  ;;  %v3794_v10 = vrot.slane %v3792_v37, 4 }
 0x2f6   : > { %v9569_v39 = vadd.f32 %v3633_v1, %v2777_v25  ;;  %v2646_v2 = vpop.f32.mrf.mxu2  ;;  %v7350_v1 = vrot.slane %v7334_v35, 9  ;;  %v3796_v43 = vsel %vm8563_vm5, %v3794_v10, %v3795_v26  ;;  %v8268_v35 = vld [vmem:[%s8367_s18 + $0xc8] sm:$0xff]  ;;  %v7335_v10 = vld [vmem:[%s8367_s18 + $0xc0] sm:$0xee] }
 0x2f7   : > { %v3919_v38 = vunpack.c.l.b16 %v3796_v43  ;;  %v3920_v16 = vunpack.c.h.b16 %v3796_v43 }
 0x2f8   : > { %v3548_v12 = vpop.f32.mrf.mxu0 }
 0x2f9   : > { %v2735_v58 = vpop.f32.mrf.mxu3  ;;  %v3637_v20 = vpop.f32.mrf.mxu1 }
 0x2fa   : > { %v2736_v57 = vadd.f32 %v2735_v58, %v2646_v2  ;;  %v3638_v62 = vadd.f32 %v3637_v20, %v3548_v12  ;;  %v8160_v2 = vld [vmem:[%s8367_s18 + $0xc4] sm:$0xf0] }
 0x2fb   : > { %4150 = vmatmul.bf16.gmra.mxu2 %v3967_v15  ;;  %4682 = vmatmul.bf16.gmra.mxu0 %v7563_v55  ;;  %v8159_v15 = vld [vmem:[%s8367_s18 + $0xc4] sm:$0xf]  ;;  %v7572_v55 = vld [vmem:[%s8367_s18 + $0xc8] sm:$0xf0] }
 0x2fc   : > { %v2778_v13 = vadd.f32 %v2736_v57, %v9205_v53  ;;  %4771 = vmatmul.bf16.gmra.mxu1 %v7567_v61  ;;  %v3793_v53 = vsel %vm8563_vm5, %v7350_v1, %v3792_v37  ;;  %v7571_v61 = vor.u32 %v8160_v2, %v7570_v3  ;;  %v7575_v20 = vor.u32 %v8159_v15, %v7572_v55  ;;  %v8214_v2 = vld [vmem:[%s10194_s1 + $0x418] sm:$0xff] }
 0x2fd   : > { %v3917_v5 = vunpack.c.l.b16 %v3793_v53  ;;  %v8222_v15 = vld [vmem:[%s10194_s1 + $0x458] sm:$0xff]  ;;  %6195 = vmatpush.bf16.msra.mxu0 %v8214_v2 }
 0x2fe   : > { %4239 = vmatmul.bf16.gmra.mxu3 %v3968_v51  ;;  %v9577_v27 = vadd.f32 %v3635_v49, %v2778_v13  ;;  %v2649_v7 = vpop.f32.mrf.mxu2  ;;  %v3918_v49 = vunpack.c.h.b16 %v3793_v53  ;;  %v3799_v13 = vrot.slane %v8268_v35, 5  ;;  %v8206_v53 = vld [vmem:[%s10194_s1 + $0x3d8] sm:$0xff]  ;;  %6284 = vmatpush.bf16.msra.mxu1 %v8222_v15 }
 0x2ff   : > { %v3969_v51 = vpack.c.b16 %v3919_v38, %v3917_v5  ;;  %5641 = vmatpush.bf16.msra.mxu3 %v8206_v53  ;;  %v7336_v53 = vld [vmem:[%s8367_s18 + $0xd8] sm:$0xee] }
 0x300   : > { %v3550_v44 = vpop.f32.mrf.mxu0  ;;  %v3970_v37 = vpack.c.b16 %v3920_v16, %v3918_v49 }
 0x301   : > { %v2738_v25 = vpop.f32.mrf.mxu3  ;;  %v3639_v32 = vpop.f32.mrf.mxu1 }
 0x302   : > { %v2739_v33 = vadd.f32 %v2738_v25, %v2649_v7  ;;  %v3640_v50 = vadd.f32 %v3639_v32, %v3550_v44  ;;  %v3801_v7 = vrot.slane %v3799_v13, 4  ;;  %v8269_v25 = vld [vmem:[%s8367_s18 + $0xd0] sm:$0x11]  ;;  %v8198_v44 = vld [vmem:[%s10194_s1 + $0x398] sm:$0xff] }
 0x303   : > { %5552 = vmatpush.bf16.msra.mxu2 %v8198_v44 }
 0x304   : > { %v2779_v59 = vadd.f32 %v2739_v33, %v9216_v56  ;;  %v3802_v33 = vrot.slane %v8269_v25, 5  ;;  %v8270_v25 = vld [vmem:[%s8367_s18 + $0xe0] sm:$0xff] }
 0x306   : > { %v9586_v58 = vadd.f32 %v3638_v62, %v2779_v59  ;;  %v2651_v57 = vpop.f32.mrf.mxu2  ;;  %v7351_v62 = vrot.slane %v7335_v10, 9  ;;  %v3803_v49 = vsel %vm8563_vm5, %v3801_v7, %v3802_v33  ;;  %v3806_v33 = vrot.slane %v8270_v25, 5 }
 0x308   : > { %v3553_v56 = vpop.f32.mrf.mxu0  ;;  %v3800_v38 = vsel %vm8563_vm5, %v7351_v62, %v3799_v13 }
 0x309   : > { %v2740_v12 = vpop.f32.mrf.mxu3  ;;  %v3642_v1 = vpop.f32.mrf.mxu1  ;;  %v3921_v55 = vunpack.c.l.b16 %v3800_v38 }
 0x30a   : > { %v2741_v54 = vadd.f32 %v2740_v12, %v2651_v57  ;;  %v3643_v26 = vadd.f32 %v3642_v1, %v3553_v56  ;;  %v3923_v57 = vunpack.c.l.b16 %v3803_v49  ;;  %v3922_v12 = vunpack.c.h.b16 %v3800_v38  ;;  %v8161_v56 = vld [vmem:[%s8367_s18 + $0xdc] sm:$0xf] }
 0x30b   : > { %4155 = vmatmul.bf16.gmra.mxu2 %v3969_v51  ;;  %4687 = vmatmul.bf16.gmra.mxu0 %v7571_v61  ;;  %v3924_v51 = vunpack.c.h.b16 %v3803_v49  ;;  %v7578_v61 = vld [vmem:[%s8367_s18 + $0xd8] sm:$0xf] }
 0x30c   : > { %v2780_v4 = vadd.f32 %v2741_v54, %v9230_v22  ;;  %4776 = vmatmul.bf16.gmra.mxu1 %v7575_v20  ;;  %v8162_v54 = vld [vmem:[%s8367_s18 + $0xdc] sm:$0xf0]  ;;  %v3971_v13 = vpack.c.b16 %v3923_v57, %v3921_v55 }
 0x30d   : > { %v7579_v1 = vor.u32 %v8162_v54, %v7578_v61  ;;  %v3972_v62 = vpack.c.b16 %v3924_v51, %v3922_v12  ;;  %v10211_v12 = vld [vmem:[#allocation2_spill] sm:$0xff] }
 0x30e   : > { %4244 = vmatmul.bf16.gmra.mxu3 %v3970_v37  ;;  %v9600_v43 = vadd.f32 %v3640_v50, %v2780_v4  ;;  %v2654_v22 = vpop.f32.mrf.mxu2  ;;  %v7580_v37 = vld [vmem:[%s8367_s18 + $0xe0] sm:$0xf0] }
 0x30f   : > { %v7583_v7 = vor.u32 %v8161_v56, %v7580_v37 }
 0x310   : > { %v3555_v5 = vpop.f32.mrf.mxu0 }
 0x311   : > { %v2743_v32 = vpop.f32.mrf.mxu3  ;;  %v3644_v16 = vpop.f32.mrf.mxu1 }
 0x312   : > { %v2744_v59 = vadd.f32 %v2743_v32, %v2654_v22  ;;  %v3645_v3 = vadd.f32 %v3644_v16, %v3555_v5  ;;  %v8271_v5 = vld [vmem:[%s8367_s18 + $0xe8] sm:$0x11] }
 0x313   : > { %v3809_v38 = vrot.slane %v8271_v5, 5 }
 0x314   : > { %v2781_v50 = vadd.f32 %v2744_v59, %v9247_v63  ;;  %v3808_v59 = vrot.slane %v3806_v33, 4 }
 0x316   : > { %v9615_v63 = vadd.f32 %v3643_v26, %v2781_v50  ;;  %v2656_v20 = vpop.f32.mrf.mxu2  ;;  %v7352_v26 = vrot.slane %v7336_v53, 9  ;;  %v3810_v55 = vsel %vm8563_vm5, %v3808_v59, %v3809_v38  ;;  %v7337_v38 = vld [vmem:[%s8367_s18 + $0xf0] sm:$0xee] }
 0x317   : > { %v3927_v56 = vunpack.c.l.b16 %v3810_v55  ;;  %v3928_v37 = vunpack.c.h.b16 %v3810_v55  ;;  %v8197_v55 = vld [vmem:[%s10194_s1 + $0x390] sm:$0xff] }
 0x318   : > { %v3558_v4 = vpop.f32.mrf.mxu0  ;;  %5553 = vmatpush.bf16.msra.mxu2 %v8197_v55 }
 0x319   : > { %v2745_v35 = vpop.f32.mrf.mxu3  ;;  %v3647_v44 = vpop.f32.mrf.mxu1 }
 0x31a   : > { %v2746_v10 = vadd.f32 %v2745_v35, %v2656_v20  ;;  %v3648_v32 = vadd.f32 %v3647_v44, %v3558_v4  ;;  %v7586_v20 = vld [vmem:[%s8367_s18 + $0xf0] sm:$0xf]  ;;  %v8164_v35 = vld [vmem:[%s8367_s18 + $0xf4] sm:$0xf0] }
 0x31b   : > { %4160 = vmatmul.bf16.gmra.mxu2 %v3971_v13  ;;  %4692 = vmatmul.bf16.gmra.mxu0 %v7579_v1  ;;  %v8163_v1 = vld [vmem:[%s8367_s18 + $0xf4] sm:$0xf]  ;;  %v7587_v25 = vor.u32 %v8164_v35, %v7586_v20 }
 0x31c   : > { %v2782_v22 = vadd.f32 %v2746_v10, %v9254_v46  ;;  %4781 = vmatmul.bf16.gmra.mxu1 %v7583_v7  ;;  %v3807_v46 = vsel %vm8563_vm5, %v7352_v26, %v3806_v33  ;;  %v7588_v10 = vld [vmem:[%s8367_s18 + $0xf8] sm:$0xf0] }
 0x31d   : > { %v3925_v54 = vunpack.c.l.b16 %v3807_v46  ;;  %v8272_v26 = vld [vmem:[%s8367_s18 + $0xf8] sm:$0xff] }
 0x31e   : > { %4249 = vmatmul.bf16.gmra.mxu3 %v3972_v62  ;;  %v9623_v49 = vadd.f32 %v3645_v3, %v2782_v22  ;;  %v2659_v16 = vpop.f32.mrf.mxu2  ;;  %v3926_v3 = vunpack.c.h.b16 %v3807_v46  ;;  %v7591_v22 = vor.u32 %v8163_v1, %v7588_v10  ;;  %v3813_v59 = vrot.slane %v8272_v26, 5  ;;  %v8213_v1 = vld [vmem:[%s10194_s1 + $0x410] sm:$0xff] }
 0x31f   : > { %v3973_v7 = vpack.c.b16 %v3927_v56, %v3925_v54  ;;  %v8221_v10 = vld [vmem:[%s10194_s1 + $0x450] sm:$0xff]  ;;  %6196 = vmatpush.bf16.msra.mxu0 %v8213_v1 }
 0x320   : > { %v3560_v15 = vpop.f32.mrf.mxu0  ;;  %v3974_v53 = vpack.c.b16 %v3928_v37, %v3926_v3  ;;  %6285 = vmatpush.bf16.msra.mxu1 %v8221_v10 }
 0x321   : > { %v2748_v50 = vpop.f32.mrf.mxu3  ;;  %v3649_v57 = vpop.f32.mrf.mxu1 }
 0x322   : > { %v2749_v2 = vadd.f32 %v2748_v50, %v2659_v16  ;;  %v3650_v61 = vadd.f32 %v3649_v57, %v3560_v15  ;;  %v8273_v15 = vld [vmem:[%s8367_s18 + $0x100] sm:$0x11]  ;;  %v8205_v57 = vld [vmem:[%s10194_s1 + $0x3d0] sm:$0xff] }
 0x323   : > { %v3816_v46 = vrot.slane %v8273_v15, 5  ;;  %5642 = vmatpush.bf16.msra.mxu3 %v8205_v57 }
 0x324   : > { %v2783_v51 = vadd.f32 %v2749_v2, %v10211_v12  ;;  %v3815_v2 = vrot.slane %v3813_v59, 4 }
 0x326   : > { %v9632_v13 = vadd.f32 %v3648_v32, %v2783_v51  ;;  %v2661_v4 = vpop.f32.mrf.mxu2  ;;  %v7353_v32 = vrot.slane %v7337_v38, 9  ;;  %v3817_v37 = vsel %vm8563_vm5, %v3815_v2, %v3816_v46  ;;  %v8274_v46 = vld [vmem:[%s8367_s18 + $0x110] sm:$0xff] }
 0x327   : > { %v3820_v55 = vrot.slane %v8274_v46, 5 }
 0x328   : > { %v4658_v44 = vpop.f32.mrf.mxu0  ;;  %v3814_v3 = vsel %vm8563_vm5, %v7353_v32, %v3813_v59 }
 0x329   : > { %v2750_v62 = vpop.f32.mrf.mxu3  ;;  %v4747_v5 = vpop.f32.mrf.mxu1 }
 0x32a   : > { %v2751_v33 = vadd.f32 %v2750_v62, %v2661_v4  ;;  %v4748_v50 = vadd.f32 %v4747_v5, %v4658_v44  ;;  %v3929_v4 = vunpack.c.l.b16 %v3814_v3  ;;  %v3931_v62 = vunpack.c.l.b16 %v3817_v37  ;;  %v8166_v44 = vld [vmem:[%s8367_s18 + $0x10c] sm:$0xf0] }
 0x32b   : > { %4165 = vmatmul.bf16.gmra.mxu2 %v3973_v7  ;;  %4697 = vmatmul.bf16.gmra.mxu0 %v7587_v25  ;;  %v3930_v7 = vunpack.c.h.b16 %v3814_v3  ;;  %v3932_v25 = vunpack.c.h.b16 %v3817_v37  ;;  %v8275_v3 = vld [vmem:[%s8367_s18 + $0x118] sm:$0x11] }
 0x32c   : > { %v2784_v16 = vadd.f32 %v2751_v33, %v9280_v17  ;;  %4786 = vmatmul.bf16.gmra.mxu1 %v7591_v22  ;;  %v7594_v33 = vld [vmem:[%s8367_s18 + $0x108] sm:$0xf]  ;;  %v7596_v22 = vld [vmem:[%s8367_s18 + $0x110] sm:$0xf0]  ;;  %v3975_v5 = vpack.c.b16 %v3931_v62, %v3929_v4  ;;  %v3823_v37 = vrot.slane %v8275_v3, 5 }
 0x32d   : > { %v7595_v38 = vor.u32 %v8166_v44, %v7594_v33  ;;  %v3976_v2 = vpack.c.b16 %v3932_v25, %v3930_v7  ;;  %v7339_v3 = vld [vmem:[%s8367_s18 + $0x120] sm:$0xee] }
 0x32e   : > { %4254 = vmatmul.bf16.gmra.mxu3 %v3974_v53  ;;  %v9646_v12 = vadd.f32 %v3650_v61, %v2784_v16  ;;  %v4126_v17 = vpop.f32.mrf.mxu2  ;;  %v8165_v53 = vld [vmem:[%s8367_s18 + $0x10c] sm:$0xf] }
 0x32f   : > { %v7599_v15 = vor.u32 %v8165_v53, %v7596_v22 }
 0x330   : > { %v4660_v56 = vpop.f32.mrf.mxu0 }
 0x331   : > { %v4215_v51 = vpop.f32.mrf.mxu3  ;;  %v4749_v20 = vpop.f32.mrf.mxu1 }
 0x332   : > { %v4216_v54 = vadd.f32 %v4215_v51, %v4126_v17  ;;  %v4750_v35 = vadd.f32 %v4749_v20, %v4660_v56  ;;  %v7338_v17 = vld [vmem:[%s8367_s18 + $0x108] sm:$0xee]  ;;  %v3822_v56 = vrot.slane %v3820_v55, 4 }
 0x334   : > { %v4295_v61 = vadd.f32 %v4216_v54, %v9296_v21  ;;  %v3824_v62 = vsel %vm8563_vm5, %v3822_v56, %v3823_v37 }
 0x335   : > { %v3935_v53 = vunpack.c.l.b16 %v3824_v62  ;;  %v3936_v22 = vunpack.c.h.b16 %v3824_v62  ;;  %v8204_v62 = vld [vmem:[%s10194_s1 + $0x3c8] sm:$0xff] }
 0x336   : > { %v9661_v21 = vadd.f32 %v4748_v50, %v4295_v61  ;;  %v4128_v26 = vpop.f32.mrf.mxu2  ;;  %v7354_v50 = vrot.slane %v7338_v17, 9  ;;  %5643 = vmatpush.bf16.msra.mxu3 %v8204_v62 }
 0x338   : > { %v4663_v32 = vpop.f32.mrf.mxu0 }
 0x339   : > { %v4217_v59 = vpop.f32.mrf.mxu3  ;;  %v4752_v57 = vpop.f32.mrf.mxu1 }
 0x33a   : > { %v4218_v16 = vadd.f32 %v4217_v59, %v4128_v26  ;;  %v4753_v54 = vadd.f32 %v4752_v57, %v4663_v32  ;;  %v7602_v26 = vld [vmem:[%s8367_s18 + $0x120] sm:$0xf]  ;;  %v8168_v59 = vld [vmem:[%s8367_s18 + $0x124] sm:$0xf0] }
 0x33b   : > { %4170 = vmatmul.bf16.gmra.mxu2 %v3975_v5  ;;  %4702 = vmatmul.bf16.gmra.mxu0 %v7595_v38  ;;  %v8167_v38 = vld [vmem:[%s8367_s18 + $0x124] sm:$0xf]  ;;  %v7603_v46 = vor.u32 %v8168_v59, %v7602_v26 }
 0x33c   : > { %v4296_v51 = vadd.f32 %v4218_v16, %v9303_v8  ;;  %4791 = vmatmul.bf16.gmra.mxu1 %v7599_v15  ;;  %v3821_v8 = vsel %vm8563_vm5, %v7354_v50, %v3820_v55  ;;  %v7604_v16 = vld [vmem:[%s8367_s18 + $0x128] sm:$0xf0] }
 0x33d   : > { %v3933_v44 = vunpack.c.l.b16 %v3821_v8  ;;  %v7607_v17 = vor.u32 %v8167_v38, %v7604_v16  ;;  %v8212_v38 = vld [vmem:[%s10194_s1 + $0x408] sm:$0xff] }
 0x33e   : > { %4259 = vmatmul.bf16.gmra.mxu3 %v3976_v2  ;;  %v9669_v20 = vadd.f32 %v4750_v35, %v4296_v51  ;;  %v4131_v61 = vpop.f32.mrf.mxu2  ;;  %v3934_v35 = vunpack.c.h.b16 %v3821_v8  ;;  %v8276_v51 = vld [vmem:[%s8367_s18 + $0x128] sm:$0xff]  ;;  %6197 = vmatpush.bf16.msra.mxu0 %v8212_v38 }
 0x33f   : > { %v3977_v15 = vpack.c.b16 %v3935_v53, %v3933_v44  ;;  %v3827_v50 = vrot.slane %v8276_v51, 5  ;;  %v8196_v8 = vld [vmem:[%s10194_s1 + $0x388] sm:$0xff] }
 0x340   : > { %v4665_v4 = vpop.f32.mrf.mxu0  ;;  %v3978_v57 = vpack.c.b16 %v3936_v22, %v3934_v35  ;;  %5554 = vmatpush.bf16.msra.mxu2 %v8196_v8  ;;  %v8220_v16 = vld [vmem:[%s10194_s1 + $0x448] sm:$0xff] }
 0x341   : > { %v4220_v1 = vpop.f32.mrf.mxu3  ;;  %v4754_v7 = vpop.f32.mrf.mxu1  ;;  %6286 = vmatpush.bf16.msra.mxu1 %v8220_v16 }
 0x342   : > { %v4221_v10 = vadd.f32 %v4220_v1, %v4131_v61  ;;  %v4755_v33 = vadd.f32 %v4754_v7, %v4665_v4  ;;  %v3829_v1 = vrot.slane %v3827_v50, 4 }
 0x344   : > { %v4297_v25 = vadd.f32 %v4221_v10, %v9313_v52  ;;  %v8277_v10 = vld [vmem:[%s8367_s18 + $0x130] sm:$0x11] }
 0x345   : > { %v3830_v4 = vrot.slane %v8277_v10, 5 }
 0x346   : > { %v9678_v5 = vadd.f32 %v4753_v54, %v4297_v25  ;;  %v4133_v32 = vpop.f32.mrf.mxu2  ;;  %v7355_v54 = vrot.slane %v7339_v3, 9 }
 0x347   : > { %v3831_v22 = vsel %vm8563_vm5, %v3829_v1, %v3830_v4  ;;  %v8278_v4 = vld [vmem:[%s8367_s18 + $0x140] sm:$0xff] }
 0x348   : > { %v4668_v52 = vpop.f32.mrf.mxu0  ;;  %v3828_v35 = vsel %vm8563_vm5, %v7355_v54, %v3827_v50  ;;  %v3834_v8 = vrot.slane %v8278_v4, 5 }
 0x349   : > { %v4222_v2 = vpop.f32.mrf.mxu3  ;;  %v4757_v56 = vpop.f32.mrf.mxu1 }
 0x34a   : > { %v4223_v55 = vadd.f32 %v4222_v2, %v4133_v32  ;;  %v4758_v61 = vadd.f32 %v4757_v56, %v4668_v52  ;;  %v3937_v32 = vunpack.c.l.b16 %v3828_v35  ;;  %v3939_v2 = vunpack.c.l.b16 %v3831_v22  ;;  %v8170_v52 = vld [vmem:[%s8367_s18 + $0x13c] sm:$0xf0] }
 0x34b   : > { %4175 = vmatmul.bf16.gmra.mxu2 %v3977_v15  ;;  %4707 = vmatmul.bf16.gmra.mxu0 %v7603_v46  ;;  %v3938_v15 = vunpack.c.h.b16 %v3828_v35  ;;  %v3940_v46 = vunpack.c.h.b16 %v3831_v22  ;;  %v8279_v35 = vld [vmem:[%s8367_s18 + $0x148] sm:$0x11] }
 0x34c   : > { %v4298_v37 = vadd.f32 %v4223_v55, %v9325_v31  ;;  %4796 = vmatmul.bf16.gmra.mxu1 %v7607_v17  ;;  %v7610_v55 = vld [vmem:[%s8367_s18 + $0x138] sm:$0xf]  ;;  %v7612_v17 = vld [vmem:[%s8367_s18 + $0x140] sm:$0xf0]  ;;  %v3979_v56 = vpack.c.b16 %v3939_v2, %v3937_v32  ;;  %v3837_v22 = vrot.slane %v8279_v35, 5 }
 0x34d   : > { %v7611_v3 = vor.u32 %v8170_v52, %v7610_v55  ;;  %v3980_v1 = vpack.c.b16 %v3940_v46, %v3938_v15  ;;  %v7341_v35 = vld [vmem:[%s8367_s18 + $0x150] sm:$0xee] }
 0x34e   : > { %4264 = vmatmul.bf16.gmra.mxu3 %v3978_v57  ;;  %v9692_v7 = vadd.f32 %v4755_v33, %v4298_v37  ;;  %v4136_v31 = vpop.f32.mrf.mxu2  ;;  %v8169_v57 = vld [vmem:[%s8367_s18 + $0x13c] sm:$0xf] }
 0x34f   : > { %v7615_v10 = vor.u32 %v8169_v57, %v7612_v17 }
 0x350   : > { %v4670_v53 = vpop.f32.mrf.mxu0 }
 0x351   : > { %v4225_v25 = vpop.f32.mrf.mxu3  ;;  %v4759_v26 = vpop.f32.mrf.mxu1 }
 0x352   : > { %v4226_v44 = vadd.f32 %v4225_v25, %v4136_v31  ;;  %v4760_v59 = vadd.f32 %v4759_v26, %v4670_v53  ;;  %v7340_v31 = vld [vmem:[%s8367_s18 + $0x138] sm:$0xee]  ;;  %v3836_v53 = vrot.slane %v3834_v8, 4 }
 0x354   : > { %v4299_v33 = vadd.f32 %v4226_v44, %v9343_v30  ;;  %v3838_v2 = vsel %vm8563_vm5, %v3836_v53, %v3837_v22 }
 0x355   : > { %v3943_v57 = vunpack.c.l.b16 %v3838_v2  ;;  %v3944_v17 = vunpack.c.h.b16 %v3838_v2  ;;  %v8203_v2 = vld [vmem:[%s10194_s1 + $0x3c0] sm:$0xff] }
 0x356   : > { %v9707_v30 = vadd.f32 %v4758_v61, %v4299_v33  ;;  %v4138_v51 = vpop.f32.mrf.mxu2  ;;  %v7356_v61 = vrot.slane %v7340_v31, 9  ;;  %5644 = vmatpush.bf16.msra.mxu3 %v8203_v2 }
 0x358   : > { %v4673_v54 = vpop.f32.mrf.mxu0 }
 0x359   : > { %v4227_v50 = vpop.f32.mrf.mxu3  ;;  %v4762_v62 = vpop.f32.mrf.mxu1 }
 0x35a   : > { %v4228_v37 = vadd.f32 %v4227_v50, %v4138_v51  ;;  %v4763_v44 = vadd.f32 %v4762_v62, %v4673_v54  ;;  %v7618_v51 = vld [vmem:[%s8367_s18 + $0x150] sm:$0xf]  ;;  %v8172_v50 = vld [vmem:[%s8367_s18 + $0x154] sm:$0xf0] }
 0x35b   : > { %4180 = vmatmul.bf16.gmra.mxu2 %v3979_v56  ;;  %4712 = vmatmul.bf16.gmra.mxu0 %v7611_v3  ;;  %v8171_v3 = vld [vmem:[%s8367_s18 + $0x154] sm:$0xf]  ;;  %v7619_v4 = vor.u32 %v8172_v50, %v7618_v51 }
 0x35c   : > { %v4300_v25 = vadd.f32 %v4228_v37, %v9349_v23  ;;  %4801 = vmatmul.bf16.gmra.mxu1 %v7615_v10  ;;  %v3835_v23 = vsel %vm8563_vm5, %v7356_v61, %v3834_v8  ;;  %v7620_v37 = vld [vmem:[%s8367_s18 + $0x158] sm:$0xf0] }
 0x35d   : > { %v3941_v52 = vunpack.c.l.b16 %v3835_v23  ;;  %v7623_v31 = vor.u32 %v8171_v3, %v7620_v37  ;;  %v8211_v3 = vld [vmem:[%s10194_s1 + $0x400] sm:$0xff] }
 0x35e   : > { %4269 = vmatmul.bf16.gmra.mxu3 %v3980_v1  ;;  %v9715_v26 = vadd.f32 %v4760_v59, %v4300_v25  ;;  %v4141_v33 = vpop.f32.mrf.mxu2  ;;  %v3942_v59 = vunpack.c.h.b16 %v3835_v23  ;;  %v8280_v25 = vld [vmem:[%s8367_s18 + $0x158] sm:$0xff]  ;;  %v8195_v23 = vld [vmem:[%s10194_s1 + $0x380] sm:$0xff]  ;;  %6198 = vmatpush.bf16.msra.mxu0 %v8211_v3 }
 0x35f   : > { %v3981_v10 = vpack.c.b16 %v3943_v57, %v3941_v52  ;;  %v3841_v61 = vrot.slane %v8280_v25, 5  ;;  %5555 = vmatpush.bf16.msra.mxu2 %v8195_v23  ;;  %v8219_v37 = vld [vmem:[%s10194_s1 + $0x440] sm:$0xff] }
 0x360   : > { %v4675_v32 = vpop.f32.mrf.mxu0  ;;  %v3982_v62 = vpack.c.b16 %v3944_v17, %v3942_v59  ;;  %6287 = vmatpush.bf16.msra.mxu1 %v8219_v37 }
 0x361   : > { %v4230_v38 = vpop.f32.mrf.mxu3  ;;  %v4764_v15 = vpop.f32.mrf.mxu1 }
 0x362   : > { %v4231_v16 = vadd.f32 %v4230_v38, %v4141_v33  ;;  %v4765_v55 = vadd.f32 %v4764_v15, %v4675_v32  ;;  %v3843_v38 = vrot.slane %v3841_v61, 4 }
 0x364   : > { %v4301_v46 = vadd.f32 %v4231_v16, %v9359_v14  ;;  %v8281_v16 = vld [vmem:[%s8367_s18 + $0x160] sm:$0x11] }
 0x365   : > { %v3844_v32 = vrot.slane %v8281_v16, 5 }
 0x366   : > { %v9724_v56 = vadd.f32 %v4763_v44, %v4301_v46  ;;  %v4143_v54 = vpop.f32.mrf.mxu2  ;;  %v7357_v44 = vrot.slane %v7341_v35, 9 }
 0x367   : > { %v3845_v17 = vsel %vm8563_vm5, %v3843_v38, %v3844_v32  ;;  %v8282_v32 = vld [vmem:[%s8367_s18 + $0x170] sm:$0xff] }
 0x368   : > { %v4678_v14 = vpop.f32.mrf.mxu0  ;;  %v3842_v59 = vsel %vm8563_vm5, %v7357_v44, %v3841_v61  ;;  %v3848_v23 = vrot.slane %v8282_v32, 5 }
 0x369   : > { %v4232_v1 = vpop.f32.mrf.mxu3  ;;  %v4767_v53 = vpop.f32.mrf.mxu1 }
 0x36a   : > { %v4233_v8 = vadd.f32 %v4232_v1, %v4143_v54  ;;  %v4768_v33 = vadd.f32 %v4767_v53, %v4678_v14  ;;  %v3945_v54 = vunpack.c.l.b16 %v3842_v59  ;;  %v3947_v1 = vunpack.c.l.b16 %v3845_v17  ;;  %v8174_v14 = vld [vmem:[%s8367_s18 + $0x16c] sm:$0xf0] }
 0x36b   : > { %4185 = vmatmul.bf16.gmra.mxu2 %v3981_v10  ;;  %4717 = vmatmul.bf16.gmra.mxu0 %v7619_v4  ;;  %v3946_v10 = vunpack.c.h.b16 %v3842_v59  ;;  %v3948_v4 = vunpack.c.h.b16 %v3845_v17  ;;  %v3850_v59 = vrot.slane %v3848_v23, 4  ;;  %v8283_v17 = vld [vmem:[%s8367_s18 + $0x178] sm:$0x11] }
 0x36c   : > { %v4302_v22 = vadd.f32 %v4233_v8, %v9372_v48  ;;  %4806 = vmatmul.bf16.gmra.mxu1 %v7623_v31  ;;  %v7626_v8 = vld [vmem:[%s8367_s18 + $0x168] sm:$0xf]  ;;  %v7628_v31 = vld [vmem:[%s8367_s18 + $0x170] sm:$0xf0]  ;;  %v3983_v53 = vpack.c.b16 %v3947_v1, %v3945_v54 }
 0x36d   : > { %v7627_v35 = vor.u32 %v8174_v14, %v7626_v8  ;;  %v3984_v38 = vpack.c.b16 %v3948_v4, %v3946_v10 }
 0x36e   : > { %4274 = vmatmul.bf16.gmra.mxu3 %v3982_v62  ;;  %v9738_v15 = vadd.f32 %v4765_v55, %v4302_v22  ;;  %v4146_v48 = vpop.f32.mrf.mxu2  ;;  %v8173_v62 = vld [vmem:[%s8367_s18 + $0x16c] sm:$0xf] }
 0x36f   : > { %v7631_v16 = vor.u32 %v8173_v62, %v7628_v31 }
 0x370   : > { %v4680_v57 = vpop.f32.mrf.mxu0 }
 0x371   : > { %v4235_v46 = vpop.f32.mrf.mxu3  ;;  %v4769_v51 = vpop.f32.mrf.mxu1 }
 0x372   : > { %v4236_v52 = vadd.f32 %v4235_v46, %v4146_v48  ;;  %v4770_v50 = vadd.f32 %v4769_v51, %v4680_v57  ;;  %v7342_v48 = vld [vmem:[%s8367_s18 + $0x168] sm:$0xee]  ;;  %v3851_v51 = vrot.slane %v8283_v17, 5 }
 0x373   : > { %v10212_v46 = vld [vmem:[#allocation3_spill] sm:$0xff] }
 0x374   : > { %v4303_v55 = vadd.f32 %v4236_v52, %v9388_v24  ;;  %v3852_v4 = vsel %vm8563_vm5, %v3850_v59, %v3851_v51  ;;  %v7343_v51 = vld [vmem:[%s8367_s18 + $0x180] sm:$0xee] }
 0x376   : > { %v9753_v24 = vadd.f32 %v4768_v33, %v4303_v55  ;;  %v4148_v25 = vpop.f32.mrf.mxu2  ;;  %v7358_v33 = vrot.slane %v7342_v48, 9 }
 0x378   : > { %v4683_v44 = vpop.f32.mrf.mxu0  ;;  %v3849_v10 = vsel %vm8563_vm5, %v7358_v33, %v3848_v23  ;;  %v8284_v33 = vld [vmem:[%s8367_s18 + $0x188] sm:$0xff] }
 0x379   : > { %v4237_v61 = vpop.f32.mrf.mxu3  ;;  %v4772_v2 = vpop.f32.mrf.mxu1  ;;  %v3949_v31 = vunpack.c.l.b16 %v3849_v10  ;;  %v3855_v59 = vrot.slane %v8284_v33, 5 }
 0x37a   : > { %v4238_v22 = vadd.f32 %v4237_v61, %v4148_v25  ;;  %v4773_v57 = vadd.f32 %v4772_v2, %v4683_v44  ;;  %v3951_v25 = vunpack.c.l.b16 %v3852_v4  ;;  %v3952_v61 = vunpack.c.h.b16 %v3852_v4  ;;  %v8175_v44 = vld [vmem:[%s8367_s18 + $0x184] sm:$0xf]  ;;  %v8285_v4 = vld [vmem:[%s8367_s18 + $0x190] sm:$0x11] }
 0x37b   : > { %4190 = vmatmul.bf16.gmra.mxu2 %v3983_v53  ;;  %4722 = vmatmul.bf16.gmra.mxu0 %v7627_v35  ;;  %v7634_v53 = vld [vmem:[%s8367_s18 + $0x180] sm:$0xf]  ;;  %v8176_v35 = vld [vmem:[%s8367_s18 + $0x184] sm:$0xf0] }
 0x37c   : > { %v4304_v52 = vadd.f32 %v4238_v22, %v10212_v46  ;;  %4811 = vmatmul.bf16.gmra.mxu1 %v7631_v16  ;;  %v3985_v23 = vpack.c.b16 %v3951_v25, %v3949_v31  ;;  %v7635_v2 = vor.u32 %v8176_v35, %v7634_v53 }
 0x37e   : > { %4279 = vmatmul.bf16.gmra.mxu3 %v3984_v38  ;;  %v9761_v55 = vadd.f32 %v4770_v50, %v4304_v52  ;;  %v4151_v3 = vpop.f32.mrf.mxu2  ;;  %v3950_v50 = vunpack.c.h.b16 %v3849_v10  ;;  %v7636_v38 = vld [vmem:[%s8367_s18 + $0x188] sm:$0xf0]  ;;  %v3857_v10 = vrot.slane %v3855_v59, 4 }
 0x37f   : > { %v7639_v52 = vor.u32 %v8175_v44, %v7636_v38 }
 0x380   : > { %10213 = vst [vmem:[#allocation4_spill] sm:$0xff] %v9761_v55  ;;  %v4685_v1 = vpop.f32.mrf.mxu0  ;;  %v3986_v46 = vpack.c.b16 %v3952_v61, %v3950_v50 }
 0x381   : > { %v4240_v37 = vpop.f32.mrf.mxu3  ;;  %v4774_v8 = vpop.f32.mrf.mxu1 }
 0x382   : > { %v4241_v54 = vadd.f32 %v4240_v37, %v4151_v3  ;;  %v4775_v62 = vadd.f32 %v4774_v8, %v4685_v1  ;;  %v7712_v37 = vld [vmem:[%s8367_s18 + $0x30] sm:$0xff]  ;;  %v7359_v1 = vrot.slane %v7343_v51, 9  ;;  %v3858_v8 = vrot.slane %v8285_v4, 5  ;;  %v7644_v4 = vld [vmem:[%s8367_s18 + $0x1a0] sm:$0xf0] }
 0x383   : > { %v4908_v31 = vshrl.u32 %v7712_v37, 16  ;;  %v4911_v25 = vshll.u32 %v7712_v37, 16  ;;  %v8178_v37 = vld [vmem:[%s8367_s18 + $0x19c] sm:$0xf0] }
 0x384   : > { %v4305_v14 = vadd.f32 %v4241_v54, %v9406_v9  ;;  %v9779_v54 = vld [vmem:[%s8367_s18 + $0x38] sm:$0xff]  ;;  %v3856_v38 = vsel %vm8563_vm5, %v7359_v1, %v3855_v59 }
 0x385   : > { %v4917_v50 = vshll.u32 %v9779_v54, 16  ;;  %v3953_v33 = vunpack.c.l.b16 %v3856_v38  ;;  %v3954_v51 = vunpack.c.h.b16 %v3856_v38  ;;  %v7642_v59 = vld [vmem:[%s8367_s18 + $0x198] sm:$0xf] }
 0x386   : > { %v9770_v22 = vadd.f32 %v4773_v57, %v4305_v14  ;;  %v4153_v16 = vpop.f32.mrf.mxu2 }
 0x388   : > { %10214 = vst [vmem:[#allocation5_spill] sm:$0xff] %v9770_v22  ;;  %v4688_v48 = vpop.f32.mrf.mxu0 }
 0x389   : > { %v4242_v32 = vpop.f32.mrf.mxu3  ;;  %v4777_v17 = vpop.f32.mrf.mxu1 }
 0x38a   : > { %v4243_v9 = vadd.f32 %v4242_v32, %v4153_v16  ;;  %v4778_v3 = vadd.f32 %v4777_v17, %v4688_v48  ;;  %v4910_v32 = vrot.slane %v4908_v31, 4 }
 0x38b   : > { %4195 = vmatmul.bf16.gmra.mxu2 %v3985_v23  ;;  %4727 = vmatmul.bf16.gmra.mxu0 %v7635_v2  ;;  %v4913_v23 = vrot.slane %v4911_v25, 5  ;;  %v4919_v2 = vrot.slane %v4917_v50, 5 }
 0x38c   : > { %v4306_v57 = vadd.f32 %v4243_v9, %v9416_v6  ;;  %4816 = vmatmul.bf16.gmra.mxu1 %v7639_v52  ;;  %v4921_v6 = vshrl.u32 %v9779_v54, 16  ;;  %v7714_v52 = vld [vmem:[%s8367_s18 + $0x40] sm:$0x11] }
 0x38d   : > { %v4927_v25 = vshll.u32 %v7714_v52, 16  ;;  %v5827_v55 = vrot.slane %v7714_v52, 5 }
 0x38e   : > { %4284 = vmatmul.bf16.gmra.mxu3 %v3986_v46  ;;  %v9782_v14 = vadd.f32 %v4775_v62, %v4306_v57  ;;  %v4156_v61 = vpop.f32.mrf.mxu2  ;;  %v3859_v62 = vsel %vm8563_vm5, %v3857_v10, %v3858_v8  ;;  %v4923_v9 = vrot.slane %v4921_v6, 4  ;;  %v8177_v10 = vld [vmem:[%s8367_s18 + $0x19c] sm:$0xf]  ;;  %v4914_v8 = vor.u32 %v4913_v23, %v4910_v32  ;;  %v7856_v6 = vld [vmem:[%s8367_s18 + $0x30] sm:$0xee] }
 0x38f   : > { %v3955_v17 = vunpack.c.l.b16 %v3859_v62  ;;  %v3956_v57 = vunpack.c.h.b16 %v3859_v62  ;;  %v7647_v62 = vor.u32 %v8177_v10, %v7644_v4  ;;  %v7872_v32 = vrot.slane %v7856_v6, 9 }
 0x390   : > { %10215 = vst [vmem:[#allocation2_spill] sm:$0xff] %v9782_v14  ;;  %v4690_v44 = vpop.f32.mrf.mxu0  ;;  %v4924_v31 = vor.u32 %v4923_v9, %v4919_v2  ;;  %v4929_v14 = vrot.slane %v4927_v25, 5 }
 0x391   : > { %v4245_v53 = vpop.f32.mrf.mxu3  ;;  %v4779_v16 = vpop.f32.mrf.mxu1  ;;  %v3988_v38 = vpack.c.b16 %v3956_v57, %v3954_v51 }
 0x392   : > { %v4246_v35 = vadd.f32 %v4245_v53, %v4156_v61  ;;  %v4780_v46 = vadd.f32 %v4779_v16, %v4690_v44  ;;  %v3987_v53 = vpack.c.b16 %v3955_v17, %v3953_v33  ;;  %v9803_v33 = vld [vmem:[%s8367_s18 + $0x50] sm:$0xff] }
 0x394   : > { %v4307_v48 = vadd.f32 %v4246_v35, %v9431_v47  ;;  %v5824_v47 = vrot.slane %v9779_v54, 5  ;;  %v7643_v35 = vor.u32 %v8178_v37, %v7642_v59  ;;  %v7715_v54 = vld [vmem:[%s8367_s18 + $0x48] sm:$0xff] }
 0x395   : > { %v4932_v10 = vshrl.u32 %v7715_v54, 16  ;;  %v4935_v4 = vshll.u32 %v7715_v54, 16 }
 0x396   : > { %v9794_v1 = vadd.f32 %v4778_v3, %v4307_v48  ;;  %v4158_v50 = vpop.f32.mrf.mxu2  ;;  %v4915_v48 = vrot.slane %v4914_v8, 4  ;;  %v5826_v22 = vrot.slane %v5824_v47, 4  ;;  %v4941_v8 = vshll.u32 %v9803_v33, 16 }
 0x398   : > { %10216 = vst [vmem:[#allocation3_spill] sm:$0xff] %v9794_v1  ;;  %v4693_v16 = vpop.f32.mrf.mxu0  ;;  %v4925_v1 = vrot.slane %v4924_v31, 4  ;;  %v4920_v57 = vsel %vm8558_vm4, %v4915_v48, %v4919_v2  ;;  %v5828_v52 = vsel %vm8563_vm5, %v5826_v22, %v5827_v55  ;;  %v4934_v55 = vrot.slane %v4932_v10, 4 }
 0x399   : > { %v4247_v61 = vpop.f32.mrf.mxu3  ;;  %v4782_v3 = vpop.f32.mrf.mxu1  ;;  %v4937_v22 = vrot.slane %v4935_v4, 5 }
 0x39a   : > { %v4248_v44 = vadd.f32 %v4247_v61, %v4158_v50  ;;  %v4783_v9 = vadd.f32 %v4782_v3, %v4693_v16  ;;  %v4930_v59 = vsel %vm8558_vm4, %v4925_v1, %v4929_v14  ;;  %v5324_v50 = vunpack.c.l.b16 %v4920_v57  ;;  %v7717_v3 = vld [vmem:[%s8367_s18 + $0x58] sm:$0x11] }
 0x39b   : > { %4200 = vmatmul.bf16.gmra.mxu2 %v3987_v53  ;;  %4732 = vmatmul.bf16.gmra.mxu0 %v7643_v35  ;;  %v5326_v6 = vunpack.c.l.b16 %v4930_v59  ;;  %v5325_v14 = vunpack.c.h.b16 %v4920_v57  ;;  %v5969_v53 = vunpack.c.l.b16 %v5828_v52  ;;  %v4943_v35 = vrot.slane %v4941_v8, 5 }
 0x39c   : > { %v4308_v23 = vadd.f32 %v4248_v44, %v9439_v34  ;;  %4821 = vmatmul.bf16.gmra.mxu1 %v7647_v62  ;;  %v5825_v34 = vsel %vm8563_vm5, %v7872_v32, %v5824_v47  ;;  %v5327_v16 = vunpack.c.h.b16 %v4930_v59  ;;  %v5970_v62 = vunpack.c.h.b16 %v5828_v52  ;;  %v7857_v52 = vld [vmem:[%s8367_s18 + $0x48] sm:$0xee] }
 0x39d   : > { %v5967_v61 = vunpack.c.l.b16 %v5825_v34  ;;  %v5831_v59 = vrot.slane %v9803_v33, 5 }
 0x39e   : > { %4289 = vmatmul.bf16.gmra.mxu3 %v3988_v38  ;;  %v9805_v17 = vadd.f32 %v4780_v46, %v4308_v23  ;;  %v4161_v51 = vpop.f32.mrf.mxu2  ;;  %v4945_v46 = vshrl.u32 %v9803_v33, 16  ;;  %v5968_v38 = vunpack.c.h.b16 %v5825_v34  ;;  %v5388_v23 = vpack.c.b16 %v5326_v6, %v5324_v50 }
 0x39f   : > { %v5389_v8 = vpack.c.b16 %v5327_v16, %v5325_v14  ;;  %v5833_v14 = vrot.slane %v5831_v59, 4 }
 0x3a0   : > { %v4695_v25 = vpop.f32.mrf.mxu0  ;;  %v4947_v44 = vrot.slane %v4945_v46, 4  ;;  %v6032_v46 = vpack.c.b16 %v5970_v62, %v5968_v38 }
 0x3a1   : > { %v4250_v37 = vpop.f32.mrf.mxu3  ;;  %v4784_v2 = vpop.f32.mrf.mxu1 }
 0x3a2   : > { %v4251_v31 = vadd.f32 %v4250_v37, %v4161_v51  ;;  %v4785_v47 = vadd.f32 %v4784_v2, %v4695_v25  ;;  %v4938_v51 = vor.u32 %v4937_v22, %v4934_v55  ;;  %v4948_v57 = vor.u32 %v4947_v44, %v4943_v35  ;;  %v7718_v25 = vld [vmem:[%s8367_s18 + $0x60] sm:$0xff]  ;;  %v9826_v2 = vld [vmem:[%s8367_s18 + $0x68] sm:$0xff] }
 0x3a3   : > { %v4951_v37 = vshll.u32 %v7717_v3, 16  ;;  %v4956_v33 = vshrl.u32 %v7718_v25, 16  ;;  %v4959_v22 = vshll.u32 %v7718_v25, 16  ;;  %v4969_v44 = vshrl.u32 %v9826_v2, 16 }
 0x3a4   : > { %v4309_v1 = vadd.f32 %v4251_v31, %v9448_v11  ;;  %v6031_v11 = vpack.c.b16 %v5969_v53, %v5967_v61  ;;  %v4939_v50 = vrot.slane %v4938_v51, 4  ;;  %v4949_v6 = vrot.slane %v4948_v57, 4 }
 0x3a5   : > { %v7873_v61 = vrot.slane %v7857_v52, 9  ;;  %v5834_v53 = vrot.slane %v7717_v3, 5  ;;  %v4958_v51 = vrot.slane %v4956_v33, 4  ;;  %v4961_v57 = vrot.slane %v4959_v22, 5  ;;  %v7858_v22 = vld [vmem:[%s8367_s18 + $0x60] sm:$0xee] }
 0x3a6   : > { %v9819_v48 = vadd.f32 %v4783_v9, %v4309_v1  ;;  %v4163_v32 = vpop.f32.mrf.mxu2  ;;  %v4953_v1 = vrot.slane %v4951_v37, 5  ;;  %v4944_v62 = vsel %vm8558_vm4, %v4939_v50, %v4943_v35 }
 0x3a7   : > { %v5835_v3 = vsel %vm8563_vm5, %v5833_v14, %v5834_v53  ;;  %v5329_v52 = vunpack.c.h.b16 %v4944_v62 }
 0x3a8   : > { %v4698_v4 = vpop.f32.mrf.mxu0  ;;  %v5973_v25 = vunpack.c.l.b16 %v5835_v3 }
 0x3a9   : > { %v4252_v54 = vpop.f32.mrf.mxu3  ;;  %v4787_v34 = vpop.f32.mrf.mxu1 }
 0x3aa   : > { %v4253_v10 = vadd.f32 %v4252_v54, %v4163_v32  ;;  %v4788_v31 = vadd.f32 %v4787_v34, %v4698_v4  ;;  %v4954_v54 = vsel %vm8558_vm4, %v4949_v6, %v4953_v1  ;;  %v5974_v6 = vunpack.c.h.b16 %v5835_v3 }
 0x3ab   : > { %5556 = vmatmul.bf16.vlgmr.msra.gmra.mxu2 %v5388_v23  ;;  %6199 = vmatmul.bf16.vlgmr.msra.gmra.mxu0 %v6031_v11  ;;  %v5330_v34 = vunpack.c.l.b16 %v4954_v54  ;;  %v5331_v50 = vunpack.c.h.b16 %v4954_v54 }
 0x3ac   : > { %v4310_v9 = vadd.f32 %v4253_v10, %v9462_v0  ;;  %6288 = vmatmul.bf16.vlgmr.msra.gmra.mxu1 %v6032_v46  ;;  %v4965_v0 = vshll.u32 %v9826_v2, 16  ;;  %v4971_v10 = vrot.slane %v4969_v44, 4  ;;  %v7720_v46 = vld [vmem:[%s8367_s18 + $0x70] sm:$0x11] }
 0x3ad   : > { %v4975_v53 = vshll.u32 %v7720_v46, 16 }
 0x3ae   : > { %5645 = vmatmul.bf16.vlgmr.msra.gmra.mxu3 %v5389_v8  ;;  %v9828_v55 = vadd.f32 %v4785_v47, %v4310_v9  ;;  %v4166_v16 = vpop.f32.mrf.mxu2  ;;  %v5832_v47 = vsel %vm8563_vm5, %v7873_v61, %v5831_v59  ;;  %v4967_v37 = vrot.slane %v4965_v0, 5  ;;  %v5328_v8 = vunpack.c.l.b16 %v4944_v62 }
 0x3af   : > { %v5971_v9 = vunpack.c.l.b16 %v5832_v47  ;;  %v5972_v59 = vunpack.c.h.b16 %v5832_v47  ;;  %v4962_v61 = vor.u32 %v4961_v57, %v4958_v51  ;;  %v5391_v62 = vpack.c.b16 %v5331_v50, %v5329_v52 }
 0x3b0   : > { %v4700_v23 = vpop.f32.mrf.mxu0  ;;  %v4972_v14 = vor.u32 %v4971_v10, %v4967_v37  ;;  %v5390_v44 = vpack.c.b16 %v5330_v34, %v5328_v8  ;;  %v4977_v3 = vrot.slane %v4975_v53, 5  ;;  %v9849_v8 = vld [vmem:[%s8367_s18 + $0x80] sm:$0xff] }
 0x3b1   : > { %v4255_v38 = vpop.f32.mrf.mxu3  ;;  %v4789_v11 = vpop.f32.mrf.mxu1  ;;  %v4963_v47 = vrot.slane %v4962_v61, 4  ;;  %v4989_v61 = vshll.u32 %v9849_v8, 16 }
 0x3b2   : > { %v4256_v32 = vadd.f32 %v4255_v38, %v4166_v16  ;;  %v4790_v35 = vadd.f32 %v4789_v11, %v4700_v23  ;;  %v6033_v16 = vpack.c.b16 %v5973_v25, %v5971_v9  ;;  %v6034_v23 = vpack.c.b16 %v5974_v6, %v5972_v59 }
 0x3b3   : > { %v7874_v11 = vrot.slane %v7858_v22, 9  ;;  %v4968_v9 = vsel %vm8558_vm4, %v4963_v47, %v4967_v37 }
 0x3b4   : > { %v4311_v4 = vadd.f32 %v4256_v32, %v9477_v42  ;;  %v5838_v42 = vrot.slane %v9826_v2, 5  ;;  %v7721_v2 = vld [vmem:[%s8367_s18 + $0x78] sm:$0xff] }
 0x3b5   : > { %v4980_v59 = vshrl.u32 %v7721_v2, 16  ;;  %v4983_v6 = vshll.u32 %v7721_v2, 16 }
 0x3b6   : > { %v9842_v1 = vadd.f32 %v4788_v31, %v4311_v4  ;;  %v4168_v33 = vpop.f32.mrf.mxu2  ;;  %v4973_v31 = vrot.slane %v4972_v14, 4  ;;  %v5840_v10 = vrot.slane %v5838_v42, 4  ;;  %v5841_v4 = vrot.slane %v7720_v46, 5 }
 0x3b8   : > { %v4703_v32 = vpop.f32.mrf.mxu0  ;;  %v4978_v25 = vsel %vm8558_vm4, %v4973_v31, %v4977_v3  ;;  %v5842_v46 = vsel %vm8563_vm5, %v5840_v10, %v5841_v4 }
 0x3b9   : > { %v4257_v0 = vpop.f32.mrf.mxu3  ;;  %v4792_v54 = vpop.f32.mrf.mxu1  ;;  %v5334_v22 = vunpack.c.l.b16 %v4978_v25  ;;  %v5335_v47 = vunpack.c.h.b16 %v4978_v25  ;;  %v5978_v3 = vunpack.c.h.b16 %v5842_v46  ;;  %v5845_v25 = vrot.slane %v9849_v8, 5 }
 0x3ba   : > { %v4258_v38 = vadd.f32 %v4257_v0, %v4168_v33  ;;  %v4793_v57 = vadd.f32 %v4792_v54, %v4703_v32  ;;  %v5332_v33 = vunpack.c.l.b16 %v4968_v9  ;;  %v5333_v0 = vunpack.c.h.b16 %v4968_v9 }
 0x3bb   : > { %5561 = vmatmul.bf16.gmra.mxu2 %v5390_v44  ;;  %6204 = vmatmul.bf16.gmra.mxu0 %v6033_v16  ;;  %v4982_v32 = vrot.slane %v4980_v59, 4 }
 0x3bc   : > { %v4312_v51 = vadd.f32 %v4258_v38, %v9485_v36  ;;  %6293 = vmatmul.bf16.gmra.mxu1 %v6034_v23  ;;  %v5839_v36 = vsel %vm8563_vm5, %v7874_v11, %v5838_v42  ;;  %v5977_v38 = vunpack.c.l.b16 %v5842_v46  ;;  %v4991_v23 = vrot.slane %v4989_v61, 5  ;;  %v7723_v11 = vld [vmem:[%s8367_s18 + $0x88] sm:$0x11]  ;;  %v7859_v46 = vld [vmem:[%s8367_s18 + $0x78] sm:$0xee] }
 0x3bd   : > { %v5975_v16 = vunpack.c.l.b16 %v5839_v36  ;;  %v5976_v31 = vunpack.c.h.b16 %v5839_v36  ;;  %v5392_v4 = vpack.c.b16 %v5334_v22, %v5332_v33  ;;  %v5393_v61 = vpack.c.b16 %v5335_v47, %v5333_v0 }
 0x3be   : > { %5650 = vmatmul.bf16.gmra.mxu3 %v5391_v62  ;;  %v9851_v34 = vadd.f32 %v4790_v35, %v4312_v51  ;;  %v4171_v52 = vpop.f32.mrf.mxu2  ;;  %v4993_v35 = vshrl.u32 %v9849_v8, 16  ;;  %v4985_v62 = vrot.slane %v4983_v6, 5  ;;  %v5847_v0 = vrot.slane %v5845_v25, 4 }
 0x3c0   : > { %v4705_v53 = vpop.f32.mrf.mxu0  ;;  %v4995_v54 = vrot.slane %v4993_v35, 4  ;;  %v6036_v35 = vpack.c.b16 %v5978_v3, %v5976_v31 }
 0x3c1   : > { %v4260_v50 = vpop.f32.mrf.mxu3  ;;  %v4794_v37 = vpop.f32.mrf.mxu1 }
 0x3c2   : > { %v4261_v14 = vadd.f32 %v4260_v50, %v4171_v52  ;;  %v4795_v42 = vadd.f32 %v4794_v37, %v4705_v53  ;;  %v4986_v52 = vor.u32 %v4985_v62, %v4982_v32  ;;  %v4996_v9 = vor.u32 %v4995_v54, %v4991_v23  ;;  %v7724_v53 = vld [vmem:[%s8367_s18 + $0x90] sm:$0xff]  ;;  %v9872_v37 = vld [vmem:[%s8367_s18 + $0x98] sm:$0xff] }
 0x3c3   : > { %v4999_v50 = vshll.u32 %v7723_v11, 16  ;;  %v5004_v8 = vshrl.u32 %v7724_v53, 16  ;;  %v5007_v62 = vshll.u32 %v7724_v53, 16  ;;  %v5017_v54 = vshrl.u32 %v9872_v37, 16 }
 0x3c4   : > { %v4313_v44 = vadd.f32 %v4261_v14, %v9494_v28  ;;  %v6035_v28 = vpack.c.b16 %v5977_v38, %v5975_v16  ;;  %v4987_v33 = vrot.slane %v4986_v52, 4  ;;  %v4997_v22 = vrot.slane %v4996_v9, 4 }
 0x3c5   : > { %v7875_v16 = vrot.slane %v7859_v46, 9  ;;  %v5848_v38 = vrot.slane %v7723_v11, 5  ;;  %v5006_v52 = vrot.slane %v5004_v8, 4  ;;  %v5009_v9 = vrot.slane %v5007_v62, 5  ;;  %v7860_v62 = vld [vmem:[%s8367_s18 + $0x90] sm:$0xee] }
 0x3c6   : > { %v9865_v51 = vadd.f32 %v4793_v57, %v4313_v44  ;;  %v4173_v10 = vpop.f32.mrf.mxu2  ;;  %v5001_v44 = vrot.slane %v4999_v50, 5  ;;  %v4992_v3 = vsel %vm8558_vm4, %v4987_v33, %v4991_v23 }
 0x3c7   : > { %v5849_v11 = vsel %vm8563_vm5, %v5847_v0, %v5848_v38  ;;  %v5337_v46 = vunpack.c.h.b16 %v4992_v3 }
 0x3c8   : > { %v4708_v6 = vpop.f32.mrf.mxu0  ;;  %v5981_v53 = vunpack.c.l.b16 %v5849_v11 }
 0x3c9   : > { %v4262_v2 = vpop.f32.mrf.mxu3  ;;  %v4797_v36 = vpop.f32.mrf.mxu1 }
 0x3ca   : > { %v4263_v59 = vadd.f32 %v4262_v2, %v4173_v10  ;;  %v4798_v14 = vadd.f32 %v4797_v36, %v4708_v6  ;;  %v5002_v2 = vsel %vm8558_vm4, %v4997_v22, %v5001_v44  ;;  %v5982_v22 = vunpack.c.h.b16 %v5849_v11 }
 0x3cb   : > { %5566 = vmatmul.bf16.gmra.mxu2 %v5392_v4  ;;  %6209 = vmatmul.bf16.gmra.mxu0 %v6035_v28  ;;  %v5338_v36 = vunpack.c.l.b16 %v5002_v2  ;;  %v5339_v33 = vunpack.c.h.b16 %v5002_v2 }
 0x3cc   : > { %v4314_v57 = vadd.f32 %v4263_v59, %v9508_v18  ;;  %6298 = vmatmul.bf16.gmra.mxu1 %v6036_v35  ;;  %v5013_v18 = vshll.u32 %v9872_v37, 16  ;;  %v5019_v59 = vrot.slane %v5017_v54, 4  ;;  %v7726_v35 = vld [vmem:[%s8367_s18 + $0xa0] sm:$0x11] }
 0x3cd   : > { %v5023_v38 = vshll.u32 %v7726_v35, 16 }
 0x3ce   : > { %5655 = vmatmul.bf16.gmra.mxu3 %v5393_v61  ;;  %v9874_v32 = vadd.f32 %v4795_v42, %v4314_v57  ;;  %v4176_v47 = vpop.f32.mrf.mxu2  ;;  %v5846_v42 = vsel %vm8563_vm5, %v7875_v16, %v5845_v25  ;;  %v5015_v50 = vrot.slane %v5013_v18, 5  ;;  %v5336_v61 = vunpack.c.l.b16 %v4992_v3 }
 0x3cf   : > { %v5979_v57 = vunpack.c.l.b16 %v5846_v42  ;;  %v5980_v25 = vunpack.c.h.b16 %v5846_v42  ;;  %v5010_v16 = vor.u32 %v5009_v9, %v5006_v52  ;;  %v5395_v3 = vpack.c.b16 %v5339_v33, %v5337_v46 }
 0x3d0   : > { %v4710_v4 = vpop.f32.mrf.mxu0  ;;  %v5020_v0 = vor.u32 %v5019_v59, %v5015_v50  ;;  %v5394_v54 = vpack.c.b16 %v5338_v36, %v5336_v61  ;;  %v5025_v11 = vrot.slane %v5023_v38, 5  ;;  %v9895_v61 = vld [vmem:[%s8367_s18 + $0xb0] sm:$0xff] }
 0x3d1   : > { %v4265_v31 = vpop.f32.mrf.mxu3  ;;  %v4799_v28 = vpop.f32.mrf.mxu1  ;;  %v5011_v42 = vrot.slane %v5010_v16, 4  ;;  %v5037_v16 = vshll.u32 %v9895_v61, 16 }
 0x3d2   : > { %v4266_v10 = vadd.f32 %v4265_v31, %v4176_v47  ;;  %v4800_v23 = vadd.f32 %v4799_v28, %v4710_v4  ;;  %v6037_v47 = vpack.c.b16 %v5981_v53, %v5979_v57  ;;  %v6038_v4 = vpack.c.b16 %v5982_v22, %v5980_v25 }
 0x3d3   : > { %v7876_v28 = vrot.slane %v7860_v62, 9  ;;  %v5016_v57 = vsel %vm8558_vm4, %v5011_v42, %v5015_v50 }
 0x3d4   : > { %v4315_v6 = vadd.f32 %v4266_v10, %v9523_v29  ;;  %v5852_v29 = vrot.slane %v9872_v37, 5  ;;  %v7727_v37 = vld [vmem:[%s8367_s18 + $0xa8] sm:$0xff] }
 0x3d5   : > { %v5028_v25 = vshrl.u32 %v7727_v37, 16  ;;  %v5031_v22 = vshll.u32 %v7727_v37, 16 }
 0x3d6   : > { %v9888_v44 = vadd.f32 %v4798_v14, %v4315_v6  ;;  %v4178_v8 = vpop.f32.mrf.mxu2  ;;  %v5021_v14 = vrot.slane %v5020_v0, 4  ;;  %v5854_v59 = vrot.slane %v5852_v29, 4  ;;  %v5855_v6 = vrot.slane %v7726_v35, 5 }
 0x3d8   : > { %v4713_v10 = vpop.f32.mrf.mxu0  ;;  %v5026_v53 = vsel %vm8558_vm4, %v5021_v14, %v5025_v11  ;;  %v5856_v35 = vsel %vm8563_vm5, %v5854_v59, %v5855_v6 }
 0x3d9   : > { %v4267_v18 = vpop.f32.mrf.mxu3  ;;  %v4802_v2 = vpop.f32.mrf.mxu1  ;;  %v5342_v62 = vunpack.c.l.b16 %v5026_v53  ;;  %v5343_v42 = vunpack.c.h.b16 %v5026_v53  ;;  %v5986_v11 = vunpack.c.h.b16 %v5856_v35  ;;  %v5859_v53 = vrot.slane %v9895_v61, 5 }
 0x3da   : > { %v4268_v31 = vadd.f32 %v4267_v18, %v4178_v8  ;;  %v4803_v9 = vadd.f32 %v4802_v2, %v4713_v10  ;;  %v5340_v8 = vunpack.c.l.b16 %v5016_v57  ;;  %v5341_v18 = vunpack.c.h.b16 %v5016_v57 }
 0x3db   : > { %5571 = vmatmul.bf16.gmra.mxu2 %v5394_v54  ;;  %6214 = vmatmul.bf16.gmra.mxu0 %v6037_v47  ;;  %v5030_v10 = vrot.slane %v5028_v25, 4 }
 0x3dc   : > { %v4316_v52 = vadd.f32 %v4268_v31, %v9531_v60  ;;  %6303 = vmatmul.bf16.gmra.mxu1 %v6038_v4  ;;  %v5853_v60 = vsel %vm8563_vm5, %v7876_v28, %v5852_v29  ;;  %v5985_v31 = vunpack.c.l.b16 %v5856_v35  ;;  %v5039_v4 = vrot.slane %v5037_v16, 5  ;;  %v7729_v28 = vld [vmem:[%s8367_s18 + $0xb8] sm:$0x11]  ;;  %v7861_v35 = vld [vmem:[%s8367_s18 + $0xa8] sm:$0xee] }
 0x3dd   : > { %v5983_v47 = vunpack.c.l.b16 %v5853_v60  ;;  %v5984_v14 = vunpack.c.h.b16 %v5853_v60  ;;  %v5396_v6 = vpack.c.b16 %v5342_v62, %v5340_v8  ;;  %v5397_v16 = vpack.c.b16 %v5343_v42, %v5341_v18 }
 0x3de   : > { %5660 = vmatmul.bf16.gmra.mxu3 %v5395_v3  ;;  %v9897_v36 = vadd.f32 %v4800_v23, %v4316_v52  ;;  %v4181_v46 = vpop.f32.mrf.mxu2  ;;  %v5041_v23 = vshrl.u32 %v9895_v61, 16  ;;  %v5033_v3 = vrot.slane %v5031_v22, 5  ;;  %v5861_v18 = vrot.slane %v5859_v53, 4 }
 0x3e0   : > { %v4715_v38 = vpop.f32.mrf.mxu0  ;;  %v5043_v2 = vrot.slane %v5041_v23, 4  ;;  %v6040_v23 = vpack.c.b16 %v5986_v11, %v5984_v14 }
 0x3e1   : > { %v4270_v33 = vpop.f32.mrf.mxu3  ;;  %v4804_v50 = vpop.f32.mrf.mxu1 }
 0x3e2   : > { %v4271_v0 = vadd.f32 %v4270_v33, %v4181_v46  ;;  %v4805_v29 = vadd.f32 %v4804_v50, %v4715_v38  ;;  %v5034_v46 = vor.u32 %v5033_v3, %v5030_v10  ;;  %v5044_v57 = vor.u32 %v5043_v2, %v5039_v4  ;;  %v7730_v38 = vld [vmem:[%s8367_s18 + $0xc0] sm:$0xff]  ;;  %v9918_v50 = vld [vmem:[%s8367_s18 + $0xc8] sm:$0xff] }
 0x3e3   : > { %v5047_v33 = vshll.u32 %v7729_v28, 16  ;;  %v5052_v61 = vshrl.u32 %v7730_v38, 16  ;;  %v5055_v3 = vshll.u32 %v7730_v38, 16  ;;  %v5065_v2 = vshrl.u32 %v9918_v50, 16 }
 0x3e4   : > { %v4317_v54 = vadd.f32 %v4271_v0, %v9540_v41  ;;  %v6039_v41 = vpack.c.b16 %v5985_v31, %v5983_v47  ;;  %v5035_v8 = vrot.slane %v5034_v46, 4  ;;  %v5045_v62 = vrot.slane %v5044_v57, 4 }
 0x3e5   : > { %v7877_v47 = vrot.slane %v7861_v35, 9  ;;  %v5862_v31 = vrot.slane %v7729_v28, 5  ;;  %v5054_v46 = vrot.slane %v5052_v61, 4  ;;  %v5057_v57 = vrot.slane %v5055_v3, 5  ;;  %v7862_v3 = vld [vmem:[%s8367_s18 + $0xc0] sm:$0xee] }
 0x3e6   : > { %v9911_v52 = vadd.f32 %v4803_v9, %v4317_v54  ;;  %v4183_v59 = vpop.f32.mrf.mxu2  ;;  %v5049_v54 = vrot.slane %v5047_v33, 5  ;;  %v5040_v11 = vsel %vm8558_vm4, %v5035_v8, %v5039_v4 }
 0x3e7   : > { %v5863_v28 = vsel %vm8563_vm5, %v5861_v18, %v5862_v31  ;;  %v5345_v35 = vunpack.c.h.b16 %v5040_v11 }
 0x3e8   : > { %v4718_v22 = vpop.f32.mrf.mxu0  ;;  %v5989_v38 = vunpack.c.l.b16 %v5863_v28 }
 0x3e9   : > { %v4272_v37 = vpop.f32.mrf.mxu3  ;;  %v4807_v60 = vpop.f32.mrf.mxu1 }
 0x3ea   : > { %v4273_v25 = vadd.f32 %v4272_v37, %v4183_v59  ;;  %v4808_v0 = vadd.f32 %v4807_v60, %v4718_v22  ;;  %v5050_v37 = vsel %vm8558_vm4, %v5045_v62, %v5049_v54  ;;  %v5990_v62 = vunpack.c.h.b16 %v5863_v28 }
 0x3eb   : > { %5576 = vmatmul.bf16.gmra.mxu2 %v5396_v6  ;;  %6219 = vmatmul.bf16.gmra.mxu0 %v6039_v41  ;;  %v5346_v60 = vunpack.c.l.b16 %v5050_v37  ;;  %v5347_v8 = vunpack.c.h.b16 %v5050_v37 }
 0x3ec   : > { %v4318_v9 = vadd.f32 %v4273_v25, %v9554_v19  ;;  %6308 = vmatmul.bf16.gmra.mxu1 %v6040_v23  ;;  %v5061_v19 = vshll.u32 %v9918_v50, 16  ;;  %v5067_v25 = vrot.slane %v5065_v2, 4  ;;  %v7732_v23 = vld [vmem:[%s8367_s18 + $0xd0] sm:$0x11] }
 0x3ed   : > { %v5071_v31 = vshll.u32 %v7732_v23, 16 }
 0x3ee   : > { %5665 = vmatmul.bf16.gmra.mxu3 %v5397_v16  ;;  %v9920_v10 = vadd.f32 %v4805_v29, %v4318_v9  ;;  %v4186_v42 = vpop.f32.mrf.mxu2  ;;  %v5860_v29 = vsel %vm8563_vm5, %v7877_v47, %v5859_v53  ;;  %v5063_v33 = vrot.slane %v5061_v19, 5  ;;  %v5344_v16 = vunpack.c.l.b16 %v5040_v11 }
 0x3ef   : > { %v5987_v9 = vunpack.c.l.b16 %v5860_v29  ;;  %v5988_v53 = vunpack.c.h.b16 %v5860_v29  ;;  %v5058_v47 = vor.u32 %v5057_v57, %v5054_v46  ;;  %v5399_v11 = vpack.c.b16 %v5347_v8, %v5345_v35 }
 0x3f0   : > { %v4720_v6 = vpop.f32.mrf.mxu0  ;;  %v5068_v18 = vor.u32 %v5067_v25, %v5063_v33  ;;  %v5398_v2 = vpack.c.b16 %v5346_v60, %v5344_v16  ;;  %v5073_v28 = vrot.slane %v5071_v31, 5  ;;  %v9941_v16 = vld [vmem:[%s8367_s18 + $0xe0] sm:$0xff] }
 0x3f1   : > { %v4275_v14 = vpop.f32.mrf.mxu3  ;;  %v4809_v41 = vpop.f32.mrf.mxu1  ;;  %v5059_v29 = vrot.slane %v5058_v47, 4  ;;  %v5085_v47 = vshll.u32 %v9941_v16, 16 }
 0x3f2   : > { %v4276_v59 = vadd.f32 %v4275_v14, %v4186_v42  ;;  %v4810_v4 = vadd.f32 %v4809_v41, %v4720_v6  ;;  %v6041_v42 = vpack.c.b16 %v5989_v38, %v5987_v9  ;;  %v6042_v6 = vpack.c.b16 %v5990_v62, %v5988_v53 }
 0x3f3   : > { %v7878_v41 = vrot.slane %v7862_v3, 9  ;;  %v5064_v9 = vsel %vm8558_vm4, %v5059_v29, %v5063_v33 }
 0x3f4   : > { %v4319_v22 = vadd.f32 %v4276_v59, %v9569_v39  ;;  %v5866_v39 = vrot.slane %v9918_v50, 5  ;;  %v7733_v50 = vld [vmem:[%s8367_s18 + $0xd8] sm:$0xff] }
 0x3f5   : > { %v5076_v53 = vshrl.u32 %v7733_v50, 16  ;;  %v5079_v62 = vshll.u32 %v7733_v50, 16 }
 0x3f6   : > { %v9934_v54 = vadd.f32 %v4808_v0, %v4319_v22  ;;  %v4188_v61 = vpop.f32.mrf.mxu2  ;;  %v5069_v0 = vrot.slane %v5068_v18, 4  ;;  %v5868_v25 = vrot.slane %v5866_v39, 4  ;;  %v5869_v22 = vrot.slane %v7732_v23, 5 }
 0x3f8   : > { %v4723_v59 = vpop.f32.mrf.mxu0  ;;  %v5074_v38 = vsel %vm8558_vm4, %v5069_v0, %v5073_v28  ;;  %v5870_v23 = vsel %vm8563_vm5, %v5868_v25, %v5869_v22 }
 0x3f9   : > { %v4277_v19 = vpop.f32.mrf.mxu3  ;;  %v4812_v37 = vpop.f32.mrf.mxu1  ;;  %v5350_v3 = vunpack.c.l.b16 %v5074_v38  ;;  %v5351_v29 = vunpack.c.h.b16 %v5074_v38  ;;  %v5994_v28 = vunpack.c.h.b16 %v5870_v23  ;;  %v5873_v38 = vrot.slane %v9941_v16, 5 }
 0x3fa   : > { %v4278_v14 = vadd.f32 %v4277_v19, %v4188_v61  ;;  %v4813_v57 = vadd.f32 %v4812_v37, %v4723_v59  ;;  %v5348_v61 = vunpack.c.l.b16 %v5064_v9  ;;  %v5349_v19 = vunpack.c.h.b16 %v5064_v9 }
 0x3fb   : > { %5581 = vmatmul.bf16.gmra.mxu2 %v5398_v2  ;;  %6224 = vmatmul.bf16.gmra.mxu0 %v6041_v42  ;;  %v5078_v59 = vrot.slane %v5076_v53, 4 }
 0x3fc   : > { %v4320_v46 = vadd.f32 %v4278_v14, %v9577_v27  ;;  %6313 = vmatmul.bf16.gmra.mxu1 %v6042_v6  ;;  %v5867_v27 = vsel %vm8563_vm5, %v7878_v41, %v5866_v39  ;;  %v5993_v14 = vunpack.c.l.b16 %v5870_v23  ;;  %v5087_v6 = vrot.slane %v5085_v47, 5  ;;  %v7735_v41 = vld [vmem:[%s8367_s18 + $0xe8] sm:$0x11]  ;;  %v7863_v23 = vld [vmem:[%s8367_s18 + $0xd8] sm:$0xee] }
 0x3fd   : > { %v5991_v42 = vunpack.c.l.b16 %v5867_v27  ;;  %v5992_v0 = vunpack.c.h.b16 %v5867_v27  ;;  %v5400_v22 = vpack.c.b16 %v5350_v3, %v5348_v61  ;;  %v5401_v47 = vpack.c.b16 %v5351_v29, %v5349_v19 }
 0x3fe   : > { %5670 = vmatmul.bf16.gmra.mxu3 %v5399_v11  ;;  %v9943_v60 = vadd.f32 %v4810_v4, %v4320_v46  ;;  %v4191_v35 = vpop.f32.mrf.mxu2  ;;  %v5089_v4 = vshrl.u32 %v9941_v16, 16  ;;  %v5081_v11 = vrot.slane %v5079_v62, 5  ;;  %v5875_v19 = vrot.slane %v5873_v38, 4 }
 0x400   : > { %v4725_v31 = vpop.f32.mrf.mxu0  ;;  %v5091_v37 = vrot.slane %v5089_v4, 4  ;;  %v6044_v4 = vpack.c.b16 %v5994_v28, %v5992_v0 }
 0x401   : > { %v4280_v8 = vpop.f32.mrf.mxu3  ;;  %v4814_v33 = vpop.f32.mrf.mxu1 }
 0x402   : > { %v4281_v18 = vadd.f32 %v4280_v8, %v4191_v35  ;;  %v4815_v39 = vadd.f32 %v4814_v33, %v4725_v31  ;;  %v5082_v35 = vor.u32 %v5081_v11, %v5078_v59  ;;  %v5092_v9 = vor.u32 %v5091_v37, %v5087_v6  ;;  %v7736_v31 = vld [vmem:[%s8367_s18 + $0xf0] sm:$0xff]  ;;  %v9964_v33 = vld [vmem:[%s8367_s18 + $0xf8] sm:$0xff] }
 0x403   : > { %v5095_v8 = vshll.u32 %v7735_v41, 16  ;;  %v5100_v16 = vshrl.u32 %v7736_v31, 16  ;;  %v5103_v11 = vshll.u32 %v7736_v31, 16  ;;  %v5113_v37 = vshrl.u32 %v9964_v33, 16 }
 0x404   : > { %v4321_v2 = vadd.f32 %v4281_v18, %v9586_v58  ;;  %v6043_v58 = vpack.c.b16 %v5993_v14, %v5991_v42  ;;  %v5083_v61 = vrot.slane %v5082_v35, 4  ;;  %v5093_v3 = vrot.slane %v5092_v9, 4 }
 0x405   : > { %v7879_v42 = vrot.slane %v7863_v23, 9  ;;  %v5876_v14 = vrot.slane %v7735_v41, 5  ;;  %v5102_v35 = vrot.slane %v5100_v16, 4  ;;  %v5105_v9 = vrot.slane %v5103_v11, 5  ;;  %v7864_v11 = vld [vmem:[%s8367_s18 + $0xf0] sm:$0xee] }
 0x406   : > { %v9957_v46 = vadd.f32 %v4813_v57, %v4321_v2  ;;  %v4193_v25 = vpop.f32.mrf.mxu2  ;;  %v5097_v2 = vrot.slane %v5095_v8, 5  ;;  %v5088_v28 = vsel %vm8558_vm4, %v5083_v61, %v5087_v6 }
 0x407   : > { %v5877_v41 = vsel %vm8563_vm5, %v5875_v19, %v5876_v14  ;;  %v5353_v23 = vunpack.c.h.b16 %v5088_v28 }
 0x408   : > { %v4728_v62 = vpop.f32.mrf.mxu0  ;;  %v5997_v31 = vunpack.c.l.b16 %v5877_v41 }
 0x409   : > { %v4282_v50 = vpop.f32.mrf.mxu3  ;;  %v4817_v27 = vpop.f32.mrf.mxu1 }
 0x40a   : > { %v4283_v53 = vadd.f32 %v4282_v50, %v4193_v25  ;;  %v4818_v18 = vadd.f32 %v4817_v27, %v4728_v62  ;;  %v5098_v50 = vsel %vm8558_vm4, %v5093_v3, %v5097_v2  ;;  %v5998_v3 = vunpack.c.h.b16 %v5877_v41 }
 0x40b   : > { %5586 = vmatmul.bf16.gmra.mxu2 %v5400_v22  ;;  %6229 = vmatmul.bf16.gmra.mxu0 %v6043_v58  ;;  %v5354_v27 = vunpack.c.l.b16 %v5098_v50  ;;  %v5355_v61 = vunpack.c.h.b16 %v5098_v50 }
 0x40c   : > { %v4322_v57 = vadd.f32 %v4283_v53, %v9600_v43  ;;  %6318 = vmatmul.bf16.gmra.mxu1 %v6044_v4  ;;  %v5109_v43 = vshll.u32 %v9964_v33, 16  ;;  %v5115_v53 = vrot.slane %v5113_v37, 4  ;;  %v7738_v4 = vld [vmem:[%s8367_s18 + $0x100] sm:$0x11] }
 0x40d   : > { %v5119_v14 = vshll.u32 %v7738_v4, 16 }
 0x40e   : > { %5675 = vmatmul.bf16.gmra.mxu3 %v5401_v47  ;;  %v9966_v59 = vadd.f32 %v4815_v39, %v4322_v57  ;;  %v4196_v29 = vpop.f32.mrf.mxu2  ;;  %v5874_v39 = vsel %vm8563_vm5, %v7879_v42, %v5873_v38  ;;  %v5111_v8 = vrot.slane %v5109_v43, 5  ;;  %v5352_v47 = vunpack.c.l.b16 %v5088_v28 }
 0x40f   : > { %v5995_v57 = vunpack.c.l.b16 %v5874_v39  ;;  %v5996_v38 = vunpack.c.h.b16 %v5874_v39  ;;  %v5106_v42 = vor.u32 %v5105_v9, %v5102_v35  ;;  %v5403_v28 = vpack.c.b16 %v5355_v61, %v5353_v23 }
 0x410   : > { %v4730_v22 = vpop.f32.mrf.mxu0  ;;  %v5116_v19 = vor.u32 %v5115_v53, %v5111_v8  ;;  %v5402_v37 = vpack.c.b16 %v5354_v27, %v5352_v47  ;;  %v5121_v41 = vrot.slane %v5119_v14, 5  ;;  %v9987_v47 = vld [vmem:[%s8367_s18 + $0x110] sm:$0xff] }
 0x411   : > { %v4285_v0 = vpop.f32.mrf.mxu3  ;;  %v4819_v58 = vpop.f32.mrf.mxu1  ;;  %v5107_v39 = vrot.slane %v5106_v42, 4  ;;  %v5133_v42 = vshll.u32 %v9987_v47, 16 }
 0x412   : > { %v4286_v25 = vadd.f32 %v4285_v0, %v4196_v29  ;;  %v4820_v6 = vadd.f32 %v4819_v58, %v4730_v22  ;;  %v6045_v29 = vpack.c.b16 %v5997_v31, %v5995_v57  ;;  %v6046_v22 = vpack.c.b16 %v5998_v3, %v5996_v38 }
 0x413   : > { %v7880_v58 = vrot.slane %v7864_v11, 9  ;;  %v5112_v57 = vsel %vm8558_vm4, %v5107_v39, %v5111_v8 }
 0x414   : > { %v4323_v62 = vadd.f32 %v4286_v25, %v9615_v63  ;;  %v5880_v63 = vrot.slane %v9964_v33, 5  ;;  %v7739_v33 = vld [vmem:[%s8367_s18 + $0x108] sm:$0xff] }
 0x415   : > { %v5124_v38 = vshrl.u32 %v7739_v33, 16  ;;  %v5127_v3 = vshll.u32 %v7739_v33, 16 }
 0x416   : > { %v9980_v2 = vadd.f32 %v4818_v18, %v4323_v62  ;;  %v4198_v16 = vpop.f32.mrf.mxu2  ;;  %v5117_v18 = vrot.slane %v5116_v19, 4  ;;  %v5882_v53 = vrot.slane %v5880_v63, 4  ;;  %v5883_v62 = vrot.slane %v7738_v4, 5 }
 0x418   : > { %v4733_v25 = vpop.f32.mrf.mxu0  ;;  %v5122_v31 = vsel %vm8558_vm4, %v5117_v18, %v5121_v41  ;;  %v5884_v4 = vsel %vm8563_vm5, %v5882_v53, %v5883_v62 }
 0x419   : > { %v4287_v43 = vpop.f32.mrf.mxu3  ;;  %v4822_v50 = vpop.f32.mrf.mxu1  ;;  %v5358_v11 = vunpack.c.l.b16 %v5122_v31  ;;  %v5359_v39 = vunpack.c.h.b16 %v5122_v31  ;;  %v6002_v41 = vunpack.c.h.b16 %v5884_v4  ;;  %v5887_v31 = vrot.slane %v9987_v47, 5 }
 0x41a   : > { %v4288_v0 = vadd.f32 %v4287_v43, %v4198_v16  ;;  %v4823_v9 = vadd.f32 %v4822_v50, %v4733_v25  ;;  %v5356_v16 = vunpack.c.l.b16 %v5112_v57  ;;  %v5357_v43 = vunpack.c.h.b16 %v5112_v57 }
 0x41b   : > { %5591 = vmatmul.bf16.gmra.mxu2 %v5402_v37  ;;  %6234 = vmatmul.bf16.gmra.mxu0 %v6045_v29  ;;  %v5126_v25 = vrot.slane %v5124_v38, 4 }
 0x41c   : > { %v4324_v35 = vadd.f32 %v4288_v0, %v9623_v49  ;;  %6323 = vmatmul.bf16.gmra.mxu1 %v6046_v22  ;;  %v5881_v49 = vsel %vm8563_vm5, %v7880_v58, %v5880_v63  ;;  %v6001_v0 = vunpack.c.l.b16 %v5884_v4  ;;  %v5135_v22 = vrot.slane %v5133_v42, 5  ;;  %v7741_v58 = vld [vmem:[%s8367_s18 + $0x118] sm:$0x11]  ;;  %v7865_v4 = vld [vmem:[%s8367_s18 + $0x108] sm:$0xee] }
 0x41d   : > { %v5999_v29 = vunpack.c.l.b16 %v5881_v49  ;;  %v6000_v18 = vunpack.c.h.b16 %v5881_v49  ;;  %v5404_v62 = vpack.c.b16 %v5358_v11, %v5356_v16  ;;  %v5405_v42 = vpack.c.b16 %v5359_v39, %v5357_v43 }
 0x41e   : > { %5680 = vmatmul.bf16.gmra.mxu3 %v5403_v28  ;;  %v9989_v27 = vadd.f32 %v4820_v6, %v4324_v35  ;;  %v4201_v23 = vpop.f32.mrf.mxu2  ;;  %v5137_v6 = vshrl.u32 %v9987_v47, 16  ;;  %v5129_v28 = vrot.slane %v5127_v3, 5  ;;  %v5890_v43 = vrot.slane %v7741_v58, 5 }
 0x420   : > { %v4735_v14 = vpop.f32.mrf.mxu0  ;;  %v5139_v50 = vrot.slane %v5137_v6, 4  ;;  %v6048_v6 = vpack.c.b16 %v6002_v41, %v6000_v18 }
 0x421   : > { %v4290_v61 = vpop.f32.mrf.mxu3  ;;  %v4824_v8 = vpop.f32.mrf.mxu1 }
 0x422   : > { %v4291_v19 = vadd.f32 %v4290_v61, %v4201_v23  ;;  %v4825_v63 = vadd.f32 %v4824_v8, %v4735_v14  ;;  %v5130_v23 = vor.u32 %v5129_v28, %v5126_v25  ;;  %v5140_v57 = vor.u32 %v5139_v50, %v5135_v22  ;;  %v10010_v14 = vld [vmem:[%s8367_s18 + $0x128] sm:$0xff] }
 0x423   : > { %v5143_v61 = vshll.u32 %v7741_v58, 16  ;;  %v5157_v28 = vshll.u32 %v10010_v14, 16 }
 0x424   : > { %v4325_v37 = vadd.f32 %v4291_v19, %v9632_v13  ;;  %v6047_v13 = vpack.c.b16 %v6001_v0, %v5999_v29  ;;  %v7742_v19 = vld [vmem:[%s8367_s18 + $0x120] sm:$0xff]  ;;  %v5131_v8 = vrot.slane %v5130_v23, 4  ;;  %v5141_v16 = vrot.slane %v5140_v57, 4 }
 0x425   : > { %v5145_v11 = vrot.slane %v5143_v61, 5  ;;  %v5889_v29 = vrot.slane %v5887_v31, 4  ;;  %v5148_v47 = vshrl.u32 %v7742_v19, 16  ;;  %v5151_v25 = vshll.u32 %v7742_v19, 16 }
 0x426   : > { %v10003_v35 = vadd.f32 %v4823_v9, %v4325_v37  ;;  %v4203_v53 = vpop.f32.mrf.mxu2  ;;  %v7881_v37 = vrot.slane %v7865_v4, 9  ;;  %v5136_v18 = vsel %vm8558_vm4, %v5131_v8, %v5135_v22  ;;  %v5159_v61 = vrot.slane %v5157_v28, 5 }
 0x427   : > { %v5146_v41 = vsel %vm8558_vm4, %v5141_v16, %v5145_v11  ;;  %v5150_v23 = vrot.slane %v5148_v47, 4  ;;  %v5153_v57 = vrot.slane %v5151_v25, 5  ;;  %v7866_v47 = vld [vmem:[%s8367_s18 + $0x120] sm:$0xee]  ;;  %v5894_v25 = vrot.slane %v10010_v14, 5 }
 0x428   : > { %v6200_v3 = vpop.f32.mrf.mxu0 }
 0x429   : > { %v4292_v33 = vpop.f32.mrf.mxu3  ;;  %v6289_v49 = vpop.f32.mrf.mxu1  ;;  %v5154_v11 = vor.u32 %v5153_v57, %v5150_v23  ;;  %v7882_v57 = vrot.slane %v7866_v47, 9 }
 0x42a   : > { %v4293_v38 = vadd.f32 %v4292_v33, %v4203_v53  ;;  %v6290_v53 = vadd.f32 %v6289_v49, %v6200_v3  ;;  %v5891_v33 = vsel %vm8563_vm5, %v5889_v29, %v5890_v43  ;;  %v5362_v3 = vunpack.c.l.b16 %v5146_v41 }
 0x42b   : > { %5596 = vmatmul.bf16.gmra.mxu2 %v5404_v62  ;;  %6239 = vmatmul.bf16.gmra.mxu0 %v6047_v13  ;;  %v5888_v62 = vsel %vm8563_vm5, %v7881_v37, %v5887_v31  ;;  %v5361_v49 = vunpack.c.h.b16 %v5136_v18  ;;  %v5363_v31 = vunpack.c.h.b16 %v5146_v41  ;;  %v6006_v16 = vunpack.c.h.b16 %v5891_v33 }
 0x42c   : > { %v4326_v9 = vadd.f32 %v4293_v38, %v9646_v12  ;;  %6328 = vmatmul.bf16.gmra.mxu1 %v6048_v6  ;;  %v5161_v12 = vshrl.u32 %v10010_v14, 16  ;;  %v7744_v6 = vld [vmem:[%s8367_s18 + $0x130] sm:$0x11]  ;;  %v6003_v4 = vunpack.c.l.b16 %v5888_v62  ;;  %v6004_v8 = vunpack.c.h.b16 %v5888_v62 }
 0x42d   : > { %v5407_v41 = vpack.c.b16 %v5363_v31, %v5361_v49  ;;  %v5155_v62 = vrot.slane %v5154_v11, 4  ;;  %v5897_v14 = vrot.slane %v7744_v6, 5  ;;  %v10038_v49 = vld [vmem:[%s8367_s18 + $0x140] sm:$0xff] }
 0x42e   : > { %5685 = vmatmul.bf16.gmra.mxu3 %v5405_v42  ;;  %v10012_v0 = vadd.f32 %v4825_v63, %v4326_v9  ;;  %v5557_v50 = vpop.f32.mrf.mxu2  ;;  %v5163_v38 = vrot.slane %v5161_v12, 4  ;;  %v5360_v42 = vunpack.c.l.b16 %v5136_v18  ;;  %v6005_v9 = vunpack.c.l.b16 %v5891_v33 }
 0x42f   : > { %v5181_v11 = vshll.u32 %v10038_v49, 16 }
 0x430   : > { %v6202_v63 = vpop.f32.mrf.mxu0  ;;  %v5164_v37 = vor.u32 %v5163_v38, %v5159_v61  ;;  %v5406_v12 = vpack.c.b16 %v5362_v3, %v5360_v42  ;;  %v7745_v3 = vld [vmem:[%s8367_s18 + $0x138] sm:$0xff] }
 0x431   : > { %v5646_v39 = vpop.f32.mrf.mxu3  ;;  %v6291_v13 = vpop.f32.mrf.mxu1 }
 0x432   : > { %v5647_v58 = vadd.f32 %v5646_v39, %v5557_v50  ;;  %v6049_v50 = vpack.c.b16 %v6005_v9, %v6003_v4  ;;  %v5165_v33 = vrot.slane %v5164_v37, 4  ;;  %v6292_v38 = vadd.f32 %v6291_v13, %v6202_v63 }
 0x433   : > { %v5160_v4 = vsel %vm8558_vm4, %v5155_v62, %v5159_v61  ;;  %v5185_v37 = vshrl.u32 %v10038_v49, 16  ;;  %v5183_v62 = vrot.slane %v5181_v11, 5 }
 0x434   : > { %v5726_v22 = vadd.f32 %v5647_v58, %v9661_v21  ;;  %v5167_v21 = vshll.u32 %v7744_v6, 16  ;;  %v5364_v47 = vunpack.c.l.b16 %v5160_v4 }
 0x436   : > { %v6369_v19 = vadd.f32 %v6290_v53, %v5726_v22  ;;  %v5559_v43 = vpop.f32.mrf.mxu2  ;;  %v6050_v53 = vpack.c.b16 %v6006_v16, %v6004_v8  ;;  %v5169_v23 = vrot.slane %v5167_v21, 5  ;;  %v5172_v8 = vshrl.u32 %v7745_v3, 16 }
 0x437   : > { %v5175_v16 = vshll.u32 %v7745_v3, 16 }
 0x438   : > { %v6401_v29 = vmax.f32 %v6369_v19, 0.0  ;;  %v6205_v18 = vpop.f32.mrf.mxu0  ;;  %v5896_v19 = vrot.slane %v5894_v25, 4  ;;  %v5170_v63 = vsel %vm8558_vm4, %v5165_v33, %v5169_v23  ;;  %v5187_v33 = vrot.slane %v5185_v37, 4 }
 0x439   : > { %v5648_v28 = vpop.f32.mrf.mxu3  ;;  %v6294_v58 = vpop.f32.mrf.mxu1 }
 0x43a   : > { %6433 = vst [vmem:[%s10030_s24] sm:$0xff] %v6401_v29  ;;  %v5649_v39 = vadd.f32 %v5648_v28, %v5559_v43  ;;  %v5898_v13 = vsel %vm8563_vm5, %v5896_v19, %v5897_v14  ;;  %v6295_v61 = vadd.f32 %v6294_v58, %v6205_v18  ;;  %v5366_v28 = vunpack.c.l.b16 %v5170_v63  ;;  %v7747_v58 = vld [vmem:[%s8367_s18 + $0x148] sm:$0x11] }
 0x43b   : > { %5601 = vmatmul.bf16.gmra.mxu2 %v5406_v12  ;;  %6244 = vmatmul.bf16.gmra.mxu0 %v6049_v50  ;;  %v5365_v12 = vunpack.c.h.b16 %v5160_v4  ;;  %v6010_v18 = vunpack.c.h.b16 %v5898_v13  ;;  %v5188_v4 = vor.u32 %v5187_v33, %v5183_v62 }
 0x43c   : > { %v5727_v22 = vadd.f32 %v5649_v39, %v9669_v20  ;;  %6333 = vmatmul.bf16.gmra.mxu1 %v6050_v53  ;;  %v5895_v20 = vsel %vm8563_vm5, %v7882_v57, %v5894_v25  ;;  %v6009_v39 = vunpack.c.l.b16 %v5898_v13  ;;  %v5177_v53 = vrot.slane %v5175_v16, 5  ;;  %v7867_v13 = vld [vmem:[%s8367_s18 + $0x138] sm:$0xee] }
 0x43d   : > { %v6007_v50 = vunpack.c.l.b16 %v5895_v20  ;;  %v5367_v57 = vunpack.c.h.b16 %v5170_v63  ;;  %v5408_v14 = vpack.c.b16 %v5366_v28, %v5364_v47  ;;  %v5901_v63 = vrot.slane %v10038_v49, 5 }
 0x43e   : > { %v6370_v42 = vadd.f32 %v6292_v38, %v5727_v22  ;;  %5690 = vmatmul.bf16.gmra.mxu3 %v5407_v41  ;;  %v5562_v31 = vpop.f32.mrf.mxu2  ;;  %v5174_v41 = vrot.slane %v5172_v8, 4  ;;  %v6008_v38 = vunpack.c.h.b16 %v5895_v20  ;;  %v5189_v28 = vrot.slane %v5188_v4, 4 }
 0x43f   : > { %v5409_v8 = vpack.c.b16 %v5367_v57, %v5365_v12  ;;  %v7883_v12 = vrot.slane %v7867_v13, 9  ;;  %v5904_v49 = vrot.slane %v7747_v58, 5 }
 0x440   : > { %v6402_v9 = vmax.f32 %v6370_v42, 0.0  ;;  %v6207_v29 = vpop.f32.mrf.mxu0  ;;  %v5178_v3 = vor.u32 %v5177_v53, %v5174_v41  ;;  %v6052_v16 = vpack.c.b16 %v6010_v18, %v6008_v38 }
 0x441   : > { %v5651_v6 = vpop.f32.mrf.mxu3  ;;  %v6296_v43 = vpop.f32.mrf.mxu1 }
 0x442   : > { %6434 = vst [vmem:[%s10030_s24 + $0x8] sm:$0xff] %v6402_v9  ;;  %v5652_v21 = vadd.f32 %v5651_v6, %v5562_v31  ;;  %v5191_v9 = vshll.u32 %v7747_v58, 16  ;;  %v6297_v11 = vadd.f32 %v6296_v43, %v6207_v29  ;;  %v5179_v47 = vrot.slane %v5178_v3, 4 }
 0x444   : > { %v5728_v25 = vadd.f32 %v5652_v21, %v9678_v5  ;;  %v6051_v5 = vpack.c.b16 %v6009_v39, %v6007_v50  ;;  %v10059_v21 = vld [vmem:[%s8367_s18 + $0x158] sm:$0xff]  ;;  %v5903_v39 = vrot.slane %v5901_v63, 4  ;;  %v5184_v57 = vsel %vm8558_vm4, %v5179_v47, %v5183_v62 }
 0x445   : > { %v5205_v29 = vshll.u32 %v10059_v21, 16 }
 0x446   : > { %v6371_v23 = vadd.f32 %v6295_v61, %v5728_v25  ;;  %v5564_v19 = vpop.f32.mrf.mxu2  ;;  %v7748_v61 = vld [vmem:[%s8367_s18 + $0x150] sm:$0xff]  ;;  %v5193_v25 = vrot.slane %v5191_v9, 5 }
 0x447   : > { %v5196_v41 = vshrl.u32 %v7748_v61, 16  ;;  %v5199_v53 = vshll.u32 %v7748_v61, 16  ;;  %v5207_v4 = vrot.slane %v5205_v29, 5 }
 0x448   : > { %v6403_v22 = vmax.f32 %v6371_v23, 0.0  ;;  %v6210_v6 = vpop.f32.mrf.mxu0  ;;  %v5194_v38 = vsel %vm8558_vm4, %v5189_v28, %v5193_v25 }
 0x449   : > { %v5653_v42 = vpop.f32.mrf.mxu3  ;;  %v6299_v20 = vpop.f32.mrf.mxu1  ;;  %v5201_v3 = vrot.slane %v5199_v53, 5 }
 0x44a   : > { %6435 = vst [vmem:[%s10030_s24 + $0x10] sm:$0xff] %v6403_v22  ;;  %v5654_v31 = vadd.f32 %v5653_v42, %v5564_v19  ;;  %v6300_v18 = vadd.f32 %v6299_v20, %v6210_v6  ;;  %v5902_v19 = vsel %vm8563_vm5, %v7883_v12, %v5901_v63  ;;  %v5369_v6 = vunpack.c.h.b16 %v5184_v57 }
 0x44b   : > { %5606 = vmatmul.bf16.gmra.mxu2 %v5408_v14  ;;  %6249 = vmatmul.bf16.gmra.mxu0 %v6051_v5  ;;  %v5905_v14 = vsel %vm8563_vm5, %v5903_v39, %v5904_v49  ;;  %v5198_v5 = vrot.slane %v5196_v41, 4  ;;  %v6011_v20 = vunpack.c.l.b16 %v5902_v19  ;;  %v5371_v63 = vunpack.c.h.b16 %v5194_v38  ;;  %v7868_v39 = vld [vmem:[%s8367_s18 + $0x150] sm:$0xee] }
 0x44c   : > { %v5729_v37 = vadd.f32 %v5654_v31, %v9692_v7  ;;  %6338 = vmatmul.bf16.gmra.mxu1 %v6052_v16  ;;  %v5209_v7 = vshrl.u32 %v10059_v21, 16  ;;  %v5368_v31 = vunpack.c.l.b16 %v5184_v57  ;;  %v5370_v16 = vunpack.c.l.b16 %v5194_v38 }
 0x44d   : > { %v6013_v13 = vunpack.c.l.b16 %v5905_v14  ;;  %v6014_v61 = vunpack.c.h.b16 %v5905_v14  ;;  %v5202_v47 = vor.u32 %v5201_v3, %v5198_v5 }
 0x44e   : > { %v6372_v50 = vadd.f32 %v6297_v11, %v5729_v37  ;;  %5695 = vmatmul.bf16.gmra.mxu3 %v5409_v8  ;;  %v5567_v33 = vpop.f32.mrf.mxu2  ;;  %v5211_v9 = vrot.slane %v5209_v7, 4  ;;  %v7750_v8 = vld [vmem:[%s8367_s18 + $0x160] sm:$0x11]  ;;  %v6012_v37 = vunpack.c.h.b16 %v5902_v19  ;;  %v5410_v41 = vpack.c.b16 %v5370_v16, %v5368_v31 }
 0x44f   : > { %v5215_v25 = vshll.u32 %v7750_v8, 16  ;;  %v6053_v53 = vpack.c.b16 %v6013_v13, %v6011_v20  ;;  %v5203_v57 = vrot.slane %v5202_v47, 4 }
 0x450   : > { %v6404_v43 = vmax.f32 %v6372_v50, 0.0  ;;  %v6212_v58 = vpop.f32.mrf.mxu0  ;;  %v5212_v28 = vor.u32 %v5211_v9, %v5207_v4  ;;  %v7751_v9 = vld [vmem:[%s8367_s18 + $0x168] sm:$0xff] }
 0x451   : > { %v5656_v23 = vpop.f32.mrf.mxu3  ;;  %v6301_v42 = vpop.f32.mrf.mxu1  ;;  %v5208_v31 = vsel %vm8558_vm4, %v5203_v57, %v5207_v4  ;;  %v5220_v20 = vshrl.u32 %v7751_v9, 16  ;;  %v5223_v13 = vshll.u32 %v7751_v9, 16 }
 0x452   : > { %6436 = vst [vmem:[%s10030_s24 + $0x18] sm:$0xff] %v6404_v43  ;;  %v5657_v22 = vadd.f32 %v5656_v23, %v5567_v33  ;;  %v5411_v43 = vpack.c.b16 %v5371_v63, %v5369_v6  ;;  %v6054_v33 = vpack.c.b16 %v6014_v61, %v6012_v37  ;;  %v5213_v38 = vrot.slane %v5212_v28, 4 }
 0x453   : > { %v6302_v19 = vadd.f32 %v6301_v42, %v6212_v58  ;;  %v5372_v28 = vunpack.c.l.b16 %v5208_v31 }
 0x454   : > { %v5730_v62 = vadd.f32 %v5657_v22, %v9707_v30  ;;  %v5908_v30 = vrot.slane %v10059_v21, 5  ;;  %v7884_v22 = vrot.slane %v7868_v39, 9  ;;  %v5911_v21 = vrot.slane %v7750_v8, 5 }
 0x456   : > { %v6373_v11 = vadd.f32 %v6300_v18, %v5730_v62  ;;  %v5569_v12 = vpop.f32.mrf.mxu2  ;;  %v5217_v18 = vrot.slane %v5215_v25, 5  ;;  %v5910_v5 = vrot.slane %v5908_v30, 4  ;;  %v10080_v62 = vld [vmem:[%s8367_s18 + $0x170] sm:$0xff] }
 0x457   : > { %v5233_v63 = vshrl.u32 %v10080_v62, 16 }
 0x458   : > { %v6405_v50 = vmax.f32 %v6373_v11, 0.0  ;;  %v6215_v7 = vpop.f32.mrf.mxu0  ;;  %v5218_v58 = vsel %vm8558_vm4, %v5213_v38, %v5217_v18  ;;  %v5912_v42 = vsel %vm8563_vm5, %v5910_v5, %v5911_v21  ;;  %v5229_v11 = vshll.u32 %v10080_v62, 16 }
 0x459   : > { %v5658_v49 = vpop.f32.mrf.mxu3  ;;  %v6304_v23 = vpop.f32.mrf.mxu1  ;;  %v5374_v25 = vunpack.c.l.b16 %v5218_v58 }
 0x45a   : > { %6437 = vst [vmem:[%s10030_s24 + $0x20] sm:$0xff] %v6405_v50  ;;  %v5659_v29 = vadd.f32 %v5658_v49, %v5569_v12  ;;  %v6305_v4 = vadd.f32 %v6304_v23, %v6215_v7  ;;  %v5373_v12 = vunpack.c.h.b16 %v5208_v31  ;;  %v5222_v49 = vrot.slane %v5220_v20, 4  ;;  %v7753_v23 = vld [vmem:[%s8367_s18 + $0x178] sm:$0x11]  ;;  %v7754_v20 = vld [vmem:[%s8367_s18 + $0x180] sm:$0xff] }
 0x45b   : > { %5611 = vmatmul.bf16.gmra.mxu2 %v5410_v41  ;;  %6254 = vmatmul.bf16.gmra.mxu0 %v6053_v53  ;;  %v5225_v41 = vrot.slane %v5223_v13, 5  ;;  %v5231_v53 = vrot.slane %v5229_v11, 5  ;;  %v6018_v7 = vunpack.c.h.b16 %v5912_v42  ;;  %v5239_v21 = vshll.u32 %v7753_v23, 16  ;;  %v10101_v13 = vld [vmem:[%s8367_s18 + $0x188] sm:$0xff] }
 0x45c   : > { %v5731_v14 = vadd.f32 %v5659_v29, %v9715_v26  ;;  %6343 = vmatmul.bf16.gmra.mxu1 %v6054_v33  ;;  %v5909_v26 = vsel %vm8563_vm5, %v7884_v22, %v5908_v30  ;;  %v6017_v30 = vunpack.c.l.b16 %v5912_v42  ;;  %v5235_v29 = vrot.slane %v5233_v63, 4 }
 0x45d   : > { %v6015_v39 = vunpack.c.l.b16 %v5909_v26  ;;  %v5375_v33 = vunpack.c.h.b16 %v5218_v58  ;;  %v6016_v57 = vunpack.c.h.b16 %v5909_v26  ;;  %v5412_v22 = vpack.c.b16 %v5374_v25, %v5372_v28  ;;  %v7869_v26 = vld [vmem:[%s8367_s18 + $0x168] sm:$0xee] }
 0x45e   : > { %v6374_v3 = vadd.f32 %v6302_v19, %v5731_v14  ;;  %5700 = vmatmul.bf16.gmra.mxu3 %v5411_v43  ;;  %v5572_v6 = vpop.f32.mrf.mxu2  ;;  %v5226_v14 = vor.u32 %v5225_v41, %v5222_v49  ;;  %v5236_v5 = vor.u32 %v5235_v29, %v5231_v53  ;;  %v7885_v28 = vrot.slane %v7869_v26, 9 }
 0x45f   : > { %v5413_v31 = vpack.c.b16 %v5375_v33, %v5373_v12  ;;  %v5247_v12 = vshll.u32 %v7754_v20, 16 }
 0x460   : > { %v6406_v16 = vmax.f32 %v6374_v3, 0.0  ;;  %v6217_v61 = vpop.f32.mrf.mxu0  ;;  %v5227_v11 = vrot.slane %v5226_v14, 4  ;;  %v5237_v63 = vrot.slane %v5236_v5, 4  ;;  %v7756_v14 = vld [vmem:[%s8367_s18 + $0x190] sm:$0x11] }
 0x461   : > { %v5661_v8 = vpop.f32.mrf.mxu3  ;;  %v6306_v47 = vpop.f32.mrf.mxu1 }
 0x462   : > { %6438 = vst [vmem:[%s10030_s24 + $0x28] sm:$0xff] %v6406_v16  ;;  %v5662_v37 = vadd.f32 %v5661_v8, %v5572_v6  ;;  %v6056_v16 = vpack.c.b16 %v6018_v7, %v6016_v57  ;;  %v5915_v6 = vrot.slane %v10080_v62, 5  ;;  %v6307_v42 = vadd.f32 %v6306_v47, %v6217_v61 }
 0x463   : > { %v5918_v62 = vrot.slane %v7753_v23, 5  ;;  %v5253_v61 = vshll.u32 %v10101_v13, 16  ;;  %v5232_v49 = vsel %vm8558_vm4, %v5227_v11, %v5231_v53 }
 0x464   : > { %v5732_v50 = vadd.f32 %v5662_v37, %v9724_v56  ;;  %v6055_v56 = vpack.c.b16 %v6017_v30, %v6015_v39  ;;  %v5917_v25 = vrot.slane %v5915_v6, 4  ;;  %v5916_v57 = vsel %vm8563_vm5, %v7885_v28, %v5915_v6 }
 0x465   : > { %v6020_v6 = vunpack.c.h.b16 %v5916_v57 }
 0x466   : > { %v6375_v43 = vadd.f32 %v6305_v4, %v5732_v50  ;;  %v5574_v18 = vpop.f32.mrf.mxu2  ;;  %v5241_v4 = vrot.slane %v5239_v21, 5  ;;  %v5244_v50 = vshrl.u32 %v7754_v20, 16  ;;  %v5919_v7 = vsel %vm8563_vm5, %v5917_v25, %v5918_v62 }
 0x467   : > { %v5377_v21 = vunpack.c.h.b16 %v5232_v49 }
 0x468   : > { %v6407_v38 = vmax.f32 %v6375_v43, 0.0  ;;  %v6220_v9 = vpop.f32.mrf.mxu0  ;;  %v5242_v41 = vsel %vm8558_vm4, %v5237_v63, %v5241_v4  ;;  %v7870_v63 = vld [vmem:[%s8367_s18 + $0x180] sm:$0xee] }
 0x469   : > { %v5663_v19 = vpop.f32.mrf.mxu3  ;;  %v6309_v58 = vpop.f32.mrf.mxu1  ;;  %v5378_v5 = vunpack.c.l.b16 %v5242_v41 }
 0x46a   : > { %6439 = vst [vmem:[%s10030_s24 + $0x30] sm:$0xff] %v6407_v38  ;;  %v5664_v3 = vadd.f32 %v5663_v19, %v5574_v18  ;;  %v6310_v29 = vadd.f32 %v6309_v58, %v6220_v9  ;;  %v5246_v38 = vrot.slane %v5244_v50, 4  ;;  %v5249_v18 = vrot.slane %v5247_v12, 5 }
 0x46b   : > { %5616 = vmatmul.bf16.gmra.mxu2 %v5412_v22  ;;  %6259 = vmatmul.bf16.gmra.mxu0 %v6055_v56  ;;  %v5255_v22 = vrot.slane %v5253_v61, 5  ;;  %v5376_v56 = vunpack.c.l.b16 %v5232_v49  ;;  %v6021_v9 = vunpack.c.l.b16 %v5919_v7  ;;  %v6022_v58 = vunpack.c.h.b16 %v5919_v7  ;;  %v7757_v7 = vld [vmem:[%s8367_s18 + $0x198] sm:$0xff] }
 0x46c   : > { %v5733_v8 = vadd.f32 %v5664_v3, %v9738_v15  ;;  %6348 = vmatmul.bf16.gmra.mxu1 %v6056_v16  ;;  %v5257_v15 = vshrl.u32 %v10101_v13, 16  ;;  %v6019_v3 = vunpack.c.l.b16 %v5916_v57  ;;  %v5379_v16 = vunpack.c.h.b16 %v5242_v41  ;;  %v10217_v41 = vld [vmem:[#allocation4_spill] sm:$0xff] }
 0x46d   : > { %v5250_v26 = vor.u32 %v5249_v18, %v5246_v38  ;;  %v6058_v12 = vpack.c.b16 %v6022_v58, %v6020_v6  ;;  %v10122_v38 = vld [vmem:[%s8367_s18 + $0x1a0] sm:$0xff] }
 0x46e   : > { %v6376_v37 = vadd.f32 %v6307_v42, %v5733_v8  ;;  %5705 = vmatmul.bf16.gmra.mxu3 %v5413_v31  ;;  %v5577_v39 = vpop.f32.mrf.mxu2  ;;  %v5259_v19 = vrot.slane %v5257_v15, 4  ;;  %v5263_v8 = vshll.u32 %v7756_v14, 16  ;;  %v6057_v28 = vpack.c.b16 %v6021_v9, %v6019_v3 }
 0x46f   : > { %v5415_v50 = vpack.c.b16 %v5379_v16, %v5377_v21  ;;  %v5251_v15 = vrot.slane %v5250_v26, 4  ;;  %v5271_v21 = vshll.u32 %v7757_v7, 16  ;;  %v5277_v3 = vshll.u32 %v10122_v38, 16 }
 0x470   : > { %v6408_v47 = vmax.f32 %v6376_v37, 0.0  ;;  %v6222_v33 = vpop.f32.mrf.mxu0  ;;  %v5260_v42 = vor.u32 %v5259_v19, %v5255_v22  ;;  %v5414_v37 = vpack.c.b16 %v5378_v5, %v5376_v56  ;;  %v5268_v5 = vshrl.u32 %v7757_v7, 16 }
 0x471   : > { %v5666_v30 = vpop.f32.mrf.mxu3  ;;  %v6311_v23 = vpop.f32.mrf.mxu1  ;;  %v5256_v18 = vsel %vm8558_vm4, %v5251_v15, %v5255_v22  ;;  %v5281_v9 = vshrl.u32 %v10122_v38, 16 }
 0x472   : > { %6440 = vst [vmem:[%s10030_s24 + $0x38] sm:$0xff] %v6408_v47  ;;  %v5667_v43 = vadd.f32 %v5666_v30, %v5577_v39  ;;  %v5261_v47 = vrot.slane %v5260_v42, 4  ;;  %v5265_v39 = vrot.slane %v5263_v8, 5  ;;  %v7886_v30 = vrot.slane %v7870_v63, 9  ;;  %v10218_v42 = vld [vmem:[#allocation5_spill] sm:$0xff] }
 0x473   : > { %v6312_v49 = vadd.f32 %v6311_v23, %v6222_v33  ;;  %v5380_v58 = vunpack.c.l.b16 %v5256_v18 }
 0x474   : > { %v5734_v53 = vadd.f32 %v5667_v43, %v9753_v24  ;;  %v5922_v24 = vrot.slane %v10101_v13, 5  ;;  %v5925_v13 = vrot.slane %v7756_v14, 5  ;;  %v5266_v33 = vsel %vm8558_vm4, %v5261_v47, %v5265_v39 }
 0x475   : > { %v5382_v26 = vunpack.c.l.b16 %v5266_v33 }
 0x476   : > { %v6377_v31 = vadd.f32 %v6310_v29, %v5734_v53  ;;  %v5579_v11 = vpop.f32.mrf.mxu2  ;;  %v5924_v43 = vrot.slane %v5922_v24, 4  ;;  %v5923_v23 = vsel %vm8563_vm5, %v7886_v30, %v5922_v24  ;;  %v5270_v24 = vrot.slane %v5268_v5, 4 }
 0x477   : > { %v5416_v39 = vpack.c.b16 %v5382_v26, %v5380_v58 }
 0x478   : > { %v6409_v20 = vmax.f32 %v6377_v31, 0.0  ;;  %v6225_v62 = vpop.f32.mrf.mxu0  ;;  %v5926_v56 = vsel %vm8563_vm5, %v5924_v43, %v5925_v13 }
 0x479   : > { %v5668_v4 = vpop.f32.mrf.mxu3  ;;  %v6314_v61 = vpop.f32.mrf.mxu1  ;;  %v6025_v63 = vunpack.c.l.b16 %v5926_v56 }
 0x47a   : > { %6441 = vst [vmem:[%s10030_s24 + $0x40] sm:$0xff] %v6409_v20  ;;  %v5669_v25 = vadd.f32 %v5668_v4, %v5579_v11  ;;  %v6315_v22 = vadd.f32 %v6314_v61, %v6225_v62  ;;  %v5381_v20 = vunpack.c.h.b16 %v5256_v18  ;;  %v6023_v11 = vunpack.c.l.b16 %v5923_v23  ;;  %v7759_v61 = vld [vmem:[%s8367_s18 + $0x1a8] sm:$0x11] }
 0x47b   : > { %5621 = vmatmul.bf16.gmra.mxu2 %v5414_v37  ;;  %6264 = vmatmul.bf16.gmra.mxu0 %v6057_v28  ;;  %v5273_v4 = vrot.slane %v5271_v21, 5  ;;  %v5279_v37 = vrot.slane %v5277_v3, 5  ;;  %v5283_v28 = vrot.slane %v5281_v9, 4  ;;  %v6026_v62 = vunpack.c.h.b16 %v5926_v56  ;;  %v10219_v56 = vld [vmem:[#allocation2_spill] sm:$0xff] }
 0x47c   : > { %v5735_v29 = vadd.f32 %v5669_v25, %v10217_v41  ;;  %6353 = vmatmul.bf16.gmra.mxu1 %v6058_v12  ;;  %v6024_v12 = vunpack.c.h.b16 %v5923_v23  ;;  %v5287_v43 = vshll.u32 %v7759_v61, 16  ;;  %v5932_v58 = vrot.slane %v7759_v61, 5 }
 0x47d   : > { %v5274_v41 = vor.u32 %v5273_v4, %v5270_v24 }
 0x47e   : > { %v6378_v57 = vadd.f32 %v6312_v49, %v5735_v29  ;;  %5710 = vmatmul.bf16.gmra.mxu3 %v5415_v50  ;;  %v5582_v53 = vpop.f32.mrf.mxu2  ;;  %v5383_v50 = vunpack.c.h.b16 %v5266_v33  ;;  %v6059_v49 = vpack.c.b16 %v6025_v63, %v6023_v11  ;;  %v5284_v29 = vor.u32 %v5283_v28, %v5279_v37  ;;  %v7871_v33 = vld [vmem:[%s8367_s18 + $0x198] sm:$0xee]  ;;  %v10220_v28 = vld [vmem:[#allocation3_spill] sm:$0xff] }
 0x47f   : > { %v6060_v18 = vpack.c.b16 %v6026_v62, %v6024_v12  ;;  %v5275_v5 = vrot.slane %v5274_v41, 4  ;;  %v5289_v3 = vrot.slane %v5287_v43, 5 }
 0x480   : > { %v6410_v19 = vmax.f32 %v6378_v57, 0.0  ;;  %v6227_v16 = vpop.f32.mrf.mxu0  ;;  %v5417_v7 = vpack.c.b16 %v5383_v50, %v5381_v20  ;;  %v5285_v21 = vrot.slane %v5284_v29, 4 }
 0x481   : > { %v5671_v14 = vpop.f32.mrf.mxu3  ;;  %v6316_v6 = vpop.f32.mrf.mxu1 }
 0x482   : > { %6442 = vst [vmem:[%s10030_s24 + $0x48] sm:$0xff] %v6410_v19  ;;  %v5672_v31 = vadd.f32 %v5671_v14, %v5582_v53  ;;  %v5929_v19 = vrot.slane %v10122_v38, 5  ;;  %v6317_v23 = vadd.f32 %v6316_v6, %v6227_v16  ;;  %v5280_v16 = vsel %vm8558_vm4, %v5275_v5, %v5279_v37 }
 0x483   : > { %v5290_v6 = vsel %vm8558_vm4, %v5285_v21, %v5289_v3  ;;  %v5384_v50 = vunpack.c.l.b16 %v5280_v16  ;;  %v5385_v37 = vunpack.c.h.b16 %v5280_v16 }
 0x484   : > { %v5736_v8 = vadd.f32 %v5672_v31, %v10218_v42  ;;  %v5931_v31 = vrot.slane %v5929_v19, 4  ;;  %v5386_v12 = vunpack.c.l.b16 %v5290_v6 }
 0x486   : > { %v6379_v25 = vadd.f32 %v6315_v22, %v5736_v8  ;;  %v5584_v47 = vpop.f32.mrf.mxu2  ;;  %v7887_v22 = vrot.slane %v7871_v33, 9  ;;  %v5933_v24 = vsel %vm8563_vm5, %v5931_v31, %v5932_v58  ;;  %v5418_v29 = vpack.c.b16 %v5386_v12, %v5384_v50 }
 0x487   : > { %v6029_v40 = vunpack.c.l.b16 %v5933_v24 }
 0x488   : > { %v6411_v15 = vmax.f32 %v6379_v25, 0.0  ;;  %v6230_v57 = vpop.f32.mrf.mxu0  ;;  %v5930_v63 = vsel %vm8563_vm5, %v7887_v22, %v5929_v19 }
 0x489   : > { %v5673_v30 = vpop.f32.mrf.mxu3  ;;  %v6319_v53 = vpop.f32.mrf.mxu1  ;;  %v6027_v62 = vunpack.c.l.b16 %v5930_v63 }
 0x48a   : > { %6443 = vst [vmem:[%s10030_s24 + $0x50] sm:$0xff] %v6411_v15  ;;  %v5674_v13 = vadd.f32 %v5673_v30, %v5584_v47  ;;  %v6320_v8 = vadd.f32 %v6319_v53, %v6230_v57  ;;  %v5387_v15 = vunpack.c.h.b16 %v5290_v6  ;;  %v6028_v47 = vunpack.c.h.b16 %v5930_v63 }
 0x48b   : > { %5626 = vmatmul.bf16.gmra.mxu2 %v5416_v39  ;;  %6269 = vmatmul.bf16.gmra.mxu0 %v6059_v49  ;;  %v6030_v39 = vunpack.c.h.b16 %v5933_v24  ;;  %v6061_v43 = vpack.c.b16 %v6029_v40, %v6027_v62 }
 0x48c   : > { %v5737_v14 = vadd.f32 %v5674_v13, %v10219_v56  ;;  %6358 = vmatmul.bf16.gmra.mxu1 %v6060_v18  ;;  %v5419_v57 = vpack.c.b16 %v5387_v15, %v5385_v37 }
 0x48e   : > { %v6380_v9 = vadd.f32 %v6317_v23, %v5737_v14  ;;  %5715 = vmatmul.bf16.gmra.mxu3 %v5417_v7  ;;  %v5587_v42 = vpop.f32.mrf.mxu2  ;;  %v6062_v7 = vpack.c.b16 %v6030_v39, %v6028_v47 }
 0x490   : > { %v6412_v26 = vmax.f32 %v6380_v9, 0.0  ;;  %v6232_v11 = vpop.f32.mrf.mxu0 }
 0x491   : > { %v5676_v38 = vpop.f32.mrf.mxu3  ;;  %v6321_v4 = vpop.f32.mrf.mxu1 }
 0x492   : > { %6444 = vst [vmem:[%s10030_s24 + $0x58] sm:$0xff] %v6412_v26  ;;  %v5677_v20 = vadd.f32 %v5676_v38, %v5587_v42  ;;  %v6322_v19 = vadd.f32 %v6321_v4, %v6232_v11 }
 0x494   : > { %v5738_v25 = vadd.f32 %v5677_v20, %v10220_v28 }
 0x496   : > { %v6381_v61 = vadd.f32 %v6320_v8, %v5738_v25  ;;  %v5589_v49 = vpop.f32.mrf.mxu2 }
 0x498   : > { %v6413_v30 = vmax.f32 %v6381_v61, 0.0  ;;  %v6235_v13 = vpop.f32.mrf.mxu0 }
 0x499   : > { %v5678_v41 = vpop.f32.mrf.mxu3  ;;  %v6324_v18 = vpop.f32.mrf.mxu1 }
 0x49a   : > { %6445 = vst [vmem:[%s10030_s24 + $0x60] sm:$0xff] %v6413_v30  ;;  %v5679_v45 = vadd.f32 %v5678_v41, %v5589_v49  ;;  %v6325_v5 = vadd.f32 %v6324_v18, %v6235_v13 }
 0x49b   : > { %5631 = vmatmul.bf16.gmra.mxu2 %v5418_v29  ;;  %6274 = vmatmul.bf16.gmra.mxu0 %v6061_v43 }
 0x49c   : > { %v5739_v53 = vadd.f32 %v5679_v45, %v9805_v17  ;;  %6363 = vmatmul.bf16.gmra.mxu1 %v6062_v7 }
 0x49e   : > { %v6382_v33 = vadd.f32 %v6322_v19, %v5739_v53  ;;  %5720 = vmatmul.bf16.gmra.mxu3 %v5419_v57  ;;  %v5592_v56 = vpop.f32.mrf.mxu2 }
 0x4a0   : > { %v6414_v23 = vmax.f32 %v6382_v33, 0.0  ;;  %v6237_v3 = vpop.f32.mrf.mxu0 }
 0x4a1   : > { %v5681_v14 = vpop.f32.mrf.mxu3  ;;  %v6326_v9 = vpop.f32.mrf.mxu1 }
 0x4a2   : > { %6446 = vst [vmem:[%s10030_s24 + $0x68] sm:$0xff] %v6414_v23  ;;  %v5682_v21 = vadd.f32 %v5681_v14, %v5592_v56  ;;  %v6327_v6 = vadd.f32 %v6326_v9, %v6237_v3 }
 0x4a4   : > { %v5740_v22 = vadd.f32 %v5682_v21, %v9819_v48 }
 0x4a6   : > { %v6383_v31 = vadd.f32 %v6325_v5, %v5740_v22  ;;  %v5594_v17 = vpop.f32.mrf.mxu2 }
 0x4a8   : > { %v6415_v58 = vmax.f32 %v6383_v31, 0.0  ;;  %v6240_v38 = vpop.f32.mrf.mxu0 }
 0x4a9   : > { %v5683_v26 = vpop.f32.mrf.mxu3  ;;  %v6329_v16 = vpop.f32.mrf.mxu1 }
 0x4aa   : > { %6447 = vst [vmem:[%s10030_s24 + $0x70] sm:$0xff] %v6415_v58  ;;  %v5684_v42 = vadd.f32 %v5683_v26, %v5594_v17  ;;  %v6330_v4 = vadd.f32 %v6329_v16, %v6240_v38 }
 0x4ac   : > { %v5741_v8 = vadd.f32 %v5684_v42, %v9828_v55 }
 0x4ae   : > { %v6384_v20 = vadd.f32 %v6327_v6, %v5741_v8  ;;  %v5597_v63 = vpop.f32.mrf.mxu2 }
 0x4b0   : > { %v6416_v11 = vmax.f32 %v6384_v20, 0.0  ;;  %v6242_v48 = vpop.f32.mrf.mxu0 }
 0x4b1   : > { %v5686_v24 = vpop.f32.mrf.mxu3  ;;  %v6331_v25 = vpop.f32.mrf.mxu1 }
 0x4b2   : > { %6448 = vst [vmem:[%s10030_s24 + $0x78] sm:$0xff] %v6416_v11  ;;  %v5687_v28 = vadd.f32 %v5686_v24, %v5597_v63  ;;  %v6332_v47 = vadd.f32 %v6331_v25, %v6242_v48 }
 0x4b4   : > { %v5742_v50 = vadd.f32 %v5687_v28, %v9842_v1 }
 0x4b6   : > { %v6385_v12 = vadd.f32 %v6330_v4, %v5742_v50  ;;  %v5599_v62 = vpop.f32.mrf.mxu2 }
 0x4b8   : > { %v6417_v37 = vmax.f32 %v6385_v12, 0.0  ;;  %v6245_v15 = vpop.f32.mrf.mxu0 }
 0x4b9   : > { %v5688_v40 = vpop.f32.mrf.mxu3  ;;  %v6334_v55 = vpop.f32.mrf.mxu1 }
 0x4ba   : > { %6449 = vst [vmem:[%s10030_s24 + $0x80] sm:$0xff] %v6417_v37  ;;  %v5689_v61 = vadd.f32 %v5688_v40, %v5599_v62  ;;  %v6335_v43 = vadd.f32 %v6334_v55, %v6245_v15 }
 0x4bc   : > { %v5743_v39 = vadd.f32 %v5689_v61, %v9851_v34 }
 0x4be   : > { %v6386_v30 = vadd.f32 %v6332_v47, %v5743_v39  ;;  %v5602_v41 = vpop.f32.mrf.mxu2 }
 0x4c0   : > { %v6418_v49 = vmax.f32 %v6386_v30, 0.0  ;;  %v6247_v1 = vpop.f32.mrf.mxu0 }
 0x4c1   : > { %v5691_v29 = vpop.f32.mrf.mxu3  ;;  %v6336_v13 = vpop.f32.mrf.mxu1 }
 0x4c2   : > { %6450 = vst [vmem:[%s10030_s24 + $0x88] sm:$0xff] %v6418_v49  ;;  %v5692_v45 = vadd.f32 %v5691_v29, %v5602_v41  ;;  %v6337_v56 = vadd.f32 %v6336_v13, %v6247_v1 }
 0x4c4   : > { %v5744_v57 = vadd.f32 %v5692_v45, %v9865_v51 }
 0x4c6   : > { %v6387_v7 = vadd.f32 %v6335_v43, %v5744_v57  ;;  %v5604_v19 = vpop.f32.mrf.mxu2 }
 0x4c8   : > { %v6419_v18 = vmax.f32 %v6387_v7, 0.0  ;;  %v6250_v23 = vpop.f32.mrf.mxu0 }
 0x4c9   : > { %v5693_v53 = vpop.f32.mrf.mxu3  ;;  %v6339_v34 = vpop.f32.mrf.mxu1 }
 0x4ca   : > { %6451 = vst [vmem:[%s10030_s24 + $0x90] sm:$0xff] %v6419_v18  ;;  %v5694_v33 = vadd.f32 %v5693_v53, %v5604_v19  ;;  %v6340_v22 = vadd.f32 %v6339_v34, %v6250_v23 }
 0x4cc   : > { %v5745_v14 = vadd.f32 %v5694_v33, %v9874_v32 }
 0x4ce   : > { %v6388_v5 = vadd.f32 %v6337_v56, %v5745_v14  ;;  %v5607_v3 = vpop.f32.mrf.mxu2 }
 0x4d0   : > { %v6420_v21 = vmax.f32 %v6388_v5, 0.0  ;;  %v6252_v51 = vpop.f32.mrf.mxu0 }
 0x4d1   : > { %v5696_v9 = vpop.f32.mrf.mxu3  ;;  %v6341_v58 = vpop.f32.mrf.mxu1 }
 0x4d2   : > { %6452 = vst [vmem:[%s10030_s24 + $0x98] sm:$0xff] %v6420_v21  ;;  %v5697_v31 = vadd.f32 %v5696_v9, %v5607_v3  ;;  %v6342_v20 = vadd.f32 %v6341_v58, %v6252_v51 }
 0x4d4   : > { %v5746_v17 = vadd.f32 %v5697_v31, %v9888_v44 }
 0x4d6   : > { %v6389_v26 = vadd.f32 %v6340_v22, %v5746_v17  ;;  %v5609_v38 = vpop.f32.mrf.mxu2 }
 0x4d8   : > { %v6421_v42 = vmax.f32 %v6389_v26, 0.0  ;;  %v6255_v8 = vpop.f32.mrf.mxu0 }
 0x4d9   : > { %v5698_v16 = vpop.f32.mrf.mxu3  ;;  %v6344_v32 = vpop.f32.mrf.mxu1 }
 0x4da   : > { %6453 = vst [vmem:[%s10030_s24 + $0xa0] sm:$0xff] %v6421_v42  ;;  %v5699_v6 = vadd.f32 %v5698_v16, %v5609_v38  ;;  %v6345_v48 = vadd.f32 %v6344_v32, %v6255_v8 }
 0x4dc   : > { %v5747_v11 = vadd.f32 %v5699_v6, %v9897_v36 }
 0x4de   : > { %v6390_v63 = vadd.f32 %v6342_v20, %v5747_v11  ;;  %v5612_v4 = vpop.f32.mrf.mxu2 }
 0x4e0   : > { %v6422_v24 = vmax.f32 %v6390_v63, 0.0  ;;  %v6257_v44 = vpop.f32.mrf.mxu0 }
 0x4e1   : > { %v5701_v28 = vpop.f32.mrf.mxu3  ;;  %v6346_v50 = vpop.f32.mrf.mxu1 }
 0x4e2   : > { %6454 = vst [vmem:[%s10030_s24 + $0xa8] sm:$0xff] %v6422_v24  ;;  %v5702_v25 = vadd.f32 %v5701_v28, %v5612_v4  ;;  %v6347_v47 = vadd.f32 %v6346_v50, %v6257_v44 }
 0x4e4   : > { %v5748_v12 = vadd.f32 %v5702_v25, %v9911_v52 }
 0x4e6   : > { %v6391_v37 = vadd.f32 %v6345_v48, %v5748_v12  ;;  %v5614_v40 = vpop.f32.mrf.mxu2 }
 0x4e8   : > { %v6423_v62 = vmax.f32 %v6391_v37, 0.0  ;;  %v6260_v55 = vpop.f32.mrf.mxu0 }
 0x4e9   : > { %v5703_v61 = vpop.f32.mrf.mxu3  ;;  %v6349_v36 = vpop.f32.mrf.mxu1 }
 0x4ea   : > { %6455 = vst [vmem:[%s10030_s24 + $0xb0] sm:$0xff] %v6423_v62  ;;  %v5704_v15 = vadd.f32 %v5703_v61, %v5614_v40  ;;  %v6350_v43 = vadd.f32 %v6349_v36, %v6260_v55 }
 0x4ec   : > { %v5749_v39 = vadd.f32 %v5704_v15, %v9920_v10 }
 0x4ee   : > { %v6392_v30 = vadd.f32 %v6347_v47, %v5749_v39  ;;  %v5617_v41 = vpop.f32.mrf.mxu2 }
 0x4f0   : > { %v6424_v49 = vmax.f32 %v6392_v30, 0.0  ;;  %v6262_v52 = vpop.f32.mrf.mxu0 }
 0x4f1   : > { %v5706_v29 = vpop.f32.mrf.mxu3  ;;  %v6351_v1 = vpop.f32.mrf.mxu1 }
 0x4f2   : > { %6456 = vst [vmem:[%s10030_s24 + $0xb8] sm:$0xff] %v6424_v49  ;;  %v5707_v45 = vadd.f32 %v5706_v29, %v5617_v41  ;;  %v6352_v23 = vadd.f32 %v6351_v1, %v6262_v52 }
 0x4f4   : > { %v5750_v13 = vadd.f32 %v5707_v45, %v9934_v54 }
 0x4f6   : > { %v6393_v57 = vadd.f32 %v6350_v43, %v5750_v13  ;;  %v5619_v18 = vpop.f32.mrf.mxu2 }
 0x4f8   : > { %v6425_v7 = vmax.f32 %v6393_v57, 0.0  ;;  %v6265_v33 = vpop.f32.mrf.mxu0 }
 0x4f9   : > { %v5708_v19 = vpop.f32.mrf.mxu3  ;;  %v6354_v10 = vpop.f32.mrf.mxu1 }
 0x4fa   : > { %6457 = vst [vmem:[%s10030_s24 + $0xc0] sm:$0xff] %v6425_v7  ;;  %v5709_v53 = vadd.f32 %v5708_v19, %v5619_v18  ;;  %v6355_v3 = vadd.f32 %v6354_v10, %v6265_v33 }
 0x4fc   : > { %v5751_v34 = vadd.f32 %v5709_v53, %v9943_v60 }
 0x4fe   : > { %v6394_v56 = vadd.f32 %v6352_v23, %v5751_v34  ;;  %v5622_v5 = vpop.f32.mrf.mxu2 }
 0x500   : > { %v6426_v14 = vmax.f32 %v6394_v56, 0.0  ;;  %v6267_v54 = vpop.f32.mrf.mxu0 }
 0x501   : > { %v5711_v21 = vpop.f32.mrf.mxu3  ;;  %v6356_v22 = vpop.f32.mrf.mxu1 }
 0x502   : > { %6458 = vst [vmem:[%s10030_s24 + $0xc8] sm:$0xff] %v6426_v14  ;;  %v5712_v9 = vadd.f32 %v5711_v21, %v5622_v5  ;;  %v6357_v16 = vadd.f32 %v6356_v22, %v6267_v54 }
 0x504   : > { %v5752_v31 = vadd.f32 %v5712_v9, %v9957_v46 }
 0x506   : > { %v6395_v51 = vadd.f32 %v6355_v3, %v5752_v31  ;;  %v5624_v17 = vpop.f32.mrf.mxu2 }
 0x508   : > { %v6427_v58 = vmax.f32 %v6395_v51, 0.0  ;;  %v6270_v38 = vpop.f32.mrf.mxu0 }
 0x509   : > { %v5713_v26 = vpop.f32.mrf.mxu3  ;;  %v6359_v60 = vpop.f32.mrf.mxu1 }
 0x50a   : > { %6459 = vst [vmem:[%s10030_s24 + $0xd0] sm:$0xff] %v6427_v58  ;;  %v5714_v42 = vadd.f32 %v5713_v26, %v5624_v17  ;;  %v6360_v63 = vadd.f32 %v6359_v60, %v6270_v38 }
 0x50c   : > { %v5753_v6 = vadd.f32 %v5714_v42, %v9966_v59 }
 0x50e   : > { %v6396_v8 = vadd.f32 %v6357_v16, %v5753_v6  ;;  %v5627_v20 = vpop.f32.mrf.mxu2 }
 0x510   : > { %v6428_v32 = vmax.f32 %v6396_v8, 0.0  ;;  %v6272_v4 = vpop.f32.mrf.mxu0 }
 0x511   : > { %v5716_v11 = vpop.f32.mrf.mxu3  ;;  %v6361_v28 = vpop.f32.mrf.mxu1 }
 0x512   : > { %6460 = vst [vmem:[%s10030_s24 + $0xd8] sm:$0xff] %v6428_v32  ;;  %v5717_v24 = vadd.f32 %v5716_v11, %v5627_v20  ;;  %v6362_v37 = vadd.f32 %v6361_v28, %v6272_v4 }
 0x514   : > { %v5754_v46 = vadd.f32 %v5717_v24, %v9980_v2 }
 0x516   : > { %v6397_v48 = vadd.f32 %v6360_v63, %v5754_v46  ;;  %v5629_v44 = vpop.f32.mrf.mxu2 }
 0x518   : > { %v6429_v25 = vmax.f32 %v6397_v48, 0.0  ;;  %v6275_v40 = vpop.f32.mrf.mxu0 }
 0x519   : > { %v5718_v50 = vpop.f32.mrf.mxu3  ;;  %v6364_v61 = vpop.f32.mrf.mxu1 }
 0x51a   : > { %6461 = vst [vmem:[%s10030_s24 + $0xe0] sm:$0xff] %v6429_v25  ;;  %v5719_v12 = vadd.f32 %v5718_v50, %v5629_v44  ;;  %v6365_v2 = vadd.f32 %v6364_v61, %v6275_v40 }
 0x51c   : > { %v5755_v59 = vadd.f32 %v5719_v12, %v9989_v27 }
 0x51e   : > { %v6398_v62 = vadd.f32 %v6362_v37, %v5755_v59  ;;  %v5632_v55 = vpop.f32.mrf.mxu2 }
 0x520   : > { %v6430_v15 = vmax.f32 %v6398_v62, 0.0  ;;  %v6277_v41 = vpop.f32.mrf.mxu0 }
 0x521   : > { %v5721_v36 = vpop.f32.mrf.mxu3  ;;  %v6366_v43 = vpop.f32.mrf.mxu1 }
 0x522   : > { %6462 = vst [vmem:[%s10030_s24 + $0xe8] sm:$0xff] %v6430_v15  ;;  %v5722_v47 = vadd.f32 %v5721_v36, %v5632_v55  ;;  %v6367_v52 = vadd.f32 %v6366_v43, %v6277_v41 }
 0x524   : > { %v5756_v39 = vadd.f32 %v5722_v47, %v10003_v35 }
 0x526   : > { %v6399_v30 = vadd.f32 %v6365_v2, %v5756_v39  ;;  %v5634_v29 = vpop.f32.mrf.mxu2 }
 0x528   : > { %v6431_v49 = vmax.f32 %v6399_v30, 0.0 }
 0x529   : > { %v5723_v45 = vpop.f32.mrf.mxu3 }
 0x52a   : > { %6463 = vst [vmem:[%s10030_s24 + $0xf0] sm:$0xff] %v6431_v49  ;;  %v5724_v27 = vadd.f32 %v5723_v45, %v5634_v29 }
 0x52c   : > { %v5757_v1 = vadd.f32 %v5724_v27, %v10012_v0 }
 0x52e   : > { %v6400_v13 = vadd.f32 %v6367_v52, %v5757_v1 }
 0x530   : > { %v6432_v57 = vmax.f32 %v6400_v13, 0.0 }
 0x532   : > { %6464 = vst [vmem:[%s10030_s24 + $0xf8] sm:$0xff] %v6432_v57 }
 0x533 PF: > { %s13_s12 = sadd.s32 1, %s8292_s12  }
 0x534   : > { %p10_p4 = scmp.ge.s32.totalorder %s13_s12, 4  }
 0x536   :  { %12 = sbr.rel (!%p10_p4) target bundleno = 1 (0x1), region = 72 }

</bundles_post_ra>
